<compile_context>
chip_gen: v7x
topology: tpu7x:2x2x1
jax: 0.10.0
libtpu: 0.0.40
codegen_flags: <defaults>
</compile_context>

<pallas_src>
import math
from math import sqrt
from functools import partial

import jax
import jax.numpy as jnp
from jax import lax
from jax.experimental import pallas as pl
from jax.experimental.pallas import tpu as pltpu

# ----- anchors (same logic as the PyTorch file) -----
anchor_ratios = [1, 2, 0.5]
anchors_sizes = [128, 256, 512]


def generate_anchors():
    for size in anchors_sizes:
        for ratio in anchor_ratios:
            w = sqrt(size ** 2 / ratio)
            h = size ** 2 / w
            yield (int(w), int(h))


anchors = list(generate_anchors())
K = len(anchors)  # 9 -> second conv has 6 * K = 54 output channels


def _round_up(v, m):
    return ((v + m - 1) // m) * m


# ----- Pallas kernel: whole RPN head (whole batch folded into M) -----
def _rpn_head_kernel(x_ref, w1_ref, b1_ref, w2_ref, b2_ref, o_ref, xf_ref, *,
                     n, W, HWp, HoW, N, impl):
    # x_ref : (N*HWp, Cin)        bf16  flattened NHWC batch slab (zero row pad)
    # w1_ref: (n*n*Cin, Cmid_p)   bf16  im2col-ordered conv3x3 weights
    # b1_ref: (1, Cmid_p)         f32   (padded lanes are zero)
    # w2_ref: (Cmid_p, Cout_p)    bf16  1x1 conv as matmul (padded rows zero)
    # b2_ref: (1, Cout_p)         f32
    # o_ref : (N, HoW, Cout_p)    f32   lane-dense slab (cropped by wrapper)
    # xf_ref: (N*HWp, Cin)        f32   scratch copy used for patch building
    cin = x_ref.shape[-1]
    M = (N - 1) * HWp + HoW            # rows covering every valid output row

    # One cast into the f32 scratch; all tap slices read the 32-bit copy so
    # the dx=1,2 (sublane-unaligned) offsets hit the proven 32-bit relayout
    # path instead of a packed-bf16 one.
    xf_ref[...] = x_ref[...].astype(jnp.float32)

    if impl == "im2col":
        # conv3x3 (valid) as ONE K = n*n*Cin matmul.
        cols = []
        for dy in range(n):
            for dx in range(n):
                off = dy * W + dx                       # static tap offset
                cols.append(xf_ref[off:off + M, :])     # (M, Cin)
        patch = jnp.concatenate(cols, axis=-1).astype(jnp.bfloat16)  # (M, 9*Cin)
        acc = jnp.dot(patch, w1_ref[...], preferred_element_type=jnp.float32)
    else:
        # "taps": per-tap K=Cin matmuls -- lowering-safe fallback path.
        acc = jnp.zeros((M, b1_ref.shape[-1]), jnp.float32)
        for t in range(n * n):
            dy, dx = divmod(t, n)
            piece = xf_ref[dy * W + dx:dy * W + dx + M, :].astype(jnp.bfloat16)
            acc = acc + jnp.dot(piece, w1_ref[t * cin:(t + 1) * cin, :],
                                preferred_element_type=jnp.float32)

    # bias + ReLU on the lane-dense f32 accumulator (broadcast once).
    acc = jnp.maximum(acc + b1_ref[...], 0.0)

    # 1x1 conv: K = Cmid_p matmul + bias over the whole batch slab.
    out = jnp.dot(acc.astype(jnp.bfloat16), w2_ref[...],
                  preferred_element_type=jnp.float32)
    out = out + b2_ref[...]

    # Per-image lane-dense stores (aligned: HWp and HoW are multiples of 16).
    for b in range(N):
        o_ref[b] = out[b * HWp:b * HWp + HoW, :].astype(o_ref.dtype)


# ----- parameter packing (PyTorch layouts -> kernel-ready padded bf16) -----
def prepare_params(w1_oihw, b1, w2_oihw, b2):
    Cmid, Cin, kh, kw = w1_oihw.shape
    Cout = w2_oihw.shape[0]
    Cmid_p = _round_up(Cmid, 128)
    Cout_p = _round_up(Cout, 128)
    # (O,I,kh,kw) -> (kh,kw,I,O) -> (kh*kw*I, O): row index (dy*kw+dx)*Cin + c
    # matches the kernel's im2col patch column order.
    w1_mat = jnp.transpose(w1_oihw, (2, 3, 1, 0)).reshape(kh * kw * Cin, Cmid)
    w1_mat = jnp.pad(w1_mat, ((0, 0), (0, Cmid_p - Cmid))).astype(jnp.bfloat16)
    b1_p = jnp.pad(b1, ((0, Cmid_p - Cmid),)).reshape(1, Cmid_p).astype(jnp.float32)
    w2_mat = jnp.transpose(w2_oihw[:, :, 0, 0], (1, 0))           # (Cmid, Cout)
    w2_mat = jnp.pad(w2_mat, ((0, Cmid_p - Cmid),
                              (0, Cout_p - Cout))).astype(jnp.bfloat16)
    b2_p = jnp.pad(b2, ((0, Cout_p - Cout),)).reshape(1, Cout_p).astype(jnp.float32)
    return w1_mat, b1_p, w2_mat, b2_p


# ----- forward (NHWC-native core + thin NCHW adapter for the PyTorch API) ---
@partial(jax.jit, static_argnames=("n", "cout", "impl"))
def rpn_head_forward_nhwc(x_nhwc, w1_mat, b1_p, w2_mat, b2_p, *,
                          n=3, cout=6 * K, impl="im2col"):
    """x_nhwc: (N, H, W, Cin) -> (N, Ho, Wo, cout); conv3x3 valid -> ReLU -> 1x1."""
    N, H, W, Cin = x_nhwc.shape
    Cmid_p = w1_mat.shape[-1]
    Cout_p = w2_mat.shape[-1]
    Ho, Wo = H - n + 1, W - n + 1
    HoW = Ho * W
    # Per-image stride: multiple of 16 (bf16 sublane packing) and >= H*W + n-1
    # so every tap read stays inside each image's own zero-padded region.
    HWp = _round_up(H * W + n - 1, 16)

    x_flat = x_nhwc.reshape(N, H * W, Cin).astype(jnp.bfloat16)
    x_flat = jnp.pad(x_flat, ((0, 0), (0, HWp - H * W), (0, 0)))
    x_slab = x_flat.reshape(N * HWp, Cin)

    kernel = partial(_rpn_head_kernel, n=n, W=W, HWp=HWp, HoW=HoW, N=N, impl=impl)

    out_slab = pl.pallas_call(
        kernel,
        out_shape=jax.ShapeDtypeStruct((N, HoW, Cout_p), jnp.float32),
        grid=(1,),
        in_specs=[
            pl.BlockSpec(x_slab.shape, lambda i: (0, 0)),
            pl.BlockSpec(w1_mat.shape, lambda i: (0, 0)),
            pl.BlockSpec(b1_p.shape, lambda i: (0, 0)),
            pl.BlockSpec(w2_mat.shape, lambda i: (0, 0)),
            pl.BlockSpec(b2_p.shape, lambda i: (0, 0)),
        ],
        out_specs=pl.BlockSpec((N, HoW, Cout_p), lambda i: (0, 0, 0)),
        scratch_shapes=[pltpu.VMEM((N * HWp, Cin), jnp.float32)],
        compiler_params=pltpu.CompilerParams(
            dimension_semantics=("arbitrary",)),
    )(x_slab, w1_mat, b1_p, w2_mat, b2_p)

    # (N, Ho*W, Cout_p) -> (N, Ho, W, Cout_p): crop the w >= Wo garbage
    # columns and the channel pad.
    return out_slab.reshape(N, Ho, W, Cout_p)[:, :, :Wo, :cout]


def rpn_head_forward(x_nchw, w1_mat, b1_p, w2_mat, b2_p, *, n=3, impl="im2col"):
    """PyTorch-interface adapter: (N, Cin, H, W) f32 -> (N, 6*K, Ho, Wo) f32."""
    x_nhwc = jnp.transpose(x_nchw, (0, 2, 3, 1))
    y = rpn_head_forward_nhwc(x_nhwc, w1_mat, b1_p, w2_mat, b2_p,
                              n=n, cout=6 * K, impl=impl)
    return jnp.transpose(y, (0, 3, 1, 2))


# ----- deterministic parameter init (mirrors RPNHead._initialize_weights) ---
def init_params(key, input_features, n, k):
    cmid = input_features
    cout = 6 * k
    k1, k2 = jax.random.split(key)
    std1 = math.sqrt(2.0 / (n * n * cmid))
    w1_oihw = std1 * jax.random.normal(k1, (cmid, input_features, n, n), jnp.float32)
    b1 = jnp.zeros((cmid,), jnp.float32)
    std2 = math.sqrt(2.0 / (1 * 1 * cout))
    w2_oihw = std2 * jax.random.normal(k2, (cout, cmid, 1, 1), jnp.float32)
    b2 = jnp.zeros((cout,), jnp.float32)
    return w1_oihw, b1, w2_oihw, b2


def reference_forward(x_nchw, w1_oihw, b1, w2_oihw, b2):
    """Plain-XLA f32 reference matching PyTorch nn.Conv2d semantics (NCHW, valid)."""
    dn = ("NCHW", "OIHW", "NCHW")
    y = lax.conv_general_dilated(x_nchw, w1_oihw, (1, 1), "VALID",
                                 dimension_numbers=dn)
    y = jnp.maximum(y + b1.reshape(1, -1, 1, 1), 0.0)
    y = lax.conv_general_dilated(y, w2_oihw, (1, 1), "VALID",
                                 dimension_numbers=dn)
    return y + b2.reshape(1, -1, 1, 1)


if __name__ == "__main__":
    # Small shapes consistent with the module: batch=2, input_features=32, spatial=16.
    N, Cin, H, W = 2, 32, 16, 16
    n = 3
    key = jax.random.PRNGKey(0)
    kx, kp = jax.random.split(key)
    x = jax.random.normal(kx, (N, Cin, H, W), jnp.float32)

    w1_oihw, b1, w2_oihw, b2 = init_params(kp, Cin, n, K)
    params = prepare_params(w1_oihw, b1, w2_oihw, b2)

    out = None
    try:
        out = jax.block_until_ready(rpn_head_forward(x, *params, n=n, impl="im2col"))
    except Exception:
        out = None
    if out is None:
        # Safety net: fall back to the previously-validated per-tap matmul body
        # if the im2col concatenate does not lower on this toolchain.
        out = jax.block_until_ready(rpn_head_forward(x, *params, n=n, impl="taps"))

    assert out.shape == (N, 6 * K, H - n + 1, W - n + 1), out.shape

    # The kernel feeds the MXU with bf16 operands (f32 accumulation), so the
    # apples-to-apples check is the f32 reference applied to bf16-rounded
    # operands; the residual difference is only accumulation order plus the
    # bf16 cast of the ReLU activations in front of the 1x1 matmul.
    bf = lambda a: a.astype(jnp.bfloat16).astype(jnp.float32)
    ref = jax.block_until_ready(
        reference_forward(bf(x), bf(w1_oihw), b1, bf(w2_oihw), b2))

    if not bool(jnp.allclose(out, ref, rtol=2e-2, atol=3e-2)):
        raise AssertionError("Pallas kernel output does not match reference")

    print("KERNEL_OK")
</pallas_src>

<mosaic_0001>
module attributes {stable_mosaic.version = 11 : i64} {
  func.func @_rpn_head_kernel(%arg0: i32, %arg1: memref<544x32xbf16, #tpu.memory_space<vmem>>, %arg2: memref<288x128xbf16, #tpu.memory_space<vmem>>, %arg3: memref<1x128xf32, #tpu.memory_space<vmem>>, %arg4: memref<128x128xbf16, #tpu.memory_space<vmem>>, %arg5: memref<1x128xf32, #tpu.memory_space<vmem>>, %arg6: memref<2x224x128xf32, #tpu.memory_space<vmem>>, %arg7: memref<544x32xf32, #tpu.memory_space<vmem>>) attributes {dimension_semantics = [#tpu.dimension_semantics<arbitrary>], iteration_bounds = array<i64: 1>, scalar_prefetch = 0 : i64, scratch_operands = 1 : i64, tpu.core_type = #tpu.core_type<tc>, window_params = [{pipeline_mode = #tpu.pipeline_mode<synchronous>, transform_indices = @transform_0, window_bounds = array<i64: 544, 32>}, {pipeline_mode = #tpu.pipeline_mode<synchronous>, transform_indices = @transform_1, window_bounds = array<i64: 288, 128>}, {pipeline_mode = #tpu.pipeline_mode<synchronous>, transform_indices = @transform_2, window_bounds = array<i64: 1, 128>}, {pipeline_mode = #tpu.pipeline_mode<synchronous>, transform_indices = @transform_3, window_bounds = array<i64: 128, 128>}, {pipeline_mode = #tpu.pipeline_mode<synchronous>, transform_indices = @transform_4, window_bounds = array<i64: 1, 128>}, {pipeline_mode = #tpu.pipeline_mode<synchronous>, transform_indices = @transform_5, window_bounds = array<i64: 2, 224, 128>}]} {
    %c0 = arith.constant 0 : index
    %c0_0 = arith.constant 0 : index
    %0 = vector.load %arg1[%c0, %c0_0] : memref<544x32xbf16, #tpu.memory_space<vmem>>, vector<544x32xbf16>
    %1 = arith.extf %0 : vector<544x32xbf16> to vector<544x32xf32>
    %c0_1 = arith.constant 0 : index
    %c0_2 = arith.constant 0 : index
    %2 = vector.load %arg7[%c0_1, %c0_2] : memref<544x32xf32, #tpu.memory_space<vmem>>, vector<544x32xf32>
    tpu.vector_store %arg7[%c0_1, %c0_2], %1 {strides = array<i32>} : memref<544x32xf32, #tpu.memory_space<vmem>>, vector<544x32xf32>,
    %c0_3 = arith.constant 0 : index
    %c0_4 = arith.constant 0 : index
    %3 = vector.load %arg7[%c0_3, %c0_4] : memref<544x32xf32, #tpu.memory_space<vmem>>, vector<496x32xf32>
    %c1 = arith.constant 1 : index
    %c0_5 = arith.constant 0 : index
    %4 = vector.load %arg7[%c1, %c0_5] : memref<544x32xf32, #tpu.memory_space<vmem>>, vector<496x32xf32>
    %c2 = arith.constant 2 : index
    %c0_6 = arith.constant 0 : index
    %5 = vector.load %arg7[%c2, %c0_6] : memref<544x32xf32, #tpu.memory_space<vmem>>, vector<496x32xf32>
    %c16 = arith.constant 16 : index
    %c0_7 = arith.constant 0 : index
    %6 = vector.load %arg7[%c16, %c0_7] : memref<544x32xf32, #tpu.memory_space<vmem>>, vector<496x32xf32>
    %c17 = arith.constant 17 : index
    %c0_8 = arith.constant 0 : index
    %7 = vector.load %arg7[%c17, %c0_8] : memref<544x32xf32, #tpu.memory_space<vmem>>, vector<496x32xf32>
    %c18 = arith.constant 18 : index
    %c0_9 = arith.constant 0 : index
    %8 = vector.load %arg7[%c18, %c0_9] : memref<544x32xf32, #tpu.memory_space<vmem>>, vector<496x32xf32>
    %c32 = arith.constant 32 : index
    %c0_10 = arith.constant 0 : index
    %9 = vector.load %arg7[%c32, %c0_10] : memref<544x32xf32, #tpu.memory_space<vmem>>, vector<496x32xf32>
    %c33 = arith.constant 33 : index
    %c0_11 = arith.constant 0 : index
    %10 = vector.load %arg7[%c33, %c0_11] : memref<544x32xf32, #tpu.memory_space<vmem>>, vector<496x32xf32>
    %c34 = arith.constant 34 : index
    %c0_12 = arith.constant 0 : index
    %11 = vector.load %arg7[%c34, %c0_12] : memref<544x32xf32, #tpu.memory_space<vmem>>, vector<496x32xf32>
    %12 = tpu.concatenate %3, %4, %5, %6, %7, %8, %9, %10, %11 in 1 : vector<496x32xf32>, vector<496x32xf32>, vector<496x32xf32>, vector<496x32xf32>, vector<496x32xf32>, vector<496x32xf32>, vector<496x32xf32>, vector<496x32xf32>, vector<496x32xf32> -> vector<496x288xf32>
    %13 = arith.truncf %12 : vector<496x288xf32> to vector<496x288xbf16>
    %c0_13 = arith.constant 0 : index
    %c0_14 = arith.constant 0 : index
    %14 = vector.load %arg2[%c0_13, %c0_14] : memref<288x128xbf16, #tpu.memory_space<vmem>>, vector<288x128xbf16>
    %cst = arith.constant dense<0.000000e+00> : vector<496x128xf32>
    %15 = tpu.matmul %13, %14, %cst {dimension_numbers = #tpu.dot_dimension_numbers<[1], [0], [0], [1], [0, 0, 1, 1], [], []>} : vector<496x288xbf16>, vector<288x128xbf16>, vector<496x128xf32> -> vector<496x128xf32>
    %c0_15 = arith.constant 0 : index
    %c0_16 = arith.constant 0 : index
    %16 = vector.load %arg3[%c0_15, %c0_16] : memref<1x128xf32, #tpu.memory_space<vmem>>, vector<1x128xf32>
    %17 = vector.broadcast %16 : vector<1x128xf32> to vector<496x128xf32>
    %18 = arith.addf %15, %17 : vector<496x128xf32>
    %cst_17 = arith.constant 0.000000e+00 : f32
    %19 = vector.broadcast %cst_17 : f32 to vector<496x128xf32>
    %20 = arith.maximumf %18, %19 : vector<496x128xf32>
    %21 = arith.truncf %20 : vector<496x128xf32> to vector<496x128xbf16>
    %c0_18 = arith.constant 0 : index
    %c0_19 = arith.constant 0 : index
    %22 = vector.load %arg4[%c0_18, %c0_19] : memref<128x128xbf16, #tpu.memory_space<vmem>>, vector<128x128xbf16>
    %cst_20 = arith.constant dense<0.000000e+00> : vector<496x128xf32>
    %23 = tpu.matmul %21, %22, %cst_20 {dimension_numbers = #tpu.dot_dimension_numbers<[1], [0], [0], [1], [0, 0, 1, 1], [], []>} : vector<496x128xbf16>, vector<128x128xbf16>, vector<496x128xf32> -> vector<496x128xf32>
    %c0_21 = arith.constant 0 : index
    %c0_22 = arith.constant 0 : index
    %24 = vector.load %arg5[%c0_21, %c0_22] : memref<1x128xf32, #tpu.memory_space<vmem>>, vector<1x128xf32>
    %25 = vector.broadcast %24 : vector<1x128xf32> to vector<496x128xf32>
    %26 = arith.addf %23, %25 : vector<496x128xf32>
    %27 = vector.extract_strided_slice %26 {offsets = [0, 0], sizes = [224, 128], strides = [1, 1]} : vector<496x128xf32> to vector<224x128xf32>
    %c0_23 = arith.constant 0 : index
    %c0_24 = arith.constant 0 : index
    %c0_25 = arith.constant 0 : index
    %28 = vector.load %arg6[%c0_23, %c0_24, %c0_25] : memref<2x224x128xf32, #tpu.memory_space<vmem>>, vector<1x224x128xf32>
    %29 = vector.shape_cast %28 : vector<1x224x128xf32> to vector<224x128xf32>
    %30 = vector.shape_cast %27 : vector<224x128xf32> to vector<1x224x128xf32>
    tpu.vector_store %arg6[%c0_23, %c0_24, %c0_25], %30 {strides = array<i32>} : memref<2x224x128xf32, #tpu.memory_space<vmem>>, vector<1x224x128xf32>,
    %31 = vector.extract_strided_slice %26 {offsets = [272, 0], sizes = [224, 128], strides = [1, 1]} : vector<496x128xf32> to vector<224x128xf32>
    %c1_26 = arith.constant 1 : index
    %c0_27 = arith.constant 0 : index
    %c0_28 = arith.constant 0 : index
    %32 = vector.load %arg6[%c1_26, %c0_27, %c0_28] : memref<2x224x128xf32, #tpu.memory_space<vmem>>, vector<1x224x128xf32>
    %33 = vector.shape_cast %32 : vector<1x224x128xf32> to vector<224x128xf32>
    %34 = vector.shape_cast %31 : vector<224x128xf32> to vector<1x224x128xf32>
    tpu.vector_store %arg6[%c1_26, %c0_27, %c0_28], %34 {strides = array<i32>} : memref<2x224x128xf32, #tpu.memory_space<vmem>>, vector<1x224x128xf32>,
    return
  }
  func.func @transform_0(%arg0: i32) -> (i32, i32) {
    %c0_i32 = arith.constant 0 : i32
    %c0_i32_0 = arith.constant 0 : i32
    %c0_i32_1 = arith.constant 0 : i32
    return %c0_i32, %c0_i32_0 : i32, i32
  }
  func.func @transform_1(%arg0: i32) -> (i32, i32) {
    %c0_i32 = arith.constant 0 : i32
    %c0_i32_0 = arith.constant 0 : i32
    %c0_i32_1 = arith.constant 0 : i32
    return %c0_i32, %c0_i32_0 : i32, i32
  }
  func.func @transform_2(%arg0: i32) -> (i32, i32) {
    %c0_i32 = arith.constant 0 : i32
    %c0_i32_0 = arith.constant 0 : i32
    %c0_i32_1 = arith.constant 0 : i32
    return %c0_i32, %c0_i32_0 : i32, i32
  }
  func.func @transform_3(%arg0: i32) -> (i32, i32) {
    %c0_i32 = arith.constant 0 : i32
    %c0_i32_0 = arith.constant 0 : i32
    %c0_i32_1 = arith.constant 0 : i32
    return %c0_i32, %c0_i32_0 : i32, i32
  }
  func.func @transform_4(%arg0: i32) -> (i32, i32) {
    %c0_i32 = arith.constant 0 : i32
    %c0_i32_0 = arith.constant 0 : i32
    %c0_i32_1 = arith.constant 0 : i32
    return %c0_i32, %c0_i32_0 : i32, i32
  }
  func.func @transform_5(%arg0: i32) -> (i32, i32, i32) {
    %c0_i32 = arith.constant 0 : i32
    %c0_i32_0 = arith.constant 0 : i32
    %c0_i32_1 = arith.constant 0 : i32
    %c0_i32_2 = arith.constant 0 : i32
    return %c0_i32, %c0_i32_0, %c0_i32_1 : i32, i32, i32
  }
}

module attributes {stable_mosaic.version = 11 : i64} {
  func.func @_rpn_head_kernel(%arg0: i32, %arg1: memref<544x32xbf16, #tpu.memory_space<vmem>>, %arg2: memref<288x128xbf16, #tpu.memory_space<vmem>>, %arg3: memref<1x128xf32, #tpu.memory_space<vmem>>, %arg4: memref<128x128xbf16, #tpu.memory_space<vmem>>, %arg5: memref<1x128xf32, #tpu.memory_space<vmem>>, %arg6: memref<2x224x128xf32, #tpu.memory_space<vmem>>, %arg7: memref<544x32xf32, #tpu.memory_space<vmem>>) attributes {dimension_semantics = [#tpu.dimension_semantics<arbitrary>], iteration_bounds = array<i64: 1>, scalar_prefetch = 0 : i64, scratch_operands = 1 : i64, tpu.core_type = #tpu.core_type<tc>, window_params = [{pipeline_mode = #tpu.pipeline_mode<synchronous>, transform_indices = @transform_0, window_bounds = array<i64: 544, 32>}, {pipeline_mode = #tpu.pipeline_mode<synchronous>, transform_indices = @transform_1, window_bounds = array<i64: 288, 128>}, {pipeline_mode = #tpu.pipeline_mode<synchronous>, transform_indices = @transform_2, window_bounds = array<i64: 1, 128>}, {pipeline_mode = #tpu.pipeline_mode<synchronous>, transform_indices = @transform_3, window_bounds = array<i64: 128, 128>}, {pipeline_mode = #tpu.pipeline_mode<synchronous>, transform_indices = @transform_4, window_bounds = array<i64: 1, 128>}, {pipeline_mode = #tpu.pipeline_mode<synchronous>, transform_indices = @transform_5, window_bounds = array<i64: 2, 224, 128>}]} {
    %c0 = arith.constant 0 : index
    %c0_0 = arith.constant 0 : index
    %0 = vector.load %arg1[%c0, %c0_0] : memref<544x32xbf16, #tpu.memory_space<vmem>>, vector<544x32xbf16>
    %1 = arith.extf %0 : vector<544x32xbf16> to vector<544x32xf32>
    %c0_1 = arith.constant 0 : index
    %c0_2 = arith.constant 0 : index
    %2 = vector.load %arg7[%c0_1, %c0_2] : memref<544x32xf32, #tpu.memory_space<vmem>>, vector<544x32xf32>
    tpu.vector_store %arg7[%c0_1, %c0_2], %1 {strides = array<i32>} : memref<544x32xf32, #tpu.memory_space<vmem>>, vector<544x32xf32>,
    %cst = arith.constant 0.000000e+00 : f32
    %3 = vector.broadcast %cst : f32 to vector<496x128xf32>
    %c0_3 = arith.constant 0 : index
    %c0_4 = arith.constant 0 : index
    %4 = vector.load %arg7[%c0_3, %c0_4] : memref<544x32xf32, #tpu.memory_space<vmem>>, vector<496x32xf32>
    %5 = arith.truncf %4 : vector<496x32xf32> to vector<496x32xbf16>
    %c0_5 = arith.constant 0 : index
    %c0_6 = arith.constant 0 : index
    %6 = vector.load %arg2[%c0_5, %c0_6] : memref<288x128xbf16, #tpu.memory_space<vmem>>, vector<32x128xbf16>
    %cst_7 = arith.constant dense<0.000000e+00> : vector<496x128xf32>
    %7 = tpu.matmul %5, %6, %cst_7 {dimension_numbers = #tpu.dot_dimension_numbers<[1], [0], [0], [1], [0, 0, 1, 1], [], []>} : vector<496x32xbf16>, vector<32x128xbf16>, vector<496x128xf32> -> vector<496x128xf32>
    %8 = arith.addf %3, %7 : vector<496x128xf32>
    %c1 = arith.constant 1 : index
    %c0_8 = arith.constant 0 : index
    %9 = vector.load %arg7[%c1, %c0_8] : memref<544x32xf32, #tpu.memory_space<vmem>>, vector<496x32xf32>
    %10 = arith.truncf %9 : vector<496x32xf32> to vector<496x32xbf16>
    %c32 = arith.constant 32 : index
    %c0_9 = arith.constant 0 : index
    %11 = vector.load %arg2[%c32, %c0_9] : memref<288x128xbf16, #tpu.memory_space<vmem>>, vector<32x128xbf16>
    %cst_10 = arith.constant dense<0.000000e+00> : vector<496x128xf32>
    %12 = tpu.matmul %10, %11, %cst_10 {dimension_numbers = #tpu.dot_dimension_numbers<[1], [0], [0], [1], [0, 0, 1, 1], [], []>} : vector<496x32xbf16>, vector<32x128xbf16>, vector<496x128xf32> -> vector<496x128xf32>
    %13 = arith.addf %8, %12 : vector<496x128xf32>
    %c2 = arith.constant 2 : index
    %c0_11 = arith.constant 0 : index
    %14 = vector.load %arg7[%c2, %c0_11] : memref<544x32xf32, #tpu.memory_space<vmem>>, vector<496x32xf32>
    %15 = arith.truncf %14 : vector<496x32xf32> to vector<496x32xbf16>
    %c64 = arith.constant 64 : index
    %c0_12 = arith.constant 0 : index
    %16 = vector.load %arg2[%c64, %c0_12] : memref<288x128xbf16, #tpu.memory_space<vmem>>, vector<32x128xbf16>
    %cst_13 = arith.constant dense<0.000000e+00> : vector<496x128xf32>
    %17 = tpu.matmul %15, %16, %cst_13 {dimension_numbers = #tpu.dot_dimension_numbers<[1], [0], [0], [1], [0, 0, 1, 1], [], []>} : vector<496x32xbf16>, vector<32x128xbf16>, vector<496x128xf32> -> vector<496x128xf32>
    %18 = arith.addf %13, %17 : vector<496x128xf32>
    %c16 = arith.constant 16 : index
    %c0_14 = arith.constant 0 : index
    %19 = vector.load %arg7[%c16, %c0_14] : memref<544x32xf32, #tpu.memory_space<vmem>>, vector<496x32xf32>
    %20 = arith.truncf %19 : vector<496x32xf32> to vector<496x32xbf16>
    %c96 = arith.constant 96 : index
    %c0_15 = arith.constant 0 : index
    %21 = vector.load %arg2[%c96, %c0_15] : memref<288x128xbf16, #tpu.memory_space<vmem>>, vector<32x128xbf16>
    %cst_16 = arith.constant dense<0.000000e+00> : vector<496x128xf32>
    %22 = tpu.matmul %20, %21, %cst_16 {dimension_numbers = #tpu.dot_dimension_numbers<[1], [0], [0], [1], [0, 0, 1, 1], [], []>} : vector<496x32xbf16>, vector<32x128xbf16>, vector<496x128xf32> -> vector<496x128xf32>
    %23 = arith.addf %18, %22 : vector<496x128xf32>
    %c17 = arith.constant 17 : index
    %c0_17 = arith.constant 0 : index
    %24 = vector.load %arg7[%c17, %c0_17] : memref<544x32xf32, #tpu.memory_space<vmem>>, vector<496x32xf32>
    %25 = arith.truncf %24 : vector<496x32xf32> to vector<496x32xbf16>
    %c128 = arith.constant 128 : index
    %c0_18 = arith.constant 0 : index
    %26 = vector.load %arg2[%c128, %c0_18] : memref<288x128xbf16, #tpu.memory_space<vmem>>, vector<32x128xbf16>
    %cst_19 = arith.constant dense<0.000000e+00> : vector<496x128xf32>
    %27 = tpu.matmul %25, %26, %cst_19 {dimension_numbers = #tpu.dot_dimension_numbers<[1], [0], [0], [1], [0, 0, 1, 1], [], []>} : vector<496x32xbf16>, vector<32x128xbf16>, vector<496x128xf32> -> vector<496x128xf32>
    %28 = arith.addf %23, %27 : vector<496x128xf32>
    %c18 = arith.constant 18 : index
    %c0_20 = arith.constant 0 : index
    %29 = vector.load %arg7[%c18, %c0_20] : memref<544x32xf32, #tpu.memory_space<vmem>>, vector<496x32xf32>
    %30 = arith.truncf %29 : vector<496x32xf32> to vector<496x32xbf16>
    %c160 = arith.constant 160 : index
    %c0_21 = arith.constant 0 : index
    %31 = vector.load %arg2[%c160, %c0_21] : memref<288x128xbf16, #tpu.memory_space<vmem>>, vector<32x128xbf16>
    %cst_22 = arith.constant dense<0.000000e+00> : vector<496x128xf32>
    %32 = tpu.matmul %30, %31, %cst_22 {dimension_numbers = #tpu.dot_dimension_numbers<[1], [0], [0], [1], [0, 0, 1, 1], [], []>} : vector<496x32xbf16>, vector<32x128xbf16>, vector<496x128xf32> -> vector<496x128xf32>
    %33 = arith.addf %28, %32 : vector<496x128xf32>
    %c32_23 = arith.constant 32 : index
    %c0_24 = arith.constant 0 : index
    %34 = vector.load %arg7[%c32_23, %c0_24] : memref<544x32xf32, #tpu.memory_space<vmem>>, vector<496x32xf32>
    %35 = arith.truncf %34 : vector<496x32xf32> to vector<496x32xbf16>
    %c192 = arith.constant 192 : index
    %c0_25 = arith.constant 0 : index
    %36 = vector.load %arg2[%c192, %c0_25] : memref<288x128xbf16, #tpu.memory_space<vmem>>, vector<32x128xbf16>
    %cst_26 = arith.constant dense<0.000000e+00> : vector<496x128xf32>
    %37 = tpu.matmul %35, %36, %cst_26 {dimension_numbers = #tpu.dot_dimension_numbers<[1], [0], [0], [1], [0, 0, 1, 1], [], []>} : vector<496x32xbf16>, vector<32x128xbf16>, vector<496x128xf32> -> vector<496x128xf32>
    %38 = arith.addf %33, %37 : vector<496x128xf32>
    %c33 = arith.constant 33 : index
    %c0_27 = arith.constant 0 : index
    %39 = vector.load %arg7[%c33, %c0_27] : memref<544x32xf32, #tpu.memory_space<vmem>>, vector<496x32xf32>
    %40 = arith.truncf %39 : vector<496x32xf32> to vector<496x32xbf16>
    %c224 = arith.constant 224 : index
    %c0_28 = arith.constant 0 : index
    %41 = vector.load %arg2[%c224, %c0_28] : memref<288x128xbf16, #tpu.memory_space<vmem>>, vector<32x128xbf16>
    %cst_29 = arith.constant dense<0.000000e+00> : vector<496x128xf32>
    %42 = tpu.matmul %40, %41, %cst_29 {dimension_numbers = #tpu.dot_dimension_numbers<[1], [0], [0], [1], [0, 0, 1, 1], [], []>} : vector<496x32xbf16>, vector<32x128xbf16>, vector<496x128xf32> -> vector<496x128xf32>
    %43 = arith.addf %38, %42 : vector<496x128xf32>
    %c34 = arith.constant 34 : index
    %c0_30 = arith.constant 0 : index
    %44 = vector.load %arg7[%c34, %c0_30] : memref<544x32xf32, #tpu.memory_space<vmem>>, vector<496x32xf32>
    %45 = arith.truncf %44 : vector<496x32xf32> to vector<496x32xbf16>
    %c256 = arith.constant 256 : index
    %c0_31 = arith.constant 0 : index
    %46 = vector.load %arg2[%c256, %c0_31] : memref<288x128xbf16, #tpu.memory_space<vmem>>, vector<32x128xbf16>
    %cst_32 = arith.constant dense<0.000000e+00> : vector<496x128xf32>
    %47 = tpu.matmul %45, %46, %cst_32 {dimension_numbers = #tpu.dot_dimension_numbers<[1], [0], [0], [1], [0, 0, 1, 1], [], []>} : vector<496x32xbf16>, vector<32x128xbf16>, vector<496x128xf32> -> vector<496x128xf32>
    %48 = arith.addf %43, %47 : vector<496x128xf32>
    %c0_33 = arith.constant 0 : index
    %c0_34 = arith.constant 0 : index
    %49 = vector.load %arg3[%c0_33, %c0_34] : memref<1x128xf32, #tpu.memory_space<vmem>>, vector<1x128xf32>
    %50 = vector.broadcast %49 : vector<1x128xf32> to vector<496x128xf32>
    %51 = arith.addf %48, %50 : vector<496x128xf32>
    %cst_35 = arith.constant 0.000000e+00 : f32
    %52 = vector.broadcast %cst_35 : f32 to vector<496x128xf32>
    %53 = arith.maximumf %51, %52 : vector<496x128xf32>
    %54 = arith.truncf %53 : vector<496x128xf32> to vector<496x128xbf16>
    %c0_36 = arith.constant 0 : index
    %c0_37 = arith.constant 0 : index
    %55 = vector.load %arg4[%c0_36, %c0_37] : memref<128x128xbf16, #tpu.memory_space<vmem>>, vector<128x128xbf16>
    %cst_38 = arith.constant dense<0.000000e+00> : vector<496x128xf32>
    %56 = tpu.matmul %54, %55, %cst_38 {dimension_numbers = #tpu.dot_dimension_numbers<[1], [0], [0], [1], [0, 0, 1, 1], [], []>} : vector<496x128xbf16>, vector<128x128xbf16>, vector<496x128xf32> -> vector<496x128xf32>
    %c0_39 = arith.constant 0 : index
    %c0_40 = arith.constant 0 : index
    %57 = vector.load %arg5[%c0_39, %c0_40] : memref<1x128xf32, #tpu.memory_space<vmem>>, vector<1x128xf32>
    %58 = vector.broadcast %57 : vector<1x128xf32> to vector<496x128xf32>
    %59 = arith.addf %56, %58 : vector<496x128xf32>
    %60 = vector.extract_strided_slice %59 {offsets = [0, 0], sizes = [224, 128], strides = [1, 1]} : vector<496x128xf32> to vector<224x128xf32>
    %c0_41 = arith.constant 0 : index
    %c0_42 = arith.constant 0 : index
    %c0_43 = arith.constant 0 : index
    %61 = vector.load %arg6[%c0_41, %c0_42, %c0_43] : memref<2x224x128xf32, #tpu.memory_space<vmem>>, vector<1x224x128xf32>
    %62 = vector.shape_cast %61 : vector<1x224x128xf32> to vector<224x128xf32>
    %63 = vector.shape_cast %60 : vector<224x128xf32> to vector<1x224x128xf32>
    tpu.vector_store %arg6[%c0_41, %c0_42, %c0_43], %63 {strides = array<i32>} : memref<2x224x128xf32, #tpu.memory_space<vmem>>, vector<1x224x128xf32>,
    %64 = vector.extract_strided_slice %59 {offsets = [272, 0], sizes = [224, 128], strides = [1, 1]} : vector<496x128xf32> to vector<224x128xf32>
    %c1_44 = arith.constant 1 : index
    %c0_45 = arith.constant 0 : index
    %c0_46 = arith.constant 0 : index
    %65 = vector.load %arg6[%c1_44, %c0_45, %c0_46] : memref<2x224x128xf32, #tpu.memory_space<vmem>>, vector<1x224x128xf32>
    %66 = vector.shape_cast %65 : vector<1x224x128xf32> to vector<224x128xf32>
    %67 = vector.shape_cast %64 : vector<224x128xf32> to vector<1x224x128xf32>
    tpu.vector_store %arg6[%c1_44, %c0_45, %c0_46], %67 {strides = array<i32>} : memref<2x224x128xf32, #tpu.memory_space<vmem>>, vector<1x224x128xf32>,
    return
  }
  func.func @transform_0(%arg0: i32) -> (i32, i32) {
    %c0_i32 = arith.constant 0 : i32
    %c0_i32_0 = arith.constant 0 : i32
    %c0_i32_1 = arith.constant 0 : i32
    return %c0_i32, %c0_i32_0 : i32, i32
  }
  func.func @transform_1(%arg0: i32) -> (i32, i32) {
    %c0_i32 = arith.constant 0 : i32
    %c0_i32_0 = arith.constant 0 : i32
    %c0_i32_1 = arith.constant 0 : i32
    return %c0_i32, %c0_i32_0 : i32, i32
  }
  func.func @transform_2(%arg0: i32) -> (i32, i32) {
    %c0_i32 = arith.constant 0 : i32
    %c0_i32_0 = arith.constant 0 : i32
    %c0_i32_1 = arith.constant 0 : i32
    return %c0_i32, %c0_i32_0 : i32, i32
  }
  func.func @transform_3(%arg0: i32) -> (i32, i32) {
    %c0_i32 = arith.constant 0 : i32
    %c0_i32_0 = arith.constant 0 : i32
    %c0_i32_1 = arith.constant 0 : i32
    return %c0_i32, %c0_i32_0 : i32, i32
  }
  func.func @transform_4(%arg0: i32) -> (i32, i32) {
    %c0_i32 = arith.constant 0 : i32
    %c0_i32_0 = arith.constant 0 : i32
    %c0_i32_1 = arith.constant 0 : i32
    return %c0_i32, %c0_i32_0 : i32, i32
  }
  func.func @transform_5(%arg0: i32) -> (i32, i32, i32) {
    %c0_i32 = arith.constant 0 : i32
    %c0_i32_0 = arith.constant 0 : i32
    %c0_i32_1 = arith.constant 0 : i32
    %c0_i32_2 = arith.constant 0 : i32
    return %c0_i32, %c0_i32_0, %c0_i32_1 : i32, i32, i32
  }
}

</mosaic_0001>

<bundles_post_ra>
// kernel: rpn_head_forward_nhwc.1
= control target key start
LH: loop header
LB: loop body
LE: loop exit
PB: predicated region body
PF: predicated region fallthrough
CT: control target
= control target key end

     0   :  { %vm157_vm0 = vcmask 261120   ;;  %v5337_v3 = vmov 0   ;;  %s5338_s19 = smov 64   ;;  %s5339_s22 = smov 32   ;;  %vm1796_vm1 = vcmask 523264   ;;  %vm1859_vm2 = vcmask 785408   ;;  %s7195_s0 = inlined_call_operand.vmem [shape: bf16[544,32], index: 0, kind: input, shape index: {}]   ;;  %s7196_s1 = inlined_call_operand.vmem [shape: bf16[288,128], index: 1, kind: input, shape index: {}]   ;;  %s7197_s3 = inlined_call_operand.vmem [shape: bf16[128,128], index: 3, kind: input, shape index: {}]   ;;  %s7198_s2 = inlined_call_operand.vmem [shape: f32[1,128], index: 2, kind: input, shape index: {}]   ;;  %s7199_s4 = inlined_call_operand.vmem [shape: f32[1,128], index: 4, kind: input, shape index: {}]   ;;  %s7200_s5 = inlined_call_operand.vmem [shape: f32[2,224,128], index: 5, kind: output, shape index: {}]  }
   0x1   :  { %v3731_v0 = vld [vmem:[%s7195_s0 + $0x10] sm:$0xff]   ;;  %v3730_v1 = vld [vmem:[%s7195_s0 + $0x8] sm:$0xff]   ;;  %v3595_v2 = vld [vmem:[%s7195_s0] sm:$0xff]   ;;  %2445 = vmatprep.subr.bf16.mxu0 %v5337_v3  ;;  %s5340_s25 = smov 96   ;;  %vm5342_vm3 = vmmov 0  }
   0x2   :  { %v3604_v4 = vunpack.c.l.bf16 %v3731_v0  ;;  %v3605_v5 = vunpack.c.h.bf16 %v3731_v0  ;;  %v3600_v6 = vunpack.c.l.bf16 %v3730_v1  ;;  %v3601_v7 = vunpack.c.h.bf16 %v3730_v1  ;;  %v3732_v8 = vld [vmem:[%s7195_s0 + $0x18] sm:$0xff]   ;;  %v3733_v9 = vld [vmem:[%s7195_s0 + $0x20] sm:$0xff]   ;;  %v3734_v10 = vld [vmem:[%s7195_s0 + $0x28] sm:$0xff]  }
   0x3   :  { %v3596_v11 = vunpack.c.l.bf16 %v3595_v2  ;;  %v3597_v12 = vunpack.c.h.bf16 %v3595_v2  ;;  %v3608_v13 = vunpack.c.l.bf16 %v3732_v8  ;;  %v3609_v14 = vunpack.c.h.bf16 %v3732_v8  ;;  %v3735_v15 = vld [vmem:[%s7195_s0 + $0x30] sm:$0xff]   ;;  %v3736_v16 = vld [vmem:[%s7195_s0 + $0x38] sm:$0xff]   ;;  %v5191_v21 = vld [vmem:[%s7196_s1] sm:$0xff]  }
   0x4   :  { %162 = vst.msk [vmem:[#allocation2 + $0x20] sm:$0xff] %vm157_vm0, %v3604_v4  ;;  %163 = vst.msk [vmem:[#allocation2 + $0x28] sm:$0xff] %vm157_vm0, %v3605_v5  ;;  %v3612_v17 = vunpack.c.l.bf16 %v3733_v9  ;;  %v3613_v18 = vunpack.c.h.bf16 %v3733_v9  ;;  %v3616_v19 = vunpack.c.l.bf16 %v3734_v10  ;;  %v3617_v20 = vunpack.c.h.bf16 %v3734_v10  ;;  %v3737_v22 = vld [vmem:[%s7195_s0 + $0x40] sm:$0xff]   ;;  %2446 = vmatpush1.bf16.msra.mxu0 %v5191_v21  ;;  %v5192_v28 = vld [vmem:[%s7196_s1 + $0x8] sm:$0xff]  }
   0x5   :  { %160 = vst.msk [vmem:[#allocation2 + $0x10] sm:$0xff] %vm157_vm0, %v3600_v6  ;;  %161 = vst.msk [vmem:[#allocation2 + $0x18] sm:$0xff] %vm157_vm0, %v3601_v7  ;;  %v3620_v23 = vunpack.c.l.bf16 %v3735_v15  ;;  %v3621_v24 = vunpack.c.h.bf16 %v3735_v15  ;;  %v3624_v25 = vunpack.c.l.bf16 %v3736_v16  ;;  %v3625_v26 = vunpack.c.h.bf16 %v3736_v16  ;;  %2447 = vmatprep.subr.bf16.mxu0 %v5337_v3  ;;  %v3738_v30 = vld [vmem:[%s7195_s0 + $0x48] sm:$0xff]   ;;  %v5193_v33 = vld [vmem:[%s7196_s1 + $0x10] sm:$0xff]  }
   0x6   :  { %158 = vst.msk [vmem:[#allocation2] sm:$0xff] %vm157_vm0, %v3596_v11  ;;  %159 = vst.msk [vmem:[#allocation2 + $0x8] sm:$0xff] %vm157_vm0, %v3597_v12  ;;  %v3628_v27 = vunpack.c.l.bf16 %v3737_v22  ;;  %v3629_v29 = vunpack.c.h.bf16 %v3737_v22  ;;  %v3632_v31 = vunpack.c.l.bf16 %v3738_v30  ;;  %v3633_v32 = vunpack.c.h.bf16 %v3738_v30  ;;  %v5194_v45 = vld [vmem:[%s7196_s1 + $0x18] sm:$0xff]   ;;  %v5195_v55 = vld [vmem:[%s7196_s1 + $0x20] sm:$0xff]  }
   0x7   :  { %164 = vst.msk [vmem:[#allocation2 + $0x30] sm:$0xff] %vm157_vm0, %v3608_v13  ;;  %165 = vst.msk [vmem:[#allocation2 + $0x38] sm:$0xff] %vm157_vm0, %v3609_v14  ;;  %v5196_v60 = vld [vmem:[%s7196_s1 + $0x28] sm:$0xff]   ;;  %v5197_v4 = vld [vmem:[%s7196_s1 + $0x30] sm:$0xff]  }
   0x8   :  { %166 = vst.msk [vmem:[#allocation2 + $0x40] sm:$0xff] %vm157_vm0, %v3612_v17  ;;  %167 = vst.msk [vmem:[#allocation2 + $0x48] sm:$0xff] %vm157_vm0, %v3613_v18  ;;  %2448 = vmatpush1.bf16.msra.mxu0 %v5192_v28  ;;  %v3739_v5 = vld [vmem:[%s7195_s0 + $0x50] sm:$0xff]   ;;  %v5198_v10 = vld [vmem:[%s7196_s1 + $0x38] sm:$0xff]  }
   0x9   :  { %168 = vst.msk [vmem:[#allocation2 + $0x50] sm:$0xff] %vm157_vm0, %v3616_v19  ;;  %169 = vst.msk [vmem:[#allocation2 + $0x58] sm:$0xff] %vm157_vm0, %v3617_v20  ;;  %2449 = vmatprep.subr.bf16.mxu0 %v5337_v3  ;;  %v3636_v7 = vunpack.c.l.bf16 %v3739_v5  ;;  %v3637_v8 = vunpack.c.h.bf16 %v3739_v5  ;;  %v3740_v12 = vld [vmem:[%s7195_s0 + $0x58] sm:$0xff]   ;;  %v5199_v17 = vld [vmem:[%s7196_s1 + $0x40] sm:$0xff]  }
   0xa   :  { %170 = vst.msk [vmem:[#allocation2 + $0x60] sm:$0xff] %vm157_vm0, %v3620_v23  ;;  %171 = vst.msk [vmem:[#allocation2 + $0x68] sm:$0xff] %vm157_vm0, %v3621_v24  ;;  %v3640_v14 = vunpack.c.l.bf16 %v3740_v12  ;;  %v3641_v15 = vunpack.c.h.bf16 %v3740_v12  ;;  %v3741_v19 = vld [vmem:[%s7195_s0 + $0x60] sm:$0xff]   ;;  %v5200_v23 = vld [vmem:[%s7196_s1 + $0x48] sm:$0xff]  }
   0xb   :  { %172 = vst.msk [vmem:[#allocation2 + $0x70] sm:$0xff] %vm157_vm0, %v3624_v25  ;;  %173 = vst.msk [vmem:[#allocation2 + $0x78] sm:$0xff] %vm157_vm0, %v3625_v26  ;;  %v5432_v34 = vld [vmem:[#allocation2 + $0x20] sm:$0xff]  ;;  %v5434_v35 = vld [vmem:[#allocation2 + $0x28] sm:$0xff]  ;;  %v3644_v20 = vunpack.c.l.bf16 %v3741_v19  ;;  %v3645_v21 = vunpack.c.h.bf16 %v3741_v19 }
   0xc   :  { %174 = vst.msk [vmem:[#allocation2 + $0x80] sm:$0xff] %vm157_vm0, %v3628_v27  ;;  %175 = vst.msk [vmem:[#allocation2 + $0x88] sm:$0xff] %vm157_vm0, %v3629_v29  ;;  %v352_v36 = vld [vmem:[#allocation2 + $0x12] sm:$0xff]  ;;  %v5441_v37 = vpack.i.bf16 %v5434_v35, %v5432_v34  ;;  %v353_v38 = vld [vmem:[#allocation2 + $0x1a] sm:$0xff]  ;;  %2450 = vmatpush1.bf16.msra.mxu0 %v5193_v33 }
   0xd   :  { %176 = vst.msk [vmem:[#allocation2 + $0x90] sm:$0xff] %vm157_vm0, %v3632_v31  ;;  %177 = vst.msk [vmem:[#allocation2 + $0x98] sm:$0xff] %vm157_vm0, %v3633_v32  ;;  %v350_v39 = vld [vmem:[#allocation2 + $0x2] sm:$0xff]  ;;  %v351_v40 = vld [vmem:[#allocation2 + $0xa] sm:$0xff]  ;;  %v4261_v41 = vpack.i.bf16 %v353_v38, %v352_v36  ;;  %2451 = vmatprep.subr.bf16.mxu0 %v5337_v3 }
   0xe   :  { %v288_v42 = vld [vmem:[#allocation2 + $0x1] sm:$0xff]  ;;  %v289_v43 = vld [vmem:[#allocation2 + $0x9] sm:$0xff]  ;;  %4272 = vrot.lane.b32.xlu1 %v5441_v37, %s5338_s19  ;;  %v4276_v44 = vpack.i.bf16 %v351_v40, %v350_v39  ;;  %v5451_v48 = vld [vmem:[#allocation2 + $0x18] sm:$0xff]  ;;  %178 = vst.msk [vmem:[#allocation2 + $0xa0] sm:$0xff] %vm157_vm0, %v3636_v7 }
   0xf   :  { %4262 = vrot.lane.b32.xlu0 %v4261_v41, %s5339_s22  ;;  %v4266_v46 = vpack.i.bf16 %v289_v43, %v288_v42  ;;  %v5449_v47 = vld [vmem:[#allocation2 + $0x10] sm:$0xff]  ;;  %v5453_v49 = vld [vmem:[#allocation2 + $0x21] sm:$0xff]  ;;  %v5475_v58 = vld [vmem:[#allocation2 + $0x19] sm:$0xff]  ;;  %179 = vst.msk [vmem:[#allocation2 + $0xa8] sm:$0xff] %vm157_vm0, %v3637_v8 }
  0x10   :  { %v5456_v50 = vld [vmem:[#allocation2 + $0x29] sm:$0xff]  ;;  %v4286_v54 = vpack.i.bf16 %v5451_v48, %v5449_v47  ;;  %2452 = vmatpush1.bf16.msra.mxu0 %v5194_v45  ;;  %v5473_v57 = vld [vmem:[#allocation2 + $0x11] sm:$0xff]  ;;  %v5499_v2 = vld [vmem:[#allocation2 + $0x39] sm:$0xff]  ;;  %180 = vst.msk [vmem:[#allocation2 + $0xb0] sm:$0xff] %vm157_vm0, %v3640_v14 }
  0x11   :  { %v5458_v51 = vld [vmem:[#allocation2 + $0x22] sm:$0xff]  ;;  %v5460_v52 = vld [vmem:[#allocation2 + $0x2a] sm:$0xff]  ;;  %v4281_v56 = vpack.i.bf16 %v5456_v50, %v5453_v49  ;;  %2453 = vmatprep.subr.bf16.mxu0 %v5337_v3  ;;  %v4296_v59 = vpack.i.bf16 %v5475_v58, %v5473_v57  ;;  %v5489_v63 = vld [vmem:[#allocation2 + $0x38] sm:$0xff]  ;;  %181 = vst.msk [vmem:[#allocation2 + $0xb8] sm:$0xff] %vm157_vm0, %v3641_v15 }
  0x12   :  { %v2110_v53 = vpack.c.bf16 %v5460_v52, %v5458_v51  ;;  %4277 = vrot.lane.b32.xlu1 %v4276_v44, %s5338_s19  ;;  %v4291_v61 = vpack.i.bf16 %v5460_v52, %v5458_v51  ;;  %v5487_v62 = vld [vmem:[#allocation2 + $0x30] sm:$0xff]  ;;  %v357_v11 = vld [vmem:[#allocation2 + $0x3a] sm:$0xff]  ;;  %v235_v18 = vld [vmem:[#allocation2 + $0x48] sm:$0xff]  ;;  %182 = vst.msk [vmem:[#allocation2 + $0xc0] sm:$0xff] %vm157_vm0, %v3644_v20 }
  0x13   :  { %4267 = vrot.lane.b32.xlu0 %v4266_v46, %s5339_s22  ;;  %v4301_v0 = vpack.i.bf16 %v5489_v63, %v5487_v62  ;;  %v5497_v1 = vld [vmem:[#allocation2 + $0x31] sm:$0xff]  ;;  %v234_v13 = vld [vmem:[#allocation2 + $0x40] sm:$0xff]  ;;  %183 = vst.msk [vmem:[#allocation2 + $0xc8] sm:$0xff] %vm157_vm0, %v3645_v21  ;;  %v5547_v25 = vld [vmem:[#allocation2 + $0x49] sm:$0xff] }
  0x14   :  { %2454 = vmatpush1.bf16.msra.mxu0 %v5195_v55  ;;  %v356_v6 = vld [vmem:[#allocation2 + $0x32] sm:$0xff]  ;;  %v5511_v9 = vpack.i.bf16 %v5499_v2, %v5497_v1  ;;  %v4331_v22 = vpack.i.bf16 %v235_v18, %v234_v13  ;;  %v5545_v24 = vld [vmem:[#allocation2 + $0x41] sm:$0xff]  ;;  %v359_v32 = vld [vmem:[#allocation2 + $0x4a] sm:$0xff] }
  0x15   :  { %2455 = vmatprep.subr.bf16.mxu0 %v5337_v3  ;;  %v5526_v16 = vpack.i.bf16 %v357_v11, %v356_v6  ;;  %v3742_v26 = vld [vmem:[%s7195_s0 + $0x68] sm:$0xff]   ;;  %v4341_v27 = vpack.i.bf16 %v5547_v25, %v5545_v24  ;;  %v5201_v28 = vld [vmem:[%s7196_s1 + $0x50] sm:$0xff]   ;;  %v3744_v36 = vld [vmem:[%s7195_s0 + $0x78] sm:$0xff]  }
  0x16   :  { %4287 = vrot.lane.b32.xlu1 %v4286_v54, %s5340_s25  ;;  %v3648_v29 = vunpack.c.l.bf16 %v3742_v26  ;;  %v3649_v30 = vunpack.c.h.bf16 %v3742_v26  ;;  %v358_v31 = vld [vmem:[#allocation2 + $0x42] sm:$0xff]  ;;  %v3656_v40 = vunpack.c.l.bf16 %v3744_v36  ;;  %v236_v43 = vld [vmem:[#allocation2 + $0x50] sm:$0xff]  ;;  %v237_v44 = vld [vmem:[#allocation2 + $0x58] sm:$0xff] }
  0x17   :  { %4282 = vrot.lane.b32.xlu0 %v4281_v56, %s5340_s25  ;;  %v3743_v33 = vld [vmem:[%s7195_s0 + $0x70] sm:$0xff]   ;;  %v4351_v42 = vpack.i.bf16 %v359_v32, %v358_v31  ;;  %v5202_v45 = vld [vmem:[%s7196_s1 + $0x58] sm:$0xff]   ;;  %v3746_v55 = vld [vmem:[%s7195_s0 + $0x88] sm:$0xff]  }
  0x18   :  { %2456 = vmatpush1.bf16.msra.mxu0 %v5196_v60  ;;  %184 = vst.msk [vmem:[#allocation2 + $0xd0] sm:$0xff] %vm157_vm0, %v3648_v29  ;;  %185 = vst.msk [vmem:[#allocation2 + $0xd8] sm:$0xff] %vm157_vm0, %v3649_v30  ;;  %v3652_v38 = vunpack.c.l.bf16 %v3743_v33  ;;  %v3653_v39 = vunpack.c.h.bf16 %v3743_v33  ;;  %v3664_v60 = vunpack.c.l.bf16 %v3746_v55  ;;  %v5204_v5 = vld [vmem:[%s7196_s1 + $0x68] sm:$0xff]   ;;  %v238_v11 = vld [vmem:[#allocation2 + $0x60] sm:$0xff] }
  0x19   :  { %2457 = vmatprep.subr.bf16.mxu0 %v5337_v3  ;;  %188 = vst.msk [vmem:[#allocation2 + $0xf0] sm:$0xff] %vm157_vm0, %v3656_v40  ;;  %v360_v6 = vld [vmem:[#allocation2 + $0x52] sm:$0xff]  ;;  %v361_v7 = vld [vmem:[#allocation2 + $0x5a] sm:$0xff]  ;;  %v239_v12 = vld [vmem:[#allocation2 + $0x68] sm:$0xff] }
  0x1a   :  { %4297 = vrot.lane.b32.xlu1 %v4296_v59, %s5339_s22  ;;  %186 = vst.msk [vmem:[#allocation2 + $0xe0] sm:$0xff] %vm157_vm0, %v3652_v38  ;;  %187 = vst.msk [vmem:[#allocation2 + $0xe8] sm:$0xff] %vm157_vm0, %v3653_v39  ;;  %v5203_v59 = vld [vmem:[%s7196_s1 + $0x60] sm:$0xff]   ;;  %v4381_v8 = vpack.i.bf16 %v361_v7, %v360_v6  ;;  %v3747_v13 = vld [vmem:[%s7195_s0 + $0x90] sm:$0xff]   ;;  %v4391_v14 = vpack.i.bf16 %v239_v12, %v238_v11 }
  0x1b   :  { %4292 = vrot.lane.b32.xlu0 %v4291_v61, %s5339_s22  ;;  %192 = vst.msk [vmem:[#allocation2 + $0x110] sm:$0xff] %vm157_vm0, %v3664_v60  ;;  %v5206_v15 = vld [vmem:[%s7196_s1 + $0x78] sm:$0xff]   ;;  %v240_v26 = vld [vmem:[#allocation2 + $0x70] sm:$0xff]  ;;  %v5643_v31 = vld [vmem:[#allocation2 + $0x79] sm:$0xff] }
  0x1c   :  { %2458 = vmatpush1.bf16.msra.mxu0 %v5197_v4  ;;  %v5625_v18 = vld [vmem:[#allocation2 + $0x69] sm:$0xff]  ;;  %v5641_v30 = vld [vmem:[#allocation2 + $0x71] sm:$0xff]  ;;  %v242_v39 = vld [vmem:[#allocation2 + $0x80] sm:$0xff] }
  0x1d   :  { %2459 = vmatprep.subr.bf16.mxu0 %v5337_v3  ;;  %v362_v20 = vld [vmem:[#allocation2 + $0x62] sm:$0xff]  ;;  %v363_v21 = vld [vmem:[#allocation2 + $0x6a] sm:$0xff]  ;;  %v4431_v32 = vpack.i.bf16 %v5643_v31, %v5641_v30  ;;  %v364_v33 = vld [vmem:[#allocation2 + $0x72] sm:$0xff] }
  0x1e   :  { %4307 = vrot.lane.b32.xlu1 %v4261_v41, %s5338_s19  ;;  %v3657_v41 = vunpack.c.h.bf16 %v3744_v36  ;;  %v365_v36 = vld [vmem:[#allocation2 + $0x7a] sm:$0xff]  ;;  %v243_v40 = vld [vmem:[#allocation2 + $0x88] sm:$0xff]  ;;  %v244_v60 = vld [vmem:[#allocation2 + $0x90] sm:$0xff] }
  0x1f   :  { %4302 = vrot.lane.b32.xlu0 %v4301_v0, %s5338_s19  ;;  %v368_v11 = vld [vmem:[#allocation2 + $0x92] sm:$0xff]  ;;  %v369_v12 = vld [vmem:[#allocation2 + $0x9a] sm:$0xff] }
  0x20   :  { %2460 = vmatpush1.bf16.msra.mxu0 %v5198_v10  ;;  %189 = vst.msk [vmem:[#allocation2 + $0xf8] sm:$0xff] %vm157_vm0, %v3657_v41  ;;  %v3665_v10 = vunpack.c.h.bf16 %v3746_v55  ;;  %v3749_v41 = vld [vmem:[%s7195_s0 + $0xa0] sm:$0xff]  }
  0x21   :  { %2461 = vmatprep.subr.bf16.mxu0 %v5337_v3  ;;  %v367_v55 = vld [vmem:[#allocation2 + $0x8a] sm:$0xff]  ;;  %v5315_v52 = vld [vmem:[#allocation2 + $0x32] sm:$0xff] }
  0x22   :  { %4317 = vrot.lane.b32.xlu1 %v5441_v37, %s5340_s25  ;;  %v3745_v37 = vld [vmem:[%s7195_s0 + $0x80] sm:$0xff]   ;;  %193 = vst.msk [vmem:[#allocation2 + $0x118] sm:$0xff] %vm157_vm0, %v3665_v10 }
  0x23   :  { %4312 = vrot.lane.b32.xlu0 %v5511_v9, %s5340_s25  ;;  %v3660_v46 = vunpack.c.l.bf16 %v3745_v37  ;;  %v3661_v54 = vunpack.c.h.bf16 %v3745_v37  ;;  %v4441_v37 = vpack.i.bf16 %v365_v36, %v364_v33  ;;  %v249_v33 = vld [vmem:[#allocation2 + $0xb8] sm:$0xff]  ;;  %v3752_v36 = vld [vmem:[%s7195_s0 + $0xb8] sm:$0xff]  }
  0x24   :  { %2462 = vmatpush1.bf16.msra.mxu0 %v5199_v17  ;;  %v5623_v17 = vld [vmem:[#allocation2 + $0x61] sm:$0xff] }
  0x25   :  { %2463 = vmatprep.subr.bf16.mxu0 %v5337_v3  ;;  %190 = vst.msk [vmem:[#allocation2 + $0x100] sm:$0xff] %vm157_vm0, %v3660_v46  ;;  %191 = vst.msk [vmem:[#allocation2 + $0x108] sm:$0xff] %vm157_vm0, %v3661_v54  ;;  %v4401_v19 = vpack.i.bf16 %v5625_v18, %v5623_v17  ;;  %v366_v54 = vld [vmem:[#allocation2 + $0x82] sm:$0xff] }
  0x26   :  { %4327 = vrot.lane.b32.xlu1 %v4281_v56, %s5339_s22  ;;  %v4361_v56 = vpack.i.bf16 %v237_v44, %v236_v43  ;;  %v3676_v43 = vunpack.c.l.bf16 %v3749_v41  ;;  %v304_v44 = vld [vmem:[#allocation2 + $0x81] sm:$0xff] }
  0x27   :  { %4322 = vrot.lane.b32.xlu0 %v5526_v16, %s5339_s22 }
  0x28   :  { %2464 = vmatpush1.bf16.msra.mxu0 %v5200_v23  ;;  %v3669_v23 = vunpack.c.h.bf16 %v3747_v13  ;;  %198 = vst.msk [vmem:[#allocation2 + $0x140] sm:$0xff] %vm157_vm0, %v3676_v43  ;;  %v372_v43 = vld [vmem:[#allocation2 + $0xb2] sm:$0xff] }
  0x29   :  { %2465 = vmatprep.subr.bf16.mxu0 %v5337_v3 }
  0x2a   :  { %4337 = vrot.lane.b32.xlu1 %v4291_v61, %s5338_s19  ;;  %v5593_v61 = vld [vmem:[#allocation2 + $0x51] sm:$0xff]  ;;  %195 = vst.msk [vmem:[#allocation2 + $0x128] sm:$0xff] %vm157_vm0, %v3669_v23  ;;  %v309_v23 = vld [vmem:[#allocation2 + $0xa9] sm:$0xff] }
  0x2b   :  { %4332 = vrot.lane.b32.xlu0 %v4331_v22, %s5338_s19 }
  0x2c   :  { %2466 = vmatpush1.bf16.msra.mxu0 %v5201_v28 }
  0x2d   :  { %2467 = vmatprep.subr.bf16.mxu0 %v5337_v3 }
  0x2e   :  { %4347 = vrot.lane.b32.xlu1 %v4301_v0, %s5340_s25  ;;  %v5595_v0 = vld [vmem:[#allocation2 + $0x59] sm:$0xff] }
  0x2f   :  { %4342 = vrot.lane.b32.xlu0 %v4341_v27, %s5340_s25  ;;  %v4371_v4 = vpack.i.bf16 %v5595_v0, %v5593_v61 }
  0x30   :  { %2468 = vmatpush1.bf16.msra.mxu0 %v5202_v45  ;;  %v305_v45 = vld [vmem:[#allocation2 + $0x89] sm:$0xff] }
  0x31   :  { %2469 = vmatprep.subr.bf16.mxu0 %v5337_v3  ;;  %v4461_v46 = vpack.i.bf16 %v305_v45, %v304_v44  ;;  %v373_v44 = vld [vmem:[#allocation2 + $0xba] sm:$0xff] }
  0x32   :  { %4357 = vrot.lane.b32.xlu1 %v5511_v9, %s5339_s22  ;;  %v5205_v9 = vld [vmem:[%s7196_s1 + $0x70] sm:$0xff]  }
  0x33   :  { %4352 = vrot.lane.b32.xlu0 %v4351_v42, %s5339_s22 }
  0x34   :  { %2470 = vmatpush1.bf16.msra.mxu0 %v5203_v59  ;;  %v3677_v59 = vunpack.c.h.bf16 %v3749_v41 }
  0x35   :  { %2471 = vmatprep.subr.bf16.mxu0 %v5337_v3 }
  0x36   :  { %4367 = vrot.lane.b32.xlu1 %v5526_v16, %s5338_s19  ;;  %v3668_v16 = vunpack.c.l.bf16 %v3747_v13  ;;  %199 = vst.msk [vmem:[#allocation2 + $0x148] sm:$0xff] %vm157_vm0, %v3677_v59  ;;  %v4501_v13 = vpack.i.bf16 %v369_v12, %v368_v11 }
  0x37   :  { %4362 = vrot.lane.b32.xlu0 %v4361_v56, %s5338_s19 }
  0x38   :  { %2472 = vmatpush1.bf16.msra.mxu0 %v5204_v5  ;;  %194 = vst.msk [vmem:[#allocation2 + $0x120] sm:$0xff] %vm157_vm0, %v3668_v16  ;;  %v3750_v5 = vld [vmem:[%s7195_s0 + $0xa8] sm:$0xff]   ;;  %v247_v16 = vld [vmem:[#allocation2 + $0xa8] sm:$0xff] }
  0x39   :  { %2473 = vmatprep.subr.bf16.mxu0 %v5337_v3  ;;  %v3680_v7 = vunpack.c.l.bf16 %v3750_v5 }
  0x3a   :  { %4377 = vrot.lane.b32.xlu1 %v4331_v22, %s5340_s25  ;;  %v4411_v22 = vpack.i.bf16 %v363_v21, %v362_v20 }
  0x3b   :  { %4372 = vrot.lane.b32.xlu0 %v4371_v4, %s5340_s25  ;;  %200 = vst.msk [vmem:[#allocation2 + $0x150] sm:$0xff] %vm157_vm0, %v3680_v7 }
  0x3c   :  { %2474 = vmatpush1.bf16.msra.mxu0 %v5205_v9  ;;  %v307_v9 = vld [vmem:[#allocation2 + $0x99] sm:$0xff] }
  0x3d   :  { %2475 = vmatprep.subr.bf16.mxu0 %v5337_v3  ;;  %v241_v3 = vld [vmem:[#allocation2 + $0x78] sm:$0xff] }
  0x3e   :  { %4387 = vrot.lane.b32.xlu1 %v4341_v27, %s5339_s22  ;;  %v3748_v27 = vld [vmem:[%s7195_s0 + $0x98] sm:$0xff]   ;;  %v4421_v28 = vpack.i.bf16 %v241_v3, %v240_v26 }
  0x3f   :  { %4382 = vrot.lane.b32.xlu0 %v4381_v8, %s5339_s22  ;;  %v3672_v29 = vunpack.c.l.bf16 %v3748_v27  ;;  %v3673_v38 = vunpack.c.h.bf16 %v3748_v27  ;;  %v370_v3 = vld [vmem:[#allocation2 + $0xa2] sm:$0xff]  ;;  %v371_v27 = vld [vmem:[#allocation2 + $0xaa] sm:$0xff] }
  0x40   :  { %2476 = vmatpush1.bf16.msra.mxu0 %v5206_v15  ;;  %v246_v15 = vld [vmem:[#allocation2 + $0xa0] sm:$0xff] }
  0x41   :  { %196 = vst.msk [vmem:[#allocation2 + $0x130] sm:$0xff] %vm157_vm0, %v3672_v29  ;;  %197 = vst.msk [vmem:[#allocation2 + $0x138] sm:$0xff] %vm157_vm0, %v3673_v38  ;;  %v4511_v20 = vpack.i.bf16 %v247_v16, %v246_v15  ;;  %v3688_v38 = vunpack.c.l.bf16 %v3752_v36  ;;  %v313_v15 = vld [vmem:[#allocation2 + $0xc9] sm:$0xff] }
  0x42   :  { %4397 = vrot.lane.b32.xlu1 %v4351_v42, %s5338_s19  ;;  %v4451_v42 = vpack.i.bf16 %v243_v40, %v242_v39  ;;  %v310_v39 = vld [vmem:[#allocation2 + $0xb1] sm:$0xff]  ;;  %v311_v40 = vld [vmem:[#allocation2 + $0xb9] sm:$0xff] }
  0x43   :  { %4392 = vrot.lane.b32.xlu0 %v4391_v14, %s5338_s19  ;;  %204 = vst.msk [vmem:[#allocation2 + $0x170] sm:$0xff] %vm157_vm0, %v3688_v38  ;;  %v5700_v41 = vpack.i.bf16 %v311_v40, %v310_v39  ;;  %v3753_v16 = vld [vmem:[%s7195_s0 + $0xc0] sm:$0xff]   ;;  %v5341_v38 = vmov 0.0  }
  0x44   :  { %3835 = vmatprep.subr.bf16.mxu0 %v5341_v38  ;;  %4103 = vmatprep.subr.bf16.mxu1 %v5341_v38 }
  0x45   :  { %3887 = vmatprep.mubr.msk.bf16.mxu1 %vm5342_vm3, %v5341_v38 }
  0x46   :  { %4407 = vrot.lane.b32.xlu1 %v4361_v56, %s5340_s25  ;;  %v4471_v56 = vpack.i.bf16 %v367_v55, %v366_v54  ;;  %v5705_v54 = vpack.i.bf16 %v373_v44, %v372_v43  ;;  %v3689_v55 = vunpack.c.h.bf16 %v3752_v36 }
  0x47   :  { %4402 = vrot.lane.b32.xlu0 %v4401_v19, %s5340_s25 }
  0x48   :  { %205 = vst.msk [vmem:[#allocation2 + $0x178] sm:$0xff] %vm157_vm0, %v3689_v55 }
  0x4a   :  { %4417 = vrot.lane.b32.xlu1 %v4371_v4, %s5339_s22  ;;  %v245_v4 = vld [vmem:[#allocation2 + $0x98] sm:$0xff] }
  0x4b   :  { %4412 = vrot.lane.b32.xlu0 %v4411_v22, %s5339_s22  ;;  %v4481_v6 = vpack.i.bf16 %v245_v4, %v244_v60  ;;  %v250_v60 = vld [vmem:[#allocation2 + $0xc0] sm:$0xff]  ;;  %v251_v4 = vld [vmem:[#allocation2 + $0xc8] sm:$0xff] }
  0x4e   :  { %4427 = vrot.lane.b32.xlu1 %v4381_v8, %s5338_s19  ;;  %v306_v8 = vld [vmem:[#allocation2 + $0x91] sm:$0xff] }
  0x4f   :  { %4422 = vrot.lane.b32.xlu0 %v4421_v28, %s5338_s19  ;;  %v4491_v10 = vpack.i.bf16 %v307_v9, %v306_v8  ;;  %v226_v8 = vld [vmem:[#allocation2] sm:$0xff] }
  0x52   :  { %4437 = vrot.lane.b32.xlu1 %v4391_v14, %s5340_s25  ;;  %v3681_v14 = vunpack.c.h.bf16 %v3750_v5 }
  0x53   :  { %4432 = vrot.lane.b32.xlu0 %v4431_v32, %s5340_s25 }
  0x54   :  { %201 = vst.msk [vmem:[#allocation2 + $0x158] sm:$0xff] %vm157_vm0, %v3681_v14  ;;  %v312_v14 = vld [vmem:[#allocation2 + $0xc1] sm:$0xff] }
  0x56   :  { %4447 = vrot.lane.b32.xlu1 %v4401_v19, %s5339_s22  ;;  %v3751_v19 = vld [vmem:[%s7195_s0 + $0xb0] sm:$0xff]  }
  0x57   :  { %4442 = vrot.lane.b32.xlu0 %v4441_v37, %s5339_s22  ;;  %v3684_v21 = vunpack.c.l.bf16 %v3751_v19  ;;  %v3685_v29 = vunpack.c.h.bf16 %v3751_v19 }
  0x59   :  { %202 = vst.msk [vmem:[#allocation2 + $0x160] sm:$0xff] %vm157_vm0, %v3684_v21  ;;  %203 = vst.msk [vmem:[#allocation2 + $0x168] sm:$0xff] %vm157_vm0, %v3685_v29 }
  0x5a   :  { %4457 = vrot.lane.b32.xlu1 %v4411_v22, %s5338_s19  ;;  %v308_v22 = vld [vmem:[#allocation2 + $0xa1] sm:$0xff] }
  0x5b   :  { %4452 = vrot.lane.b32.xlu0 %v4451_v42, %s5338_s19  ;;  %v4521_v26 = vpack.i.bf16 %v309_v23, %v308_v22 }
  0x5e   :  { %4467 = vrot.lane.b32.xlu1 %v4421_v28, %s5340_s25  ;;  %v5685_v28 = vpack.i.bf16 %v371_v27, %v370_v3  ;;  %v5207_v3 = vld [vmem:[%s7196_s1 + $0x80] sm:$0xff]  }
  0x5f   :  { %4462 = vrot.lane.b32.xlu0 %v4461_v46, %s5340_s25  ;;  %4105 = vmatpush3.bf16.msra.mxu1 %v5207_v3 }
  0x60   :  { %4104 = vmatprep.subr.bf16.mxu1 %v5341_v38 }
  0x62   :  { %4477 = vrot.lane.b32.xlu1 %v4431_v32, %s5339_s22  ;;  %v248_v32 = vld [vmem:[#allocation2 + $0xb0] sm:$0xff] }
  0x63   :  { %4472 = vrot.lane.b32.xlu0 %v4471_v56, %s5339_s22 }
  0x66   :  { %4487 = vrot.lane.b32.xlu1 %v4441_v37, %s5338_s19  ;;  %v5694_v37 = vpack.i.bf16 %v249_v33, %v248_v32  ;;  %v5725_v33 = vpack.i.bf16 %v313_v15, %v312_v14 }
  0x67   :  { %4482 = vrot.lane.b32.xlu0 %v4481_v6, %s5338_s19 }
  0x6a   :  { %4497 = vrot.lane.b32.xlu1 %v4451_v42, %s5340_s25 }
  0x6b   :  { %4492 = vrot.lane.b32.xlu0 %v4491_v10, %s5340_s25 }
  0x6e   :  { %4507 = vrot.lane.b32.xlu1 %v4461_v46, %s5339_s22 }
  0x6f   :  { %4502 = vrot.lane.b32.xlu0 %v4501_v13, %s5339_s22 }
  0x72   :  { %4517 = vrot.lane.b32.xlu1 %v4471_v56, %s5338_s19 }
  0x73   :  { %4512 = vrot.lane.b32.xlu0 %v4511_v20, %s5338_s19 }
  0x76   :  { %4527 = vrot.lane.b32.xlu1 %v4481_v6, %s5340_s25  ;;  %v227_v6 = vld [vmem:[#allocation2 + $0x8] sm:$0xff] }
  0x77   :  { %4522 = vrot.lane.b32.xlu0 %v4521_v26, %s5340_s25 }
  0x7a   :  { %4537 = vrot.lane.b32.xlu1 %v4491_v10, %s5339_s22 }
  0x7b   :  { %4532 = vrot.lane.b32.xlu0 %v5685_v28, %s5339_s22 }
  0x7e   :  { %4547 = vrot.lane.b32.xlu1 %v4501_v13, %s5338_s19 }
  0x7f   :  { %4542 = vrot.lane.b32.xlu0 %v5694_v37, %s5338_s19 }
  0x80   :  { %v4273_v42 = vpop.permute.xlu1 %4272 }
  0x81   :  { %v4263_v45 = vpop.permute.xlu0 %4262  ;;  %v4274_v5 = vunpack.i.l.bf16 %v4273_v42  ;;  %v4275_v19 = vunpack.i.h.bf16 %v4273_v42 }
  0x82   :  { %v4264_v46 = vunpack.i.l.bf16 %v4263_v45  ;;  %4557 = vrot.lane.b32.xlu1 %v4511_v20, %s5340_s25  ;;  %v4265_v56 = vunpack.i.h.bf16 %v4263_v45  ;;  %v5716_v20 = vpack.i.bf16 %v251_v4, %v250_v60  ;;  %v375_v60 = vld [vmem:[#allocation2 + $0xca] sm:$0xff] }
  0x83   :  { %4552 = vrot.lane.b32.xlu0 %v5700_v41, %s5340_s25 }
  0x84   :  { %v4278_v59 = vpop.permute.xlu1 %4277  ;;  %v1922_v9 = vsel %vm157_vm0, %v5473_v57, %v4264_v46  ;;  %v3692_v57 = vunpack.c.l.bf16 %v3753_v16 }
  0x85   :  { %v4268_v7 = vpop.permute.xlu0 %4267  ;;  %v4280_v10 = vunpack.i.h.bf16 %v4278_v59  ;;  %v4279_v11 = vunpack.i.l.bf16 %v4278_v59  ;;  %v1984_v36 = vsel %vm1796_vm1, %v1922_v9, %v4274_v5  ;;  %v374_v59 = vld [vmem:[#allocation2 + $0xc2] sm:$0xff] }
  0x86   :  { %v4270_v12 = vunpack.i.h.bf16 %v4268_v7  ;;  %v4269_v13 = vunpack.i.l.bf16 %v4268_v7  ;;  %4567 = vrot.lane.b32.xlu1 %v4521_v26, %s5339_s22  ;;  %v1923_v26 = vsel %vm157_vm0, %v5475_v58, %v4265_v56  ;;  %206 = vst.msk [vmem:[#allocation2 + $0x180] sm:$0xff] %vm157_vm0, %v3692_v57  ;;  %v3693_v7 = vunpack.c.h.bf16 %v3753_v16  ;;  %v315_v57 = vld [vmem:[#allocation2 + $0xd9] sm:$0xff] }
  0x87   :  { %4562 = vrot.lane.b32.xlu0 %v5705_v54, %s5339_s22  ;;  %v1985_v43 = vsel %vm1796_vm1, %v1923_v26, %v4275_v19  ;;  %v314_v19 = vld [vmem:[#allocation2 + $0xd1] sm:$0xff] }
  0x88   :  { %v1735_v21 = vsel %vm157_vm0, %v227_v6, %v4270_v12  ;;  %v1734_v22 = vsel %vm157_vm0, %v226_v8, %v4269_v13  ;;  %v4288_v23 = vpop.permute.xlu1 %4287  ;;  %v5747_v6 = vpack.i.bf16 %v375_v60, %v374_v59  ;;  %v253_v12 = vld [vmem:[#allocation2 + $0xd8] sm:$0xff]  ;;  %207 = vst.msk [vmem:[#allocation2 + $0x188] sm:$0xff] %vm157_vm0, %v3693_v7 }
  0x89   :  { %v4290_v27 = vunpack.i.h.bf16 %v4288_v23  ;;  %v4289_v29 = vunpack.i.l.bf16 %v4288_v23  ;;  %v4283_v32 = vpop.permute.xlu0 %4282  ;;  %v1797_v40 = vsel %vm1796_vm1, %v1734_v22, %v4279_v11  ;;  %v1798_v42 = vsel %vm1796_vm1, %v1735_v21, %v4280_v10  ;;  %v252_v11 = vld [vmem:[#allocation2 + $0xd0] sm:$0xff]  ;;  %v3754_v16 = vld [vmem:[%s7195_s0 + $0xc8] sm:$0xff]  }
  0x8a   :  { %v4285_v39 = vunpack.i.h.bf16 %v4283_v32  ;;  %v4284_v58 = vunpack.i.l.bf16 %v4283_v32  ;;  %4577 = vrot.lane.b32.xlu1 %v5685_v28, %s5338_s19  ;;  %v5758_v26 = vpack.i.bf16 %v253_v12, %v252_v11  ;;  %v5764_v32 = vpack.i.bf16 %v315_v57, %v314_v19  ;;  %v376_v59 = vld [vmem:[#allocation2 + $0xd2] sm:$0xff]  ;;  %v377_v60 = vld [vmem:[#allocation2 + $0xda] sm:$0xff]  ;;  %v317_v19 = vld [vmem:[#allocation2 + $0xe9] sm:$0xff] }
  0x8b   :  { %4572 = vrot.lane.b32.xlu0 %v5716_v20, %s5338_s19  ;;  %v1860_v44 = vsel %vm1859_vm2, %v1797_v40, %v4289_v29  ;;  %v1861_v45 = vsel %vm1859_vm2, %v1798_v42, %v4290_v27  ;;  %v3697_v11 = vunpack.c.h.bf16 %v3754_v16 }
  0x8c   :  { %v4298_v46 = vpop.permute.xlu1 %4297  ;;  %v2046_v55 = vsel %vm1859_vm2, %v1984_v36, %v4284_v58  ;;  %v2047_v28 = vsel %vm1859_vm2, %v1985_v43, %v4285_v39  ;;  %v2108_v56 = vpack.c.bf16 %v1861_v45, %v1860_v44 }
  0x8d   :  { %v4293_v4 = vpop.permute.xlu0 %4292  ;;  %v2109_v5 = vpack.c.bf16 %v2047_v28, %v2046_v55  ;;  %v4300_v8 = vunpack.i.h.bf16 %v4298_v46  ;;  %v4299_v9 = vunpack.i.l.bf16 %v4298_v46  ;;  %209 = vst.msk [vmem:[#allocation2 + $0x198] sm:$0xff] %vm157_vm0, %v3697_v11 }
  0x8e   :  { %4587 = vrot.lane.b32.xlu1 %v5694_v37, %s5340_s25  ;;  %v4295_v13 = vunpack.i.h.bf16 %v4293_v4  ;;  %v4294_v14 = vunpack.i.l.bf16 %v4293_v4 }
  0x8f   :  { %4582 = vrot.lane.b32.xlu0 %v5725_v33, %s5340_s25  ;;  %2477 = vmatprep.mubr.bf16.mxu0 %v2109_v5  ;;  %v1737_v27 = vsel %vm157_vm0, %v5451_v48, %v4300_v8  ;;  %v5787_v8 = vpack.i.bf16 %v377_v60, %v376_v59 }
  0x90   :  { %2478 = vmatmul.mubr.bf16.vlgmr.msra.gmra.mrb[0].mxu0 %v2108_v56  ;;  %v4308_v10 = vpop.permute.xlu1 %4307  ;;  %v1925_v36 = vsel %vm157_vm0, %v5456_v50, %v4295_v13  ;;  %v1924_v39 = vsel %vm157_vm0, %v5453_v49, %v4294_v14 }
  0x91   :  { %v4303_v15 = vpop.permute.xlu0 %4302  ;;  %3836 = vmatpush3.bf16.msra.mxu0 %v5207_v3  ;;  %v4310_v37 = vunpack.i.h.bf16 %v4308_v10  ;;  %v4309_v21 = vunpack.i.l.bf16 %v4308_v10  ;;  %v3696_v3 = vunpack.c.l.bf16 %v3754_v16  ;;  %v255_v10 = vld [vmem:[#allocation2 + $0xe8] sm:$0xff] }
  0x92   :  { %4597 = vrot.lane.b32.xlu1 %v5700_v41, %s5339_s22  ;;  %3837 = vmatprep.subr.bf16.mxu0 %v5341_v38  ;;  %v4305_v22 = vunpack.i.h.bf16 %v4303_v15  ;;  %v4304_v23 = vunpack.i.l.bf16 %v4303_v15  ;;  %v1736_v41 = vsel %vm157_vm0, %v5449_v47, %v4299_v9  ;;  %v254_v9 = vld [vmem:[#allocation2 + $0xe0] sm:$0xff] }
  0x93   :  { %4592 = vrot.lane.b32.xlu0 %v5747_v6, %s5339_s22  ;;  %208 = vst.msk [vmem:[#allocation2 + $0x190] sm:$0xff] %vm157_vm0, %v3696_v3  ;;  %v1799_v47 = vsel %vm1796_vm1, %v1736_v41, %v4309_v21  ;;  %v1800_v48 = vsel %vm1796_vm1, %v1737_v27, %v4310_v37  ;;  %v316_v15 = vld [vmem:[#allocation2 + $0xe1] sm:$0xff]  ;;  %v5795_v16 = vpack.i.bf16 %v255_v10, %v254_v9 }
  0x94   :  { %v4318_v29 = vpop.permute.xlu1 %4317  ;;  %v1986_v50 = vsel %vm1796_vm1, %v1924_v39, %v4304_v23  ;;  %v1987_v49 = vsel %vm1796_vm1, %v1925_v36, %v4305_v22  ;;  %v3755_v3 = vld [vmem:[%s7195_s0 + $0xd0] sm:$0xff]   ;;  %v379_v39 = vld [vmem:[#allocation2 + $0xea] sm:$0xff] }
  0x95   :  { %v4320_v58 = vunpack.i.h.bf16 %v4318_v29  ;;  %v4319_v40 = vunpack.i.l.bf16 %v4318_v29  ;;  %v4313_v42 = vpop.permute.xlu0 %4312  ;;  %v5804_v29 = vpack.i.bf16 %v317_v19, %v316_v15  ;;  %v378_v36 = vld [vmem:[#allocation2 + $0xe2] sm:$0xff]  ;;  %v319_v15 = vld [vmem:[#allocation2 + $0xf9] sm:$0xff] }
  0x96   :  { %v4315_v43 = vunpack.i.h.bf16 %v4313_v42  ;;  %v4314_v44 = vunpack.i.l.bf16 %v4313_v42  ;;  %4607 = vrot.lane.b32.xlu1 %v5705_v54, %s5338_s19 }
  0x97   :  { %4602 = vrot.lane.b32.xlu0 %v5758_v26, %s5338_s19  ;;  %v1862_v45 = vsel %vm1859_vm2, %v1799_v47, %v4319_v40  ;;  %v1863_v46 = vsel %vm1859_vm2, %v1800_v48, %v4320_v58  ;;  %v3700_v58 = vunpack.c.l.bf16 %v3755_v3 }
  0x98   :  { %v4328_v55 = vpop.permute.xlu1 %4327  ;;  %v2048_v28 = vsel %vm1859_vm2, %v1986_v50, %v4314_v44  ;;  %v2049_v54 = vsel %vm1859_vm2, %v1987_v49, %v4315_v43  ;;  %v2111_v56 = vpack.c.bf16 %v1863_v46, %v1862_v45  ;;  %v2146_v43 = vpack.c.bf16 %v379_v39, %v378_v36 }
  0x99   :  { %v4323_v4 = vpop.permute.xlu0 %4322  ;;  %v2112_v5 = vpack.c.bf16 %v2049_v54, %v2048_v28  ;;  %v4330_v7 = vunpack.i.h.bf16 %v4328_v55  ;;  %v4329_v12 = vunpack.i.l.bf16 %v4328_v55  ;;  %210 = vst.msk [vmem:[#allocation2 + $0x1a0] sm:$0xff] %vm157_vm0, %v3700_v58 }
  0x9a   :  { %4617 = vrot.lane.b32.xlu1 %v5716_v20, %s5340_s25  ;;  %v4325_v13 = vunpack.i.h.bf16 %v4323_v4  ;;  %v4324_v57 = vunpack.i.l.bf16 %v4323_v4  ;;  %v5208_v20 = vld [vmem:[%s7196_s1 + $0x88] sm:$0xff]   ;;  %v5835_v4 = vpack.i.bf16 %v379_v39, %v378_v36 }
  0x9b   :  { %4612 = vrot.lane.b32.xlu0 %v5764_v32, %s5340_s25  ;;  %2485 = vmatprep.mubr.bf16.mxu0 %v2112_v5  ;;  %v1739_v27 = vsel %vm157_vm0, %v5434_v35, %v4330_v7  ;;  %v256_v5 = vld [vmem:[#allocation2 + $0xf0] sm:$0xff]  ;;  %v3701_v7 = vunpack.c.h.bf16 %v3755_v3 }
  0x9c   :  { %2486 = vmatmul.mubr.bf16.gmra.mrb[4].mxu0 %v2111_v56  ;;  %v4338_v14 = vpop.permute.xlu1 %4337  ;;  %4106 = vmatpush3.bf16.msra.mxu1 %v5208_v20  ;;  %v1927_v40 = vsel %vm157_vm0, %v5499_v2, %v4325_v13  ;;  %v1926_v35 = vsel %vm157_vm0, %v5497_v1, %v4324_v57  ;;  %v257_v13 = vld [vmem:[#allocation2 + $0xf8] sm:$0xff] }
  0x9d   :  { %v4339_v37 = vunpack.i.l.bf16 %v4338_v14  ;;  %v4333_v21 = vpop.permute.xlu0 %4332  ;;  %v4340_v22 = vunpack.i.h.bf16 %v4338_v14  ;;  %3838 = vmatpush3.bf16.msra.mxu0 %v5208_v20  ;;  %3963 = vmatprep.subr.bf16.mxu1 %v5341_v38  ;;  %v318_v14 = vld [vmem:[#allocation2 + $0xf1] sm:$0xff]  ;;  %211 = vst.msk [vmem:[#allocation2 + $0x1a8] sm:$0xff] %vm157_vm0, %v3701_v7  ;;  %v3756_v20 = vld [vmem:[%s7195_s0 + $0xd8] sm:$0xff]  }
  0x9e   :  { %v4334_v23 = vunpack.i.l.bf16 %v4333_v21  ;;  %4627 = vrot.lane.b32.xlu1 %v5725_v33, %s5339_s22  ;;  %v4335_v41 = vunpack.i.h.bf16 %v4333_v21  ;;  %v1738_v33 = vsel %vm157_vm0, %v5432_v34, %v4329_v12  ;;  %v5847_v3 = vpack.i.bf16 %v319_v15, %v318_v14  ;;  %v320_v7 = vld [vmem:[#allocation2 + $0x101] sm:$0xff]  ;;  %v3757_v15 = vld [vmem:[%s7195_s0 + $0xe0] sm:$0xff]  }
  0x9f   :  { %4622 = vrot.lane.b32.xlu0 %v5787_v8, %s5339_s22  ;;  %v1801_v50 = vsel %vm1796_vm1, %v1738_v33, %v4339_v37  ;;  %v1802_v1 = vsel %vm1796_vm1, %v1739_v27, %v4340_v22  ;;  %3888 = vmatmul.mubr.msk.bf16.vlgmr.msra.gmra.mrb[0].mxu1 %vm157_vm0, %v2146_v43  ;;  %v380_v27 = vld [vmem:[#allocation2 + $0xf2] sm:$0xff]  ;;  %v3704_v36 = vunpack.c.l.bf16 %v3756_v20 }
  0xa0   :  { %v4348_v42 = vpop.permute.xlu1 %4347  ;;  %v1988_v49 = vsel %vm1796_vm1, %v1926_v35, %v4334_v23  ;;  %v1989_v45 = vsel %vm1796_vm1, %v1927_v40, %v4335_v41  ;;  %3891 = vmatprep.mubr.msk.bf16.mxu1 %vm5342_vm3, %v5341_v38  ;;  %v5845_v23 = vpack.i.bf16 %v257_v13, %v256_v5  ;;  %v381_v41 = vld [vmem:[#allocation2 + $0xfa] sm:$0xff] }
  0xa1   :  { %v4350_v44 = vunpack.i.h.bf16 %v4348_v42  ;;  %v4349_v47 = vunpack.i.l.bf16 %v4348_v42  ;;  %v4343_v48 = vpop.permute.xlu0 %4342  ;;  %v2149_v40 = vpack.c.bf16 %v381_v41, %v380_v27  ;;  %212 = vst.msk [vmem:[#allocation2 + $0x1b0] sm:$0xff] %vm157_vm0, %v3704_v36 }
  0xa2   :  { %v4345_v34 = vunpack.i.h.bf16 %v4343_v48  ;;  %v4344_v2 = vunpack.i.l.bf16 %v4343_v48  ;;  %4637 = vrot.lane.b32.xlu1 %v5747_v6, %s5338_s19 }
  0xa3   :  { %4632 = vrot.lane.b32.xlu0 %v5795_v16, %s5338_s19  ;;  %v1864_v46 = vsel %vm1859_vm2, %v1801_v50, %v4349_v47  ;;  %v1865_v55 = vsel %vm1859_vm2, %v1802_v1, %v4350_v44 }
  0xa4   :  { %v4358_v28 = vpop.permute.xlu1 %4357  ;;  %v2050_v6 = vsel %vm1859_vm2, %v1988_v49, %v4344_v2  ;;  %v2051_v54 = vsel %vm1859_vm2, %v1989_v45, %v4345_v34  ;;  %v2114_v56 = vpack.c.bf16 %v1865_v55, %v1864_v46  ;;  %v5877_v55 = vpack.i.bf16 %v381_v41, %v380_v27  ;;  %v5218_v27 = vld [vmem:[#allocation2 + $0x40] sm:$0xff] }
  0xa5   :  { %v4353_v59 = vpop.permute.xlu0 %4352  ;;  %v2115_v60 = vpack.c.bf16 %v2051_v54, %v2050_v6  ;;  %v4360_v9 = vunpack.i.h.bf16 %v4358_v28  ;;  %v4359_v10 = vunpack.i.l.bf16 %v4358_v28  ;;  %v258_v28 = vld [vmem:[#allocation2 + $0x100] sm:$0xff]  ;;  %v259_v6 = vld [vmem:[#allocation2 + $0x108] sm:$0xff]  ;;  %v3705_v54 = vunpack.c.h.bf16 %v3756_v20 }
  0xa6   :  { %4647 = vrot.lane.b32.xlu1 %v5758_v26, %s5340_s25  ;;  %v4355_v11 = vunpack.i.h.bf16 %v4353_v59  ;;  %v4354_v19 = vunpack.i.l.bf16 %v4353_v59  ;;  %v5882_v14 = vpack.i.bf16 %v259_v6, %v258_v28  ;;  %v5217_v20 = vld [vmem:[#allocation2 + $0x48] sm:$0xff]  ;;  %v322_v6 = vld [vmem:[#allocation2 + $0x111] sm:$0xff] }
  0xa7   :  { %4642 = vrot.lane.b32.xlu0 %v5804_v29, %s5340_s25  ;;  %2493 = vmatprep.mubr.bf16.mxu0 %v2115_v60  ;;  %v1741_v39 = vsel %vm157_vm0, %v5489_v63, %v4360_v9  ;;  %v321_v9 = vld [vmem:[#allocation2 + $0x109] sm:$0xff]  ;;  %213 = vst.msk [vmem:[#allocation2 + $0x1b8] sm:$0xff] %vm157_vm0, %v3705_v54  ;;  %v323_v54 = vld [vmem:[#allocation2 + $0x119] sm:$0xff] }
  0xa8   :  { %2494 = vmatmul.mubr.bf16.gmra.mrb[8].mxu0 %v2114_v56  ;;  %v4368_v12 = vpop.permute.xlu1 %4367  ;;  %v1929_v58 = vsel %vm157_vm0, %v5547_v25, %v4355_v11  ;;  %v1928_v42 = vsel %vm157_vm0, %v5545_v24, %v4354_v19  ;;  %3892 = vmatmul.mubr.msk.bf16.gmra.mrb[4].mxu1 %vm157_vm0, %v2149_v40 }
  0xa9   :  { %v4369_v57 = vunpack.i.l.bf16 %v4368_v12  ;;  %v4363_v37 = vpop.permute.xlu0 %4362  ;;  %v4370_v26 = vunpack.i.h.bf16 %v4368_v12  ;;  %3895 = vmatprep.mubr.msk.bf16.mxu1 %vm5342_vm3, %v5341_v38 }
  0xaa   :  { %v4364_v21 = vunpack.i.l.bf16 %v4363_v37  ;;  %4657 = vrot.lane.b32.xlu1 %v5764_v32, %s5339_s22  ;;  %v4365_v22 = vunpack.i.h.bf16 %v4363_v37  ;;  %v1740_v32 = vsel %vm157_vm0, %v5487_v62, %v4359_v10  ;;  %v382_v37 = vld [vmem:[#allocation2 + $0x102] sm:$0xff] }
  0xab   :  { %4652 = vrot.lane.b32.xlu0 %v5835_v4, %s5339_s22  ;;  %v1803_v47 = vsel %vm1796_vm1, %v1740_v32, %v4369_v57  ;;  %v1804_v25 = vsel %vm1796_vm1, %v1741_v39, %v4370_v26  ;;  %v5889_v57 = vpack.i.bf16 %v321_v9, %v320_v7  ;;  %v383_v26 = vld [vmem:[#allocation2 + $0x10a] sm:$0xff]  ;;  %v3758_v9 = vld [vmem:[%s7195_s0 + $0xe8] sm:$0xff]  }
  0xac   :  { %v4378_v33 = vpop.permute.xlu1 %4377  ;;  %v1990_v62 = vsel %vm1796_vm1, %v1928_v42, %v4364_v21  ;;  %v1991_v24 = vsel %vm1796_vm1, %v1929_v58, %v4365_v22  ;;  %v3708_v21 = vunpack.c.l.bf16 %v3757_v15  ;;  %v2152_v39 = vpack.c.bf16 %v383_v26, %v382_v37 }
  0xad   :  { %v4380_v43 = vunpack.i.h.bf16 %v4378_v33  ;;  %v4379_v35 = vunpack.i.l.bf16 %v4378_v33  ;;  %v4373_v44 = vpop.permute.xlu0 %4372 }
  0xae   :  { %v4375_v48 = vunpack.i.h.bf16 %v4373_v44  ;;  %v4374_v63 = vunpack.i.l.bf16 %v4373_v44  ;;  %4667 = vrot.lane.b32.xlu1 %v5787_v8, %s5338_s19  ;;  %214 = vst.msk [vmem:[#allocation2 + $0x1c0] sm:$0xff] %vm157_vm0, %v3708_v21 }
  0xaf   :  { %4662 = vrot.lane.b32.xlu0 %v5845_v23, %s5338_s19  ;;  %v1866_v50 = vsel %vm1859_vm2, %v1803_v47, %v4379_v35  ;;  %v1867_v34 = vsel %vm1859_vm2, %v1804_v25, %v4380_v43 }
  0xb0   :  { %v4388_v2 = vpop.permute.xlu1 %4387  ;;  %v2052_v8 = vsel %vm1859_vm2, %v1990_v62, %v4374_v63  ;;  %v2053_v49 = vsel %vm1859_vm2, %v1991_v24, %v4375_v48  ;;  %v2117_v1 = vpack.c.bf16 %v1867_v34, %v1866_v50  ;;  %3896 = vmatmul.mubr.msk.bf16.gmra.mrb[8].mxu1 %vm157_vm0, %v2152_v39  ;;  %v5917_v34 = vpack.i.bf16 %v383_v26, %v382_v37  ;;  %v5220_v37 = vld [vmem:[#allocation2 + $0x50] sm:$0xff] }
  0xb1   :  { %v4383_v45 = vpop.permute.xlu0 %4382  ;;  %v2118_v46 = vpack.c.bf16 %v2053_v49, %v2052_v8  ;;  %v4390_v56 = vunpack.i.h.bf16 %v4388_v2  ;;  %v4389_v59 = vunpack.i.l.bf16 %v4388_v2  ;;  %3899 = vmatprep.mubr.msk.bf16.mxu1 %vm5342_vm3, %v5341_v38  ;;  %v260_v2 = vld [vmem:[#allocation2 + $0x110] sm:$0xff]  ;;  %v261_v8 = vld [vmem:[#allocation2 + $0x118] sm:$0xff]  ;;  %v3709_v49 = vunpack.c.h.bf16 %v3757_v15 }
  0xb2   :  { %4677 = vrot.lane.b32.xlu1 %v5795_v16, %s5340_s25  ;;  %v4385_v60 = vunpack.i.h.bf16 %v4383_v45  ;;  %v4384_v10 = vunpack.i.l.bf16 %v4383_v45  ;;  %v5922_v7 = vpack.i.bf16 %v261_v8, %v260_v2  ;;  %v5219_v15 = vld [vmem:[#allocation2 + $0x58] sm:$0xff]  ;;  %v325_v2 = vld [vmem:[#allocation2 + $0x129] sm:$0xff] }
  0xb3   :  { %4672 = vrot.lane.b32.xlu0 %v5847_v3, %s5340_s25  ;;  %2501 = vmatprep.mubr.bf16.mxu0 %v2118_v46  ;;  %v1743_v22 = vsel %vm157_vm0, %v5217_v20, %v4390_v56  ;;  %215 = vst.msk [vmem:[#allocation2 + $0x1c8] sm:$0xff] %vm157_vm0, %v3709_v49 }
  0xb4   :  { %2502 = vmatmul.mubr.bf16.gmra.mrb[12].mxu0 %v2117_v1  ;;  %v4398_v5 = vpop.permute.xlu1 %4397  ;;  %v1931_v41 = vsel %vm157_vm0, %v5595_v0, %v4385_v60  ;;  %v1930_v32 = vsel %vm157_vm0, %v5593_v61, %v4384_v10 }
  0xb5   :  { %v4399_v11 = vunpack.i.l.bf16 %v4398_v5  ;;  %v4393_v12 = vpop.permute.xlu0 %4392  ;;  %v4400_v16 = vunpack.i.h.bf16 %v4398_v5 }
  0xb6   :  { %v4394_v13 = vunpack.i.l.bf16 %v4393_v12  ;;  %4687 = vrot.lane.b32.xlu1 %v5804_v29, %s5339_s22  ;;  %v4395_v19 = vunpack.i.h.bf16 %v4393_v12  ;;  %v1742_v29 = vsel %vm157_vm0, %v5218_v27, %v4389_v59  ;;  %v384_v12 = vld [vmem:[#allocation2 + $0x112] sm:$0xff] }
  0xb7   :  { %4682 = vrot.lane.b32.xlu0 %v5877_v55, %s5339_s22  ;;  %v1805_v42 = vsel %vm1796_vm1, %v1742_v29, %v4399_v11  ;;  %v1806_v0 = vsel %vm1796_vm1, %v1743_v22, %v4400_v16  ;;  %v5929_v11 = vpack.i.bf16 %v323_v54, %v322_v6  ;;  %v385_v16 = vld [vmem:[#allocation2 + $0x11a] sm:$0xff] }
  0xb8   :  { %v4408_v36 = vpop.permute.xlu1 %4407  ;;  %v1992_v44 = vsel %vm1796_vm1, %v1930_v32, %v4394_v13  ;;  %v1993_v61 = vsel %vm1796_vm1, %v1931_v41, %v4395_v19  ;;  %v3712_v13 = vunpack.c.l.bf16 %v3758_v9  ;;  %v2155_v20 = vpack.c.bf16 %v385_v16, %v384_v12 }
  0xb9   :  { %v4410_v58 = vunpack.i.h.bf16 %v4408_v36  ;;  %v4409_v33 = vunpack.i.l.bf16 %v4408_v36  ;;  %v4403_v40 = vpop.permute.xlu0 %4402 }
  0xba   :  { %v4405_v43 = vunpack.i.h.bf16 %v4403_v40  ;;  %v4404_v35 = vunpack.i.l.bf16 %v4403_v40  ;;  %4697 = vrot.lane.b32.xlu1 %v5835_v4, %s5338_s19  ;;  %216 = vst.msk [vmem:[#allocation2 + $0x1d0] sm:$0xff] %vm157_vm0, %v3712_v13  ;;  %3900 = vmatmul.mubr.msk.bf16.gmra.mrb[12].mxu1 %vm157_vm0, %v2155_v20 }
  0xbb   :  { %4692 = vrot.lane.b32.xlu0 %v5882_v14, %s5338_s19  ;;  %v1868_v47 = vsel %vm1859_vm2, %v1805_v42, %v4409_v33  ;;  %v1869_v48 = vsel %vm1859_vm2, %v1806_v0, %v4410_v58  ;;  %3903 = vmatprep.mubr.msk.bf16.mxu1 %vm5342_vm3, %v5341_v38 }
  0xbc   :  { %v4418_v63 = vpop.permute.xlu1 %4417  ;;  %v2054_v4 = vsel %vm1859_vm2, %v1992_v44, %v4404_v35  ;;  %v2055_v62 = vsel %vm1859_vm2, %v1993_v61, %v4405_v43  ;;  %v2120_v25 = vpack.c.bf16 %v1869_v48, %v1868_v47  ;;  %v5957_v61 = vpack.i.bf16 %v385_v16, %v384_v12  ;;  %v262_v47 = vld [vmem:[#allocation2 + $0x120] sm:$0xff]  ;;  %v263_v48 = vld [vmem:[#allocation2 + $0x128] sm:$0xff] }
  0xbd   :  { %v4413_v24 = vpop.permute.xlu0 %4412  ;;  %v2121_v50 = vpack.c.bf16 %v2055_v62, %v2054_v4  ;;  %v4420_v1 = vunpack.i.h.bf16 %v4418_v63  ;;  %v4419_v45 = vunpack.i.l.bf16 %v4418_v63  ;;  %v3713_v63 = vunpack.c.h.bf16 %v3758_v9  ;;  %v5222_v9 = vld [vmem:[#allocation2 + $0x60] sm:$0xff] }
  0xbe   :  { %4707 = vrot.lane.b32.xlu1 %v5845_v23, %s5340_s25  ;;  %v4415_v46 = vunpack.i.h.bf16 %v4413_v24  ;;  %v4414_v56 = vunpack.i.l.bf16 %v4413_v24 }
  0xbf   :  { %4702 = vrot.lane.b32.xlu0 %v5889_v57, %s5340_s25  ;;  %2509 = vmatprep.mubr.bf16.mxu0 %v2121_v50  ;;  %v1745_v19 = vsel %vm157_vm0, %v5219_v15, %v4420_v1  ;;  %v324_v50 = vld [vmem:[#allocation2 + $0x121] sm:$0xff]  ;;  %217 = vst.msk [vmem:[#allocation2 + $0x1d8] sm:$0xff] %vm157_vm0, %v3713_v63 }
  0xc0   :  { %2510 = vmatmul.mubr.bf16.gmra.mrb[16].mxu0 %v2120_v25  ;;  %v4428_v28 = vpop.permute.xlu1 %4427  ;;  %v1933_v26 = vsel %vm157_vm0, %v5625_v18, %v4415_v46  ;;  %v1932_v22 = vsel %vm157_vm0, %v5623_v17, %v4414_v56  ;;  %v5962_v46 = vpack.i.bf16 %v263_v48, %v262_v47  ;;  %v5969_v54 = vpack.i.bf16 %v325_v2, %v324_v50  ;;  %v386_v56 = vld [vmem:[#allocation2 + $0x122] sm:$0xff]  ;;  %v388_v50 = vld [vmem:[#allocation2 + $0x132] sm:$0xff]  ;;  %v389_v2 = vld [vmem:[#allocation2 + $0x13a] sm:$0xff] }
  0xc1   :  { %v4429_v59 = vunpack.i.l.bf16 %v4428_v28  ;;  %v4423_v60 = vpop.permute.xlu0 %4422  ;;  %v4430_v23 = vunpack.i.h.bf16 %v4428_v28  ;;  %v3759_v28 = vld [vmem:[%s7195_s0 + $0xf0] sm:$0xff]  }
  0xc2   :  { %v4424_v5 = vunpack.i.l.bf16 %v4423_v60  ;;  %4717 = vrot.lane.b32.xlu1 %v5847_v3, %s5339_s22  ;;  %v4425_v10 = vunpack.i.h.bf16 %v4423_v60  ;;  %v1744_v3 = vsel %vm157_vm0, %v5220_v37, %v4419_v45  ;;  %v3716_v60 = vunpack.c.l.bf16 %v3759_v28 }
  0xc3   :  { %4712 = vrot.lane.b32.xlu0 %v5917_v34, %s5339_s22  ;;  %v1807_v36 = vsel %vm1796_vm1, %v1744_v3, %v4429_v59  ;;  %v1808_v18 = vsel %vm1796_vm1, %v1745_v19, %v4430_v23  ;;  %v387_v59 = vld [vmem:[#allocation2 + $0x12a] sm:$0xff] }
  0xc4   :  { %v4438_v21 = vpop.permute.xlu1 %4437  ;;  %v1994_v58 = vsel %vm1796_vm1, %v1932_v22, %v4424_v5  ;;  %v1995_v17 = vsel %vm1796_vm1, %v1933_v26, %v4425_v10  ;;  %v5221_v23 = vld [vmem:[#allocation2 + $0x68] sm:$0xff]  ;;  %v2158_v16 = vpack.c.bf16 %v387_v59, %v386_v56  ;;  %218 = vst.msk [vmem:[#allocation2 + $0x1e0] sm:$0xff] %vm157_vm0, %v3716_v60 }
  0xc5   :  { %v4440_v27 = vunpack.i.h.bf16 %v4438_v21  ;;  %v4439_v29 = vunpack.i.l.bf16 %v4438_v21  ;;  %v4433_v41 = vpop.permute.xlu0 %4432 }
  0xc6   :  { %v4435_v39 = vunpack.i.h.bf16 %v4433_v41  ;;  %v4434_v32 = vunpack.i.l.bf16 %v4433_v41  ;;  %4727 = vrot.lane.b32.xlu1 %v5877_v55, %s5338_s19  ;;  %3904 = vmatmul.mubr.msk.bf16.gmra.mrb[16].mxu1 %vm157_vm0, %v2158_v16 }
  0xc7   :  { %4722 = vrot.lane.b32.xlu0 %v5922_v7, %s5338_s19  ;;  %v1870_v33 = vsel %vm1859_vm2, %v1807_v36, %v4439_v29  ;;  %v1871_v40 = vsel %vm1859_vm2, %v1808_v18, %v4440_v27  ;;  %3907 = vmatprep.mubr.msk.bf16.mxu1 %vm5342_vm3, %v5341_v38  ;;  %v264_v18 = vld [vmem:[#allocation2 + $0x130] sm:$0xff] }
  0xc8   :  { %v4448_v42 = vpop.permute.xlu1 %4447  ;;  %v2056_v55 = vsel %vm1859_vm2, %v1994_v58, %v4434_v32  ;;  %v2057_v43 = vsel %vm1859_vm2, %v1995_v17, %v4435_v39  ;;  %v2123_v35 = vpack.c.bf16 %v1871_v40, %v1870_v33  ;;  %v5997_v58 = vpack.i.bf16 %v387_v59, %v386_v56  ;;  %v265_v17 = vld [vmem:[#allocation2 + $0x138] sm:$0xff]  ;;  %v5226_v59 = vld [vmem:[#allocation2 + $0x81] sm:$0xff] }
  0xc9   :  { %v4443_v44 = vpop.permute.xlu0 %4442  ;;  %v2124_v0 = vpack.c.bf16 %v2057_v43, %v2056_v55  ;;  %v4450_v4 = vunpack.i.h.bf16 %v4448_v42  ;;  %v4449_v62 = vunpack.i.l.bf16 %v4448_v42  ;;  %v3717_v33 = vunpack.c.h.bf16 %v3759_v28 }
  0xca   :  { %4737 = vrot.lane.b32.xlu1 %v5882_v14, %s5340_s25  ;;  %v4445_v25 = vunpack.i.h.bf16 %v4443_v44  ;;  %v4444_v8 = vunpack.i.l.bf16 %v4443_v44  ;;  %v327_v44 = vld [vmem:[#allocation2 + $0x139] sm:$0xff]  ;;  %v2161_v56 = vpack.c.bf16 %v389_v2, %v388_v50 }
  0xcb   :  { %4732 = vrot.lane.b32.xlu0 %v5929_v11, %s5340_s25  ;;  %2517 = vmatprep.mubr.bf16.mxu0 %v2124_v0  ;;  %v1747_v5 = vsel %vm157_vm0, %v5221_v23, %v4450_v4  ;;  %219 = vst.msk [vmem:[#allocation2 + $0x1e8] sm:$0xff] %vm157_vm0, %v3717_v33  ;;  %v6002_v4 = vpack.i.bf16 %v265_v17, %v264_v18  ;;  %v329_v18 = vld [vmem:[#allocation2 + $0x149] sm:$0xff] }
  0xcc   :  { %2518 = vmatmul.mubr.bf16.gmra.mrb[20].mxu0 %v2123_v35  ;;  %v4458_v24 = vpop.permute.xlu1 %4457  ;;  %v1935_v10 = vsel %vm157_vm0, %v5643_v31, %v4445_v25  ;;  %v1934_v13 = vsel %vm157_vm0, %v5641_v30, %v4444_v8  ;;  %v326_v35 = vld [vmem:[#allocation2 + $0x131] sm:$0xff] }
  0xcd   :  { %v4459_v49 = vunpack.i.l.bf16 %v4458_v24  ;;  %v4453_v1 = vpop.permute.xlu0 %4452  ;;  %v4460_v14 = vunpack.i.h.bf16 %v4458_v24  ;;  %v6009_v24 = vpack.i.bf16 %v327_v44, %v326_v35 }
  0xce   :  { %v4454_v45 = vunpack.i.l.bf16 %v4453_v1  ;;  %4747 = vrot.lane.b32.xlu1 %v5889_v57, %s5339_s22  ;;  %v4455_v6 = vunpack.i.h.bf16 %v4453_v1  ;;  %v1746_v57 = vsel %vm157_vm0, %v5222_v9, %v4449_v62  ;;  %v3760_v62 = vld [vmem:[%s7195_s0 + $0xf8] sm:$0xff]   ;;  %3908 = vmatmul.mubr.msk.bf16.gmra.mrb[20].mxu1 %vm157_vm0, %v2161_v56 }
  0xcf   :  { %4742 = vrot.lane.b32.xlu0 %v5957_v61, %s5339_s22  ;;  %v1809_v3 = vsel %vm1796_vm1, %v1746_v57, %v4459_v49  ;;  %v1810_v31 = vsel %vm1796_vm1, %v1747_v5, %v4460_v14  ;;  %v3720_v8 = vunpack.c.l.bf16 %v3760_v62  ;;  %v5223_v49 = vld [vmem:[#allocation2 + $0x78] sm:$0xff]  ;;  %v5224_v14 = vld [vmem:[#allocation2 + $0x70] sm:$0xff]  ;;  %3911 = vmatprep.mubr.msk.bf16.mxu1 %vm5342_vm3, %v5341_v38 }
  0xd0   :  { %v4468_v12 = vpop.permute.xlu1 %4467  ;;  %v1996_v20 = vsel %vm1796_vm1, %v1934_v13, %v4454_v45  ;;  %v1997_v30 = vsel %vm1796_vm1, %v1935_v10, %v4455_v6  ;;  %v5225_v45 = vld [vmem:[#allocation2 + $0x89] sm:$0xff] }
  0xd1   :  { %v4470_v15 = vunpack.i.h.bf16 %v4468_v12  ;;  %v4469_v19 = vunpack.i.l.bf16 %v4468_v12  ;;  %v4463_v37 = vpop.permute.xlu0 %4462  ;;  %220 = vst.msk [vmem:[#allocation2 + $0x1f0] sm:$0xff] %vm157_vm0, %v3720_v8 }
  0xd2   :  { %v4465_v26 = vunpack.i.h.bf16 %v4463_v37  ;;  %v4464_v21 = vunpack.i.l.bf16 %v4463_v37  ;;  %4757 = vrot.lane.b32.xlu1 %v5917_v34, %s5338_s19 }
  0xd3   :  { %4752 = vrot.lane.b32.xlu0 %v5962_v46, %s5338_s19  ;;  %v1872_v22 = vsel %vm1859_vm2, %v1809_v3, %v4469_v19  ;;  %v1873_v27 = vsel %vm1859_vm2, %v1810_v31, %v4470_v15 }
  0xd4   :  { %v4478_v29 = vpop.permute.xlu1 %4477  ;;  %v2058_v34 = vsel %vm1859_vm2, %v1996_v20, %v4464_v21  ;;  %v2059_v41 = vsel %vm1859_vm2, %v1997_v30, %v4465_v26  ;;  %v2126_v36 = vpack.c.bf16 %v1873_v27, %v1872_v22  ;;  %v6035_v30 = vpack.i.bf16 %v389_v2, %v388_v50  ;;  %v266_v22 = vld [vmem:[#allocation2 + $0x140] sm:$0xff]  ;;  %v267_v27 = vld [vmem:[#allocation2 + $0x148] sm:$0xff] }
  0xd5   :  { %v4473_v39 = vpop.permute.xlu0 %4472  ;;  %v2127_v32 = vpack.c.bf16 %v2059_v41, %v2058_v34  ;;  %v4480_v40 = vunpack.i.h.bf16 %v4478_v29  ;;  %v4479_v42 = vunpack.i.l.bf16 %v4478_v29  ;;  %v3721_v29 = vunpack.c.h.bf16 %v3760_v62  ;;  %v5228_v62 = vld [vmem:[#allocation2 + $0x80] sm:$0xff] }
  0xd6   :  { %4767 = vrot.lane.b32.xlu1 %v5922_v7, %s5340_s25  ;;  %v4475_v55 = vunpack.i.h.bf16 %v4473_v39  ;;  %v4474_v0 = vunpack.i.l.bf16 %v4473_v39 }
  0xd7   :  { %4762 = vrot.lane.b32.xlu0 %v5969_v54, %s5340_s25  ;;  %2525 = vmatprep.mubr.bf16.mxu0 %v2127_v32  ;;  %v1749_v1 = vsel %vm157_vm0, %v5223_v49, %v4480_v40  ;;  %v328_v32 = vld [vmem:[#allocation2 + $0x141] sm:$0xff]  ;;  %221 = vst.msk [vmem:[#allocation2 + $0x1f8] sm:$0xff] %vm157_vm0, %v3721_v29  ;;  %v5230_v49 = vld [vmem:[#allocation2 + $0x91] sm:$0xff] }
  0xd8   :  { %2526 = vmatmul.mubr.bf16.gmra.mrb[24].mxu0 %v2126_v36  ;;  %v4488_v43 = vpop.permute.xlu1 %4487  ;;  %v1937_v28 = vsel %vm157_vm0, %v5225_v45, %v4475_v55  ;;  %v1936_v60 = vsel %vm157_vm0, %v5226_v59, %v4474_v0  ;;  %v6040_v55 = vpack.i.bf16 %v267_v27, %v266_v22  ;;  %v6047_v44 = vpack.i.bf16 %v329_v18, %v328_v32  ;;  %v390_v0 = vld [vmem:[#allocation2 + $0x142] sm:$0xff]  ;;  %v331_v22 = vld [vmem:[#allocation2 + $0x159] sm:$0xff] }
  0xd9   :  { %v4489_v47 = vunpack.i.l.bf16 %v4488_v43  ;;  %v4483_v48 = vpop.permute.xlu0 %4482  ;;  %v4490_v7 = vunpack.i.h.bf16 %v4488_v43  ;;  %v3761_v43 = vld [vmem:[%s7195_s0 + $0x100] sm:$0xff]  }
  0xda   :  { %v4484_v63 = vunpack.i.l.bf16 %v4483_v48  ;;  %4777 = vrot.lane.b32.xlu1 %v5929_v11, %s5339_s22  ;;  %v4485_v25 = vunpack.i.h.bf16 %v4483_v48  ;;  %v1748_v11 = vsel %vm157_vm0, %v5224_v14, %v4479_v42  ;;  %v3724_v48 = vunpack.c.l.bf16 %v3761_v43 }
  0xdb   :  { %4772 = vrot.lane.b32.xlu0 %v5997_v58, %s5339_s22  ;;  %v1811_v57 = vsel %vm1796_vm1, %v1748_v11, %v4489_v47  ;;  %v1812_v13 = vsel %vm1796_vm1, %v1749_v1, %v4490_v7  ;;  %v391_v47 = vld [vmem:[#allocation2 + $0x14a] sm:$0xff] }
  0xdc   :  { %v4498_v6 = vpop.permute.xlu1 %4497  ;;  %v1998_v16 = vsel %vm1796_vm1, %v1936_v60, %v4484_v63  ;;  %v1999_v15 = vsel %vm1796_vm1, %v1937_v28, %v4485_v25  ;;  %v5227_v7 = vld [vmem:[#allocation2 + $0x88] sm:$0xff]  ;;  %v5229_v25 = vld [vmem:[#allocation2 + $0x99] sm:$0xff]  ;;  %v2164_v8 = vpack.c.bf16 %v391_v47, %v390_v0  ;;  %222 = vst.msk [vmem:[#allocation2 + $0x200] sm:$0xff] %vm157_vm0, %v3724_v48 }
  0xdd   :  { %v4500_v23 = vunpack.i.h.bf16 %v4498_v6  ;;  %v4499_v5 = vunpack.i.l.bf16 %v4498_v6  ;;  %v4493_v9 = vpop.permute.xlu0 %4492 }
  0xde   :  { %v4495_v10 = vunpack.i.h.bf16 %v4493_v9  ;;  %v4494_v12 = vunpack.i.l.bf16 %v4493_v9  ;;  %4787 = vrot.lane.b32.xlu1 %v5957_v61, %s5338_s19  ;;  %3912 = vmatmul.mubr.msk.bf16.gmra.mrb[24].mxu1 %vm157_vm0, %v2164_v8 }
  0xdf   :  { %4782 = vrot.lane.b32.xlu0 %v6002_v4, %s5338_s19  ;;  %v1874_v19 = vsel %vm1859_vm2, %v1811_v57, %v4499_v5  ;;  %v1875_v37 = vsel %vm1859_vm2, %v1812_v13, %v4500_v23  ;;  %3915 = vmatprep.mubr.msk.bf16.mxu1 %vm5342_vm3, %v5341_v38 }
  0xe0   :  { %v4508_v3 = vpop.permute.xlu1 %4507  ;;  %v2060_v61 = vsel %vm1859_vm2, %v1998_v16, %v4494_v12  ;;  %v2061_v26 = vsel %vm1859_vm2, %v1999_v15, %v4495_v10  ;;  %v2129_v21 = vpack.c.bf16 %v1875_v37, %v1874_v19  ;;  %v6073_v15 = vpack.i.bf16 %v391_v47, %v390_v0  ;;  %v268_v19 = vld [vmem:[#allocation2 + $0x150] sm:$0xff]  ;;  %v269_v37 = vld [vmem:[#allocation2 + $0x158] sm:$0xff] }
  0xe1   :  { %v4503_v20 = vpop.permute.xlu0 %4502  ;;  %v2130_v31 = vpack.c.bf16 %v2061_v26, %v2060_v61  ;;  %v4510_v34 = vunpack.i.h.bf16 %v4508_v3  ;;  %v4509_v41 = vunpack.i.l.bf16 %v4508_v3  ;;  %v3725_v3 = vunpack.c.h.bf16 %v3761_v43  ;;  %v5232_v43 = vld [vmem:[#allocation2 + $0x90] sm:$0xff] }
  0xe2   :  { %4797 = vrot.lane.b32.xlu1 %v5962_v46, %s5340_s25  ;;  %v4505_v36 = vunpack.i.h.bf16 %v4503_v20  ;;  %v4504_v17 = vunpack.i.l.bf16 %v4503_v20 }
  0xe3   :  { %4792 = vrot.lane.b32.xlu0 %v6009_v24, %s5340_s25  ;;  %2533 = vmatprep.mubr.bf16.mxu0 %v2130_v31  ;;  %v1751_v63 = vsel %vm157_vm0, %v5227_v7, %v4510_v34  ;;  %v330_v31 = vld [vmem:[#allocation2 + $0x151] sm:$0xff]  ;;  %223 = vst.msk [vmem:[#allocation2 + $0x208] sm:$0xff] %vm157_vm0, %v3725_v3  ;;  %v5234_v7 = vld [vmem:[#allocation2 + $0xa1] sm:$0xff] }
  0xe4   :  { %2534 = vmatmul.mubr.bf16.gmra.mrb[28].mxu0 %v2129_v21  ;;  %v4518_v39 = vpop.permute.xlu1 %4517  ;;  %v1939_v50 = vsel %vm157_vm0, %v5229_v25, %v4505_v36  ;;  %v1938_v1 = vsel %vm157_vm0, %v5230_v49, %v4504_v17  ;;  %v6078_v36 = vpack.i.bf16 %v269_v37, %v268_v19  ;;  %v6085_v18 = vpack.i.bf16 %v331_v22, %v330_v31  ;;  %v392_v17 = vld [vmem:[#allocation2 + $0x152] sm:$0xff] }
  0xe5   :  { %v4519_v33 = vunpack.i.l.bf16 %v4518_v39  ;;  %v4513_v40 = vpop.permute.xlu0 %4512  ;;  %v4520_v46 = vunpack.i.h.bf16 %v4518_v39  ;;  %v3762_v39 = vld [vmem:[%s7195_s0 + $0x108] sm:$0xff]  }
  0xe6   :  { %v4514_v42 = vunpack.i.l.bf16 %v4513_v40  ;;  %4807 = vrot.lane.b32.xlu1 %v5969_v54, %s5339_s22  ;;  %v4515_v35 = vunpack.i.h.bf16 %v4513_v40  ;;  %v1750_v54 = vsel %vm157_vm0, %v5228_v62, %v4509_v41  ;;  %v3728_v40 = vunpack.c.l.bf16 %v3762_v39 }
  0xe7   :  { %4802 = vrot.lane.b32.xlu0 %v6035_v30, %s5339_s22  ;;  %v1813_v28 = vsel %vm1796_vm1, %v1750_v54, %v4519_v33  ;;  %v1814_v60 = vsel %vm1796_vm1, %v1751_v63, %v4520_v46  ;;  %v393_v33 = vld [vmem:[#allocation2 + $0x15a] sm:$0xff] }
  0xe8   :  { %v4528_v2 = vpop.permute.xlu1 %4527  ;;  %v2000_v59 = vsel %vm1796_vm1, %v1938_v1, %v4514_v42  ;;  %v2001_v23 = vsel %vm1796_vm1, %v1939_v50, %v4515_v35  ;;  %v5231_v46 = vld [vmem:[#allocation2 + $0x98] sm:$0xff]  ;;  %v5233_v35 = vld [vmem:[#allocation2 + $0xa9] sm:$0xff]  ;;  %v2167_v48 = vpack.c.bf16 %v393_v33, %v392_v17  ;;  %224 = vst.msk [vmem:[#allocation2 + $0x210] sm:$0xff] %vm157_vm0, %v3728_v40 }
  0xe9   :  { %v4530_v14 = vunpack.i.h.bf16 %v4528_v2  ;;  %v4529_v11 = vunpack.i.l.bf16 %v4528_v2  ;;  %v4523_v45 = vpop.permute.xlu0 %4522 }
  0xea   :  { %v4525_v6 = vunpack.i.h.bf16 %v4523_v45  ;;  %v4524_v56 = vunpack.i.l.bf16 %v4523_v45  ;;  %4817 = vrot.lane.b32.xlu1 %v5997_v58, %s5338_s19  ;;  %3916 = vmatmul.mubr.msk.bf16.gmra.mrb[28].mxu1 %vm157_vm0, %v2167_v48 }
  0xeb   :  { %4812 = vrot.lane.b32.xlu0 %v6040_v55, %s5338_s19  ;;  %v1876_v5 = vsel %vm1859_vm2, %v1813_v28, %v4529_v11  ;;  %v1877_v9 = vsel %vm1859_vm2, %v1814_v60, %v4530_v14  ;;  %3919 = vmatprep.mubr.msk.bf16.mxu1 %vm5342_vm3, %v5341_v38 }
  0xec   :  { %v4538_v57 = vpop.permute.xlu1 %4537  ;;  %v2062_v58 = vsel %vm1859_vm2, %v2000_v59, %v4524_v56  ;;  %v2063_v10 = vsel %vm1859_vm2, %v2001_v23, %v4525_v6  ;;  %v2132_v12 = vpack.c.bf16 %v1877_v9, %v1876_v5  ;;  %v6111_v5 = vpack.i.bf16 %v393_v33, %v392_v17  ;;  %v270_v9 = vld [vmem:[#allocation2 + $0x160] sm:$0xff]  ;;  %v5238_v17 = vld [vmem:[#allocation2 + $0xb1] sm:$0xff] }
  0xed   :  { %v4533_v16 = vpop.permute.xlu0 %4532  ;;  %v2133_v13 = vpack.c.bf16 %v2063_v10, %v2062_v58  ;;  %v4540_v61 = vunpack.i.h.bf16 %v4538_v57  ;;  %v4539_v26 = vunpack.i.l.bf16 %v4538_v57  ;;  %v271_v57 = vld [vmem:[#allocation2 + $0x168] sm:$0xff] }
  0xee   :  { %4827 = vrot.lane.b32.xlu1 %v6002_v4, %s5340_s25  ;;  %v4535_v21 = vunpack.i.h.bf16 %v4533_v16  ;;  %v4534_v27 = vunpack.i.l.bf16 %v4533_v16  ;;  %v332_v16 = vld [vmem:[#allocation2 + $0x161] sm:$0xff] }
  0xef   :  { %4822 = vrot.lane.b32.xlu0 %v6047_v44, %s5340_s25  ;;  %2541 = vmatprep.mubr.bf16.mxu0 %v2133_v13  ;;  %v1753_v42 = vsel %vm157_vm0, %v5231_v46, %v4540_v61  ;;  %v333_v13 = vld [vmem:[#allocation2 + $0x169] sm:$0xff] }
  0xf0   :  { %2542 = vmatmul.mubr.bf16.gmra.mrb[32].mxu0 %v2132_v12  ;;  %v4548_v20 = vpop.permute.xlu1 %4547  ;;  %v1941_v0 = vsel %vm157_vm0, %v5233_v35, %v4535_v21  ;;  %v1940_v63 = vsel %vm157_vm0, %v5234_v7, %v4534_v27  ;;  %v5235_v21 = vld [vmem:[#allocation2 + $0xa8] sm:$0xff]  ;;  %v6120_v22 = vpack.i.bf16 %v333_v13, %v332_v16  ;;  %v5239_v16 = vld [vmem:[#allocation2 + $0xb8] sm:$0xff] }
  0xf1   :  { %v4549_v29 = vunpack.i.l.bf16 %v4548_v20  ;;  %v4543_v34 = vpop.permute.xlu0 %4542  ;;  %v4550_v4 = vunpack.i.h.bf16 %v4548_v20  ;;  %v394_v27 = vld [vmem:[#allocation2 + $0x162] sm:$0xff] }
  0xf2   :  { %v4544_v41 = vunpack.i.l.bf16 %v4543_v34  ;;  %4837 = vrot.lane.b32.xlu1 %v6009_v24, %s5339_s22  ;;  %v4545_v32 = vunpack.i.h.bf16 %v4543_v34  ;;  %v1752_v24 = vsel %vm157_vm0, %v5232_v43, %v4539_v26  ;;  %v6115_v26 = vpack.i.bf16 %v271_v57, %v270_v9  ;;  %v5236_v34 = vld [vmem:[#allocation2 + $0xa0] sm:$0xff] }
  0xf3   :  { %4832 = vrot.lane.b32.xlu0 %v6073_v15, %s5339_s22  ;;  %v1815_v50 = vsel %vm1796_vm1, %v1752_v24, %v4549_v29  ;;  %v1816_v1 = vsel %vm1796_vm1, %v1753_v42, %v4550_v4  ;;  %v395_v29 = vld [vmem:[#allocation2 + $0x16a] sm:$0xff] }
  0xf4   :  { %v4558_v47 = vpop.permute.xlu1 %4557  ;;  %v2002_v49 = vsel %vm1796_vm1, %v1940_v63, %v4544_v41  ;;  %v2003_v14 = vsel %vm1796_vm1, %v1941_v0, %v4545_v32  ;;  %v5237_v41 = vld [vmem:[#allocation2 + $0xb9] sm:$0xff]  ;;  %v2170_v32 = vpack.c.bf16 %v395_v29, %v394_v27 }
  0xf5   :  { %v4560_v62 = vunpack.i.h.bf16 %v4558_v47  ;;  %v4559_v54 = vunpack.i.l.bf16 %v4558_v47  ;;  %v4553_v25 = vpop.permute.xlu0 %4552 }
  0xf6   :  { %v4555_v2 = vunpack.i.h.bf16 %v4553_v25  ;;  %v4554_v8 = vunpack.i.l.bf16 %v4553_v25  ;;  %4847 = vrot.lane.b32.xlu1 %v6035_v30, %s5338_s19  ;;  %3920 = vmatmul.mubr.msk.bf16.gmra.mrb[32].mxu1 %vm157_vm0, %v2170_v32 }
  0xf7   :  { %4842 = vrot.lane.b32.xlu0 %v6078_v36, %s5338_s19  ;;  %v1878_v11 = vsel %vm1859_vm2, %v1815_v50, %v4559_v54  ;;  %v1879_v45 = vsel %vm1859_vm2, %v1816_v1, %v4560_v62  ;;  %3923 = vmatprep.mubr.msk.bf16.mxu1 %vm5342_vm3, %v5341_v38 }
  0xf8   :  { %v4568_v28 = vpop.permute.xlu1 %4567  ;;  %v2064_v30 = vsel %vm1859_vm2, %v2002_v49, %v4554_v8  ;;  %v2065_v6 = vsel %vm1859_vm2, %v2003_v14, %v4555_v2  ;;  %v2135_v56 = vpack.c.bf16 %v1879_v45, %v1878_v11  ;;  %v6144_v8 = vpack.i.bf16 %v395_v29, %v394_v27  ;;  %v272_v49 = vld [vmem:[#allocation2 + $0x170] sm:$0xff] }
  0xf9   :  { %v4563_v59 = vpop.permute.xlu0 %4562  ;;  %v2136_v60 = vpack.c.bf16 %v2065_v6, %v2064_v30  ;;  %v4570_v23 = vunpack.i.h.bf16 %v4568_v28  ;;  %v4569_v58 = vunpack.i.l.bf16 %v4568_v28  ;;  %v273_v28 = vld [vmem:[#allocation2 + $0x178] sm:$0xff] }
  0xfa   :  { %4857 = vrot.lane.b32.xlu1 %v6040_v55, %s5340_s25  ;;  %v4565_v10 = vunpack.i.h.bf16 %v4563_v59  ;;  %v4564_v19 = vunpack.i.l.bf16 %v4563_v59  ;;  %v334_v30 = vld [vmem:[#allocation2 + $0x171] sm:$0xff]  ;;  %v335_v6 = vld [vmem:[#allocation2 + $0x179] sm:$0xff]  ;;  %v6150_v57 = vpack.i.bf16 %v273_v28, %v272_v49 }
  0xfb   :  { %4852 = vrot.lane.b32.xlu0 %v6085_v18, %s5340_s25  ;;  %2549 = vmatprep.mubr.bf16.mxu0 %v2136_v60  ;;  %v1755_v20 = vsel %vm157_vm0, %v5235_v21, %v4570_v23  ;;  %v1754_v4 = vsel %vm157_vm0, %v5236_v34, %v4569_v58  ;;  %v6152_v58 = vpack.i.bf16 %v335_v6, %v334_v30  ;;  %v5242_v21 = vld [vmem:[#allocation2 + $0xc1] sm:$0xff]  ;;  %v399_v28 = vld [vmem:[#allocation2 + $0x18a] sm:$0xff] }
  0xfc   :  { %2550 = vmatmul.mubr.bf16.gmra.mrb[36].mxu0 %v2135_v56  ;;  %v4578_v12 = vpop.permute.xlu1 %4577  ;;  %v1943_v39 = vsel %vm157_vm0, %v5237_v41, %v4565_v10  ;;  %v1942_v33 = vsel %vm157_vm0, %v5238_v17, %v4564_v19  ;;  %v396_v10 = vld [vmem:[#allocation2 + $0x172] sm:$0xff]  ;;  %v5243_v30 = vld [vmem:[#allocation2 + $0xc8] sm:$0xff] }
  0xfd   :  { %v4579_v37 = vunpack.i.l.bf16 %v4578_v12  ;;  %v4573_v3 = vpop.permute.xlu0 %4572  ;;  %v4580_v61 = vunpack.i.h.bf16 %v4578_v12  ;;  %v397_v12 = vld [vmem:[#allocation2 + $0x17a] sm:$0xff]  ;;  %v5240_v19 = vld [vmem:[#allocation2 + $0xb0] sm:$0xff] }
  0xfe   :  { %v4574_v55 = vunpack.i.l.bf16 %v4573_v3  ;;  %4867 = vrot.lane.b32.xlu1 %v6047_v44, %s5339_s22  ;;  %v4575_v31 = vunpack.i.h.bf16 %v4573_v3  ;;  %v5241_v3 = vld [vmem:[#allocation2 + $0xc9] sm:$0xff] }
  0xff   :  { %4862 = vrot.lane.b32.xlu0 %v6111_v5, %s5339_s22  ;;  %v1817_v43 = vsel %vm1796_vm1, %v1754_v4, %v4579_v37  ;;  %v1818_v47 = vsel %vm1796_vm1, %v1755_v20, %v4580_v61 }
 0x100   :  { %v4588_v44 = vpop.permute.xlu1 %4587  ;;  %v2004_v0 = vsel %vm1796_vm1, %v1942_v33, %v4574_v55  ;;  %v2005_v48 = vsel %vm1796_vm1, %v1943_v39, %v4575_v31  ;;  %v2173_v55 = vpack.c.bf16 %v397_v12, %v396_v10 }
 0x101   :  { %v4590_v40 = vunpack.i.h.bf16 %v4588_v44  ;;  %v4589_v46 = vunpack.i.l.bf16 %v4588_v44  ;;  %v4583_v42 = vpop.permute.xlu0 %4582 }
 0x102   :  { %v4585_v24 = vunpack.i.h.bf16 %v4583_v42  ;;  %v4584_v35 = vunpack.i.l.bf16 %v4583_v42  ;;  %4877 = vrot.lane.b32.xlu1 %v6073_v15, %s5338_s19  ;;  %3924 = vmatmul.mubr.msk.bf16.gmra.mrb[36].mxu1 %vm157_vm0, %v2173_v55 }
 0x103   :  { %4872 = vrot.lane.b32.xlu0 %v6115_v26, %s5338_s19  ;;  %v1880_v7 = vsel %vm1859_vm2, %v1817_v43, %v4589_v46  ;;  %v1881_v63 = vsel %vm1859_vm2, %v1818_v47, %v4590_v40  ;;  %3927 = vmatprep.mubr.msk.bf16.mxu1 %vm5342_vm3, %v5341_v38 }
 0x104   :  { %v4598_v62 = vpop.permute.xlu1 %4597  ;;  %v2066_v15 = vsel %vm1859_vm2, %v2004_v0, %v4584_v35  ;;  %v2067_v54 = vsel %vm1859_vm2, %v2005_v48, %v4585_v24  ;;  %v2138_v25 = vpack.c.bf16 %v1881_v63, %v1880_v7  ;;  %v6177_v35 = vpack.i.bf16 %v397_v12, %v396_v10  ;;  %v274_v0 = vld [vmem:[#allocation2 + $0x180] sm:$0xff] }
 0x105   :  { %v4593_v50 = vpop.permute.xlu0 %4592  ;;  %v2139_v2 = vpack.c.bf16 %v2067_v54, %v2066_v15  ;;  %v4600_v1 = vunpack.i.h.bf16 %v4598_v62  ;;  %v4599_v14 = vunpack.i.l.bf16 %v4598_v62  ;;  %v275_v62 = vld [vmem:[#allocation2 + $0x188] sm:$0xff] }
 0x106   :  { %4887 = vrot.lane.b32.xlu1 %v6078_v36, %s5340_s25  ;;  %v4595_v11 = vunpack.i.h.bf16 %v4593_v50  ;;  %v4594_v56 = vunpack.i.l.bf16 %v4593_v50  ;;  %v336_v15 = vld [vmem:[#allocation2 + $0x181] sm:$0xff]  ;;  %v337_v54 = vld [vmem:[#allocation2 + $0x189] sm:$0xff] }
 0x107   :  { %4882 = vrot.lane.b32.xlu0 %v6120_v22, %s5340_s25  ;;  %2557 = vmatprep.mubr.bf16.mxu0 %v2139_v2  ;;  %v1757_v13 = vsel %vm157_vm0, %v5239_v16, %v4600_v1  ;;  %v1756_v37 = vsel %vm157_vm0, %v5240_v19, %v4599_v14  ;;  %v6183_v14 = vpack.i.bf16 %v275_v62, %v274_v0  ;;  %v401_v62 = vld [vmem:[#allocation2 + $0x19a] sm:$0xff] }
 0x108   :  { %2558 = vmatmul.mubr.bf16.gmra.mrb[40].mxu0 %v2138_v25  ;;  %v4608_v45 = vpop.permute.xlu1 %4607  ;;  %v1945_v61 = vsel %vm157_vm0, %v5241_v3, %v4595_v11  ;;  %v1944_v20 = vsel %vm157_vm0, %v5242_v21, %v4594_v56  ;;  %v6185_v11 = vpack.i.bf16 %v337_v54, %v336_v15  ;;  %v5244_v56 = vld [vmem:[#allocation2 + $0xc0] sm:$0xff]  ;;  %v5247_v15 = vld [vmem:[#allocation2 + $0xd8] sm:$0xff] }
 0x109   :  { %v4609_v59 = vunpack.i.l.bf16 %v4608_v45  ;;  %v4603_v60 = vpop.permute.xlu0 %4602  ;;  %v4610_v23 = vunpack.i.h.bf16 %v4608_v45  ;;  %v398_v45 = vld [vmem:[#allocation2 + $0x182] sm:$0xff] }
 0x10a   :  { %v4604_v36 = vunpack.i.l.bf16 %v4603_v60  ;;  %4897 = vrot.lane.b32.xlu1 %v6085_v18, %s5339_s22  ;;  %v4605_v9 = vunpack.i.h.bf16 %v4603_v60  ;;  %v5245_v60 = vld [vmem:[#allocation2 + $0xd9] sm:$0xff] }
 0x10b   :  { %4892 = vrot.lane.b32.xlu0 %v6144_v8, %s5339_s22  ;;  %v1819_v34 = vsel %vm1796_vm1, %v1756_v37, %v4609_v59  ;;  %v1820_v44 = vsel %vm1796_vm1, %v1757_v13, %v4610_v23 }
 0x10c   :  { %v4618_v18 = vpop.permute.xlu1 %4617  ;;  %v2006_v39 = vsel %vm1796_vm1, %v1944_v20, %v4604_v36  ;;  %v2007_v32 = vsel %vm1796_vm1, %v1945_v61, %v4605_v9  ;;  %v2176_v36 = vpack.c.bf16 %v399_v28, %v398_v45  ;;  %v5246_v9 = vld [vmem:[#allocation2 + $0xd1] sm:$0xff] }
 0x10d   :  { %v4620_v31 = vunpack.i.h.bf16 %v4618_v18  ;;  %v4619_v27 = vunpack.i.l.bf16 %v4618_v18  ;;  %v4613_v29 = vpop.permute.xlu0 %4612 }
 0x10e   :  { %v4615_v4 = vunpack.i.h.bf16 %v4613_v29  ;;  %v4614_v41 = vunpack.i.l.bf16 %v4613_v29  ;;  %4907 = vrot.lane.b32.xlu1 %v6111_v5, %s5338_s19  ;;  %3928 = vmatmul.mubr.msk.bf16.gmra.mrb[40].mxu1 %vm157_vm0, %v2176_v36 }
 0x10f   :  { %4902 = vrot.lane.b32.xlu0 %v6150_v57, %s5338_s19  ;;  %v1882_v17 = vsel %vm1859_vm2, %v1819_v34, %v4619_v27  ;;  %v1883_v33 = vsel %vm1859_vm2, %v1820_v44, %v4620_v31  ;;  %3931 = vmatprep.mubr.msk.bf16.mxu1 %vm5342_vm3, %v5341_v38 }
 0x110   :  { %v4628_v40 = vpop.permute.xlu1 %4627  ;;  %v2068_v5 = vsel %vm1859_vm2, %v2006_v39, %v4614_v41  ;;  %v2069_v46 = vsel %vm1859_vm2, %v2007_v32, %v4615_v4  ;;  %v2141_v42 = vpack.c.bf16 %v1883_v33, %v1882_v17  ;;  %v6210_v41 = vpack.i.bf16 %v399_v28, %v398_v45  ;;  %v276_v39 = vld [vmem:[#allocation2 + $0x190] sm:$0xff] }
 0x111   :  { %v4623_v43 = vpop.permute.xlu0 %4622  ;;  %v2142_v24 = vpack.c.bf16 %v2069_v46, %v2068_v5  ;;  %v4630_v47 = vunpack.i.h.bf16 %v4628_v40  ;;  %v4629_v48 = vunpack.i.l.bf16 %v4628_v40  ;;  %v277_v40 = vld [vmem:[#allocation2 + $0x198] sm:$0xff] }
 0x112   :  { %4917 = vrot.lane.b32.xlu1 %v6115_v26, %s5340_s25  ;;  %v4625_v7 = vunpack.i.h.bf16 %v4623_v43  ;;  %v4624_v25 = vunpack.i.l.bf16 %v4623_v43  ;;  %v338_v5 = vld [vmem:[#allocation2 + $0x191] sm:$0xff]  ;;  %v339_v46 = vld [vmem:[#allocation2 + $0x199] sm:$0xff] }
 0x113   :  { %4912 = vrot.lane.b32.xlu0 %v6152_v58, %s5340_s25  ;;  %2565 = vmatprep.mubr.bf16.mxu0 %v2142_v24  ;;  %v1759_v6 = vsel %vm157_vm0, %v5243_v30, %v4630_v47  ;;  %v1758_v59 = vsel %vm157_vm0, %v5244_v56, %v4629_v48  ;;  %v6216_v48 = vpack.i.bf16 %v277_v40, %v276_v39  ;;  %v403_v40 = vld [vmem:[#allocation2 + $0x1aa] sm:$0xff] }
 0x114   :  { %2566 = vmatmul.mubr.bf16.gmra.mrb[44].mxu0 %v2141_v42  ;;  %v4638_v63 = vpop.permute.xlu1 %4637  ;;  %v1947_v23 = vsel %vm157_vm0, %v5245_v60, %v4625_v7  ;;  %v1946_v10 = vsel %vm157_vm0, %v5246_v9, %v4624_v25  ;;  %v6218_v7 = vpack.i.bf16 %v339_v46, %v338_v5  ;;  %v5248_v25 = vld [vmem:[#allocation2 + $0xd0] sm:$0xff]  ;;  %v5251_v5 = vld [vmem:[#allocation2 + $0xe8] sm:$0xff] }
 0x115   :  { %v4639_v50 = vunpack.i.l.bf16 %v4638_v63  ;;  %v4633_v2 = vpop.permute.xlu0 %4632  ;;  %v4640_v49 = vunpack.i.h.bf16 %v4638_v63  ;;  %v400_v63 = vld [vmem:[#allocation2 + $0x192] sm:$0xff] }
 0x116   :  { %v4634_v26 = vunpack.i.l.bf16 %v4633_v2  ;;  %4927 = vrot.lane.b32.xlu1 %v6120_v22, %s5339_s22  ;;  %v4635_v1 = vunpack.i.h.bf16 %v4633_v2  ;;  %v5249_v2 = vld [vmem:[#allocation2 + $0xe9] sm:$0xff] }
 0x117   :  { %4922 = vrot.lane.b32.xlu0 %v6177_v35, %s5339_s22  ;;  %v1821_v19 = vsel %vm1796_vm1, %v1758_v59, %v4639_v50  ;;  %v1822_v18 = vsel %vm1796_vm1, %v1759_v6, %v4640_v49 }
 0x118   :  { %v4648_v22 = vpop.permute.xlu1 %4647  ;;  %v2008_v61 = vsel %vm1796_vm1, %v1946_v10, %v4634_v26  ;;  %v2009_v55 = vsel %vm1796_vm1, %v1947_v23, %v4635_v1  ;;  %v2179_v26 = vpack.c.bf16 %v401_v62, %v400_v63  ;;  %v5250_v1 = vld [vmem:[#allocation2 + $0xe1] sm:$0xff] }
 0x119   :  { %v4650_v12 = vunpack.i.h.bf16 %v4648_v22  ;;  %v4649_v16 = vunpack.i.l.bf16 %v4648_v22  ;;  %v4643_v13 = vpop.permute.xlu0 %4642 }
 0x11a   :  { %v4645_v37 = vunpack.i.h.bf16 %v4643_v13  ;;  %v4644_v3 = vunpack.i.l.bf16 %v4643_v13  ;;  %4937 = vrot.lane.b32.xlu1 %v6144_v8, %s5338_s19  ;;  %3932 = vmatmul.mubr.msk.bf16.gmra.mrb[44].mxu1 %vm157_vm0, %v2179_v26 }
 0x11b   :  { %4932 = vrot.lane.b32.xlu0 %v6183_v14, %s5338_s19  ;;  %v1884_v21 = vsel %vm1859_vm2, %v1821_v19, %v4649_v16  ;;  %v1885_v20 = vsel %vm1859_vm2, %v1822_v18, %v4650_v12  ;;  %3935 = vmatprep.mubr.msk.bf16.mxu1 %vm5342_vm3, %v5341_v38 }
 0x11c   :  { %v4658_v31 = vpop.permute.xlu1 %4657  ;;  %v2070_v8 = vsel %vm1859_vm2, %v2008_v61, %v4644_v3  ;;  %v2071_v27 = vsel %vm1859_vm2, %v2009_v55, %v4645_v37  ;;  %v2144_v29 = vpack.c.bf16 %v1885_v20, %v1884_v21  ;;  %v6243_v3 = vpack.i.bf16 %v401_v62, %v400_v63  ;;  %v278_v61 = vld [vmem:[#allocation2 + $0x1a0] sm:$0xff] }
 0x11d   :  { %v4653_v34 = vpop.permute.xlu0 %4652  ;;  %v2145_v4 = vpack.c.bf16 %v2071_v27, %v2070_v8  ;;  %v4660_v44 = vunpack.i.h.bf16 %v4658_v31  ;;  %v4659_v32 = vunpack.i.l.bf16 %v4658_v31  ;;  %v279_v31 = vld [vmem:[#allocation2 + $0x1a8] sm:$0xff] }
 0x11e   :  { %4947 = vrot.lane.b32.xlu1 %v6150_v57, %s5340_s25  ;;  %v4655_v17 = vunpack.i.h.bf16 %v4653_v34  ;;  %v4654_v42 = vunpack.i.l.bf16 %v4653_v34  ;;  %v340_v8 = vld [vmem:[#allocation2 + $0x1a1] sm:$0xff]  ;;  %v341_v27 = vld [vmem:[#allocation2 + $0x1a9] sm:$0xff] }
 0x11f   :  { %4942 = vrot.lane.b32.xlu0 %v6185_v11, %s5340_s25  ;;  %2573 = vmatprep.mubr.bf16.mxu0 %v2145_v4  ;;  %v1761_v54 = vsel %vm157_vm0, %v5247_v15, %v4660_v44  ;;  %v1760_v50 = vsel %vm157_vm0, %v5248_v25, %v4659_v32  ;;  %v6249_v32 = vpack.i.bf16 %v279_v31, %v278_v61  ;;  %v405_v31 = vld [vmem:[#allocation2 + $0x1ba] sm:$0xff] }
 0x120   :  { %2574 = vmatmul.mubr.bf16.gmra.mrb[48].mxu0 %v2144_v29  ;;  %v4668_v33 = vpop.permute.xlu1 %4667  ;;  %v1949_v49 = vsel %vm157_vm0, %v5249_v2, %v4655_v17  ;;  %v1948_v45 = vsel %vm157_vm0, %v5250_v1, %v4654_v42  ;;  %v6251_v17 = vpack.i.bf16 %v341_v27, %v340_v8  ;;  %v5252_v42 = vld [vmem:[#allocation2 + $0xe0] sm:$0xff]  ;;  %v5255_v8 = vld [vmem:[#allocation2 + $0xf8] sm:$0xff] }
 0x121   :  { %v4669_v43 = vunpack.i.l.bf16 %v4668_v33  ;;  %v4663_v24 = vpop.permute.xlu0 %4662  ;;  %v4670_v0 = vunpack.i.h.bf16 %v4668_v33  ;;  %v402_v33 = vld [vmem:[#allocation2 + $0x1a2] sm:$0xff] }
 0x122   :  { %v4664_v57 = vunpack.i.l.bf16 %v4663_v24  ;;  %4957 = vrot.lane.b32.xlu1 %v6152_v58, %s5339_s22  ;;  %v4665_v47 = vunpack.i.h.bf16 %v4663_v24  ;;  %v5253_v24 = vld [vmem:[#allocation2 + $0xf9] sm:$0xff] }
 0x123   :  { %4952 = vrot.lane.b32.xlu0 %v6210_v41, %s5339_s22  ;;  %v1823_v56 = vsel %vm1796_vm1, %v1760_v50, %v4669_v43  ;;  %v1824_v22 = vsel %vm1796_vm1, %v1761_v54, %v4670_v0 }
 0x124   :  { %v4678_v58 = vpop.permute.xlu1 %4677  ;;  %v2010_v23 = vsel %vm1796_vm1, %v1948_v45, %v4664_v57  ;;  %v2011_v36 = vsel %vm1796_vm1, %v1949_v49, %v4665_v47  ;;  %v2182_v57 = vpack.c.bf16 %v403_v40, %v402_v33  ;;  %v5254_v47 = vld [vmem:[#allocation2 + $0xf1] sm:$0xff] }
 0x125   :  { %v4680_v28 = vunpack.i.h.bf16 %v4678_v58  ;;  %v4679_v30 = vunpack.i.l.bf16 %v4678_v58  ;;  %v4673_v6 = vpop.permute.xlu0 %4672 }
 0x126   :  { %v4675_v59 = vunpack.i.h.bf16 %v4673_v6  ;;  %v4674_v60 = vunpack.i.l.bf16 %v4673_v6  ;;  %4967 = vrot.lane.b32.xlu1 %v6177_v35, %s5338_s19  ;;  %3936 = vmatmul.mubr.msk.bf16.gmra.mrb[48].mxu1 %vm157_vm0, %v2182_v57 }
 0x127   :  { %4962 = vrot.lane.b32.xlu0 %v6216_v48, %s5338_s19  ;;  %v1886_v9 = vsel %vm1859_vm2, %v1823_v56, %v4679_v30  ;;  %v1887_v10 = vsel %vm1859_vm2, %v1824_v22, %v4680_v28  ;;  %3939 = vmatprep.mubr.msk.bf16.mxu1 %vm5342_vm3, %v5341_v38 }
 0x128   :  { %v4688_v12 = vpop.permute.xlu1 %4687  ;;  %v2072_v35 = vsel %vm1859_vm2, %v2010_v23, %v4674_v60  ;;  %v2073_v16 = vsel %vm1859_vm2, %v2011_v36, %v4675_v59  ;;  %v2147_v13 = vpack.c.bf16 %v1887_v10, %v1886_v9  ;;  %v6276_v60 = vpack.i.bf16 %v403_v40, %v402_v33  ;;  %v280_v23 = vld [vmem:[#allocation2 + $0x1b0] sm:$0xff] }
 0x129   :  { %v4683_v19 = vpop.permute.xlu0 %4682  ;;  %v2148_v37 = vpack.c.bf16 %v2073_v16, %v2072_v35  ;;  %v4690_v18 = vunpack.i.h.bf16 %v4688_v12  ;;  %v4689_v55 = vunpack.i.l.bf16 %v4688_v12  ;;  %v281_v12 = vld [vmem:[#allocation2 + $0x1b8] sm:$0xff] }
 0x12a   :  { %4977 = vrot.lane.b32.xlu1 %v6183_v14, %s5340_s25  ;;  %v4685_v21 = vunpack.i.h.bf16 %v4683_v19  ;;  %v4684_v29 = vunpack.i.l.bf16 %v4683_v19  ;;  %v342_v35 = vld [vmem:[#allocation2 + $0x1b1] sm:$0xff]  ;;  %v343_v16 = vld [vmem:[#allocation2 + $0x1b9] sm:$0xff] }
 0x12b   :  { %4972 = vrot.lane.b32.xlu0 %v6218_v7, %s5340_s25  ;;  %2581 = vmatprep.mubr.bf16.mxu0 %v2148_v37  ;;  %v1763_v46 = vsel %vm157_vm0, %v5251_v5, %v4690_v18  ;;  %v1762_v43 = vsel %vm157_vm0, %v5252_v42, %v4689_v55  ;;  %v6282_v55 = vpack.i.bf16 %v281_v12, %v280_v23  ;;  %v407_v12 = vld [vmem:[#allocation2 + $0x1ca] sm:$0xff] }
 0x12c   :  { %2582 = vmatmul.mubr.bf16.gmra.mrb[52].mxu0 %v2147_v13  ;;  %v4698_v20 = vpop.permute.xlu1 %4697  ;;  %v1951_v0 = vsel %vm157_vm0, %v5253_v24, %v4685_v21  ;;  %v1950_v63 = vsel %vm157_vm0, %v5254_v47, %v4684_v29  ;;  %v6284_v21 = vpack.i.bf16 %v343_v16, %v342_v35  ;;  %v5256_v29 = vld [vmem:[#allocation2 + $0xf0] sm:$0xff]  ;;  %v5259_v35 = vld [vmem:[#allocation2 + $0x108] sm:$0xff] }
 0x12d   :  { %v4699_v34 = vunpack.i.l.bf16 %v4698_v20  ;;  %v4693_v4 = vpop.permute.xlu0 %4692  ;;  %v4700_v39 = vunpack.i.h.bf16 %v4698_v20  ;;  %v404_v20 = vld [vmem:[#allocation2 + $0x1b2] sm:$0xff] }
 0x12e   :  { %v4694_v14 = vunpack.i.l.bf16 %v4693_v4  ;;  %4987 = vrot.lane.b32.xlu1 %v6185_v11, %s5339_s22  ;;  %v4695_v44 = vunpack.i.h.bf16 %v4693_v4  ;;  %v5257_v4 = vld [vmem:[#allocation2 + $0x109] sm:$0xff] }
 0x12f   :  { %4982 = vrot.lane.b32.xlu0 %v6243_v3, %s5339_s22  ;;  %v1825_v25 = vsel %vm1796_vm1, %v1762_v43, %v4699_v34  ;;  %v1826_v58 = vsel %vm1796_vm1, %v1763_v46, %v4700_v39 }
 0x130   :  { %v4708_v11 = vpop.permute.xlu1 %4707  ;;  %v2012_v49 = vsel %vm1796_vm1, %v1950_v63, %v4694_v14  ;;  %v2013_v26 = vsel %vm1796_vm1, %v1951_v0, %v4695_v44  ;;  %v2185_v14 = vpack.c.bf16 %v405_v31, %v404_v20  ;;  %v5258_v44 = vld [vmem:[#allocation2 + $0x101] sm:$0xff] }
 0x131   :  { %v4710_v62 = vunpack.i.h.bf16 %v4708_v11  ;;  %v4709_v15 = vunpack.i.l.bf16 %v4708_v11  ;;  %v4703_v54 = vpop.permute.xlu0 %4702 }
 0x132   :  { %v4705_v50 = vunpack.i.h.bf16 %v4703_v54  ;;  %v4704_v2 = vunpack.i.l.bf16 %v4703_v54  ;;  %4997 = vrot.lane.b32.xlu1 %v6210_v41, %s5338_s19  ;;  %3940 = vmatmul.mubr.msk.bf16.gmra.mrb[52].mxu1 %vm157_vm0, %v2185_v14 }
 0x133   :  { %4992 = vrot.lane.b32.xlu0 %v6249_v32, %s5338_s19  ;;  %v1888_v1 = vsel %vm1859_vm2, %v1825_v25, %v4709_v15  ;;  %v1889_v45 = vsel %vm1859_vm2, %v1826_v58, %v4710_v62  ;;  %3943 = vmatprep.mubr.msk.bf16.mxu1 %vm5342_vm3, %v5341_v38 }
 0x134   :  { %v4718_v28 = vpop.permute.xlu1 %4717  ;;  %v2074_v41 = vsel %vm1859_vm2, %v2012_v49, %v4704_v2  ;;  %v2075_v30 = vsel %vm1859_vm2, %v2013_v26, %v4705_v50  ;;  %v2150_v6 = vpack.c.bf16 %v1889_v45, %v1888_v1  ;;  %v6309_v2 = vpack.i.bf16 %v405_v31, %v404_v20  ;;  %v282_v49 = vld [vmem:[#allocation2 + $0x1c0] sm:$0xff] }
 0x135   :  { %v4713_v56 = vpop.permute.xlu0 %4712  ;;  %v2151_v59 = vpack.c.bf16 %v2075_v30, %v2074_v41  ;;  %v4720_v22 = vunpack.i.h.bf16 %v4718_v28  ;;  %v4719_v36 = vunpack.i.l.bf16 %v4718_v28  ;;  %v283_v28 = vld [vmem:[#allocation2 + $0x1c8] sm:$0xff] }
 0x136   :  { %5007 = vrot.lane.b32.xlu1 %v6216_v48, %s5340_s25  ;;  %v4715_v9 = vunpack.i.h.bf16 %v4713_v56  ;;  %v4714_v13 = vunpack.i.l.bf16 %v4713_v56  ;;  %v344_v41 = vld [vmem:[#allocation2 + $0x1c1] sm:$0xff]  ;;  %v345_v30 = vld [vmem:[#allocation2 + $0x1c9] sm:$0xff] }
 0x137   :  { %5002 = vrot.lane.b32.xlu0 %v6251_v17, %s5340_s25  ;;  %2589 = vmatprep.mubr.bf16.mxu0 %v2151_v59  ;;  %v1765_v27 = vsel %vm157_vm0, %v5255_v8, %v4720_v22  ;;  %v1764_v34 = vsel %vm157_vm0, %v5256_v29, %v4719_v36  ;;  %v6315_v36 = vpack.i.bf16 %v283_v28, %v282_v49  ;;  %v409_v28 = vld [vmem:[#allocation2 + $0x1da] sm:$0xff] }
 0x138   :  { %2590 = vmatmul.mubr.bf16.gmra.mrb[56].mxu0 %v2150_v6  ;;  %v4728_v10 = vpop.permute.xlu1 %4727  ;;  %v1953_v39 = vsel %vm157_vm0, %v5257_v4, %v4715_v9  ;;  %v1952_v33 = vsel %vm157_vm0, %v5258_v44, %v4714_v13  ;;  %v6317_v9 = vpack.i.bf16 %v345_v30, %v344_v41  ;;  %v5260_v13 = vld [vmem:[#allocation2 + $0x100] sm:$0xff]  ;;  %v5263_v41 = vld [vmem:[#allocation2 + $0x118] sm:$0xff] }
 0x139   :  { %v4729_v19 = vunpack.i.l.bf16 %v4728_v10  ;;  %v4723_v37 = vpop.permute.xlu0 %4722  ;;  %v4730_v61 = vunpack.i.h.bf16 %v4728_v10  ;;  %v406_v10 = vld [vmem:[#allocation2 + $0x1c2] sm:$0xff] }
 0x13a   :  { %v4724_v48 = vunpack.i.l.bf16 %v4723_v37  ;;  %5017 = vrot.lane.b32.xlu1 %v6218_v7, %s5339_s22  ;;  %v4725_v18 = vunpack.i.h.bf16 %v4723_v37  ;;  %v5261_v37 = vld [vmem:[#allocation2 + $0x119] sm:$0xff] }
 0x13b   :  { %5012 = vrot.lane.b32.xlu0 %v6276_v60, %s5339_s22  ;;  %v1827_v40 = vsel %vm1796_vm1, %v1764_v34, %v4729_v19  ;;  %v1828_v43 = vsel %vm1796_vm1, %v1765_v27, %v4730_v61 }
 0x13c   :  { %v4738_v7 = vpop.permute.xlu1 %4737  ;;  %v2014_v24 = vsel %vm1796_vm1, %v1952_v33, %v4724_v48  ;;  %v2015_v57 = vsel %vm1796_vm1, %v1953_v39, %v4725_v18  ;;  %v2188_v48 = vpack.c.bf16 %v407_v12, %v406_v10  ;;  %v5262_v18 = vld [vmem:[#allocation2 + $0x111] sm:$0xff] }
 0x13d   :  { %v4740_v5 = vunpack.i.h.bf16 %v4738_v7  ;;  %v4739_v46 = vunpack.i.l.bf16 %v4738_v7  ;;  %v4733_v42 = vpop.permute.xlu0 %4732 }
 0x13e   :  { %v4735_v0 = vunpack.i.h.bf16 %v4733_v42  ;;  %v4734_v11 = vunpack.i.l.bf16 %v4733_v42  ;;  %5027 = vrot.lane.b32.xlu1 %v6243_v3, %s5338_s19  ;;  %3944 = vmatmul.mubr.msk.bf16.gmra.mrb[56].mxu1 %vm157_vm0, %v2188_v48 }
 0x13f   :  { %5022 = vrot.lane.b32.xlu0 %v6282_v55, %s5338_s19  ;;  %v1890_v47 = vsel %vm1859_vm2, %v1827_v40, %v4739_v46  ;;  %v1891_v63 = vsel %vm1859_vm2, %v1828_v43, %v4740_v5  ;;  %3947 = vmatprep.mubr.msk.bf16.mxu1 %vm5342_vm3, %v5341_v38 }
 0x140   :  { %v4748_v62 = vpop.permute.xlu1 %4747  ;;  %v2076_v15 = vsel %vm1859_vm2, %v2014_v24, %v4734_v11  ;;  %v2077_v54 = vsel %vm1859_vm2, %v2015_v57, %v4735_v0  ;;  %v2153_v3 = vpack.c.bf16 %v1891_v63, %v1890_v47  ;;  %v6342_v24 = vpack.i.bf16 %v407_v12, %v406_v10  ;;  %v284_v0 = vld [vmem:[#allocation2 + $0x1d0] sm:$0xff] }
 0x141   :  { %v4743_v25 = vpop.permute.xlu0 %4742  ;;  %v2154_v50 = vpack.c.bf16 %v2077_v54, %v2076_v15  ;;  %v4750_v58 = vunpack.i.h.bf16 %v4748_v62  ;;  %v4749_v26 = vunpack.i.l.bf16 %v4748_v62  ;;  %v285_v62 = vld [vmem:[#allocation2 + $0x1d8] sm:$0xff] }
 0x142   :  { %5037 = vrot.lane.b32.xlu1 %v6249_v32, %s5340_s25  ;;  %v4745_v1 = vunpack.i.h.bf16 %v4743_v25  ;;  %v4744_v6 = vunpack.i.l.bf16 %v4743_v25  ;;  %v346_v15 = vld [vmem:[#allocation2 + $0x1d1] sm:$0xff]  ;;  %v347_v54 = vld [vmem:[#allocation2 + $0x1d9] sm:$0xff] }
 0x143   :  { %5032 = vrot.lane.b32.xlu0 %v6284_v21, %s5340_s25  ;;  %2597 = vmatprep.mubr.bf16.mxu0 %v2154_v50  ;;  %v1767_v16 = vsel %vm157_vm0, %v5259_v35, %v4750_v58  ;;  %v1766_v19 = vsel %vm157_vm0, %v5260_v13, %v4749_v26  ;;  %v6348_v26 = vpack.i.bf16 %v285_v62, %v284_v0  ;;  %v411_v62 = vld [vmem:[#allocation2 + $0x1ea] sm:$0xff] }
 0x144   :  { %2598 = vmatmul.mubr.bf16.gmra.mrb[60].mxu0 %v2153_v3  ;;  %v4758_v45 = vpop.permute.xlu1 %4757  ;;  %v1955_v61 = vsel %vm157_vm0, %v5261_v37, %v4745_v1  ;;  %v1954_v20 = vsel %vm157_vm0, %v5262_v18, %v4744_v6  ;;  %v6350_v1 = vpack.i.bf16 %v347_v54, %v346_v15  ;;  %v5264_v6 = vld [vmem:[#allocation2 + $0x110] sm:$0xff]  ;;  %v5267_v15 = vld [vmem:[#allocation2 + $0x128] sm:$0xff] }
 0x145   :  { %v4759_v56 = vunpack.i.l.bf16 %v4758_v45  ;;  %v4753_v59 = vpop.permute.xlu0 %4752  ;;  %v4760_v23 = vunpack.i.h.bf16 %v4758_v45  ;;  %v408_v45 = vld [vmem:[#allocation2 + $0x1d2] sm:$0xff] }
 0x146   :  { %v4754_v32 = vunpack.i.l.bf16 %v4753_v59  ;;  %5047 = vrot.lane.b32.xlu1 %v6251_v17, %s5339_s22  ;;  %v4755_v22 = vunpack.i.h.bf16 %v4753_v59  ;;  %v5265_v59 = vld [vmem:[#allocation2 + $0x129] sm:$0xff] }
 0x147   :  { %5042 = vrot.lane.b32.xlu0 %v6309_v2, %s5339_s22  ;;  %v1829_v31 = vsel %vm1796_vm1, %v1766_v19, %v4759_v56  ;;  %v1830_v34 = vsel %vm1796_vm1, %v1767_v16, %v4760_v23 }
 0x148   :  { %v4768_v17 = vpop.permute.xlu1 %4767  ;;  %v2016_v4 = vsel %vm1796_vm1, %v1954_v20, %v4754_v32  ;;  %v2017_v14 = vsel %vm1796_vm1, %v1955_v61, %v4755_v22  ;;  %v2191_v32 = vpack.c.bf16 %v409_v28, %v408_v45  ;;  %v5266_v22 = vld [vmem:[#allocation2 + $0x121] sm:$0xff] }
 0x149   :  { %v4770_v8 = vunpack.i.h.bf16 %v4768_v17  ;;  %v4769_v27 = vunpack.i.l.bf16 %v4768_v17  ;;  %v4763_v29 = vpop.permute.xlu0 %4762 }
 0x14a   :  { %v4765_v39 = vunpack.i.h.bf16 %v4763_v29  ;;  %v4764_v7 = vunpack.i.l.bf16 %v4763_v29  ;;  %5057 = vrot.lane.b32.xlu1 %v6276_v60, %s5338_s19  ;;  %3948 = vmatmul.mubr.msk.bf16.gmra.mrb[60].mxu1 %vm157_vm0, %v2191_v32 }
 0x14b   :  { %5052 = vrot.lane.b32.xlu0 %v6315_v36, %s5338_s19  ;;  %v1892_v44 = vsel %vm1859_vm2, %v1829_v31, %v4769_v27  ;;  %v1893_v33 = vsel %vm1859_vm2, %v1830_v34, %v4770_v8  ;;  %3951 = vmatprep.mubr.msk.bf16.mxu1 %vm5342_vm3, %v5341_v38 }
 0x14c   :  { %v4778_v40 = vpop.permute.xlu1 %4777  ;;  %v2078_v5 = vsel %vm1859_vm2, %v2016_v4, %v4764_v7  ;;  %v2079_v46 = vsel %vm1859_vm2, %v2017_v14, %v4765_v39  ;;  %v2156_v60 = vpack.c.bf16 %v1893_v33, %v1892_v44  ;;  %v6375_v4 = vpack.i.bf16 %v409_v28, %v408_v45  ;;  %v286_v39 = vld [vmem:[#allocation2 + $0x1e0] sm:$0xff] }
 0x14d   :  { %v4773_v42 = vpop.permute.xlu0 %4772  ;;  %v2157_v43 = vpack.c.bf16 %v2079_v46, %v2078_v5  ;;  %v4780_v11 = vunpack.i.h.bf16 %v4778_v40  ;;  %v4779_v57 = vunpack.i.l.bf16 %v4778_v40  ;;  %v287_v40 = vld [vmem:[#allocation2 + $0x1e8] sm:$0xff] }
 0x14e   :  { %5067 = vrot.lane.b32.xlu1 %v6282_v55, %s5340_s25  ;;  %v4775_v47 = vunpack.i.h.bf16 %v4773_v42  ;;  %v4774_v3 = vunpack.i.l.bf16 %v4773_v42  ;;  %v6377_v5 = vld [vmem:[#allocation2 + $0x1e1] sm:$0xff]  ;;  %v6379_v46 = vld [vmem:[#allocation2 + $0x1e9] sm:$0xff] }
 0x14f   :  { %5062 = vrot.lane.b32.xlu0 %v6317_v9, %s5340_s25  ;;  %2605 = vmatprep.mubr.bf16.mxu0 %v2157_v43  ;;  %v1769_v30 = vsel %vm157_vm0, %v5263_v41, %v4780_v11  ;;  %v1768_v56 = vsel %vm157_vm0, %v5264_v6, %v4779_v57  ;;  %v6385_v57 = vpack.i.bf16 %v287_v40, %v286_v39  ;;  %v417_v40 = vld [vmem:[#allocation2 + $0x1fa] sm:$0xff] }
 0x150   :  { %2606 = vmatmul.mubr.bf16.gmra.mrb[64].mxu0 %v2156_v60  ;;  %v4788_v63 = vpop.permute.xlu1 %4787  ;;  %v1957_v23 = vsel %vm157_vm0, %v5265_v59, %v4775_v47  ;;  %v1956_v10 = vsel %vm157_vm0, %v5266_v22, %v4774_v3  ;;  %v6389_v47 = vpack.i.bf16 %v6379_v46, %v6377_v5  ;;  %v5268_v3 = vld [vmem:[#allocation2 + $0x120] sm:$0xff] }
 0x151   :  { %v4789_v25 = vunpack.i.l.bf16 %v4788_v63  ;;  %v4783_v50 = vpop.permute.xlu0 %4782  ;;  %v4790_v49 = vunpack.i.h.bf16 %v4788_v63  ;;  %v410_v63 = vld [vmem:[#allocation2 + $0x1e2] sm:$0xff] }
 0x152   :  { %v4784_v55 = vunpack.i.l.bf16 %v4783_v50  ;;  %5077 = vrot.lane.b32.xlu1 %v6284_v21, %s5339_s22  ;;  %v4785_v58 = vunpack.i.h.bf16 %v4783_v50  ;;  %v5269_v50 = vld [vmem:[#allocation2 + $0x139] sm:$0xff] }
 0x153   :  { %5072 = vrot.lane.b32.xlu0 %v6342_v24, %s5339_s22  ;;  %v1831_v12 = vsel %vm1796_vm1, %v1768_v56, %v4789_v25  ;;  %v1832_v19 = vsel %vm1796_vm1, %v1769_v30, %v4790_v49 }
 0x154   :  { %v4798_v21 = vpop.permute.xlu1 %4797  ;;  %v2018_v37 = vsel %vm1796_vm1, %v1956_v10, %v4784_v55  ;;  %v2019_v48 = vsel %vm1796_vm1, %v1957_v23, %v4785_v58  ;;  %v2194_v55 = vpack.c.bf16 %v411_v62, %v410_v63  ;;  %v5270_v58 = vld [vmem:[#allocation2 + $0x131] sm:$0xff] }
 0x155   :  { %v4800_v35 = vunpack.i.h.bf16 %v4798_v21  ;;  %v4799_v16 = vunpack.i.l.bf16 %v4798_v21  ;;  %v4793_v13 = vpop.permute.xlu0 %4792 }
 0x156   :  { %v4795_v61 = vunpack.i.h.bf16 %v4793_v13  ;;  %v4794_v17 = vunpack.i.l.bf16 %v4793_v13  ;;  %5087 = vrot.lane.b32.xlu1 %v6309_v2, %s5338_s19  ;;  %3952 = vmatmul.mubr.msk.bf16.gmra.mrb[64].mxu1 %vm157_vm0, %v2194_v55 }
 0x157   :  { %5082 = vrot.lane.b32.xlu0 %v6348_v26, %s5338_s19  ;;  %v1894_v18 = vsel %vm1859_vm2, %v1831_v12, %v4799_v16  ;;  %v1895_v20 = vsel %vm1859_vm2, %v1832_v19, %v4800_v35  ;;  %3955 = vmatprep.mubr.msk.bf16.mxu1 %vm5342_vm3, %v5341_v38 }
 0x158   :  { %v4808_v31 = vpop.permute.xlu1 %4807  ;;  %v2080_v8 = vsel %vm1859_vm2, %v2018_v37, %v4794_v17  ;;  %v2081_v27 = vsel %vm1859_vm2, %v2019_v48, %v4795_v61  ;;  %v2159_v2 = vpack.c.bf16 %v1895_v20, %v1894_v18  ;;  %v6414_v37 = vpack.i.bf16 %v411_v62, %v410_v63  ;;  %v412_v61 = vld [vmem:[#allocation2 + $0x1f0] sm:$0xff]  ;;  %v5274_v62 = vld [vmem:[#allocation2 + $0x141] sm:$0xff] }
 0x159   :  { %v4803_v29 = vpop.permute.xlu0 %4802  ;;  %v2160_v34 = vpack.c.bf16 %v2081_v27, %v2080_v8  ;;  %v4810_v7 = vunpack.i.h.bf16 %v4808_v31  ;;  %v4809_v14 = vunpack.i.l.bf16 %v4808_v31  ;;  %v413_v31 = vld [vmem:[#allocation2 + $0x1f8] sm:$0xff] }
 0x15a   :  { %5097 = vrot.lane.b32.xlu1 %v6315_v36, %s5340_s25  ;;  %v4805_v44 = vunpack.i.h.bf16 %v4803_v29  ;;  %v4804_v60 = vunpack.i.l.bf16 %v4803_v29  ;;  %v6416_v8 = vld [vmem:[#allocation2 + $0x1f1] sm:$0xff]  ;;  %v6418_v27 = vld [vmem:[#allocation2 + $0x1f9] sm:$0xff] }
 0x15b   :  { %5092 = vrot.lane.b32.xlu0 %v6350_v1, %s5340_s25  ;;  %2613 = vmatprep.mubr.bf16.mxu0 %v2160_v34  ;;  %v1771_v54 = vsel %vm157_vm0, %v5267_v15, %v4810_v7  ;;  %v1770_v25 = vsel %vm157_vm0, %v5268_v3, %v4809_v14  ;;  %v6424_v14 = vpack.i.bf16 %v413_v31, %v412_v61 }
 0x15c   :  { %2614 = vmatmul.mubr.bf16.gmra.mrb[68].mxu0 %v2159_v2  ;;  %v4818_v33 = vpop.permute.xlu1 %4817  ;;  %v1958_v45 = vsel %vm157_vm0, %v5270_v58, %v4804_v60  ;;  %v5271_v60 = vld [vmem:[#allocation2 + $0x138] sm:$0xff] }
 0x15d   :  { %v4819_v42 = vunpack.i.l.bf16 %v4818_v33  ;;  %v4813_v36 = vpop.permute.xlu0 %4812  ;;  %v4820_v43 = vunpack.i.h.bf16 %v4818_v33  ;;  %v416_v33 = vld [vmem:[#allocation2 + $0x1f2] sm:$0xff] }
 0x15e   :  { %v4814_v0 = vunpack.i.l.bf16 %v4813_v36  ;;  %5107 = vrot.lane.b32.xlu1 %v6317_v9, %s5339_s22  ;;  %v4815_v11 = vunpack.i.h.bf16 %v4813_v36  ;;  %v1959_v9 = vsel %vm157_vm0, %v5269_v50, %v4805_v44  ;;  %v5151_v44 = vpack.i.bf16 %v6418_v27, %v6416_v8  ;;  %v5272_v36 = vld [vmem:[#allocation2 + $0x130] sm:$0xff] }
 0x15f   :  { %5102 = vrot.lane.b32.xlu0 %v6375_v4, %s5339_s22  ;;  %v1833_v28 = vsel %vm1796_vm1, %v1770_v25, %v4819_v42  ;;  %v1834_v56 = vsel %vm1796_vm1, %v1771_v54, %v4820_v43  ;;  %v2197_v63 = vpack.c.bf16 %v417_v40, %v416_v33 }
 0x160   :  { %v4828_v49 = vpop.permute.xlu1 %4827  ;;  %v2020_v59 = vsel %vm1796_vm1, %v1958_v45, %v4814_v0  ;;  %v2021_v32 = vsel %vm1796_vm1, %v1959_v9, %v4815_v11  ;;  %v5273_v0 = vld [vmem:[#allocation2 + $0x149] sm:$0xff] }
 0x161   :  { %v4830_v41 = vunpack.i.h.bf16 %v4828_v49  ;;  %v4829_v30 = vunpack.i.l.bf16 %v4828_v49  ;;  %v4823_v6 = vpop.permute.xlu0 %4822  ;;  %3956 = vmatmul.mubr.msk.bf16.gmra.mrb[68].mxu1 %vm157_vm0, %v2197_v63 }
 0x162   :  { %v4825_v23 = vunpack.i.h.bf16 %v4823_v6  ;;  %v4824_v21 = vunpack.i.l.bf16 %v4823_v6  ;;  %5117 = vrot.lane.b32.xlu1 %v6342_v24, %s5338_s19  ;;  %3959 = vmatprep.mubr.msk.bf16.mxu1 %vm5342_vm3, %v5341_v38 }
 0x163   :  { %5112 = vrot.lane.b32.xlu0 %v6385_v57, %s5338_s19  ;;  %v1896_v22 = vsel %vm1859_vm2, %v1833_v28, %v4829_v30  ;;  %v1897_v10 = vsel %vm1859_vm2, %v1834_v56, %v4830_v41 }
 0x164   :  { %v4838_v12 = vpop.permute.xlu1 %4837  ;;  %v2082_v35 = vsel %vm1859_vm2, %v2020_v59, %v4824_v21  ;;  %v2083_v16 = vsel %vm1859_vm2, %v2021_v32, %v4825_v23  ;;  %v2162_v24 = vpack.c.bf16 %v1897_v10, %v1896_v22  ;;  %v5161_v21 = vpack.i.bf16 %v417_v40, %v416_v33  ;;  %v418_v32 = vld [vmem:[#allocation2 + $0x200] sm:$0xff] }
 0x165   :  { %v4833_v13 = vpop.permute.xlu0 %4832  ;;  %v2163_v19 = vpack.c.bf16 %v2083_v16, %v2082_v35  ;;  %v4840_v17 = vunpack.i.h.bf16 %v4838_v12  ;;  %v4839_v48 = vunpack.i.l.bf16 %v4838_v12  ;;  %v419_v16 = vld [vmem:[#allocation2 + $0x208] sm:$0xff]  ;;  %v5276_v33 = vld [vmem:[#allocation2 + $0x140] sm:$0xff] }
 0x166   :  { %5127 = vrot.lane.b32.xlu1 %v6348_v26, %s5340_s25  ;;  %v4835_v18 = vunpack.i.h.bf16 %v4833_v13  ;;  %v4834_v2 = vunpack.i.l.bf16 %v4833_v13  ;;  %v421_v13 = vld [vmem:[#allocation2 + $0x209] sm:$0xff] }
 0x167   :  { %5122 = vrot.lane.b32.xlu0 %v6389_v47, %s5340_s25  ;;  %2621 = vmatprep.mubr.bf16.mxu0 %v2163_v19  ;;  %v1773_v42 = vsel %vm157_vm0, %v5271_v60, %v4840_v17  ;;  %v1772_v43 = vsel %vm157_vm0, %v5272_v36, %v4839_v48  ;;  %v5277_v60 = vld [vmem:[#allocation2 + $0x159] sm:$0xff] }
 0x168   :  { %2622 = vmatmul.mubr.bf16.gmra.mrb[72].mxu0 %v2162_v24  ;;  %v4848_v20 = vpop.permute.xlu1 %4847  ;;  %v1960_v15 = vsel %vm157_vm0, %v5274_v62, %v4834_v2  ;;  %v420_v24 = vld [vmem:[#allocation2 + $0x201] sm:$0xff]  ;;  %v5171_v2 = vpack.i.bf16 %v419_v16, %v418_v32 }
 0x169   :  { %v4849_v29 = vunpack.i.l.bf16 %v4848_v20  ;;  %v4843_v26 = vpop.permute.xlu0 %4842  ;;  %v4850_v34 = vunpack.i.h.bf16 %v4848_v20 }
 0x16a   :  { %v4844_v39 = vunpack.i.l.bf16 %v4843_v26  ;;  %5137 = vrot.lane.b32.xlu1 %v6350_v1, %s5339_s22  ;;  %v4845_v7 = vunpack.i.h.bf16 %v4843_v26  ;;  %v1961_v1 = vsel %vm157_vm0, %v5273_v0, %v4835_v18  ;;  %v5278_v0 = vld [vmem:[#allocation2 + $0x151] sm:$0xff] }
 0x16b   :  { %5132 = vrot.lane.b32.xlu0 %v6414_v37, %s5339_s22  ;;  %v1835_v54 = vsel %vm1796_vm1, %v1772_v43, %v4849_v29  ;;  %v1836_v9 = vsel %vm1796_vm1, %v1773_v42, %v4850_v34  ;;  %v5181_v29 = vpack.i.bf16 %v421_v13, %v420_v24  ;;  %v422_v34 = vld [vmem:[#allocation2 + $0x202] sm:$0xff] }
 0x16c   :  { %v4858_v11 = vpop.permute.xlu1 %4857  ;;  %v2022_v49 = vsel %vm1796_vm1, %v1960_v15, %v4844_v39  ;;  %v2023_v45 = vsel %vm1796_vm1, %v1961_v1, %v4845_v7  ;;  %v423_v39 = vld [vmem:[#allocation2 + $0x20a] sm:$0xff] }
 0x16d   :  { %v4860_v3 = vunpack.i.h.bf16 %v4858_v11  ;;  %v4859_v25 = vunpack.i.l.bf16 %v4858_v11  ;;  %v4853_v50 = vpop.permute.xlu0 %4852  ;;  %v5275_v7 = vld [vmem:[#allocation2 + $0x148] sm:$0xff]  ;;  %v2200_v36 = vpack.c.bf16 %v423_v39, %v422_v34 }
 0x16e   :  { %v4855_v55 = vunpack.i.h.bf16 %v4853_v50  ;;  %v4854_v58 = vunpack.i.l.bf16 %v4853_v50  ;;  %5147 = vrot.lane.b32.xlu1 %v6375_v4, %s5338_s19 }
 0x16f   :  { %5142 = vrot.lane.b32.xlu0 %v6424_v14, %s5338_s19  ;;  %v1898_v28 = vsel %vm1859_vm2, %v1835_v54, %v4859_v25  ;;  %v1899_v41 = vsel %vm1859_vm2, %v1836_v9, %v4860_v3  ;;  %3960 = vmatmul.mubr.msk.bf16.gmra.mrb[72].mxu1 %vm157_vm0, %v2200_v36 }
 0x170   :  { %v4868_v30 = vpop.permute.xlu1 %4867  ;;  %v2084_v6 = vsel %vm1859_vm2, %v2022_v49, %v4854_v58  ;;  %v2085_v56 = vsel %vm1859_vm2, %v2023_v45, %v4855_v55  ;;  %v2165_v4 = vpack.c.bf16 %v1899_v41, %v1898_v28  ;;  %3979 = vmatprep.mubr.msk.bf16.mxu1 %vm5342_vm3, %v5341_v38 }
 0x171   :  { %v4863_v59 = vpop.permute.xlu0 %4862  ;;  %v2166_v23 = vpack.c.bf16 %v2085_v56, %v2084_v6  ;;  %v4870_v22 = vunpack.i.h.bf16 %v4868_v30  ;;  %v4869_v10 = vunpack.i.l.bf16 %v4868_v30 }
 0x172   :  { %5157 = vrot.lane.b32.xlu1 %v6385_v57, %s5340_s25  ;;  %v4865_v12 = vunpack.i.h.bf16 %v4863_v59  ;;  %v4864_v19 = vunpack.i.l.bf16 %v4863_v59  ;;  %v6450_v48 = vpop.f32.mrb[0].mxu1 }
 0x173   :  { %5152 = vrot.lane.b32.xlu0 %v5151_v44, %s5340_s25  ;;  %2629 = vmatprep.mubr.bf16.mxu0 %v2166_v23  ;;  %v3889_v20 = vpop.f32.mrb[1].mxu1  ;;  %v1775_v44 = vsel %vm157_vm0, %v5275_v7, %v4870_v22  ;;  %v1774_v40 = vsel %vm157_vm0, %v5276_v33, %v4869_v10 }
 0x174   :  { %2630 = vmatmul.mubr.bf16.gmra.mrb[76].mxu0 %v2165_v4  ;;  %v4878_v35 = vpop.permute.xlu1 %4877  ;;  %v6455_v26 = vpop.f32.mrb[2].mxu1  ;;  %v1963_v42 = vsel %vm157_vm0, %v5277_v60, %v4865_v12  ;;  %v1962_v1 = vsel %vm157_vm0, %v5278_v0, %v4864_v19  ;;  %v5280_v19 = vld [vmem:[#allocation2 + $0x150] sm:$0xff] }
 0x175   :  { %v4879_v61 = vunpack.i.l.bf16 %v4878_v35  ;;  %v4873_v17 = vpop.permute.xlu0 %4872  ;;  %v4880_v18 = vunpack.i.h.bf16 %v4878_v35  ;;  %v3890_v43 = vpop.f32.mrb[3].mxu1 }
 0x176   :  { %v4874_v57 = vunpack.i.l.bf16 %v4873_v17  ;;  %5167 = vrot.lane.b32.xlu1 %v6389_v47, %s5339_s22  ;;  %v4875_v31 = vunpack.i.h.bf16 %v4873_v17 }
 0x177   :  { %5162 = vrot.lane.b32.xlu0 %v5161_v21, %s5339_s22  ;;  %v1837_v11 = vsel %vm1796_vm1, %v1774_v40, %v4879_v61  ;;  %v1838_v54 = vsel %vm1796_vm1, %v1775_v44, %v4880_v18 }
 0x178   :  { %v4888_v47 = vpop.permute.xlu1 %4887  ;;  %v2024_v3 = vsel %vm1796_vm1, %v1962_v1, %v4874_v57  ;;  %v2025_v9 = vsel %vm1796_vm1, %v1963_v42, %v4875_v31  ;;  %v5281_v57 = vld [vmem:[#allocation2 + $0x169] sm:$0xff]  ;;  %v5282_v31 = vld [vmem:[#allocation2 + $0x161] sm:$0xff] }
 0x179   :  { %v4890_v63 = vunpack.i.h.bf16 %v4888_v47  ;;  %v4889_v62 = vunpack.i.l.bf16 %v4888_v47  ;;  %v4883_v15 = vpop.permute.xlu0 %4882 }
 0x17a   :  { %v4885_v25 = vunpack.i.h.bf16 %v4883_v15  ;;  %v4884_v50 = vunpack.i.l.bf16 %v4883_v15  ;;  %5177 = vrot.lane.b32.xlu1 %v6414_v37, %s5338_s19 }
 0x17b   :  { %5172 = vrot.lane.b32.xlu0 %v5171_v2, %s5338_s19  ;;  %v1900_v49 = vsel %vm1859_vm2, %v1837_v11, %v4889_v62  ;;  %v1901_v55 = vsel %vm1859_vm2, %v1838_v54, %v4890_v63  ;;  %v6478_v32 = vpop.f32.mrb[4].mxu1 }
 0x17c   :  { %v4898_v58 = vpop.permute.xlu1 %4897  ;;  %v2086_v45 = vsel %vm1859_vm2, %v2024_v3, %v4884_v50  ;;  %v2087_v28 = vsel %vm1859_vm2, %v2025_v9, %v4885_v25  ;;  %v2168_v41 = vpack.c.bf16 %v1901_v55, %v1900_v49  ;;  %v3893_v12 = vpop.f32.mrb[5].mxu1 }
 0x17d   :  { %v4893_v37 = vpop.permute.xlu0 %4892  ;;  %v2169_v30 = vpack.c.bf16 %v2087_v28, %v2086_v45  ;;  %v4900_v6 = vunpack.i.h.bf16 %v4898_v58  ;;  %v4899_v56 = vunpack.i.l.bf16 %v4898_v58  ;;  %v6480_v24 = vpop.f32.mrb[6].mxu1 }
 0x17e   :  { %5187 = vrot.lane.b32.xlu1 %v6424_v14, %s5340_s25  ;;  %v4895_v59 = vunpack.i.h.bf16 %v4893_v37  ;;  %v4894_v23 = vunpack.i.l.bf16 %v4893_v37  ;;  %v5279_v14 = vld [vmem:[#allocation2 + $0x158] sm:$0xff]  ;;  %v3894_v18 = vpop.f32.mrb[7].mxu1 }
 0x17f   :  { %5182 = vrot.lane.b32.xlu0 %v5181_v29, %s5340_s25  ;;  %2637 = vmatprep.mubr.bf16.mxu0 %v2169_v30  ;;  %v1777_v13 = vsel %vm157_vm0, %v5279_v14, %v4900_v6  ;;  %v1776_v61 = vsel %vm157_vm0, %v5280_v19, %v4899_v56  ;;  %v5283_v30 = vld [vmem:[#allocation2 + $0x168] sm:$0xff]  ;;  %v5284_v56 = vld [vmem:[#allocation2 + $0x160] sm:$0xff] }
 0x180   :  { %2638 = vmatmul.mubr.bf16.gmra.mrb[80].mxu0 %v2168_v41  ;;  %v4908_v4 = vpop.permute.xlu1 %4907  ;;  %v1965_v20 = vsel %vm157_vm0, %v5281_v57, %v4895_v59  ;;  %v1964_v2 = vsel %vm157_vm0, %v5282_v31, %v4894_v23 }
 0x181   :  { %v4903_v21 = vpop.permute.xlu0 %4902  ;;  %v4910_v22 = vunpack.i.h.bf16 %v4908_v4  ;;  %v4909_v10 = vunpack.i.l.bf16 %v4908_v4 }
 0x182   :  { %v4905_v35 = vunpack.i.h.bf16 %v4903_v21  ;;  %v4904_v16 = vunpack.i.l.bf16 %v4903_v21  ;;  %v5285_v21 = vld [vmem:[#allocation2 + $0x179] sm:$0xff] }
 0x183   :  { %v1839_v7 = vsel %vm1796_vm1, %v1776_v61, %v4909_v10  ;;  %v1840_v44 = vsel %vm1796_vm1, %v1777_v13, %v4910_v22  ;;  %v6494_v49 = vpop.f32.mrb[8].mxu1  ;;  %v5286_v10 = vld [vmem:[#allocation2 + $0x171] sm:$0xff] }
 0x184   :  { %v4918_v17 = vpop.permute.xlu1 %4917  ;;  %v2026_v60 = vsel %vm1796_vm1, %v1964_v2, %v4904_v16  ;;  %v2027_v42 = vsel %vm1796_vm1, %v1965_v20, %v4905_v35  ;;  %v3897_v45 = vpop.f32.mrb[9].mxu1 }
 0x185   :  { %v4920_v29 = vunpack.i.h.bf16 %v4918_v17  ;;  %v4919_v34 = vunpack.i.l.bf16 %v4918_v17  ;;  %v4913_v39 = vpop.permute.xlu0 %4912  ;;  %v6496_v37 = vpop.f32.mrb[10].mxu1 }
 0x186   :  { %v4915_v33 = vunpack.i.h.bf16 %v4913_v39  ;;  %v4914_v40 = vunpack.i.l.bf16 %v4913_v39  ;;  %v3898_v23 = vpop.f32.mrb[11].mxu1 }
 0x187   :  { %v1902_v47 = vsel %vm1859_vm2, %v1839_v7, %v4919_v34  ;;  %v1903_v36 = vsel %vm1859_vm2, %v1840_v44, %v4920_v29 }
 0x188   :  { %v4928_v43 = vpop.permute.xlu1 %4927  ;;  %v2088_v0 = vsel %vm1859_vm2, %v2026_v60, %v4914_v40  ;;  %v2089_v1 = vsel %vm1859_vm2, %v2027_v42, %v4915_v33  ;;  %v2171_v11 = vpack.c.bf16 %v1903_v36, %v1902_v47 }
 0x189   :  { %v4923_v63 = vpop.permute.xlu0 %4922  ;;  %v2172_v62 = vpack.c.bf16 %v2089_v1, %v2088_v0  ;;  %v4930_v15 = vunpack.i.h.bf16 %v4928_v43  ;;  %v4929_v54 = vunpack.i.l.bf16 %v4928_v43 }
 0x18a   :  { %v4925_v25 = vunpack.i.h.bf16 %v4923_v63  ;;  %v4924_v50 = vunpack.i.l.bf16 %v4923_v63 }
 0x18b   :  { %2645 = vmatprep.mubr.bf16.mxu0 %v2172_v62  ;;  %v1779_v6 = vsel %vm157_vm0, %v5283_v30, %v4930_v15  ;;  %v1778_v4 = vsel %vm157_vm0, %v5284_v56, %v4929_v54  ;;  %v5287_v54 = vld [vmem:[#allocation2 + $0x178] sm:$0xff] }
 0x18c   :  { %2646 = vmatmul.mubr.bf16.gmra.mrb[84].mxu0 %v2171_v11  ;;  %v4938_v3 = vpop.permute.xlu1 %4937  ;;  %v1967_v22 = vsel %vm157_vm0, %v5285_v21, %v4925_v25  ;;  %v1966_v12 = vsel %vm157_vm0, %v5286_v10, %v4924_v50  ;;  %v5288_v25 = vld [vmem:[#allocation2 + $0x170] sm:$0xff] }
 0x18d   :  { %v4933_v9 = vpop.permute.xlu0 %4932  ;;  %v4940_v55 = vunpack.i.h.bf16 %v4938_v3  ;;  %v4939_v58 = vunpack.i.l.bf16 %v4938_v3  ;;  %v6510_v43 = vpop.f32.mrb[12].mxu1 }
 0x18e   :  { %v4935_v28 = vunpack.i.h.bf16 %v4933_v9  ;;  %v4934_v41 = vunpack.i.l.bf16 %v4933_v9  ;;  %v3901_v11 = vpop.f32.mrb[13].mxu1 }
 0x18f   :  { %v1841_v13 = vsel %vm1796_vm1, %v1778_v4, %v4939_v58  ;;  %v1842_v19 = vsel %vm1796_vm1, %v1779_v6, %v4940_v55  ;;  %v6512_v15 = vpop.f32.mrb[14].mxu1  ;;  %v5289_v58 = vld [vmem:[#allocation2 + $0x189] sm:$0xff] }
 0x190   :  { %v4948_v59 = vpop.permute.xlu1 %4947  ;;  %v2028_v18 = vsel %vm1796_vm1, %v1966_v12, %v4934_v41  ;;  %v2029_v57 = vsel %vm1796_vm1, %v1967_v22, %v4935_v28  ;;  %v3902_v55 = vpop.f32.mrb[15].mxu1  ;;  %v5290_v28 = vld [vmem:[#allocation2 + $0x181] sm:$0xff] }
 0x191   :  { %v4950_v35 = vunpack.i.h.bf16 %v4948_v59  ;;  %v4949_v16 = vunpack.i.l.bf16 %v4948_v59  ;;  %v4943_v14 = vpop.permute.xlu0 %4942 }
 0x192   :  { %v4945_v61 = vunpack.i.h.bf16 %v4943_v14  ;;  %v4944_v17 = vunpack.i.l.bf16 %v4943_v14 }
 0x193   :  { %v1904_v20 = vsel %vm1859_vm2, %v1841_v13, %v4949_v16  ;;  %v1905_v31 = vsel %vm1859_vm2, %v1842_v19, %v4950_v35 }
 0x194   :  { %v4958_v2 = vpop.permute.xlu1 %4957  ;;  %v2090_v29 = vsel %vm1859_vm2, %v2028_v18, %v4944_v17  ;;  %v2091_v34 = vsel %vm1859_vm2, %v2029_v57, %v4945_v61  ;;  %v2174_v39 = vpack.c.bf16 %v1905_v31, %v1904_v20 }
 0x195   :  { %v4953_v7 = vpop.permute.xlu0 %4952  ;;  %v2175_v44 = vpack.c.bf16 %v2091_v34, %v2090_v29  ;;  %v4960_v33 = vunpack.i.h.bf16 %v4958_v2  ;;  %v4959_v40 = vunpack.i.l.bf16 %v4958_v2 }
 0x196   :  { %v4955_v42 = vunpack.i.h.bf16 %v4953_v7  ;;  %v4954_v47 = vunpack.i.l.bf16 %v4953_v7 }
 0x197   :  { %2653 = vmatprep.mubr.bf16.mxu0 %v2175_v44  ;;  %v1781_v3 = vsel %vm157_vm0, %v5287_v54, %v4960_v33  ;;  %v1780_v50 = vsel %vm157_vm0, %v5288_v25, %v4959_v40  ;;  %v5294_v54 = vld [vmem:[#allocation2 + $0x191] sm:$0xff] }
 0x198   :  { %2654 = vmatmul.mubr.bf16.gmra.mrb[88].mxu0 %v2174_v39  ;;  %v4968_v60 = vpop.permute.xlu1 %4967  ;;  %v1969_v45 = vsel %vm157_vm0, %v5289_v58, %v4955_v42  ;;  %v1968_v41 = vsel %vm157_vm0, %v5290_v28, %v4954_v47  ;;  %v5291_v42 = vld [vmem:[#allocation2 + $0x188] sm:$0xff] }
 0x199   :  { %v4963_v36 = vpop.permute.xlu0 %4962  ;;  %v4970_v0 = vunpack.i.h.bf16 %v4968_v60  ;;  %v4969_v1 = vunpack.i.l.bf16 %v4968_v60  ;;  %v6526_v34 = vpop.f32.mrb[16].mxu1 }
 0x19a   :  { %v4965_v63 = vunpack.i.h.bf16 %v4963_v36  ;;  %v4964_v62 = vunpack.i.l.bf16 %v4963_v36  ;;  %v3905_v44 = vpop.f32.mrb[17].mxu1  ;;  %v5292_v36 = vld [vmem:[#allocation2 + $0x180] sm:$0xff] }
 0x19b   :  { %v1843_v4 = vsel %vm1796_vm1, %v1780_v50, %v4969_v1  ;;  %v1844_v59 = vsel %vm1796_vm1, %v1781_v3, %v4970_v0  ;;  %v6528_v60 = vpop.f32.mrb[18].mxu1 }
 0x19c   :  { %v4978_v9 = vpop.permute.xlu1 %4977  ;;  %v2030_v22 = vsel %vm1796_vm1, %v1968_v41, %v4964_v62  ;;  %v2031_v10 = vsel %vm1796_vm1, %v1969_v45, %v4965_v63  ;;  %v3906_v11 = vpop.f32.mrb[19].mxu1  ;;  %v5293_v63 = vld [vmem:[#allocation2 + $0x199] sm:$0xff] }
 0x19d   :  { %v4980_v30 = vunpack.i.h.bf16 %v4978_v9  ;;  %v4979_v6 = vunpack.i.l.bf16 %v4978_v9  ;;  %v4973_v56 = vpop.permute.xlu0 %4972 }
 0x19e   :  { %v4975_v23 = vunpack.i.h.bf16 %v4973_v56  ;;  %v4974_v21 = vunpack.i.l.bf16 %v4973_v56 }
 0x19f   :  { %v1906_v12 = vsel %vm1859_vm2, %v1843_v4, %v4979_v6  ;;  %v1907_v35 = vsel %vm1859_vm2, %v1844_v59, %v4980_v30 }
 0x1a0   :  { %v4988_v16 = vpop.permute.xlu1 %4987  ;;  %v2092_v14 = vsel %vm1859_vm2, %v2030_v22, %v4974_v21  ;;  %v2093_v13 = vsel %vm1859_vm2, %v2031_v10, %v4975_v23  ;;  %v2177_v19 = vpack.c.bf16 %v1907_v35, %v1906_v12 }
 0x1a1   :  { %v4983_v61 = vpop.permute.xlu0 %4982  ;;  %v2178_v17 = vpack.c.bf16 %v2093_v13, %v2092_v14  ;;  %v4990_v18 = vunpack.i.h.bf16 %v4988_v16  ;;  %v4989_v57 = vunpack.i.l.bf16 %v4988_v16 }
 0x1a2   :  { %v4985_v31 = vunpack.i.h.bf16 %v4983_v61  ;;  %v4984_v2 = vunpack.i.l.bf16 %v4983_v61  ;;  %v6542_v61 = vpop.f32.mrb[20].mxu1 }
 0x1a3   :  { %2661 = vmatprep.mubr.bf16.mxu0 %v2178_v17  ;;  %v1783_v47 = vsel %vm157_vm0, %v5291_v42, %v4990_v18  ;;  %v1782_v0 = vsel %vm157_vm0, %v5292_v36, %v4989_v57  ;;  %v3909_v57 = vpop.f32.mrb[21].mxu1  ;;  %v5297_v42 = vld [vmem:[#allocation2 + $0x1a9] sm:$0xff]  ;;  %v5298_v36 = vld [vmem:[#allocation2 + $0x1a1] sm:$0xff] }
 0x1a4   :  { %2662 = vmatmul.mubr.bf16.gmra.mrb[92].mxu0 %v2177_v19  ;;  %v4998_v20 = vpop.permute.xlu1 %4997  ;;  %v1971_v62 = vsel %vm157_vm0, %v5293_v63, %v4985_v31  ;;  %v1970_v3 = vsel %vm157_vm0, %v5294_v54, %v4984_v2  ;;  %v6544_v2 = vpop.f32.mrb[22].mxu1 }
 0x1a5   :  { %v4993_v29 = vpop.permute.xlu0 %4992  ;;  %v5000_v39 = vunpack.i.h.bf16 %v4998_v20  ;;  %v4999_v7 = vunpack.i.l.bf16 %v4998_v20 }
 0x1a6   :  { %v4995_v33 = vunpack.i.h.bf16 %v4993_v29  ;;  %v4994_v40 = vunpack.i.l.bf16 %v4993_v29  ;;  %v5295_v29 = vld [vmem:[#allocation2 + $0x198] sm:$0xff] }
 0x1a7   :  { %v1845_v55 = vsel %vm1796_vm1, %v1782_v0, %v4999_v7  ;;  %v1846_v58 = vsel %vm1796_vm1, %v1783_v47, %v5000_v39  ;;  %v5296_v7 = vld [vmem:[#allocation2 + $0x190] sm:$0xff] }
 0x1a8   :  { %v5008_v1 = vpop.permute.xlu1 %5007  ;;  %v2032_v41 = vsel %vm1796_vm1, %v1970_v3, %v4994_v40  ;;  %v2033_v30 = vsel %vm1796_vm1, %v1971_v62, %v4995_v33  ;;  %v3910_v40 = vpop.f32.mrb[23].mxu1 }
 0x1a9   :  { %v5010_v25 = vunpack.i.h.bf16 %v5008_v1  ;;  %v5009_v50 = vunpack.i.l.bf16 %v5008_v1  ;;  %v5003_v9 = vpop.permute.xlu0 %5002 }
 0x1aa   :  { %v5005_v45 = vunpack.i.h.bf16 %v5003_v9  ;;  %v5004_v28 = vunpack.i.l.bf16 %v5003_v9 }
 0x1ab   :  { %v1908_v6 = vsel %vm1859_vm2, %v1845_v55, %v5009_v50  ;;  %v1909_v56 = vsel %vm1859_vm2, %v1846_v58, %v5010_v25 }
 0x1ac   :  { %v5018_v4 = vpop.permute.xlu1 %5017  ;;  %v2094_v59 = vsel %vm1859_vm2, %v2032_v41, %v5004_v28  ;;  %v2095_v23 = vsel %vm1859_vm2, %v2033_v30, %v5005_v45  ;;  %v2180_v21 = vpack.c.bf16 %v1909_v56, %v1908_v6 }
 0x1ad   :  { %v5013_v22 = vpop.permute.xlu0 %5012  ;;  %v2181_v10 = vpack.c.bf16 %v2095_v23, %v2094_v59  ;;  %v5020_v12 = vunpack.i.h.bf16 %v5018_v4  ;;  %v5019_v35 = vunpack.i.l.bf16 %v5018_v4 }
 0x1ae   :  { %v5015_v14 = vunpack.i.h.bf16 %v5013_v22  ;;  %v5014_v13 = vunpack.i.l.bf16 %v5013_v22 }
 0x1af   :  { %2669 = vmatprep.mubr.bf16.mxu0 %v2181_v10  ;;  %v1785_v39 = vsel %vm157_vm0, %v5295_v29, %v5020_v12  ;;  %v1784_v44 = vsel %vm157_vm0, %v5296_v7, %v5019_v35  ;;  %v5301_v7 = vld [vmem:[#allocation2 + $0x1b9] sm:$0xff] }
 0x1b0   :  { %2670 = vmatmul.mubr.bf16.gmra.mrb[96].mxu0 %v2180_v21  ;;  %v5028_v16 = vpop.permute.xlu1 %5027  ;;  %v1973_v47 = vsel %vm157_vm0, %v5297_v42, %v5015_v14  ;;  %v1972_v0 = vsel %vm157_vm0, %v5298_v36, %v5014_v13 }
 0x1b1   :  { %v5023_v19 = vpop.permute.xlu0 %5022  ;;  %v5030_v17 = vunpack.i.h.bf16 %v5028_v16  ;;  %v5029_v18 = vunpack.i.l.bf16 %v5028_v16  ;;  %v6558_v12 = vpop.f32.mrb[24].mxu1 }
 0x1b2   :  { %v5025_v20 = vunpack.i.h.bf16 %v5023_v19  ;;  %v5024_v31 = vunpack.i.l.bf16 %v5023_v19  ;;  %v3913_v14 = vpop.f32.mrb[25].mxu1 }
 0x1b3   :  { %v1847_v62 = vsel %vm1796_vm1, %v1784_v44, %v5029_v18  ;;  %v1848_v54 = vsel %vm1796_vm1, %v1785_v39, %v5030_v17  ;;  %v6560_v17 = vpop.f32.mrb[26].mxu1  ;;  %v5299_v18 = vld [vmem:[#allocation2 + $0x1a8] sm:$0xff] }
 0x1b4   :  { %v5038_v33 = vpop.permute.xlu1 %5037  ;;  %v2034_v50 = vsel %vm1796_vm1, %v1972_v0, %v5024_v31  ;;  %v2035_v9 = vsel %vm1796_vm1, %v1973_v47, %v5025_v20  ;;  %v5300_v20 = vld [vmem:[#allocation2 + $0x1a0] sm:$0xff]  ;;  %v3914_v39 = vpop.f32.mrb[27].mxu1 }
 0x1b5   :  { %v5040_v1 = vunpack.i.h.bf16 %v5038_v33  ;;  %v5039_v11 = vunpack.i.l.bf16 %v5038_v33  ;;  %v5033_v63 = vpop.permute.xlu0 %5032  ;;  %v5302_v33 = vld [vmem:[#allocation2 + $0x1b1] sm:$0xff]  ;;  %v5305_v39 = vld [vmem:[#allocation2 + $0x1c9] sm:$0xff] }
 0x1b6   :  { %v5035_v3 = vunpack.i.h.bf16 %v5033_v63  ;;  %v5034_v25 = vunpack.i.l.bf16 %v5033_v63 }
 0x1b7   :  { %v1910_v55 = vsel %vm1859_vm2, %v1847_v62, %v5039_v11  ;;  %v1911_v58 = vsel %vm1859_vm2, %v1848_v54, %v5040_v1 }
 0x1b8   :  { %v5048_v45 = vpop.permute.xlu1 %5047  ;;  %v2096_v28 = vsel %vm1859_vm2, %v2034_v50, %v5034_v25  ;;  %v2097_v41 = vsel %vm1859_vm2, %v2035_v9, %v5035_v3  ;;  %v2183_v30 = vpack.c.bf16 %v1911_v58, %v1910_v55 }
 0x1b9   :  { %v5043_v6 = vpop.permute.xlu0 %5042  ;;  %v2184_v56 = vpack.c.bf16 %v2097_v41, %v2096_v28  ;;  %v5050_v4 = vunpack.i.h.bf16 %v5048_v45  ;;  %v5049_v59 = vunpack.i.l.bf16 %v5048_v45  ;;  %v5209_v41 = vld [vmem:[%s7197_s3] sm:$0xff]  }
 0x1ba   :  { %v5045_v21 = vunpack.i.h.bf16 %v5043_v6  ;;  %v5044_v22 = vunpack.i.l.bf16 %v5043_v6  ;;  %3964 = vmatpush3.bf16.msra.mxu1 %v5209_v41 }
 0x1bb   :  { %2677 = vmatprep.mubr.bf16.mxu0 %v2184_v56  ;;  %v1787_v57 = vsel %vm157_vm0, %v5299_v18, %v5050_v4  ;;  %v1786_v31 = vsel %vm157_vm0, %v5300_v20, %v5049_v59  ;;  %3965 = vmatprep.subr.bf16.mxu1 %v5341_v38 }
 0x1bc   :  { %2678 = vmatmul.mubr.bf16.gmra.mrb[100].mxu0 %v2183_v30  ;;  %v5058_v23 = vpop.permute.xlu1 %5057  ;;  %v1975_v44 = vsel %vm157_vm0, %v5301_v7, %v5045_v21  ;;  %v1974_v40 = vsel %vm157_vm0, %v5302_v33, %v5044_v22 }
 0x1bd   :  { %v5053_v10 = vpop.permute.xlu0 %5052  ;;  %v5060_v35 = vunpack.i.h.bf16 %v5058_v23  ;;  %v5059_v16 = vunpack.i.l.bf16 %v5058_v23  ;;  %v6578_v21 = vpop.f32.mrb[28].mxu1 }
 0x1be   :  { %v5055_v13 = vunpack.i.h.bf16 %v5053_v10  ;;  %v5054_v19 = vunpack.i.l.bf16 %v5053_v10 }
 0x1bf   :  { %v1849_v0 = vsel %vm1796_vm1, %v1786_v31, %v5059_v16  ;;  %v1850_v1 = vsel %vm1796_vm1, %v1787_v57, %v5060_v35  ;;  %v3917_v35 = vpop.f32.mrb[29].mxu1  ;;  %v5304_v57 = vld [vmem:[#allocation2 + $0x1b0] sm:$0xff] }
 0x1c0   :  { %v5068_v29 = vpop.permute.xlu1 %5067  ;;  %v2036_v62 = vsel %vm1796_vm1, %v1974_v40, %v5054_v19  ;;  %v2037_v54 = vsel %vm1796_vm1, %v1975_v44, %v5055_v13  ;;  %v6580_v13 = vpop.f32.mrb[30].mxu1  ;;  %v5303_v19 = vld [vmem:[#allocation2 + $0x1b8] sm:$0xff]  ;;  %v5306_v44 = vld [vmem:[#allocation2 + $0x1c1] sm:$0xff] }
 0x1c1   :  { %v5070_v42 = vunpack.i.h.bf16 %v5068_v29  ;;  %v5069_v47 = vunpack.i.l.bf16 %v5068_v29  ;;  %v5063_v36 = vpop.permute.xlu0 %5062  ;;  %v3918_v29 = vpop.f32.mrb[31].mxu1 }
 0x1c2   :  { %v5065_v11 = vunpack.i.h.bf16 %v5063_v36  ;;  %v5064_v63 = vunpack.i.l.bf16 %v5063_v36 }
 0x1c3   :  { %v1912_v3 = vsel %vm1859_vm2, %v1849_v0, %v5069_v47  ;;  %v1913_v25 = vsel %vm1859_vm2, %v1850_v1, %v5070_v42 }
 0x1c4   :  { %v5078_v50 = vpop.permute.xlu1 %5077  ;;  %v2098_v9 = vsel %vm1859_vm2, %v2036_v62, %v5064_v63  ;;  %v2099_v55 = vsel %vm1859_vm2, %v2037_v54, %v5065_v11  ;;  %v2186_v58 = vpack.c.bf16 %v1913_v25, %v1912_v3 }
 0x1c5   :  { %v5073_v45 = vpop.permute.xlu0 %5072  ;;  %v2187_v28 = vpack.c.bf16 %v2099_v55, %v2098_v9  ;;  %v5080_v30 = vunpack.i.h.bf16 %v5078_v50  ;;  %v5079_v6 = vunpack.i.l.bf16 %v5078_v50 }
 0x1c6   :  { %v5075_v4 = vunpack.i.h.bf16 %v5073_v45  ;;  %v5074_v59 = vunpack.i.l.bf16 %v5073_v45 }
 0x1c7   :  { %2685 = vmatprep.mubr.bf16.mxu0 %v2187_v28  ;;  %v1789_v18 = vsel %vm157_vm0, %v5303_v19, %v5080_v30  ;;  %v1788_v20 = vsel %vm157_vm0, %v5304_v57, %v5079_v6  ;;  %v5307_v19 = vld [vmem:[#allocation2 + $0x1c8] sm:$0xff]  ;;  %v5308_v57 = vld [vmem:[#allocation2 + $0x1c0] sm:$0xff] }
 0x1c8   :  { %2686 = vmatmul.mubr.bf16.gmra.mrb[104].mxu0 %v2186_v58  ;;  %v5088_v56 = vpop.permute.xlu1 %5087  ;;  %v1977_v7 = vsel %vm157_vm0, %v5305_v39, %v5075_v4  ;;  %v1976_v33 = vsel %vm157_vm0, %v5306_v44, %v5074_v59  ;;  %v5309_v39 = vld [vmem:[#allocation2 + $0x1d9] sm:$0xff]  ;;  %v5310_v44 = vld [vmem:[#allocation2 + $0x1d1] sm:$0xff] }
 0x1c9   :  { %v5083_v23 = vpop.permute.xlu0 %5082  ;;  %v5090_v22 = vunpack.i.h.bf16 %v5088_v56  ;;  %v5089_v10 = vunpack.i.l.bf16 %v5088_v56  ;;  %v6594_v59 = vpop.f32.mrb[32].mxu1 }
 0x1ca   :  { %v5085_v16 = vunpack.i.h.bf16 %v5083_v23  ;;  %v5084_v14 = vunpack.i.l.bf16 %v5083_v23 }
 0x1cb   :  { %v1851_v36 = vsel %vm1796_vm1, %v1788_v20, %v5089_v10  ;;  %v1852_v0 = vsel %vm1796_vm1, %v1789_v18, %v5090_v22  ;;  %v3921_v10 = vpop.f32.mrb[33].mxu1 }
 0x1cc   :  { %v5098_v31 = vpop.permute.xlu1 %5097  ;;  %v2038_v63 = vsel %vm1796_vm1, %v1976_v33, %v5084_v14  ;;  %v2039_v62 = vsel %vm1796_vm1, %v1977_v7, %v5085_v16  ;;  %v6596_v14 = vpop.f32.mrb[34].mxu1 }
 0x1cd   :  { %v5100_v40 = vunpack.i.h.bf16 %v5098_v31  ;;  %v5099_v42 = vunpack.i.l.bf16 %v5098_v31  ;;  %v5093_v47 = vpop.permute.xlu0 %5092  ;;  %v3922_v29 = vpop.f32.mrb[35].mxu1 }
 0x1ce   :  { %v5095_v1 = vunpack.i.h.bf16 %v5093_v47  ;;  %v5094_v11 = vunpack.i.l.bf16 %v5093_v47  ;;  %v5312_v29 = vld [vmem:[#allocation2 + $0x1d0] sm:$0xff] }
 0x1cf   :  { %v1914_v54 = vsel %vm1859_vm2, %v1851_v36, %v5099_v42  ;;  %v1915_v3 = vsel %vm1859_vm2, %v1852_v0, %v5100_v40 }
 0x1d0   :  { %v5108_v25 = vpop.permute.xlu1 %5107  ;;  %v2100_v50 = vsel %vm1859_vm2, %v2038_v63, %v5094_v11  ;;  %v2101_v9 = vsel %vm1859_vm2, %v2039_v62, %v5095_v1  ;;  %v2189_v55 = vpack.c.bf16 %v1915_v3, %v1914_v54 }
 0x1d1   :  { %v5103_v58 = vpop.permute.xlu0 %5102  ;;  %v2190_v45 = vpack.c.bf16 %v2101_v9, %v2100_v50  ;;  %v5110_v28 = vunpack.i.h.bf16 %v5108_v25  ;;  %v5109_v41 = vunpack.i.l.bf16 %v5108_v25 }
 0x1d2   :  { %v5105_v6 = vunpack.i.h.bf16 %v5103_v58  ;;  %v5104_v56 = vunpack.i.l.bf16 %v5103_v58  ;;  %v5210_v58 = vld [vmem:[%s7197_s3 + $0x8] sm:$0xff]  }
 0x1d3   :  { %2693 = vmatprep.mubr.bf16.mxu0 %v2190_v45  ;;  %v1791_v18 = vsel %vm157_vm0, %v5307_v19, %v5110_v28  ;;  %v1790_v20 = vsel %vm157_vm0, %v5308_v57, %v5109_v41  ;;  %3966 = vmatpush3.bf16.msra.mxu1 %v5210_v58 }
 0x1d4   :  { %2694 = vmatmul.mubr.bf16.gmra.mrb[108].mxu0 %v2189_v55  ;;  %v5118_v30 = vpop.permute.xlu1 %5117  ;;  %v1979_v7 = vsel %vm157_vm0, %v5309_v39, %v5105_v6  ;;  %v1978_v33 = vsel %vm157_vm0, %v5310_v44, %v5104_v56  ;;  %3967 = vmatprep.subr.bf16.mxu1 %v5341_v38 }
 0x1d5   :  { %v5113_v4 = vpop.permute.xlu0 %5112  ;;  %v5120_v23 = vunpack.i.h.bf16 %v5118_v30  ;;  %v5119_v22 = vunpack.i.l.bf16 %v5118_v30 }
 0x1d6   :  { %v5115_v35 = vunpack.i.h.bf16 %v5113_v4  ;;  %v5114_v16 = vunpack.i.l.bf16 %v5113_v4 }
 0x1d7   :  { %v1853_v36 = vsel %vm1796_vm1, %v1790_v20, %v5119_v22  ;;  %v1854_v0 = vsel %vm1796_vm1, %v1791_v18, %v5120_v23  ;;  %v6614_v22 = vpop.f32.mrb[36].mxu1  ;;  %v5311_v20 = vld [vmem:[#allocation2 + $0x1d8] sm:$0xff] }
 0x1d8   :  { %v5128_v31 = vpop.permute.xlu1 %5127  ;;  %v2040_v63 = vsel %vm1796_vm1, %v1978_v33, %v5114_v16  ;;  %v2041_v62 = vsel %vm1796_vm1, %v1979_v7, %v5115_v35  ;;  %v3925_v16 = vpop.f32.mrb[37].mxu1 }
 0x1d9   :  { %v5130_v40 = vunpack.i.h.bf16 %v5128_v31  ;;  %v5129_v42 = vunpack.i.l.bf16 %v5128_v31  ;;  %v5123_v47 = vpop.permute.xlu0 %5122  ;;  %v6616_v57 = vpop.f32.mrb[38].mxu1 }
 0x1da   :  { %v5125_v1 = vunpack.i.h.bf16 %v5123_v47  ;;  %v5124_v11 = vunpack.i.l.bf16 %v5123_v47  ;;  %v3926_v44 = vpop.f32.mrb[39].mxu1 }
 0x1db   :  { %v1916_v54 = vsel %vm1859_vm2, %v1853_v36, %v5129_v42  ;;  %v1917_v3 = vsel %vm1859_vm2, %v1854_v0, %v5130_v40 }
 0x1dc   :  { %v5138_v25 = vpop.permute.xlu1 %5137  ;;  %v2102_v50 = vsel %vm1859_vm2, %v2040_v63, %v5124_v11  ;;  %v2103_v9 = vsel %vm1859_vm2, %v2041_v62, %v5125_v1  ;;  %v2192_v55 = vpack.c.bf16 %v1917_v3, %v1916_v54 }
 0x1dd   :  { %v5133_v45 = vpop.permute.xlu0 %5132  ;;  %v2193_v28 = vpack.c.bf16 %v2103_v9, %v2102_v50  ;;  %v5140_v41 = vunpack.i.h.bf16 %v5138_v25  ;;  %v5139_v30 = vunpack.i.l.bf16 %v5138_v25 }
 0x1de   :  { %v5135_v56 = vunpack.i.h.bf16 %v5133_v45  ;;  %v5134_v4 = vunpack.i.l.bf16 %v5133_v45 }
 0x1df   :  { %2701 = vmatprep.mubr.bf16.mxu0 %v2193_v28  ;;  %v1793_v31 = vsel %vm157_vm0, %v5311_v20, %v5140_v41  ;;  %v1792_v39 = vsel %vm157_vm0, %v5312_v29, %v5139_v30 }
 0x1e0   :  { %2702 = vmatmul.mubr.bf16.gmra.mrb[112].mxu0 %v2192_v55  ;;  %v5148_v6 = vpop.permute.xlu1 %5147  ;;  %v1981_v33 = vsel %vm157_vm0, %v6379_v46, %v5135_v56  ;;  %v1980_v40 = vsel %vm157_vm0, %v6377_v5, %v5134_v4  ;;  %v5211_v55 = vld [vmem:[%s7197_s3 + $0x10] sm:$0xff]  }
 0x1e1   :  { %v5143_v23 = vpop.permute.xlu0 %5142  ;;  %v5150_v10 = vunpack.i.h.bf16 %v5148_v6  ;;  %v5149_v35 = vunpack.i.l.bf16 %v5148_v6  ;;  %3968 = vmatpush3.bf16.msra.mxu1 %v5211_v55 }
 0x1e2   :  { %v5145_v19 = vunpack.i.h.bf16 %v5143_v23  ;;  %v5144_v18 = vunpack.i.l.bf16 %v5143_v23  ;;  %3969 = vmatprep.subr.bf16.mxu1 %v5341_v38  ;;  %v6636_v23 = vpop.f32.mrb[40].mxu1 }
 0x1e3   :  { %v1855_v0 = vsel %vm1796_vm1, %v1792_v39, %v5149_v35  ;;  %v1856_v1 = vsel %vm1796_vm1, %v1793_v31, %v5150_v10  ;;  %v3929_v16 = vpop.f32.mrb[41].mxu1  ;;  %v5313_v31 = vld [vmem:[#allocation2 + $0x1e8] sm:$0xff]  ;;  %v5314_v39 = vld [vmem:[#allocation2 + $0x1e0] sm:$0xff] }
 0x1e4   :  { %v5158_v7 = vpop.permute.xlu1 %5157  ;;  %v2042_v62 = vsel %vm1796_vm1, %v1980_v40, %v5144_v18  ;;  %v2043_v54 = vsel %vm1796_vm1, %v1981_v33, %v5145_v19  ;;  %v6638_v20 = vpop.f32.mrb[42].mxu1 }
 0x1e5   :  { %v5160_v42 = vunpack.i.h.bf16 %v5158_v7  ;;  %v5159_v47 = vunpack.i.l.bf16 %v5158_v7  ;;  %v5153_v36 = vpop.permute.xlu0 %5152  ;;  %v3930_v33 = vpop.f32.mrb[43].mxu1 }
 0x1e6   :  { %v5155_v11 = vunpack.i.h.bf16 %v5153_v36  ;;  %v5154_v63 = vunpack.i.l.bf16 %v5153_v36 }
 0x1e7   :  { %v1918_v3 = vsel %vm1859_vm2, %v1855_v0, %v5159_v47  ;;  %v1919_v46 = vsel %vm1859_vm2, %v1856_v1, %v5160_v42  ;;  %v6649_v1 = vld [vmem:[%s7198_s2] ss:$0 sm:$0xff] }
 0x1e8   :  { %v5168_v25 = vpop.permute.xlu1 %5167  ;;  %v2104_v5 = vsel %vm1859_vm2, %v2042_v62, %v5154_v63  ;;  %v2105_v50 = vsel %vm1859_vm2, %v2043_v54, %v5155_v11  ;;  %v2195_v9 = vpack.c.bf16 %v1919_v46, %v1918_v3 }
 0x1e9   :  { %v5163_v58 = vpop.permute.xlu0 %5162  ;;  %v2196_v45 = vpack.c.bf16 %v2105_v50, %v2104_v5  ;;  %v5170_v28 = vunpack.i.h.bf16 %v5168_v25  ;;  %v5169_v41 = vunpack.i.l.bf16 %v5168_v25 }
 0x1ea   :  { %v5165_v6 = vunpack.i.h.bf16 %v5163_v58  ;;  %v5164_v56 = vunpack.i.l.bf16 %v5163_v58 }
 0x1eb   :  { %2709 = vmatprep.mubr.bf16.mxu0 %v2196_v45  ;;  %v1795_v29 = vsel %vm157_vm0, %v5313_v31, %v5170_v28  ;;  %v1794_v7 = vsel %vm157_vm0, %v5314_v39, %v5169_v41 }
 0x1ec   :  { %2710 = vmatmul.mubr.bf16.gmra.mrb[116].mxu0 %v2195_v9  ;;  %v5178_v30 = vpop.permute.xlu1 %5177  ;;  %v1983_v40 = vsel %vm157_vm0, %v6418_v27, %v5165_v6  ;;  %v1982_v42 = vsel %vm157_vm0, %v6416_v8, %v5164_v56 }
 0x1ed   :  { %v5173_v4 = vpop.permute.xlu0 %5172  ;;  %v5180_v10 = vunpack.i.h.bf16 %v5178_v30  ;;  %v5179_v35 = vunpack.i.l.bf16 %v5178_v30 }
 0x1ee   :  { %v5175_v19 = vunpack.i.h.bf16 %v5173_v4  ;;  %v5174_v18 = vunpack.i.l.bf16 %v5173_v4  ;;  %v6665_v4 = vpop.f32.mrb[44].mxu1 }
 0x1ef   :  { %v1857_v11 = vsel %vm1796_vm1, %v1794_v7, %v5179_v35  ;;  %v1858_v63 = vsel %vm1796_vm1, %v1795_v29, %v5180_v10  ;;  %v3933_v16 = vpop.f32.mrb[45].mxu1 }
 0x1f0   :  { %v5188_v44 = vpop.permute.xlu1 %5187  ;;  %v2044_v3 = vsel %vm1796_vm1, %v1982_v42, %v5174_v18  ;;  %v2045_v27 = vsel %vm1796_vm1, %v1983_v40, %v5175_v19  ;;  %v6667_v19 = vpop.f32.mrb[46].mxu1 }
 0x1f1   :  { %v5190_v47 = vunpack.i.h.bf16 %v5188_v44  ;;  %v5189_v36 = vunpack.i.l.bf16 %v5188_v44  ;;  %v5183_v0 = vpop.permute.xlu0 %5182  ;;  %v3934_v31 = vpop.f32.mrb[47].mxu1 }
 0x1f2   :  { %v5185_v62 = vunpack.i.h.bf16 %v5183_v0  ;;  %v5184_v54 = vunpack.i.l.bf16 %v5183_v0 }
 0x1f3   :  { %v2575_v46 = vpop.f32.mrb[48].mxu0  ;;  %v1920_v8 = vsel %vm1859_vm2, %v1857_v11, %v5189_v36  ;;  %v1921_v25 = vsel %vm1859_vm2, %v1858_v63, %v5190_v47 }
 0x1f4   :  { %v2576_v5 = vadd.f32 %v6649_v1, %v2575_v46  ;;  %v2577_v50 = vpop.f32.mrb[49].mxu0  ;;  %v2106_v9 = vsel %vm1859_vm2, %v2044_v3, %v5184_v54  ;;  %v2107_v55 = vsel %vm1859_vm2, %v2045_v27, %v5185_v62  ;;  %v2198_v58 = vpack.c.bf16 %v1921_v25, %v1920_v8  ;;  %v5317_v27 = vld [vmem:[#allocation2 + $0x42] sm:$0xff]  ;;  %v5318_v46 = vld [vmem:[#allocation2 + $0x4a] sm:$0xff] }
 0x1f5   :  { %v2578_v45 = vpop.f32.mrb[50].mxu0  ;;  %v2199_v28 = vpack.c.bf16 %v2107_v55, %v2106_v9  ;;  %v2116_v8 = vpack.c.bf16 %v5318_v46, %v5317_v27  ;;  %v5214_v46 = vld [vmem:[%s7197_s3 + $0x28] sm:$0xff]  }
 0x1f6   :  { %v2579_v41 = vadd.f32 %v6649_v1, %v2578_v45  ;;  %v2857_v30 = vadd.f32 %v6450_v48, %v2576_v5  ;;  %v2580_v6 = vpop.f32.mrb[51].mxu0 }
 0x1f7   :  { %2717 = vmatprep.mubr.bf16.mxu0 %v2199_v28 }
 0x1f8   :  { %v2860_v56 = vadd.f32 %v6455_v26, %v2579_v41  ;;  %2718 = vmatmul.mubr.bf16.gmra.mrb[120].mxu0 %v2198_v58  ;;  %v3031_v10 = vmax.f32 %v2857_v30, 0.0  ;;  %v5212_v26 = vld [vmem:[%s7197_s3 + $0x18] sm:$0xff]   ;;  %v5213_v58 = vld [vmem:[%s7197_s3 + $0x20] sm:$0xff]  }
 0x1f9   :  { %3839 = vmatprep.mubr.msk.bf16.mxu0 %vm5342_vm3, %v5341_v38  ;;  %3970 = vmatpush3.bf16.msra.mxu1 %v5212_v26  ;;  %v6685_v47 = vpop.f32.mrb[48].mxu1 }
 0x1fa   :  { %v3032_v35 = vmax.f32 %v2860_v56, 0.0  ;;  %3971 = vmatprep.subr.bf16.mxu1 %v5341_v38  ;;  %v3937_v11 = vpop.f32.mrb[49].mxu1  ;;  %v5320_v56 = vld [vmem:[#allocation2 + $0x5a] sm:$0xff] }
 0x1fb   :  { %v6687_v63 = vpop.f32.mrb[50].mxu1 }
 0x1fc   :  { %v6669_v18 = vpack.c.bf16 %v3032_v35, %v3031_v10 }
 0x1fd   :  { %3972 = vmatpush3.bf16.msra.mxu1 %v5213_v58 }
 0x1fe   :  { %3973 = vmatprep.subr.bf16.mxu1 %v5341_v38 }
 0x1ff   :  { %v2583_v29 = vpop.f32.mrb[52].mxu0 }
 0x200   :  { %v2584_v48 = vadd.f32 %v6649_v1, %v2583_v29  ;;  %v2585_v39 = vpop.f32.mrb[53].mxu0  ;;  %3840 = vmatmul.mubr.msk.bf16.vlgmr.msra.gmra.mrb[0].mxu0 %vm157_vm0, %v2110_v53  ;;  %v5316_v53 = vld [vmem:[#allocation2 + $0x3a] sm:$0xff] }
 0x201   :  { %v2586_v7 = vpop.f32.mrb[54].mxu0  ;;  %3843 = vmatprep.mubr.msk.bf16.mxu0 %vm5342_vm3, %v5341_v38  ;;  %v2113_v42 = vpack.c.bf16 %v5316_v53, %v5315_v52  ;;  %3974 = vmatpush3.bf16.msra.mxu1 %v5214_v46 }
 0x202   :  { %v2587_v44 = vadd.f32 %v6649_v1, %v2586_v7  ;;  %v2865_v33 = vadd.f32 %v6478_v32, %v2584_v48  ;;  %v2588_v40 = vpop.f32.mrb[55].mxu0  ;;  %v3938_v32 = vpop.f32.mrb[51].mxu1  ;;  %3975 = vmatprep.subr.bf16.mxu1 %v5341_v38 }
 0x203   :  { %v5322_v40 = vld [vmem:[#allocation2 + $0x6a] sm:$0xff] }
 0x204   :  { %v2868_v51 = vadd.f32 %v6480_v24, %v2587_v44  ;;  %v3033_v36 = vmax.f32 %v2865_v33, 0.0  ;;  %v5321_v33 = vld [vmem:[#allocation2 + $0x62] sm:$0xff] }
 0x205   :  { %v6704_v45 = vpop.f32.mrb[52].mxu1 }
 0x206   :  { %v3034_v0 = vmax.f32 %v2868_v51, 0.0  ;;  %v3941_v30 = vpop.f32.mrb[53].mxu1  ;;  %v2122_v51 = vpack.c.bf16 %v5322_v40, %v5321_v33  ;;  %v5328_v33 = vld [vmem:[#allocation2 + $0x9a] sm:$0xff] }
 0x207   :  { %v6706_v6 = vpop.f32.mrb[54].mxu1 }
 0x208   :  { %v6689_v62 = vpack.c.bf16 %v3034_v0, %v3033_v36  ;;  %3844 = vmatmul.mubr.msk.bf16.gmra.mrb[4].mxu0 %vm157_vm0, %v2113_v42  ;;  %v3942_v35 = vpop.f32.mrb[55].mxu1 }
 0x209   :  { %3847 = vmatprep.mubr.msk.bf16.mxu0 %vm5342_vm3, %v5341_v38 }
 0x20b   :  { %v2591_v54 = vpop.f32.mrb[56].mxu0 }
 0x20c   :  { %v2592_v24 = vadd.f32 %v6649_v1, %v2591_v54  ;;  %v2593_v3 = vpop.f32.mrb[57].mxu0 }
 0x20d   :  { %v2594_v25 = vpop.f32.mrb[58].mxu0  ;;  %v5324_v3 = vld [vmem:[#allocation2 + $0x7a] sm:$0xff] }
 0x20e   :  { %v2595_v5 = vadd.f32 %v6649_v1, %v2594_v25  ;;  %v2873_v50 = vadd.f32 %v6494_v49, %v2592_v24  ;;  %v2596_v9 = vpop.f32.mrb[59].mxu0  ;;  %v5323_v24 = vld [vmem:[#allocation2 + $0x72] sm:$0xff] }
 0x20f   :  { %v2125_v27 = vpack.c.bf16 %v5324_v3, %v5323_v24  ;;  %v5329_v3 = vld [vmem:[#allocation2 + $0xa2] sm:$0xff] }
 0x210   :  { %v2876_v55 = vadd.f32 %v6496_v37, %v2595_v5  ;;  %3848 = vmatmul.mubr.msk.bf16.gmra.mrb[8].mxu0 %vm157_vm0, %v2116_v8  ;;  %v3035_v28 = vmax.f32 %v2873_v50, 0.0  ;;  %v5319_v37 = vld [vmem:[#allocation2 + $0x52] sm:$0xff] }
 0x211   :  { %3851 = vmatprep.mubr.msk.bf16.mxu0 %vm5342_vm3, %v5341_v38  ;;  %v2119_v10 = vpack.c.bf16 %v5320_v56, %v5319_v37  ;;  %v6718_v52 = vpop.f32.mrb[56].mxu1  ;;  %v5326_v56 = vld [vmem:[#allocation2 + $0x8a] sm:$0xff] }
 0x212   :  { %v3036_v41 = vmax.f32 %v2876_v55, 0.0  ;;  %v3945_v36 = vpop.f32.mrb[57].mxu1 }
 0x213   :  { %v6720_v0 = vpop.f32.mrb[58].mxu1 }
 0x214   :  { %v6709_v49 = vpack.c.bf16 %v3036_v41, %v3035_v28  ;;  %v3946_v32 = vpop.f32.mrb[59].mxu1 }
 0x217   :  { %v2599_v16 = vpop.f32.mrb[60].mxu0 }
 0x218   :  { %v2600_v31 = vadd.f32 %v6649_v1, %v2599_v16  ;;  %v2601_v29 = vpop.f32.mrb[61].mxu0  ;;  %3852 = vmatmul.mubr.msk.bf16.gmra.mrb[12].mxu0 %vm157_vm0, %v2119_v10 }
 0x219   :  { %v2602_v48 = vpop.f32.mrb[62].mxu0  ;;  %3855 = vmatprep.mubr.msk.bf16.mxu0 %vm5342_vm3, %v5341_v38 }
 0x21a   :  { %v2603_v39 = vadd.f32 %v6649_v1, %v2602_v48  ;;  %v2881_v26 = vadd.f32 %v6510_v43, %v2600_v31  ;;  %v2604_v7 = vpop.f32.mrb[63].mxu0 }
 0x21c   :  { %v2884_v44 = vadd.f32 %v6512_v15, %v2603_v39  ;;  %v3037_v53 = vmax.f32 %v2881_v26, 0.0 }
 0x21d   :  { %v6738_v55 = vpop.f32.mrb[60].mxu1 }
 0x21e   :  { %v3038_v42 = vmax.f32 %v2884_v44, 0.0  ;;  %v3949_v41 = vpop.f32.mrb[61].mxu1  ;;  %v5327_v44 = vld [vmem:[#allocation2 + $0x92] sm:$0xff] }
 0x21f   :  { %v6740_v30 = vpop.f32.mrb[62].mxu1  ;;  %v2131_v40 = vpack.c.bf16 %v5328_v33, %v5327_v44 }
 0x220   :  { %v6722_v11 = vpack.c.bf16 %v3038_v42, %v3037_v53  ;;  %3856 = vmatmul.mubr.msk.bf16.gmra.mrb[16].mxu0 %vm157_vm0, %v2122_v51  ;;  %v3950_v35 = vpop.f32.mrb[63].mxu1 }
 0x221   :  { %3859 = vmatprep.mubr.msk.bf16.mxu0 %vm5342_vm3, %v5341_v38  ;;  %v5331_v35 = vld [vmem:[#allocation2 + $0xb2] sm:$0xff] }
 0x223   :  { %v2607_v43 = vpop.f32.mrb[64].mxu0 }
 0x224   :  { %v2608_v15 = vadd.f32 %v6649_v1, %v2607_v43  ;;  %v2609_v54 = vpop.f32.mrb[65].mxu0 }
 0x225   :  { %v2610_v8 = vpop.f32.mrb[66].mxu0 }
 0x226   :  { %v2611_v25 = vadd.f32 %v6649_v1, %v2610_v8  ;;  %v2889_v5 = vadd.f32 %v6526_v34, %v2608_v15  ;;  %v2612_v50 = vpop.f32.mrb[67].mxu0  ;;  %v5325_v34 = vld [vmem:[#allocation2 + $0x82] sm:$0xff] }
 0x227   :  { %v2128_v10 = vpack.c.bf16 %v5326_v56, %v5325_v34 }
 0x228   :  { %v2892_v9 = vadd.f32 %v6528_v60, %v2611_v25  ;;  %3860 = vmatmul.mubr.msk.bf16.gmra.mrb[20].mxu0 %vm157_vm0, %v2125_v27  ;;  %v3039_v58 = vmax.f32 %v2889_v5, 0.0  ;;  %v5330_v27 = vld [vmem:[#allocation2 + $0xaa] sm:$0xff] }
 0x229   :  { %3863 = vmatprep.mubr.msk.bf16.mxu0 %vm5342_vm3, %v5341_v38  ;;  %v6751_v51 = vpop.f32.mrb[64].mxu1  ;;  %v2134_v46 = vpack.c.bf16 %v5330_v27, %v5329_v3 }
 0x22a   :  { %v3040_v28 = vmax.f32 %v2892_v9, 0.0  ;;  %v3953_v36 = vpop.f32.mrb[65].mxu1 }
 0x22b   :  { %v6753_v32 = vpop.f32.mrb[66].mxu1 }
 0x22c   :  { %v6742_v37 = vpack.c.bf16 %v3040_v28, %v3039_v58  ;;  %v3954_v15 = vpop.f32.mrb[67].mxu1 }
 0x22f   :  { %v2615_v16 = vpop.f32.mrb[68].mxu0 }
 0x230   :  { %v2616_v60 = vadd.f32 %v6649_v1, %v2615_v16  ;;  %v2617_v31 = vpop.f32.mrb[69].mxu0  ;;  %3864 = vmatmul.mubr.msk.bf16.gmra.mrb[24].mxu0 %vm157_vm0, %v2128_v10  ;;  %v5332_v16 = vld [vmem:[#allocation2 + $0xba] sm:$0xff] }
 0x231   :  { %v2618_v29 = vpop.f32.mrb[70].mxu0  ;;  %3867 = vmatprep.mubr.msk.bf16.mxu0 %vm5342_vm3, %v5341_v38 }
 0x232   :  { %v2619_v48 = vadd.f32 %v6649_v1, %v2618_v29  ;;  %v2897_v39 = vadd.f32 %v6542_v61, %v2616_v60  ;;  %v2620_v26 = vpop.f32.mrb[71].mxu0  ;;  %v5215_v61 = vld [vmem:[%s7197_s3 + $0x30] sm:$0xff]  }
 0x233   :  { %3976 = vmatpush3.bf16.msra.mxu1 %v5215_v61 }
 0x234   :  { %v2900_v7 = vadd.f32 %v6544_v2, %v2619_v48  ;;  %v3041_v53 = vmax.f32 %v2897_v39, 0.0  ;;  %3977 = vmatprep.subr.bf16.mxu1 %v5341_v38  ;;  %v6771_v58 = vpop.f32.mrb[68].mxu1  ;;  %v5216_v48 = vld [vmem:[%s7197_s3 + $0x38] sm:$0xff]  }
 0x235   :  { %v3957_v34 = vpop.f32.mrb[69].mxu1 }
 0x236   :  { %v3042_v42 = vmax.f32 %v2900_v7, 0.0  ;;  %v6773_v56 = vpop.f32.mrb[70].mxu1 }
 0x237   :  { %v3958_v60 = vpop.f32.mrb[71].mxu1  ;;  %3978 = vmatpush3.bf16.msra.mxu1 %v5216_v48 }
 0x238   :  { %v6755_v43 = vpack.c.bf16 %v3042_v42, %v3041_v53  ;;  %3868 = vmatmul.mubr.msk.bf16.gmra.mrb[28].mxu0 %vm157_vm0, %v2131_v40  ;;  %v5333_v40 = vld [vmem:[#allocation2 + $0xc2] sm:$0xff]  ;;  %v5334_v53 = vld [vmem:[#allocation2 + $0xca] sm:$0xff] }
 0x239   :  { %3871 = vmatprep.mubr.msk.bf16.mxu0 %vm5342_vm3, %v5341_v38  ;;  %v2140_v42 = vpack.c.bf16 %v5334_v53, %v5333_v40 }
 0x23b   :  { %v2623_v2 = vpop.f32.mrb[72].mxu0 }
 0x23c   :  { %v2624_v54 = vadd.f32 %v6649_v1, %v2623_v2  ;;  %v2625_v24 = vpop.f32.mrb[73].mxu0 }
 0x23d   :  { %v2626_v8 = vpop.f32.mrb[74].mxu0 }
 0x23e   :  { %v2627_v25 = vadd.f32 %v6649_v1, %v2626_v8  ;;  %v2905_v5 = vadd.f32 %v6558_v12, %v2624_v54  ;;  %v2628_v50 = vpop.f32.mrb[75].mxu0  ;;  %v2137_v12 = vpack.c.bf16 %v5332_v16, %v5331_v35  ;;  %v5336_v8 = vld [vmem:[#allocation2 + $0xda] sm:$0xff] }
 0x240   :  { %v2908_v9 = vadd.f32 %v6560_v17, %v2627_v25  ;;  %3872 = vmatmul.mubr.msk.bf16.gmra.mrb[32].mxu0 %vm157_vm0, %v2134_v46  ;;  %v3043_v28 = vmax.f32 %v2905_v5, 0.0  ;;  %v5335_v46 = vld [vmem:[#allocation2 + $0xd2] sm:$0xff] }
 0x241   :  { %3875 = vmatprep.mubr.msk.bf16.mxu0 %vm5342_vm3, %v5341_v38  ;;  %v2143_v25 = vpack.c.bf16 %v5336_v8, %v5335_v46 }
 0x242   :  { %v3044_v41 = vmax.f32 %v2908_v9, 0.0  ;;  %v6787_v36 = vpop.f32.mrb[72].mxu1 }
 0x243   :  { %v3961_v2 = vpop.f32.mrb[73].mxu1 }
 0x244   :  { %v6775_v10 = vpack.c.bf16 %v3044_v41, %v3043_v28  ;;  %v6789_v54 = vpop.f32.mrb[74].mxu1 }
 0x245   :  { %v3962_v3 = vpop.f32.mrb[75].mxu1 }
 0x247   :  { %v2631_v31 = vpop.f32.mrb[76].mxu0 }
 0x248   :  { %v2632_v17 = vadd.f32 %v6649_v1, %v2631_v31  ;;  %v2633_v29 = vpop.f32.mrb[77].mxu0  ;;  %3876 = vmatmul.mubr.msk.bf16.gmra.mrb[36].mxu0 %vm157_vm0, %v2137_v12 }
 0x249   :  { %v2634_v39 = vpop.f32.mrb[78].mxu0  ;;  %3879 = vmatprep.mubr.msk.bf16.mxu0 %vm5342_vm3, %v5341_v38 }
 0x24a   :  { %v2635_v26 = vadd.f32 %v6649_v1, %v2634_v39  ;;  %v2913_v7 = vadd.f32 %v6578_v21, %v2632_v17  ;;  %v2636_v44 = vpop.f32.mrb[79].mxu0 }
 0x24c   :  { %v2916_v33 = vadd.f32 %v6580_v13, %v2635_v26  ;;  %v3045_v61 = vmax.f32 %v2913_v7, 0.0 }
 0x24e   :  { %v3046_v15 = vmax.f32 %v2916_v33, 0.0 }
 0x250   :  { %v6791_v24 = vpack.c.bf16 %v3046_v15, %v3045_v61  ;;  %3880 = vmatmul.mubr.msk.bf16.gmra.mrb[40].mxu0 %vm157_vm0, %v2140_v42 }
 0x251   :  { %3883 = vmatprep.mubr.msk.bf16.mxu0 %vm5342_vm3, %v5341_v38 }
 0x253   :  { %v2639_v21 = vpop.f32.mrb[80].mxu0 }
 0x254   :  { %v2640_v13 = vadd.f32 %v6649_v1, %v2639_v21  ;;  %v2641_v27 = vpop.f32.mrb[81].mxu0 }
 0x255   :  { %v2642_v5 = vpop.f32.mrb[82].mxu0 }
 0x256   :  { %v2643_v50 = vadd.f32 %v6649_v1, %v2642_v5  ;;  %v2921_v9 = vadd.f32 %v6594_v59, %v2640_v13  ;;  %v2644_v28 = vpop.f32.mrb[83].mxu0 }
 0x258   :  { %v2924_v41 = vadd.f32 %v6596_v14, %v2643_v50  ;;  %3884 = vmatmul.mubr.msk.bf16.gmra.mrb[44].mxu0 %vm157_vm0, %v2143_v25  ;;  %v3047_v34 = vmax.f32 %v2921_v9, 0.0 }
 0x25a   :  { %v3048_v35 = vmax.f32 %v2924_v41, 0.0 }
 0x25c   :  { %v6801_v16 = vpack.c.bf16 %v3048_v35, %v3047_v34 }
 0x25f   :  { %v2647_v12 = vpop.f32.mrb[84].mxu0 }
 0x260   :  { %v2648_v60 = vadd.f32 %v6649_v1, %v2647_v12  ;;  %v2649_v31 = vpop.f32.mrb[85].mxu0 }
 0x261   :  { %v2650_v17 = vpop.f32.mrb[86].mxu0 }
 0x262   :  { %v2651_v29 = vadd.f32 %v6649_v1, %v2650_v17  ;;  %v2929_v48 = vadd.f32 %v6614_v22, %v2648_v60  ;;  %v2652_v39 = vpop.f32.mrb[87].mxu0 }
 0x264   :  { %v2932_v59 = vadd.f32 %v6616_v57, %v2651_v29  ;;  %v3049_v26 = vmax.f32 %v2929_v48, 0.0 }
 0x266   :  { %v3050_v14 = vmax.f32 %v2932_v59, 0.0 }
 0x268   :  { %v6807_v7 = vpack.c.bf16 %v3050_v14, %v3049_v26 }
 0x26b   :  { %v2655_v44 = vpop.f32.mrb[88].mxu0 }
 0x26c   :  { %v2656_v33 = vadd.f32 %v6649_v1, %v2655_v44  ;;  %v2657_v40 = vpop.f32.mrb[89].mxu0 }
 0x26d   :  { %v2658_v53 = vpop.f32.mrb[90].mxu0 }
 0x26e   :  { %v2659_v42 = vadd.f32 %v6649_v1, %v2658_v53  ;;  %v2937_v61 = vadd.f32 %v6636_v23, %v2656_v33  ;;  %v2660_v15 = vpop.f32.mrb[91].mxu0 }
 0x270   :  { %v2940_v2 = vadd.f32 %v6638_v20, %v2659_v42  ;;  %v3051_v22 = vmax.f32 %v2937_v61, 0.0 }
 0x272   :  { %v3052_v3 = vmax.f32 %v2940_v2, 0.0 }
 0x274   :  { %v6813_v21 = vpack.c.bf16 %v3052_v3, %v3051_v22 }
 0x277   :  { %v2663_v57 = vpop.f32.mrb[92].mxu0 }
 0x278   :  { %v2664_v13 = vadd.f32 %v6649_v1, %v2663_v57  ;;  %v2665_v27 = vpop.f32.mrb[93].mxu0 }
 0x279   :  { %v2666_v46 = vpop.f32.mrb[94].mxu0 }
 0x27a   :  { %v2667_v8 = vadd.f32 %v6649_v1, %v2666_v46  ;;  %v2945_v25 = vadd.f32 %v6665_v4, %v2664_v13  ;;  %v2668_v5 = vpop.f32.mrb[95].mxu0 }
 0x27c   :  { %v2948_v50 = vadd.f32 %v6667_v19, %v2667_v8  ;;  %v3053_v23 = vmax.f32 %v2945_v25, 0.0 }
 0x27e   :  { %v3054_v9 = vmax.f32 %v2948_v50, 0.0 }
 0x280   :  { %v6819_v28 = vpack.c.bf16 %v3054_v9, %v3053_v23 }
 0x283   :  { %v2671_v20 = vpop.f32.mrb[96].mxu0 }
 0x284   :  { %v2672_v41 = vadd.f32 %v6649_v1, %v2671_v20  ;;  %v2673_v34 = vpop.f32.mrb[97].mxu0 }
 0x285   :  { %v2674_v35 = vpop.f32.mrb[98].mxu0 }
 0x286   :  { %v2675_v12 = vadd.f32 %v6649_v1, %v2674_v35  ;;  %v2953_v60 = vadd.f32 %v6685_v47, %v2672_v41  ;;  %v2676_v31 = vpop.f32.mrb[99].mxu0 }
 0x288   :  { %v2956_v17 = vadd.f32 %v6687_v63, %v2675_v12  ;;  %v3055_v4 = vmax.f32 %v2953_v60, 0.0 }
 0x28a   :  { %v3056_v29 = vmax.f32 %v2956_v17, 0.0 }
 0x28c   :  { %v6825_v48 = vpack.c.bf16 %v3056_v29, %v3055_v4 }
 0x28f   :  { %v2679_v19 = vpop.f32.mrb[100].mxu0 }
 0x290   :  { %v2680_v39 = vadd.f32 %v6649_v1, %v2679_v19  ;;  %v2681_v59 = vpop.f32.mrb[101].mxu0 }
 0x291   :  { %v2682_v26 = vpop.f32.mrb[102].mxu0 }
 0x292   :  { %v2683_v14 = vadd.f32 %v6649_v1, %v2682_v26  ;;  %v2961_v44 = vadd.f32 %v6704_v45, %v2680_v39  ;;  %v2684_v33 = vpop.f32.mrb[103].mxu0 }
 0x294   :  { %v2964_v40 = vadd.f32 %v6706_v6, %v2683_v14  ;;  %v3057_v47 = vmax.f32 %v2961_v44, 0.0 }
 0x296   :  { %v3058_v53 = vmax.f32 %v2964_v40, 0.0 }
 0x298   :  { %v6831_v42 = vpack.c.bf16 %v3058_v53, %v3057_v47 }
 0x29b   :  { %v2687_v63 = vpop.f32.mrb[104].mxu0 }
 0x29c   :  { %v2688_v61 = vadd.f32 %v6649_v1, %v2687_v63  ;;  %v2689_v15 = vpop.f32.mrb[105].mxu0 }
 0x29d   :  { %v2690_v2 = vpop.f32.mrb[106].mxu0 }
 0x29e   :  { %v2691_v22 = vadd.f32 %v6649_v1, %v2690_v2  ;;  %v2969_v3 = vadd.f32 %v6718_v52, %v2688_v61  ;;  %v2692_v57 = vpop.f32.mrb[107].mxu0 }
 0x2a0   :  { %v2972_v13 = vadd.f32 %v6720_v0, %v2691_v22  ;;  %v3059_v45 = vmax.f32 %v2969_v3, 0.0 }
 0x2a2   :  { %v3060_v27 = vmax.f32 %v2972_v13, 0.0 }
 0x2a4   :  { %v6837_v46 = vpack.c.bf16 %v3060_v27, %v3059_v45 }
 0x2a7   :  { %v2695_v6 = vpop.f32.mrb[108].mxu0 }
 0x2a8   :  { %v2696_v8 = vadd.f32 %v6649_v1, %v2695_v6  ;;  %v2697_v25 = vpop.f32.mrb[109].mxu0 }
 0x2a9   :  { %v2698_v5 = vpop.f32.mrb[110].mxu0 }
 0x2aa   :  { %v2699_v50 = vadd.f32 %v6649_v1, %v2698_v5  ;;  %v2977_v23 = vadd.f32 %v6738_v55, %v2696_v8  ;;  %v2700_v9 = vpop.f32.mrb[111].mxu0 }
 0x2ac   :  { %v2980_v20 = vadd.f32 %v6740_v30, %v2699_v50  ;;  %v3061_v52 = vmax.f32 %v2977_v23, 0.0 }
 0x2ae   :  { %v3062_v41 = vmax.f32 %v2980_v20, 0.0 }
 0x2b0   :  { %v6843_v34 = vpack.c.bf16 %v3062_v41, %v3061_v52 }
 0x2b3   :  { %v2703_v0 = vpop.f32.mrb[112].mxu0 }
 0x2b4   :  { %v2704_v35 = vadd.f32 %v6649_v1, %v2703_v0  ;;  %v2705_v12 = vpop.f32.mrb[113].mxu0 }
 0x2b5   :  { %v2706_v60 = vpop.f32.mrb[114].mxu0 }
 0x2b6   :  { %v2707_v31 = vadd.f32 %v6649_v1, %v2706_v60  ;;  %v2985_v17 = vadd.f32 %v6751_v51, %v2704_v35  ;;  %v2708_v4 = vpop.f32.mrb[115].mxu0 }
 0x2b8   :  { %v2988_v29 = vadd.f32 %v6753_v32, %v2707_v31  ;;  %v3063_v55 = vmax.f32 %v2985_v17, 0.0 }
 0x2ba   :  { %v3064_v19 = vmax.f32 %v2988_v29, 0.0 }
 0x2bc   :  { %v6849_v39 = vpack.c.bf16 %v3064_v19, %v3063_v55 }
 0x2bf   :  { %v2711_v30 = vpop.f32.mrb[116].mxu0 }
 0x2c0   :  { %v2712_v59 = vadd.f32 %v6649_v1, %v2711_v30  ;;  %v2713_v26 = vpop.f32.mrb[117].mxu0 }
 0x2c1   :  { %v2714_v14 = vpop.f32.mrb[118].mxu0 }
 0x2c2   :  { %v2715_v44 = vadd.f32 %v6649_v1, %v2714_v14  ;;  %v2993_v33 = vadd.f32 %v6771_v58, %v2712_v59  ;;  %v2716_v40 = vpop.f32.mrb[119].mxu0 }
 0x2c4   :  { %v2996_v47 = vadd.f32 %v6773_v56, %v2715_v44  ;;  %v3065_v51 = vmax.f32 %v2993_v33, 0.0 }
 0x2c6   :  { %v3066_v53 = vmax.f32 %v2996_v47, 0.0 }
 0x2c8   :  { %v6855_v63 = vpack.c.bf16 %v3066_v53, %v3065_v51 }
 0x2cb   :  { %v2719_v32 = vpop.f32.mrb[120].mxu0 }
 0x2cc   :  { %v2720_v61 = vadd.f32 %v6649_v1, %v2719_v32  ;;  %v2721_v15 = vpop.f32.mrb[121].mxu0 }
 0x2cd   :  { %v2722_v2 = vpop.f32.mrb[122].mxu0 }
 0x2ce   :  { %v2723_v22 = vadd.f32 %v6649_v1, %v2722_v2  ;;  %v3001_v3 = vadd.f32 %v6787_v36, %v2720_v61  ;;  %v2724_v57 = vpop.f32.mrb[123].mxu0 }
 0x2d0   :  { %v3004_v13 = vadd.f32 %v6789_v54, %v2723_v22  ;;  %v3067_v58 = vmax.f32 %v3001_v3, 0.0 }
 0x2d2   :  { %v3068_v45 = vmax.f32 %v3004_v13, 0.0 }
 0x2d3   :  { %v2760_v27 = vpop.f32.mrb[0].mxu0 }
 0x2d4   :  { %v6861_v56 = vpack.c.bf16 %v3068_v45, %v3067_v58  ;;  %v4107_v6 = vadd.f32 %v6649_v1, %v2760_v27  ;;  %v3841_v8 = vpop.f32.mrb[1].mxu0 }
 0x2d5   :  { %v2763_v25 = vpop.f32.mrb[2].mxu0 }
 0x2d6   :  { %v4108_v5 = vadd.f32 %v6649_v1, %v2763_v25  ;;  %v3842_v50 = vpop.f32.mrb[3].mxu0  ;;  %v3007_v23 = vmax.f32 %v4107_v6, 0.0 }
 0x2d8   :  { %v3008_v9 = vmax.f32 %v4108_v5, 0.0 }
 0x2da   :  { %v3069_v20 = vpack.c.bf16 %v3008_v9, %v3007_v23 }
 0x2db   :  { %v2768_v52 = vpop.f32.mrb[4].mxu0 }
 0x2dc   :  { %v4109_v36 = vadd.f32 %v6649_v1, %v2768_v52  ;;  %v3845_v41 = vpop.f32.mrb[5].mxu0  ;;  %3980 = vmatmul.mubr.bf16.vlgmr.msra.gmra.mrb[76].mxu1 %v3069_v20 }
 0x2dd   :  { %v2771_v54 = vpop.f32.mrb[6].mxu0  ;;  %3983 = vmatprep.mubr.msk.bf16.mxu1 %vm5342_vm3, %v5341_v38 }
 0x2de   :  { %v4110_v0 = vadd.f32 %v6649_v1, %v2771_v54  ;;  %v3846_v35 = vpop.f32.mrb[7].mxu0  ;;  %v3009_v12 = vmax.f32 %v4109_v36, 0.0 }
 0x2e0   :  { %v3010_v60 = vmax.f32 %v4110_v0, 0.0 }
 0x2e2   :  { %v3070_v31 = vpack.c.bf16 %v3010_v60, %v3009_v12 }
 0x2e3   :  { %v2776_v17 = vpop.f32.mrb[8].mxu0 }
 0x2e4   :  { %v4111_v4 = vadd.f32 %v6649_v1, %v2776_v17  ;;  %v3849_v29 = vpop.f32.mrb[9].mxu0  ;;  %3984 = vmatmul.mubr.bf16.gmra.mrb[80].mxu1 %v3070_v31 }
 0x2e5   :  { %v2779_v55 = vpop.f32.mrb[10].mxu0  ;;  %3987 = vmatprep.mubr.msk.bf16.mxu1 %vm5342_vm3, %v5341_v38 }
 0x2e6   :  { %v4112_v19 = vadd.f32 %v6649_v1, %v2779_v55  ;;  %v3850_v30 = vpop.f32.mrb[11].mxu0  ;;  %v3011_v59 = vmax.f32 %v4111_v4, 0.0 }
 0x2e8   :  { %v3012_v26 = vmax.f32 %v4112_v19, 0.0 }
 0x2ea   :  { %v3071_v14 = vpack.c.bf16 %v3012_v26, %v3011_v59 }
 0x2eb   :  { %v2784_v44 = vpop.f32.mrb[12].mxu0 }
 0x2ec   :  { %v4113_v33 = vadd.f32 %v6649_v1, %v2784_v44  ;;  %v3853_v40 = vpop.f32.mrb[13].mxu0  ;;  %3988 = vmatmul.mubr.bf16.gmra.mrb[84].mxu1 %v3071_v14 }
 0x2ed   :  { %v2787_v47 = vpop.f32.mrb[14].mxu0  ;;  %3991 = vmatprep.mubr.msk.bf16.mxu1 %vm5342_vm3, %v5341_v38 }
 0x2ee   :  { %v4114_v51 = vadd.f32 %v6649_v1, %v2787_v47  ;;  %v3854_v53 = vpop.f32.mrb[15].mxu0  ;;  %v3013_v32 = vmax.f32 %v4113_v33, 0.0 }
 0x2f0   :  { %v3014_v61 = vmax.f32 %v4114_v51, 0.0 }
 0x2f2   :  { %v3072_v15 = vpack.c.bf16 %v3014_v61, %v3013_v32 }
 0x2f3   :  { %v2792_v2 = vpop.f32.mrb[16].mxu0 }
 0x2f4   :  { %v4115_v22 = vadd.f32 %v6649_v1, %v2792_v2  ;;  %v3857_v3 = vpop.f32.mrb[17].mxu0  ;;  %3992 = vmatmul.mubr.bf16.gmra.mrb[88].mxu1 %v3072_v15 }
 0x2f5   :  { %v2795_v57 = vpop.f32.mrb[18].mxu0  ;;  %3995 = vmatprep.mubr.msk.bf16.mxu1 %vm5342_vm3, %v5341_v38 }
 0x2f6   :  { %v4116_v13 = vadd.f32 %v6649_v1, %v2795_v57  ;;  %v3858_v58 = vpop.f32.mrb[19].mxu0  ;;  %v3015_v45 = vmax.f32 %v4115_v22, 0.0 }
 0x2f8   :  { %v3016_v27 = vmax.f32 %v4116_v13, 0.0 }
 0x2fa   :  { %v3073_v6 = vpack.c.bf16 %v3016_v27, %v3015_v45 }
 0x2fb   :  { %v2800_v8 = vpop.f32.mrb[20].mxu0 }
 0x2fc   :  { %v4117_v25 = vadd.f32 %v6649_v1, %v2800_v8  ;;  %v3861_v5 = vpop.f32.mrb[21].mxu0  ;;  %3996 = vmatmul.mubr.bf16.gmra.mrb[92].mxu1 %v3073_v6 }
 0x2fd   :  { %v2803_v50 = vpop.f32.mrb[22].mxu0  ;;  %3999 = vmatprep.mubr.msk.bf16.mxu1 %vm5342_vm3, %v5341_v38 }
 0x2fe   :  { %v4118_v23 = vadd.f32 %v6649_v1, %v2803_v50  ;;  %v3862_v9 = vpop.f32.mrb[23].mxu0  ;;  %v3017_v20 = vmax.f32 %v4117_v25, 0.0 }
 0x300   :  { %v3018_v52 = vmax.f32 %v4118_v23, 0.0 }
 0x302   :  { %v3074_v36 = vpack.c.bf16 %v3018_v52, %v3017_v20 }
 0x303   :  { %v2808_v41 = vpop.f32.mrb[24].mxu0 }
 0x304   :  { %v4119_v54 = vadd.f32 %v6649_v1, %v2808_v41  ;;  %v3865_v0 = vpop.f32.mrb[25].mxu0  ;;  %4000 = vmatmul.mubr.bf16.gmra.mrb[96].mxu1 %v3074_v36 }
 0x305   :  { %v2811_v35 = vpop.f32.mrb[26].mxu0  ;;  %4003 = vmatprep.mubr.msk.bf16.mxu1 %vm5342_vm3, %v5341_v38 }
 0x306   :  { %v4120_v12 = vadd.f32 %v6649_v1, %v2811_v35  ;;  %v3866_v60 = vpop.f32.mrb[27].mxu0  ;;  %v3019_v31 = vmax.f32 %v4119_v54, 0.0 }
 0x308   :  { %v3020_v17 = vmax.f32 %v4120_v12, 0.0 }
 0x30a   :  { %v3075_v4 = vpack.c.bf16 %v3020_v17, %v3019_v31 }
 0x30b   :  { %v2816_v29 = vpop.f32.mrb[28].mxu0 }
 0x30c   :  { %v4121_v55 = vadd.f32 %v6649_v1, %v2816_v29  ;;  %v3869_v19 = vpop.f32.mrb[29].mxu0  ;;  %4004 = vmatmul.mubr.bf16.gmra.mrb[100].mxu1 %v3075_v4 }
 0x30d   :  { %v2819_v30 = vpop.f32.mrb[30].mxu0  ;;  %4007 = vmatprep.mubr.msk.bf16.mxu1 %vm5342_vm3, %v5341_v38 }
 0x30e   :  { %v4122_v59 = vadd.f32 %v6649_v1, %v2819_v30  ;;  %v3870_v26 = vpop.f32.mrb[31].mxu0  ;;  %v3021_v14 = vmax.f32 %v4121_v55, 0.0 }
 0x310   :  { %v3022_v44 = vmax.f32 %v4122_v59, 0.0 }
 0x312   :  { %v3076_v33 = vpack.c.bf16 %v3022_v44, %v3021_v14 }
 0x313   :  { %v2824_v40 = vpop.f32.mrb[32].mxu0 }
 0x314   :  { %v4123_v47 = vadd.f32 %v6649_v1, %v2824_v40  ;;  %v3873_v51 = vpop.f32.mrb[33].mxu0  ;;  %4008 = vmatmul.mubr.bf16.gmra.mrb[104].mxu1 %v3076_v33 }
 0x315   :  { %v2827_v53 = vpop.f32.mrb[34].mxu0  ;;  %4011 = vmatprep.mubr.msk.bf16.mxu1 %vm5342_vm3, %v5341_v38 }
 0x316   :  { %v4124_v32 = vadd.f32 %v6649_v1, %v2827_v53  ;;  %v3874_v61 = vpop.f32.mrb[35].mxu0  ;;  %v3023_v15 = vmax.f32 %v4123_v47, 0.0 }
 0x318   :  { %v3024_v2 = vmax.f32 %v4124_v32, 0.0 }
 0x31a   :  { %v3077_v22 = vpack.c.bf16 %v3024_v2, %v3023_v15 }
 0x31b   :  { %v2832_v3 = vpop.f32.mrb[36].mxu0 }
 0x31c   :  { %v4125_v57 = vadd.f32 %v6649_v1, %v2832_v3  ;;  %v3877_v13 = vpop.f32.mrb[37].mxu0  ;;  %4012 = vmatmul.mubr.bf16.gmra.mrb[108].mxu1 %v3077_v22 }
 0x31d   :  { %v2835_v58 = vpop.f32.mrb[38].mxu0  ;;  %4015 = vmatprep.mubr.msk.bf16.mxu1 %vm5342_vm3, %v5341_v38 }
 0x31e   :  { %v4126_v45 = vadd.f32 %v6649_v1, %v2835_v58  ;;  %v3878_v27 = vpop.f32.mrb[39].mxu0  ;;  %v3025_v6 = vmax.f32 %v4125_v57, 0.0 }
 0x320   :  { %v3026_v8 = vmax.f32 %v4126_v45, 0.0 }
 0x322   :  { %v3078_v25 = vpack.c.bf16 %v3026_v8, %v3025_v6 }
 0x323   :  { %v2840_v5 = vpop.f32.mrb[40].mxu0 }
 0x324   :  { %v4127_v50 = vadd.f32 %v6649_v1, %v2840_v5  ;;  %v3881_v23 = vpop.f32.mrb[41].mxu0  ;;  %4016 = vmatmul.mubr.bf16.gmra.mrb[112].mxu1 %v3078_v25 }
 0x325   :  { %v2843_v9 = vpop.f32.mrb[42].mxu0  ;;  %4019 = vmatprep.mubr.msk.bf16.mxu1 %vm5342_vm3, %v5341_v38 }
 0x326   :  { %v4128_v20 = vadd.f32 %v6649_v1, %v2843_v9  ;;  %v3882_v52 = vpop.f32.mrb[43].mxu0  ;;  %v3027_v36 = vmax.f32 %v4127_v50, 0.0 }
 0x328   :  { %v3028_v41 = vmax.f32 %v4128_v20, 0.0 }
 0x32a   :  { %v3079_v54 = vpack.c.bf16 %v3028_v41, %v3027_v36 }
 0x32b   :  { %v2848_v0 = vpop.f32.mrb[44].mxu0 }
 0x32c   :  { %v4129_v35 = vadd.f32 %v6649_v1, %v2848_v0  ;;  %v3885_v12 = vpop.f32.mrb[45].mxu0  ;;  %4020 = vmatmul.mubr.bf16.gmra.mrb[116].mxu1 %v3079_v54 }
 0x32d   :  { %v2851_v60 = vpop.f32.mrb[46].mxu0  ;;  %4023 = vmatprep.mubr.msk.bf16.mxu1 %vm5342_vm3, %v5341_v38 }
 0x32e   :  { %v4130_v31 = vadd.f32 %v6649_v1, %v2851_v60  ;;  %v3886_v17 = vpop.f32.mrb[47].mxu0  ;;  %v3029_v4 = vmax.f32 %v4129_v35, 0.0  ;;  %v6957_v1 = vld [vmem:[%s7199_s4] ss:$0 sm:$0xff] }
 0x330   :  { %v3030_v29 = vmax.f32 %v4130_v31, 0.0 }
 0x332   :  { %v3080_v55 = vpack.c.bf16 %v3030_v29, %v3029_v4 }
 0x334   :  { %4024 = vmatmul.mubr.bf16.gmra.mrb[120].mxu1 %v3080_v55 }
 0x335   :  { %4027 = vmatprep.mubr.msk.bf16.mxu1 %vm5342_vm3, %v5341_v38 }
 0x33c   :  { %4028 = vmatmul.mubr.bf16.gmra.mrb[124].mxu1 %v6669_v18 }
 0x33d   :  { %4031 = vmatprep.mubr.msk.bf16.mxu1 %vm5342_vm3, %v5341_v38 }
 0x344   :  { %4032 = vmatmul.mubr.bf16.gmra.mrb[128].mxu1 %v6689_v62 }
 0x345   :  { %4035 = vmatprep.mubr.msk.bf16.mxu1 %vm5342_vm3, %v5341_v38 }
 0x34c   :  { %4036 = vmatmul.mubr.bf16.gmra.mrb[132].mxu1 %v6709_v49 }
 0x34d   :  { %4039 = vmatprep.mubr.msk.bf16.mxu1 %vm5342_vm3, %v5341_v38 }
 0x354   :  { %4040 = vmatmul.mubr.bf16.gmra.mrb[136].mxu1 %v6722_v11 }
 0x355   :  { %4043 = vmatprep.mubr.msk.bf16.mxu1 %vm5342_vm3, %v5341_v38 }
 0x35c   :  { %4044 = vmatmul.mubr.bf16.gmra.mrb[140].mxu1 %v6742_v37 }
 0x35d   :  { %4047 = vmatprep.mubr.msk.bf16.mxu1 %vm5342_vm3, %v5341_v38 }
 0x364   :  { %4048 = vmatmul.mubr.bf16.gmra.mrb[144].mxu1 %v6755_v43 }
 0x365   :  { %4051 = vmatprep.mubr.msk.bf16.mxu1 %vm5342_vm3, %v5341_v38 }
 0x36c   :  { %4052 = vmatmul.mubr.bf16.gmra.mrb[148].mxu1 %v6775_v10 }
 0x36d   :  { %4055 = vmatprep.mubr.msk.bf16.mxu1 %vm5342_vm3, %v5341_v38 }
 0x374   :  { %4056 = vmatmul.mubr.bf16.gmra.mrb[152].mxu1 %v6791_v24 }
 0x375   :  { %4059 = vmatprep.mubr.msk.bf16.mxu1 %vm5342_vm3, %v5341_v38 }
 0x37c   :  { %4060 = vmatmul.mubr.bf16.gmra.mrb[156].mxu1 %v6801_v16 }
 0x37d   :  { %4063 = vmatprep.mubr.msk.bf16.mxu1 %vm5342_vm3, %v5341_v38 }
 0x384   :  { %4064 = vmatmul.mubr.bf16.gmra.mrb[160].mxu1 %v6807_v7 }
 0x385   :  { %4067 = vmatprep.mubr.msk.bf16.mxu1 %vm5342_vm3, %v5341_v38 }
 0x38c   :  { %4068 = vmatmul.mubr.bf16.gmra.mrb[164].mxu1 %v6813_v21 }
 0x38d   :  { %4071 = vmatprep.mubr.msk.bf16.mxu1 %vm5342_vm3, %v5341_v38 }
 0x394   :  { %4072 = vmatmul.mubr.bf16.gmra.mrb[168].mxu1 %v6819_v28 }
 0x395   :  { %4075 = vmatprep.mubr.msk.bf16.mxu1 %vm5342_vm3, %v5341_v38 }
 0x39c   :  { %4076 = vmatmul.mubr.bf16.gmra.mrb[172].mxu1 %v6825_v48 }
 0x39d   :  { %4079 = vmatprep.mubr.msk.bf16.mxu1 %vm5342_vm3, %v5341_v38 }
 0x3a4   :  { %4080 = vmatmul.mubr.bf16.gmra.mrb[176].mxu1 %v6831_v42 }
 0x3a5   :  { %4083 = vmatprep.mubr.msk.bf16.mxu1 %vm5342_vm3, %v5341_v38 }
 0x3ac   :  { %4084 = vmatmul.mubr.bf16.gmra.mrb[180].mxu1 %v6837_v46 }
 0x3ad   :  { %4087 = vmatprep.mubr.msk.bf16.mxu1 %vm5342_vm3, %v5341_v38 }
 0x3af   :  { %v3205_v18 = vpop.f32.mrb[76].mxu1 }
 0x3b0   :  { %v3206_v62 = vadd.f32 %v6957_v1, %v3205_v18  ;;  %v3981_v49 = vpop.f32.mrb[77].mxu1 }
 0x3b1   :  { %v3208_v11 = vpop.f32.mrb[78].mxu1 }
 0x3b2   :  { %3446 = vst [vmem:[%s7200_s5] sm:$0xff] %v3206_v62  ;;  %v3209_v37 = vadd.f32 %v6957_v1, %v3208_v11  ;;  %v3982_v43 = vpop.f32.mrb[79].mxu1 }
 0x3b4   :  { %3447 = vst [vmem:[%s7200_s5 + $0x8] sm:$0xff] %v3209_v37  ;;  %4088 = vmatmul.mubr.bf16.gmra.mrb[184].mxu1 %v6843_v34 }
 0x3b5   :  { %4091 = vmatprep.mubr.msk.bf16.mxu1 %vm5342_vm3, %v5341_v38 }
 0x3b7   :  { %v3213_v10 = vpop.f32.mrb[80].mxu1 }
 0x3b8   :  { %v3214_v24 = vadd.f32 %v6957_v1, %v3213_v10  ;;  %v3985_v16 = vpop.f32.mrb[81].mxu1 }
 0x3b9   :  { %v3216_v7 = vpop.f32.mrb[82].mxu1 }
 0x3ba   :  { %3448 = vst [vmem:[%s7200_s5 + $0x10] sm:$0xff] %v3214_v24  ;;  %v3217_v21 = vadd.f32 %v6957_v1, %v3216_v7  ;;  %v3986_v28 = vpop.f32.mrb[83].mxu1 }
 0x3bc   :  { %3449 = vst [vmem:[%s7200_s5 + $0x18] sm:$0xff] %v3217_v21  ;;  %4092 = vmatmul.mubr.bf16.gmra.mrb[188].mxu1 %v6849_v39 }
 0x3bd   :  { %4095 = vmatprep.mubr.msk.bf16.mxu1 %vm5342_vm3, %v5341_v38 }
 0x3bf   :  { %v3221_v48 = vpop.f32.mrb[84].mxu1 }
 0x3c0   :  { %v3222_v42 = vadd.f32 %v6957_v1, %v3221_v48  ;;  %v3989_v46 = vpop.f32.mrb[85].mxu1 }
 0x3c1   :  { %v3224_v34 = vpop.f32.mrb[86].mxu1 }
 0x3c2   :  { %3450 = vst [vmem:[%s7200_s5 + $0x20] sm:$0xff] %v3222_v42  ;;  %v3225_v19 = vadd.f32 %v6957_v1, %v3224_v34  ;;  %v3990_v30 = vpop.f32.mrb[87].mxu1 }
 0x3c4   :  { %3451 = vst [vmem:[%s7200_s5 + $0x28] sm:$0xff] %v3225_v19  ;;  %4096 = vmatmul.mubr.bf16.gmra.mrb[192].mxu1 %v6855_v63 }
 0x3c5   :  { %4099 = vmatprep.mubr.msk.bf16.mxu1 %vm5342_vm3, %v5341_v38 }
 0x3c7   :  { %v3229_v39 = vpop.f32.mrb[88].mxu1 }
 0x3c8   :  { %v3230_v59 = vadd.f32 %v6957_v1, %v3229_v39  ;;  %v3993_v26 = vpop.f32.mrb[89].mxu1 }
 0x3c9   :  { %v3232_v14 = vpop.f32.mrb[90].mxu1 }
 0x3ca   :  { %3452 = vst [vmem:[%s7200_s5 + $0x30] sm:$0xff] %v3230_v59  ;;  %v3233_v44 = vadd.f32 %v6957_v1, %v3232_v14  ;;  %v3994_v33 = vpop.f32.mrb[91].mxu1 }
 0x3cc   :  { %3453 = vst [vmem:[%s7200_s5 + $0x38] sm:$0xff] %v3233_v44  ;;  %4100 = vmatmul.mubr.bf16.gmra.mrb[196].mxu1 %v6861_v56 }
 0x3cf   :  { %v3237_v63 = vpop.f32.mrb[92].mxu1 }
 0x3d0   :  { %v3238_v38 = vadd.f32 %v6957_v1, %v3237_v63  ;;  %v3997_v40 = vpop.f32.mrb[93].mxu1 }
 0x3d1   :  { %v3240_v47 = vpop.f32.mrb[94].mxu1 }
 0x3d2   :  { %3454 = vst [vmem:[%s7200_s5 + $0x40] sm:$0xff] %v3238_v38  ;;  %v3241_v51 = vadd.f32 %v6957_v1, %v3240_v47  ;;  %v3998_v53 = vpop.f32.mrb[95].mxu1 }
 0x3d4   :  { %3455 = vst [vmem:[%s7200_s5 + $0x48] sm:$0xff] %v3241_v51 }
 0x3d7   :  { %v3245_v32 = vpop.f32.mrb[96].mxu1 }
 0x3d8   :  { %v3246_v61 = vadd.f32 %v6957_v1, %v3245_v32  ;;  %v4001_v56 = vpop.f32.mrb[97].mxu1 }
 0x3d9   :  { %v3248_v15 = vpop.f32.mrb[98].mxu1 }
 0x3da   :  { %3456 = vst [vmem:[%s7200_s5 + $0x50] sm:$0xff] %v3246_v61  ;;  %v3249_v2 = vadd.f32 %v6957_v1, %v3248_v15  ;;  %v4002_v22 = vpop.f32.mrb[99].mxu1 }
 0x3dc   :  { %3457 = vst [vmem:[%s7200_s5 + $0x58] sm:$0xff] %v3249_v2 }
 0x3df   :  { %v3253_v3 = vpop.f32.mrb[100].mxu1 }
 0x3e0   :  { %v3254_v57 = vadd.f32 %v6957_v1, %v3253_v3  ;;  %v4005_v13 = vpop.f32.mrb[101].mxu1 }
 0x3e1   :  { %v3256_v58 = vpop.f32.mrb[102].mxu1 }
 0x3e2   :  { %3458 = vst [vmem:[%s7200_s5 + $0x60] sm:$0xff] %v3254_v57  ;;  %v3257_v45 = vadd.f32 %v6957_v1, %v3256_v58  ;;  %v4006_v27 = vpop.f32.mrb[103].mxu1 }
 0x3e4   :  { %3459 = vst [vmem:[%s7200_s5 + $0x68] sm:$0xff] %v3257_v45 }
 0x3e7   :  { %v3261_v6 = vpop.f32.mrb[104].mxu1 }
 0x3e8   :  { %v3262_v8 = vadd.f32 %v6957_v1, %v3261_v6  ;;  %v4009_v25 = vpop.f32.mrb[105].mxu1 }
 0x3e9   :  { %v3264_v5 = vpop.f32.mrb[106].mxu1 }
 0x3ea   :  { %3460 = vst [vmem:[%s7200_s5 + $0x70] sm:$0xff] %v3262_v8  ;;  %v3265_v50 = vadd.f32 %v6957_v1, %v3264_v5  ;;  %v4010_v23 = vpop.f32.mrb[107].mxu1 }
 0x3ec   :  { %3461 = vst [vmem:[%s7200_s5 + $0x78] sm:$0xff] %v3265_v50 }
 0x3ef   :  { %v3269_v9 = vpop.f32.mrb[108].mxu1 }
 0x3f0   :  { %v3270_v20 = vadd.f32 %v6957_v1, %v3269_v9  ;;  %v4013_v52 = vpop.f32.mrb[109].mxu1 }
 0x3f1   :  { %v3272_v36 = vpop.f32.mrb[110].mxu1 }
 0x3f2   :  { %3462 = vst [vmem:[%s7200_s5 + $0x80] sm:$0xff] %v3270_v20  ;;  %v3273_v41 = vadd.f32 %v6957_v1, %v3272_v36  ;;  %v4014_v54 = vpop.f32.mrb[111].mxu1 }
 0x3f4   :  { %3463 = vst [vmem:[%s7200_s5 + $0x88] sm:$0xff] %v3273_v41 }
 0x3f7   :  { %v3277_v0 = vpop.f32.mrb[112].mxu1 }
 0x3f8   :  { %v3278_v35 = vadd.f32 %v6957_v1, %v3277_v0  ;;  %v4017_v12 = vpop.f32.mrb[113].mxu1 }
 0x3f9   :  { %v3280_v60 = vpop.f32.mrb[114].mxu1 }
 0x3fa   :  { %3464 = vst [vmem:[%s7200_s5 + $0x90] sm:$0xff] %v3278_v35  ;;  %v3281_v31 = vadd.f32 %v6957_v1, %v3280_v60  ;;  %v4018_v17 = vpop.f32.mrb[115].mxu1 }
 0x3fc   :  { %3465 = vst [vmem:[%s7200_s5 + $0x98] sm:$0xff] %v3281_v31 }
 0x3ff   :  { %v3285_v4 = vpop.f32.mrb[116].mxu1 }
 0x400   :  { %v3286_v29 = vadd.f32 %v6957_v1, %v3285_v4  ;;  %v4021_v55 = vpop.f32.mrb[117].mxu1 }
 0x401   :  { %v3288_v18 = vpop.f32.mrb[118].mxu1 }
 0x402   :  { %3466 = vst [vmem:[%s7200_s5 + $0xa0] sm:$0xff] %v3286_v29  ;;  %v3289_v62 = vadd.f32 %v6957_v1, %v3288_v18  ;;  %v4022_v49 = vpop.f32.mrb[119].mxu1 }
 0x404   :  { %3467 = vst [vmem:[%s7200_s5 + $0xa8] sm:$0xff] %v3289_v62 }
 0x407   :  { %v3293_v11 = vpop.f32.mrb[120].mxu1 }
 0x408   :  { %v3294_v37 = vadd.f32 %v6957_v1, %v3293_v11  ;;  %v4025_v43 = vpop.f32.mrb[121].mxu1 }
 0x409   :  { %v3296_v10 = vpop.f32.mrb[122].mxu1 }
 0x40a   :  { %3468 = vst [vmem:[%s7200_s5 + $0xb0] sm:$0xff] %v3294_v37  ;;  %v3297_v24 = vadd.f32 %v6957_v1, %v3296_v10  ;;  %v4026_v16 = vpop.f32.mrb[123].mxu1 }
 0x40c   :  { %3469 = vst [vmem:[%s7200_s5 + $0xb8] sm:$0xff] %v3297_v24 }
 0x40f   :  { %v3301_v7 = vpop.f32.mrb[124].mxu1 }
 0x410   :  { %v3302_v21 = vadd.f32 %v6957_v1, %v3301_v7  ;;  %v4029_v28 = vpop.f32.mrb[125].mxu1 }
 0x411   :  { %v3304_v48 = vpop.f32.mrb[126].mxu1 }
 0x412   :  { %3470 = vst [vmem:[%s7200_s5 + $0xc0] sm:$0xff] %v3302_v21  ;;  %v3305_v42 = vadd.f32 %v6957_v1, %v3304_v48  ;;  %v4030_v46 = vpop.f32.mrb[127].mxu1 }
 0x414   :  { %3471 = vst [vmem:[%s7200_s5 + $0xc8] sm:$0xff] %v3305_v42 }
 0x417   :  { %v3309_v34 = vpop.f32.mrb[128].mxu1 }
 0x418   :  { %v3310_v19 = vadd.f32 %v6957_v1, %v3309_v34  ;;  %v4033_v30 = vpop.f32.mrb[129].mxu1 }
 0x419   :  { %v3312_v39 = vpop.f32.mrb[130].mxu1 }
 0x41a   :  { %3472 = vst [vmem:[%s7200_s5 + $0xd0] sm:$0xff] %v3310_v19  ;;  %v3313_v59 = vadd.f32 %v6957_v1, %v3312_v39  ;;  %v4034_v26 = vpop.f32.mrb[131].mxu1 }
 0x41c   :  { %3473 = vst [vmem:[%s7200_s5 + $0xd8] sm:$0xff] %v3313_v59 }
 0x41f   :  { %v3317_v14 = vpop.f32.mrb[132].mxu1 }
 0x420   :  { %v4037_v44 = vpop.f32.mrb[133].mxu1 }
 0x421   :  { %v3319_v33 = vpop.f32.mrb[134].mxu1 }
 0x422   :  { %v4038_v63 = vpop.f32.mrb[135].mxu1 }
 0x427   :  { %v3323_v38 = vpop.f32.mrb[136].mxu1 }
 0x428   :  { %v4041_v40 = vpop.f32.mrb[137].mxu1 }
 0x429   :  { %v3325_v47 = vpop.f32.mrb[138].mxu1 }
 0x42a   :  { %v4042_v51 = vpop.f32.mrb[139].mxu1 }
 0x42f   :  { %v3329_v53 = vpop.f32.mrb[140].mxu1 }
 0x430   :  { %v4045_v32 = vpop.f32.mrb[141].mxu1 }
 0x431   :  { %v3331_v61 = vpop.f32.mrb[142].mxu1 }
 0x432   :  { %v4046_v56 = vpop.f32.mrb[143].mxu1 }
 0x437   :  { %v3335_v15 = vpop.f32.mrb[144].mxu1 }
 0x438   :  { %v3336_v2 = vadd.f32 %v6957_v1, %v3335_v15  ;;  %v4049_v22 = vpop.f32.mrb[145].mxu1 }
 0x439   :  { %v3338_v3 = vpop.f32.mrb[146].mxu1 }
 0x43a   :  { %3566 = vst [vmem:[%s7200_s5 + $0xe0] sm:$0xff] %v3336_v2  ;;  %v3339_v57 = vadd.f32 %v6957_v1, %v3338_v3  ;;  %v4050_v13 = vpop.f32.mrb[147].mxu1 }
 0x43c   :  { %3567 = vst [vmem:[%s7200_s5 + $0xe8] sm:$0xff] %v3339_v57 }
 0x43f   :  { %v3343_v58 = vpop.f32.mrb[148].mxu1 }
 0x440   :  { %v3344_v45 = vadd.f32 %v6957_v1, %v3343_v58  ;;  %v4053_v27 = vpop.f32.mrb[149].mxu1 }
 0x441   :  { %v3346_v6 = vpop.f32.mrb[150].mxu1 }
 0x442   :  { %3568 = vst [vmem:[%s7200_s5 + $0xf0] sm:$0xff] %v3344_v45  ;;  %v3347_v8 = vadd.f32 %v6957_v1, %v3346_v6  ;;  %v4054_v25 = vpop.f32.mrb[151].mxu1 }
 0x444   :  { %3569 = vst [vmem:[%s7200_s5 + $0xf8] sm:$0xff] %v3347_v8 }
 0x447   :  { %v3351_v5 = vpop.f32.mrb[152].mxu1 }
 0x448   :  { %v3352_v50 = vadd.f32 %v6957_v1, %v3351_v5  ;;  %v4057_v23 = vpop.f32.mrb[153].mxu1 }
 0x449   :  { %v3354_v9 = vpop.f32.mrb[154].mxu1 }
 0x44a   :  { %3570 = vst [vmem:[%s7200_s5 + $0x100] sm:$0xff] %v3352_v50  ;;  %v3355_v20 = vadd.f32 %v6957_v1, %v3354_v9  ;;  %v4058_v52 = vpop.f32.mrb[155].mxu1 }
 0x44c   :  { %3571 = vst [vmem:[%s7200_s5 + $0x108] sm:$0xff] %v3355_v20 }
 0x44f   :  { %v3359_v36 = vpop.f32.mrb[156].mxu1 }
 0x450   :  { %v3360_v41 = vadd.f32 %v6957_v1, %v3359_v36  ;;  %v4061_v54 = vpop.f32.mrb[157].mxu1 }
 0x451   :  { %v3362_v0 = vpop.f32.mrb[158].mxu1 }
 0x452   :  { %3572 = vst [vmem:[%s7200_s5 + $0x110] sm:$0xff] %v3360_v41  ;;  %v3363_v35 = vadd.f32 %v6957_v1, %v3362_v0  ;;  %v4062_v12 = vpop.f32.mrb[159].mxu1 }
 0x454   :  { %3573 = vst [vmem:[%s7200_s5 + $0x118] sm:$0xff] %v3363_v35 }
 0x457   :  { %v3367_v60 = vpop.f32.mrb[160].mxu1 }
 0x458   :  { %v3368_v31 = vadd.f32 %v6957_v1, %v3367_v60  ;;  %v4065_v17 = vpop.f32.mrb[161].mxu1 }
 0x459   :  { %v3370_v4 = vpop.f32.mrb[162].mxu1 }
 0x45a   :  { %3574 = vst [vmem:[%s7200_s5 + $0x120] sm:$0xff] %v3368_v31  ;;  %v3371_v29 = vadd.f32 %v6957_v1, %v3370_v4  ;;  %v4066_v55 = vpop.f32.mrb[163].mxu1 }
 0x45c   :  { %3575 = vst [vmem:[%s7200_s5 + $0x128] sm:$0xff] %v3371_v29 }
 0x45f   :  { %v3375_v18 = vpop.f32.mrb[164].mxu1 }
 0x460   :  { %v3376_v62 = vadd.f32 %v6957_v1, %v3375_v18  ;;  %v4069_v49 = vpop.f32.mrb[165].mxu1 }
 0x461   :  { %v3378_v11 = vpop.f32.mrb[166].mxu1 }
 0x462   :  { %3576 = vst [vmem:[%s7200_s5 + $0x130] sm:$0xff] %v3376_v62  ;;  %v3379_v37 = vadd.f32 %v6957_v1, %v3378_v11  ;;  %v4070_v43 = vpop.f32.mrb[167].mxu1 }
 0x464   :  { %3577 = vst [vmem:[%s7200_s5 + $0x138] sm:$0xff] %v3379_v37 }
 0x467   :  { %v3383_v10 = vpop.f32.mrb[168].mxu1 }
 0x468   :  { %v3384_v24 = vadd.f32 %v6957_v1, %v3383_v10  ;;  %v4073_v16 = vpop.f32.mrb[169].mxu1 }
 0x469   :  { %v3386_v7 = vpop.f32.mrb[170].mxu1 }
 0x46a   :  { %3578 = vst [vmem:[%s7200_s5 + $0x140] sm:$0xff] %v3384_v24  ;;  %v3387_v21 = vadd.f32 %v6957_v1, %v3386_v7  ;;  %v4074_v28 = vpop.f32.mrb[171].mxu1 }
 0x46c   :  { %3579 = vst [vmem:[%s7200_s5 + $0x148] sm:$0xff] %v3387_v21 }
 0x46f   :  { %v3391_v48 = vpop.f32.mrb[172].mxu1 }
 0x470   :  { %v3392_v42 = vadd.f32 %v6957_v1, %v3391_v48  ;;  %v4077_v46 = vpop.f32.mrb[173].mxu1 }
 0x471   :  { %v3394_v34 = vpop.f32.mrb[174].mxu1 }
 0x472   :  { %3580 = vst [vmem:[%s7200_s5 + $0x150] sm:$0xff] %v3392_v42  ;;  %v3395_v19 = vadd.f32 %v6957_v1, %v3394_v34  ;;  %v4078_v30 = vpop.f32.mrb[175].mxu1 }
 0x474   :  { %3581 = vst [vmem:[%s7200_s5 + $0x158] sm:$0xff] %v3395_v19 }
 0x477   :  { %v3399_v39 = vpop.f32.mrb[176].mxu1 }
 0x478   :  { %v3400_v59 = vadd.f32 %v6957_v1, %v3399_v39  ;;  %v4081_v26 = vpop.f32.mrb[177].mxu1 }
 0x479   :  { %v3402_v14 = vpop.f32.mrb[178].mxu1 }
 0x47a   :  { %3582 = vst [vmem:[%s7200_s5 + $0x160] sm:$0xff] %v3400_v59  ;;  %v3403_v44 = vadd.f32 %v6957_v1, %v3402_v14  ;;  %v4082_v33 = vpop.f32.mrb[179].mxu1 }
 0x47c   :  { %3583 = vst [vmem:[%s7200_s5 + $0x168] sm:$0xff] %v3403_v44 }
 0x47f   :  { %v3407_v63 = vpop.f32.mrb[180].mxu1 }
 0x480   :  { %v3408_v38 = vadd.f32 %v6957_v1, %v3407_v63  ;;  %v4085_v40 = vpop.f32.mrb[181].mxu1 }
 0x481   :  { %v3410_v47 = vpop.f32.mrb[182].mxu1 }
 0x482   :  { %3584 = vst [vmem:[%s7200_s5 + $0x170] sm:$0xff] %v3408_v38  ;;  %v3411_v51 = vadd.f32 %v6957_v1, %v3410_v47  ;;  %v4086_v53 = vpop.f32.mrb[183].mxu1 }
 0x484   :  { %3585 = vst [vmem:[%s7200_s5 + $0x178] sm:$0xff] %v3411_v51 }
 0x487   :  { %v3415_v32 = vpop.f32.mrb[184].mxu1 }
 0x488   :  { %v3416_v61 = vadd.f32 %v6957_v1, %v3415_v32  ;;  %v4089_v56 = vpop.f32.mrb[185].mxu1 }
 0x489   :  { %v3418_v15 = vpop.f32.mrb[186].mxu1 }
 0x48a   :  { %3586 = vst [vmem:[%s7200_s5 + $0x180] sm:$0xff] %v3416_v61  ;;  %v3419_v2 = vadd.f32 %v6957_v1, %v3418_v15  ;;  %v4090_v22 = vpop.f32.mrb[187].mxu1 }
 0x48c   :  { %3587 = vst [vmem:[%s7200_s5 + $0x188] sm:$0xff] %v3419_v2 }
 0x48f   :  { %v3423_v3 = vpop.f32.mrb[188].mxu1 }
 0x490   :  { %v3424_v57 = vadd.f32 %v6957_v1, %v3423_v3  ;;  %v4093_v13 = vpop.f32.mrb[189].mxu1 }
 0x491   :  { %v3426_v58 = vpop.f32.mrb[190].mxu1 }
 0x492   :  { %3588 = vst [vmem:[%s7200_s5 + $0x190] sm:$0xff] %v3424_v57  ;;  %v3427_v45 = vadd.f32 %v6957_v1, %v3426_v58  ;;  %v4094_v27 = vpop.f32.mrb[191].mxu1 }
 0x494   :  { %3589 = vst [vmem:[%s7200_s5 + $0x198] sm:$0xff] %v3427_v45 }
 0x497   :  { %v3431_v6 = vpop.f32.mrb[192].mxu1 }
 0x498   :  { %v3432_v8 = vadd.f32 %v6957_v1, %v3431_v6  ;;  %v4097_v25 = vpop.f32.mrb[193].mxu1 }
 0x499   :  { %v3434_v5 = vpop.f32.mrb[194].mxu1 }
 0x49a   :  { %3590 = vst [vmem:[%s7200_s5 + $0x1a0] sm:$0xff] %v3432_v8  ;;  %v3435_v50 = vadd.f32 %v6957_v1, %v3434_v5  ;;  %v4098_v23 = vpop.f32.mrb[195].mxu1 }
 0x49c   :  { %3591 = vst [vmem:[%s7200_s5 + $0x1a8] sm:$0xff] %v3435_v50 }
 0x49f   :  { %v3439_v9 = vpop.f32.mrb[196].mxu1 }
 0x4a0   :  { %v3440_v20 = vadd.f32 %v6957_v1, %v3439_v9  ;;  %v4101_v52 = vpop.f32.mrb[197].mxu1 }
 0x4a1   :  { %v3442_v36 = vpop.f32.mrb[198].mxu1 }
 0x4a2   :  { %3592 = vst [vmem:[%s7200_s5 + $0x1b0] sm:$0xff] %v3440_v20  ;;  %v3443_v41 = vadd.f32 %v6957_v1, %v3442_v36  ;;  %v4102_v54 = vpop.f32.mrb[199].mxu1 }
 0x4a4   :  { %3593 = vst [vmem:[%s7200_s5 + $0x1b8] sm:$0xff] %v3443_v41 }

// kernel: rpn_head_forward_nhwc.1
= control target key start
LH: loop header
LB: loop body
LE: loop exit
PB: predicated region body
PF: predicated region fallthrough
CT: control target
= control target key end

     0   :  { %v9994_v0 = vmov 0.0   ;;  %vm7738_vm0 = vmmov 0   ;;  %vm157_vm1 = vcmask 261120   ;;  %s9988_s1 = inlined_call_operand.vmem [shape: bf16[288,128], index: 1, kind: input, shape index: {}]   ;;  %s9989_s0 = inlined_call_operand.vmem [shape: bf16[544,32], index: 0, kind: input, shape index: {}]   ;;  %s9990_s3 = inlined_call_operand.vmem [shape: bf16[128,128], index: 3, kind: input, shape index: {}]   ;;  %s9991_s2 = inlined_call_operand.vmem [shape: f32[1,128], index: 2, kind: input, shape index: {}]   ;;  %s9992_s4 = inlined_call_operand.vmem [shape: f32[1,128], index: 4, kind: input, shape index: {}]   ;;  %s9993_s5 = inlined_call_operand.vmem [shape: f32[2,224,128], index: 5, kind: output, shape index: {}]  }
   0x1   :  { %6416 = vmatprep.subr.bf16.mxu0 %v9994_v0  ;;  %v7710_v1 = vld [vmem:[%s9988_s1 + $0x10] sm:$0xff]   ;;  %6544 = vmatprep.subr.bf16.mxu1 %v9994_v0  ;;  %v7711_v2 = vld [vmem:[%s9988_s1] sm:$0xff]   ;;  %v7712_v3 = vld [vmem:[%s9988_s1 + $0x18] sm:$0xff]  }
   0x2   :  { %6420 = vmatprep.mubr.msk.bf16.mxu0 %vm7738_vm0, %v9994_v0  ;;  %6548 = vmatprep.mubr.msk.bf16.mxu1 %vm7738_vm0, %v9994_v0  ;;  %v7713_v4 = vld [vmem:[%s9988_s1 + $0x8] sm:$0xff]   ;;  %v5912_v5 = vld [vmem:[%s9989_s0] sm:$0xff]   ;;  %v6048_v11 = vld [vmem:[%s9989_s0 + $0x10] sm:$0xff]  }
   0x3   :  { %6417 = vmatpush3.bf16.msra.mxu0 %v7710_v1  ;;  %6545 = vmatpush3.bf16.msra.mxu1 %v7711_v2  ;;  %v6047_v6 = vld [vmem:[%s9989_s0 + $0x8] sm:$0xff]   ;;  %v5913_v7 = vunpack.c.l.bf16 %v5912_v5  ;;  %v5914_v8 = vunpack.c.h.bf16 %v5912_v5  ;;  %v5921_v12 = vunpack.c.l.bf16 %v6048_v11  ;;  %v5922_v13 = vunpack.c.h.bf16 %v6048_v11  ;;  %v6049_v14 = vld [vmem:[%s9989_s0 + $0x18] sm:$0xff]   ;;  %v6050_v15 = vld [vmem:[%s9989_s0 + $0x20] sm:$0xff]  }
   0x4   :  { %6418 = vmatprep.subr.bf16.mxu0 %v9994_v0  ;;  %6546 = vmatprep.subr.bf16.mxu1 %v9994_v0  ;;  %v5917_v9 = vunpack.c.l.bf16 %v6047_v6  ;;  %v5918_v10 = vunpack.c.h.bf16 %v6047_v6  ;;  %v6051_v16 = vld [vmem:[%s9989_s0 + $0x28] sm:$0xff]   ;;  %v5925_v17 = vunpack.c.l.bf16 %v6049_v14  ;;  %v5926_v18 = vunpack.c.h.bf16 %v6049_v14  ;;  %v6052_v21 = vld [vmem:[%s9989_s0 + $0x30] sm:$0xff]   ;;  %v6053_v22 = vld [vmem:[%s9989_s0 + $0x38] sm:$0xff]  }
   0x5   :  { %158 = vst.msk [vmem:[#allocation2] sm:$0xff] %vm157_vm1, %v5913_v7  ;;  %159 = vst.msk [vmem:[#allocation2 + $0x8] sm:$0xff] %vm157_vm1, %v5914_v8  ;;  %v5929_v19 = vunpack.c.l.bf16 %v6050_v15  ;;  %v5930_v20 = vunpack.c.h.bf16 %v6050_v15  ;;  %v6054_v23 = vld [vmem:[%s9989_s0 + $0x40] sm:$0xff]   ;;  %v5933_v24 = vunpack.c.l.bf16 %v6051_v16  ;;  %v5934_v25 = vunpack.c.h.bf16 %v6051_v16  ;;  %v6055_v28 = vld [vmem:[%s9989_s0 + $0x48] sm:$0xff]  }
   0x6   :  { %160 = vst.msk [vmem:[#allocation2 + $0x10] sm:$0xff] %vm157_vm1, %v5917_v9  ;;  %161 = vst.msk [vmem:[#allocation2 + $0x18] sm:$0xff] %vm157_vm1, %v5918_v10  ;;  %v5937_v26 = vunpack.c.l.bf16 %v6052_v21  ;;  %v5938_v27 = vunpack.c.h.bf16 %v6052_v21  ;;  %v6056_v29 = vld [vmem:[%s9989_s0 + $0x50] sm:$0xff]   ;;  %v6057_v30 = vld [vmem:[%s9989_s0 + $0x58] sm:$0xff]   ;;  %v5941_v31 = vunpack.c.l.bf16 %v6053_v22  ;;  %v5942_v32 = vunpack.c.h.bf16 %v6053_v22 }
   0x7   :  { %6419 = vmatpush3.bf16.msra.mxu0 %v7712_v3  ;;  %6547 = vmatpush3.bf16.msra.mxu1 %v7713_v4  ;;  %162 = vst.msk [vmem:[#allocation2 + $0x20] sm:$0xff] %vm157_vm1, %v5921_v12  ;;  %163 = vst.msk [vmem:[#allocation2 + $0x28] sm:$0xff] %vm157_vm1, %v5922_v13  ;;  %v5945_v33 = vunpack.c.l.bf16 %v6054_v23  ;;  %v5946_v34 = vunpack.c.h.bf16 %v6054_v23  ;;  %v6058_v35 = vld [vmem:[%s9989_s0 + $0x60] sm:$0xff]   ;;  %v6059_v36 = vld [vmem:[%s9989_s0 + $0x68] sm:$0xff]   ;;  %v5949_v38 = vunpack.c.l.bf16 %v6055_v28  ;;  %v5950_v39 = vunpack.c.h.bf16 %v6055_v28 }
   0x8   :  { %6672 = vmatprep.subr.bf16.mxu0 %v9994_v0  ;;  %6800 = vmatprep.subr.bf16.mxu1 %v9994_v0  ;;  %164 = vst.msk [vmem:[#allocation2 + $0x30] sm:$0xff] %vm157_vm1, %v5925_v17  ;;  %165 = vst.msk [vmem:[#allocation2 + $0x38] sm:$0xff] %vm157_vm1, %v5926_v18  ;;  %v6060_v37 = vld [vmem:[%s9989_s0 + $0x70] sm:$0xff]   ;;  %v5953_v40 = vunpack.c.l.bf16 %v6056_v29  ;;  %v5954_v41 = vunpack.c.h.bf16 %v6056_v29  ;;  %v6061_v42 = vld [vmem:[%s9989_s0 + $0x78] sm:$0xff]   ;;  %v5957_v44 = vunpack.c.l.bf16 %v6057_v30  ;;  %v5958_v45 = vunpack.c.h.bf16 %v6057_v30 }
   0x9   :  { %166 = vst.msk [vmem:[#allocation2 + $0x40] sm:$0xff] %vm157_vm1, %v5929_v19  ;;  %167 = vst.msk [vmem:[#allocation2 + $0x48] sm:$0xff] %vm157_vm1, %v5930_v20  ;;  %v6062_v43 = vld [vmem:[%s9989_s0 + $0x80] sm:$0xff]   ;;  %v5961_v46 = vunpack.c.l.bf16 %v6058_v35  ;;  %v5962_v47 = vunpack.c.h.bf16 %v6058_v35  ;;  %v6063_v48 = vld [vmem:[%s9989_s0 + $0x88] sm:$0xff]   ;;  %v5965_v50 = vunpack.c.l.bf16 %v6059_v36  ;;  %v5966_v51 = vunpack.c.h.bf16 %v6059_v36 }
   0xa   :  { %168 = vst.msk [vmem:[#allocation2 + $0x50] sm:$0xff] %vm157_vm1, %v5933_v24  ;;  %169 = vst.msk [vmem:[#allocation2 + $0x58] sm:$0xff] %vm157_vm1, %v5934_v25  ;;  %v7714_v49 = vld [vmem:[%s9988_s1 + $0x20] sm:$0xff]   ;;  %v5969_v52 = vunpack.c.l.bf16 %v6060_v37  ;;  %v5970_v53 = vunpack.c.h.bf16 %v6060_v37  ;;  %v5973_v54 = vunpack.c.l.bf16 %v6061_v42  ;;  %v5974_v55 = vunpack.c.h.bf16 %v6061_v42  ;;  %v6064_v58 = vld [vmem:[%s9989_s0 + $0x90] sm:$0xff]  }
   0xb   :  { %170 = vst.msk [vmem:[#allocation2 + $0x60] sm:$0xff] %vm157_vm1, %v5937_v26  ;;  %171 = vst.msk [vmem:[#allocation2 + $0x68] sm:$0xff] %vm157_vm1, %v5938_v27  ;;  %v5977_v56 = vunpack.c.l.bf16 %v6062_v43  ;;  %v5978_v57 = vunpack.c.h.bf16 %v6062_v43  ;;  %v5981_v62 = vunpack.c.l.bf16 %v6063_v48  ;;  %v5982_v63 = vunpack.c.h.bf16 %v6063_v48  ;;  %v7715_v7 = vld [vmem:[%s9988_s1 + $0x28] sm:$0xff]   ;;  %v6065_v25 = vld [vmem:[%s9989_s0 + $0x98] sm:$0xff]  }
   0xc   :  { %172 = vst.msk [vmem:[#allocation2 + $0x70] sm:$0xff] %vm157_vm1, %v5941_v31  ;;  %173 = vst.msk [vmem:[#allocation2 + $0x78] sm:$0xff] %vm157_vm1, %v5942_v32  ;;  %v323_v59 = vld [vmem:[#allocation2 + $0x1] sm:$0xff]  ;;  %v5985_v1 = vunpack.c.l.bf16 %v6064_v58  ;;  %v5986_v12 = vunpack.c.h.bf16 %v6064_v58  ;;  %v5989_v26 = vunpack.c.l.bf16 %v6065_v25  ;;  %v5990_v27 = vunpack.c.h.bf16 %v6065_v25  ;;  %v6066_v28 = vld [vmem:[%s9989_s0 + $0xa0] sm:$0xff]  }
   0xd   :  { %174 = vst.msk [vmem:[#allocation2 + $0x80] sm:$0xff] %vm157_vm1, %v5945_v33  ;;  %175 = vst.msk [vmem:[#allocation2 + $0x88] sm:$0xff] %vm157_vm1, %v5946_v34  ;;  %v324_v60 = vld [vmem:[#allocation2 + $0x9] sm:$0xff]  ;;  %v226_v61 = vld [vmem:[#allocation2] sm:$0xff]  ;;  %v5993_v32 = vunpack.c.l.bf16 %v6066_v28  ;;  %v5994_v33 = vunpack.c.h.bf16 %v6066_v28 }
   0xe   :  { %176 = vst.msk [vmem:[#allocation2 + $0x90] sm:$0xff] %vm157_vm1, %v5949_v38  ;;  %177 = vst.msk [vmem:[#allocation2 + $0x98] sm:$0xff] %vm157_vm1, %v5950_v39  ;;  %v385_v2 = vpack.c.bf16 %v324_v60, %v323_v59  ;;  %v227_v3 = vld [vmem:[#allocation2 + $0x8] sm:$0xff]  ;;  %v325_v5 = vld [vmem:[#allocation2 + $0x11] sm:$0xff] }
   0xf   :  { %178 = vst.msk [vmem:[#allocation2 + $0xa0] sm:$0xff] %vm157_vm1, %v5953_v40  ;;  %179 = vst.msk [vmem:[#allocation2 + $0xa8] sm:$0xff] %vm157_vm1, %v5954_v41  ;;  %v288_v4 = vpack.c.bf16 %v227_v3, %v226_v61  ;;  %v326_v6 = vld [vmem:[#allocation2 + $0x19] sm:$0xff]  ;;  %v228_v8 = vld [vmem:[#allocation2 + $0x10] sm:$0xff] }
  0x10   :  { %180 = vst.msk [vmem:[#allocation2 + $0xb0] sm:$0xff] %vm157_vm1, %v5957_v44  ;;  %181 = vst.msk [vmem:[#allocation2 + $0xb8] sm:$0xff] %vm157_vm1, %v5958_v45  ;;  %6421 = vmatmul.mubr.msk.bf16.vlgmr.msra.gmra.mrb[0].mxu0 %vm157_vm1, %v385_v2  ;;  %v229_v9 = vld [vmem:[#allocation2 + $0x18] sm:$0xff]  ;;  %v386_v10 = vpack.c.bf16 %v326_v6, %v325_v5  ;;  %v327_v13 = vld [vmem:[#allocation2 + $0x21] sm:$0xff] }
  0x11   :  { %182 = vst.msk [vmem:[#allocation2 + $0xc0] sm:$0xff] %vm157_vm1, %v5961_v46  ;;  %183 = vst.msk [vmem:[#allocation2 + $0xc8] sm:$0xff] %vm157_vm1, %v5962_v47  ;;  %6549 = vmatmul.mubr.msk.bf16.vlgmr.msra.gmra.mrb[0].mxu1 %vm157_vm1, %v288_v4  ;;  %6673 = vmatpush3.bf16.msra.mxu0 %v7714_v49  ;;  %v289_v11 = vpack.c.bf16 %v229_v9, %v228_v8  ;;  %v328_v14 = vld [vmem:[#allocation2 + $0x29] sm:$0xff]  ;;  %v230_v15 = vld [vmem:[#allocation2 + $0x20] sm:$0xff] }
  0x12   :  { %184 = vst.msk [vmem:[#allocation2 + $0xd0] sm:$0xff] %vm157_vm1, %v5965_v50  ;;  %185 = vst.msk [vmem:[#allocation2 + $0xd8] sm:$0xff] %vm157_vm1, %v5966_v51  ;;  %6424 = vmatprep.mubr.msk.bf16.mxu0 %vm7738_vm0, %v9994_v0  ;;  %6552 = vmatprep.mubr.msk.bf16.mxu1 %vm7738_vm0, %v9994_v0  ;;  %v231_v16 = vld [vmem:[#allocation2 + $0x28] sm:$0xff]  ;;  %v387_v17 = vpack.c.bf16 %v328_v14, %v327_v13  ;;  %v329_v19 = vld [vmem:[#allocation2 + $0x31] sm:$0xff] }
  0x13   :  { %186 = vst.msk [vmem:[#allocation2 + $0xe0] sm:$0xff] %vm157_vm1, %v5969_v52  ;;  %187 = vst.msk [vmem:[#allocation2 + $0xe8] sm:$0xff] %vm157_vm1, %v5970_v53  ;;  %6674 = vmatprep.subr.bf16.mxu0 %v9994_v0  ;;  %v290_v18 = vpack.c.bf16 %v231_v16, %v230_v15  ;;  %v330_v20 = vld [vmem:[#allocation2 + $0x39] sm:$0xff]  ;;  %v232_v21 = vld [vmem:[#allocation2 + $0x30] sm:$0xff] }
  0x14   :  { %188 = vst.msk [vmem:[#allocation2 + $0xf0] sm:$0xff] %vm157_vm1, %v5973_v54  ;;  %189 = vst.msk [vmem:[#allocation2 + $0xf8] sm:$0xff] %vm157_vm1, %v5974_v55  ;;  %v233_v22 = vld [vmem:[#allocation2 + $0x38] sm:$0xff]  ;;  %v388_v23 = vpack.c.bf16 %v330_v20, %v329_v19  ;;  %v331_v30 = vld [vmem:[#allocation2 + $0x41] sm:$0xff] }
  0x15   :  { %190 = vst.msk [vmem:[#allocation2 + $0x100] sm:$0xff] %vm157_vm1, %v5977_v56  ;;  %191 = vst.msk [vmem:[#allocation2 + $0x108] sm:$0xff] %vm157_vm1, %v5978_v57  ;;  %6675 = vmatpush3.bf16.msra.mxu0 %v7715_v7  ;;  %v291_v24 = vpack.c.bf16 %v233_v22, %v232_v21  ;;  %v6067_v29 = vld [vmem:[%s9989_s0 + $0xa8] sm:$0xff]   ;;  %v332_v31 = vld [vmem:[#allocation2 + $0x49] sm:$0xff] }
  0x16   :  { %192 = vst.msk [vmem:[#allocation2 + $0x110] sm:$0xff] %vm157_vm1, %v5981_v62  ;;  %193 = vst.msk [vmem:[#allocation2 + $0x118] sm:$0xff] %vm157_vm1, %v5982_v63  ;;  %6928 = vmatprep.subr.bf16.mxu0 %v9994_v0  ;;  %v5997_v34 = vunpack.c.l.bf16 %v6067_v29  ;;  %v234_v35 = vld [vmem:[#allocation2 + $0x40] sm:$0xff]  ;;  %v235_v36 = vld [vmem:[#allocation2 + $0x48] sm:$0xff]  ;;  %v389_v37 = vpack.c.bf16 %v332_v31, %v331_v30  ;;  %v5998_v40 = vunpack.c.h.bf16 %v6067_v29 }
  0x17   :  { %194 = vst.msk [vmem:[#allocation2 + $0x120] sm:$0xff] %vm157_vm1, %v5985_v1  ;;  %195 = vst.msk [vmem:[#allocation2 + $0x128] sm:$0xff] %vm157_vm1, %v5986_v12  ;;  %v6068_v38 = vld [vmem:[%s9989_s0 + $0xb0] sm:$0xff]   ;;  %v292_v39 = vpack.c.bf16 %v235_v36, %v234_v35  ;;  %v333_v42 = vld [vmem:[#allocation2 + $0x51] sm:$0xff] }
  0x18   :  { %6425 = vmatmul.mubr.msk.bf16.gmra.mrb[4].mxu0 %vm157_vm1, %v386_v10  ;;  %196 = vst.msk [vmem:[#allocation2 + $0x130] sm:$0xff] %vm157_vm1, %v5989_v26  ;;  %197 = vst.msk [vmem:[#allocation2 + $0x138] sm:$0xff] %vm157_vm1, %v5990_v27  ;;  %v6001_v41 = vunpack.c.l.bf16 %v6068_v38  ;;  %v334_v43 = vld [vmem:[#allocation2 + $0x59] sm:$0xff]  ;;  %v236_v44 = vld [vmem:[#allocation2 + $0x50] sm:$0xff]  ;;  %v6002_v49 = vunpack.c.h.bf16 %v6068_v38 }
  0x19   :  { %6553 = vmatmul.mubr.msk.bf16.gmra.mrb[4].mxu1 %vm157_vm1, %v289_v11  ;;  %6428 = vmatprep.mubr.msk.bf16.mxu0 %vm7738_vm0, %v9994_v0  ;;  %198 = vst.msk [vmem:[#allocation2 + $0x140] sm:$0xff] %vm157_vm1, %v5993_v32  ;;  %199 = vst.msk [vmem:[#allocation2 + $0x148] sm:$0xff] %vm157_vm1, %v5994_v33  ;;  %v237_v45 = vld [vmem:[#allocation2 + $0x58] sm:$0xff]  ;;  %v390_v46 = vpack.c.bf16 %v334_v43, %v333_v42  ;;  %v6069_v47 = vld [vmem:[%s9989_s0 + $0xb8] sm:$0xff]  }
  0x1a   :  { %6556 = vmatprep.mubr.msk.bf16.mxu1 %vm7738_vm0, %v9994_v0  ;;  %200 = vst.msk [vmem:[#allocation2 + $0x150] sm:$0xff] %vm157_vm1, %v5997_v34  ;;  %201 = vst.msk [vmem:[#allocation2 + $0x158] sm:$0xff] %vm157_vm1, %v5998_v40  ;;  %v293_v48 = vpack.c.bf16 %v237_v45, %v236_v44  ;;  %v6005_v50 = vunpack.c.l.bf16 %v6069_v47  ;;  %v335_v51 = vld [vmem:[#allocation2 + $0x61] sm:$0xff]  ;;  %v336_v52 = vld [vmem:[#allocation2 + $0x69] sm:$0xff]  ;;  %v6006_v58 = vunpack.c.h.bf16 %v6069_v47 }
  0x1b   :  { %202 = vst.msk [vmem:[#allocation2 + $0x160] sm:$0xff] %vm157_vm1, %v6001_v41  ;;  %203 = vst.msk [vmem:[#allocation2 + $0x168] sm:$0xff] %vm157_vm1, %v6002_v49  ;;  %v238_v53 = vld [vmem:[#allocation2 + $0x60] sm:$0xff]  ;;  %v239_v54 = vld [vmem:[#allocation2 + $0x68] sm:$0xff]  ;;  %v391_v55 = vpack.c.bf16 %v336_v52, %v335_v51 }
  0x1c   :  { %204 = vst.msk [vmem:[#allocation2 + $0x170] sm:$0xff] %vm157_vm1, %v6005_v50  ;;  %v6070_v56 = vld [vmem:[%s9989_s0 + $0xc0] sm:$0xff]   ;;  %v294_v57 = vpack.c.bf16 %v239_v54, %v238_v53  ;;  %205 = vst.msk [vmem:[#allocation2 + $0x178] sm:$0xff] %vm157_vm1, %v6006_v58  ;;  %v338_v61 = vld [vmem:[#allocation2 + $0x79] sm:$0xff] }
  0x1d   :  { %v6009_v59 = vunpack.c.l.bf16 %v6070_v56  ;;  %v337_v60 = vld [vmem:[#allocation2 + $0x71] sm:$0xff]  ;;  %v6010_v4 = vunpack.c.h.bf16 %v6070_v56  ;;  %v339_v6 = vld [vmem:[#allocation2 + $0x81] sm:$0xff]  ;;  %v340_v7 = vld [vmem:[#allocation2 + $0x89] sm:$0xff] }
  0x1e   :  { %v240_v62 = vld [vmem:[#allocation2 + $0x70] sm:$0xff]  ;;  %v241_v63 = vld [vmem:[#allocation2 + $0x78] sm:$0xff]  ;;  %v392_v1 = vpack.c.bf16 %v338_v61, %v337_v60  ;;  %v242_v8 = vld [vmem:[#allocation2 + $0x80] sm:$0xff]  ;;  %v393_v10 = vpack.c.bf16 %v340_v7, %v339_v6 }
  0x1f   :  { %206 = vst.msk [vmem:[#allocation2 + $0x180] sm:$0xff] %vm157_vm1, %v6009_v59  ;;  %v6071_v2 = vld [vmem:[%s9989_s0 + $0xc8] sm:$0xff]   ;;  %v295_v3 = vpack.c.bf16 %v241_v63, %v240_v62  ;;  %207 = vst.msk [vmem:[#allocation2 + $0x188] sm:$0xff] %vm157_vm1, %v6010_v4  ;;  %v243_v9 = vld [vmem:[#allocation2 + $0x88] sm:$0xff] }
  0x20   :  { %6429 = vmatmul.mubr.msk.bf16.gmra.mrb[8].mxu0 %vm157_vm1, %v387_v17  ;;  %v6013_v5 = vunpack.c.l.bf16 %v6071_v2  ;;  %v6072_v11 = vld [vmem:[%s9989_s0 + $0xd0] sm:$0xff]   ;;  %v296_v12 = vpack.c.bf16 %v243_v9, %v242_v8  ;;  %v6014_v13 = vunpack.c.h.bf16 %v6071_v2  ;;  %v341_v15 = vld [vmem:[#allocation2 + $0x91] sm:$0xff]  ;;  %v6073_v20 = vld [vmem:[%s9989_s0 + $0xd8] sm:$0xff]  }
  0x21   :  { %6557 = vmatmul.mubr.msk.bf16.gmra.mrb[8].mxu1 %vm157_vm1, %v290_v18  ;;  %6432 = vmatprep.mubr.msk.bf16.mxu0 %vm7738_vm0, %v9994_v0  ;;  %v6017_v14 = vunpack.c.l.bf16 %v6072_v11  ;;  %v342_v16 = vld [vmem:[#allocation2 + $0x99] sm:$0xff]  ;;  %v244_v17 = vld [vmem:[#allocation2 + $0x90] sm:$0xff]  ;;  %v6018_v22 = vunpack.c.h.bf16 %v6072_v11  ;;  %v247_v27 = vld [vmem:[#allocation2 + $0xa8] sm:$0xff]  ;;  %v6022_v31 = vunpack.c.h.bf16 %v6073_v20 }
  0x22   :  { %6560 = vmatprep.mubr.msk.bf16.mxu1 %vm7738_vm0, %v9994_v0  ;;  %208 = vst.msk [vmem:[#allocation2 + $0x190] sm:$0xff] %vm157_vm1, %v6013_v5  ;;  %209 = vst.msk [vmem:[#allocation2 + $0x198] sm:$0xff] %vm157_vm1, %v6014_v13  ;;  %v245_v18 = vld [vmem:[#allocation2 + $0x98] sm:$0xff]  ;;  %v394_v19 = vpack.c.bf16 %v342_v16, %v341_v15  ;;  %v344_v25 = vld [vmem:[#allocation2 + $0xa9] sm:$0xff] }
  0x23   :  { %210 = vst.msk [vmem:[#allocation2 + $0x1a0] sm:$0xff] %vm157_vm1, %v6017_v14  ;;  %v297_v21 = vpack.c.bf16 %v245_v18, %v244_v17  ;;  %211 = vst.msk [vmem:[#allocation2 + $0x1a8] sm:$0xff] %vm157_vm1, %v6018_v22  ;;  %v246_v26 = vld [vmem:[#allocation2 + $0xa0] sm:$0xff]  ;;  %v6074_v29 = vld [vmem:[%s9989_s0 + $0xe0] sm:$0xff]  }
  0x24   :  { %v298_v30 = vpack.c.bf16 %v247_v27, %v246_v26  ;;  %v6025_v32 = vunpack.c.l.bf16 %v6074_v29  ;;  %213 = vst.msk [vmem:[#allocation2 + $0x1b8] sm:$0xff] %vm157_vm1, %v6022_v31  ;;  %v345_v33 = vld [vmem:[#allocation2 + $0xb1] sm:$0xff]  ;;  %v346_v34 = vld [vmem:[#allocation2 + $0xb9] sm:$0xff]  ;;  %v6026_v40 = vunpack.c.h.bf16 %v6074_v29  ;;  %v347_v42 = vld [vmem:[#allocation2 + $0xc1] sm:$0xff] }
  0x25   :  { %v248_v35 = vld [vmem:[#allocation2 + $0xb0] sm:$0xff]  ;;  %v249_v36 = vld [vmem:[#allocation2 + $0xb8] sm:$0xff]  ;;  %v250_v44 = vld [vmem:[#allocation2 + $0xc0] sm:$0xff] }
  0x26   :  { %214 = vst.msk [vmem:[#allocation2 + $0x1c0] sm:$0xff] %vm157_vm1, %v6025_v32  ;;  %v6075_v38 = vld [vmem:[%s9989_s0 + $0xe8] sm:$0xff]   ;;  %215 = vst.msk [vmem:[#allocation2 + $0x1c8] sm:$0xff] %vm157_vm1, %v6026_v40  ;;  %v348_v43 = vld [vmem:[#allocation2 + $0xc9] sm:$0xff] }
  0x27   :  { %v6029_v41 = vunpack.c.l.bf16 %v6075_v38  ;;  %v251_v45 = vld [vmem:[#allocation2 + $0xc8] sm:$0xff]  ;;  %v6076_v47 = vld [vmem:[%s9989_s0 + $0xf0] sm:$0xff]   ;;  %v6030_v49 = vunpack.c.h.bf16 %v6075_v38  ;;  %v349_v52 = vld [vmem:[#allocation2 + $0xd1] sm:$0xff] }
  0x28   :  { %6433 = vmatmul.mubr.msk.bf16.gmra.mrb[12].mxu0 %vm157_vm1, %v388_v23  ;;  %v6021_v23 = vunpack.c.l.bf16 %v6073_v20  ;;  %v6033_v50 = vunpack.c.l.bf16 %v6076_v47  ;;  %v7716_v51 = vld [vmem:[%s9988_s1 + $0x30] sm:$0xff]   ;;  %v252_v54 = vld [vmem:[#allocation2 + $0xd0] sm:$0xff]  ;;  %v6034_v59 = vunpack.c.h.bf16 %v6076_v47  ;;  %v257_v7 = vld [vmem:[#allocation2 + $0xf8] sm:$0xff] }
  0x29   :  { %6561 = vmatmul.mubr.msk.bf16.gmra.mrb[12].mxu1 %vm157_vm1, %v291_v24  ;;  %6436 = vmatprep.mubr.msk.bf16.mxu0 %vm7738_vm0, %v9994_v0  ;;  %v343_v24 = vld [vmem:[#allocation2 + $0xa1] sm:$0xff]  ;;  %216 = vst.msk [vmem:[#allocation2 + $0x1d0] sm:$0xff] %vm157_vm1, %v6029_v41  ;;  %217 = vst.msk [vmem:[#allocation2 + $0x1d8] sm:$0xff] %vm157_vm1, %v6030_v49  ;;  %v350_v53 = vld [vmem:[#allocation2 + $0xd9] sm:$0xff] }
  0x2a   :  { %6564 = vmatprep.mubr.msk.bf16.mxu1 %vm7738_vm0, %v9994_v0  ;;  %212 = vst.msk [vmem:[#allocation2 + $0x1b0] sm:$0xff] %vm157_vm1, %v6021_v23  ;;  %v395_v28 = vpack.c.bf16 %v344_v25, %v343_v24  ;;  %218 = vst.msk [vmem:[#allocation2 + $0x1e0] sm:$0xff] %vm157_vm1, %v6033_v50  ;;  %6801 = vmatpush3.bf16.msra.mxu1 %v7716_v51  ;;  %v398_v56 = vpack.c.bf16 %v350_v53, %v349_v52  ;;  %v351_v61 = vld [vmem:[#allocation2 + $0xe1] sm:$0xff]  ;;  %v352_v62 = vld [vmem:[#allocation2 + $0xe9] sm:$0xff] }
  0x2b   :  { %6802 = vmatprep.subr.bf16.mxu1 %v9994_v0  ;;  %219 = vst.msk [vmem:[#allocation2 + $0x1e8] sm:$0xff] %vm157_vm1, %v6034_v59  ;;  %v254_v63 = vld [vmem:[#allocation2 + $0xe0] sm:$0xff]  ;;  %v399_v2 = vpack.c.bf16 %v352_v62, %v351_v61  ;;  %v353_v4 = vld [vmem:[#allocation2 + $0xf1] sm:$0xff]  ;;  %v259_v14 = vld [vmem:[#allocation2 + $0x108] sm:$0xff] }
  0x2c   :  { %v354_v5 = vld [vmem:[#allocation2 + $0xf9] sm:$0xff]  ;;  %v256_v6 = vld [vmem:[#allocation2 + $0xf0] sm:$0xff]  ;;  %v355_v11 = vld [vmem:[#allocation2 + $0x101] sm:$0xff] }
  0x2d   :  { %v400_v8 = vpack.c.bf16 %v354_v5, %v353_v4  ;;  %v303_v9 = vpack.c.bf16 %v257_v7, %v256_v6  ;;  %v258_v13 = vld [vmem:[#allocation2 + $0x100] sm:$0xff]  ;;  %v357_v17 = vld [vmem:[#allocation2 + $0x111] sm:$0xff]  ;;  %v360_v24 = vld [vmem:[#allocation2 + $0x129] sm:$0xff] }
  0x2e   :  { %v304_v16 = vpack.c.bf16 %v259_v14, %v258_v13  ;;  %v358_v18 = vld [vmem:[#allocation2 + $0x119] sm:$0xff]  ;;  %v359_v23 = vld [vmem:[#allocation2 + $0x121] sm:$0xff]  ;;  %v361_v29 = vld [vmem:[#allocation2 + $0x131] sm:$0xff] }
  0x2f   :  { %v261_v20 = vld [vmem:[#allocation2 + $0x118] sm:$0xff]  ;;  %v262_v25 = vld [vmem:[#allocation2 + $0x120] sm:$0xff]  ;;  %v263_v26 = vld [vmem:[#allocation2 + $0x128] sm:$0xff]  ;;  %v403_v27 = vpack.c.bf16 %v360_v24, %v359_v23 }
  0x30   :  { %6437 = vmatmul.mubr.msk.bf16.gmra.mrb[16].mxu0 %vm157_vm1, %v389_v37  ;;  %v396_v37 = vpack.c.bf16 %v346_v34, %v345_v33  ;;  %v264_v31 = vld [vmem:[#allocation2 + $0x130] sm:$0xff]  ;;  %v265_v32 = vld [vmem:[#allocation2 + $0x138] sm:$0xff]  ;;  %v267_v38 = vld [vmem:[#allocation2 + $0x148] sm:$0xff] }
  0x31   :  { %6565 = vmatmul.mubr.msk.bf16.gmra.mrb[16].mxu1 %vm157_vm1, %v292_v39  ;;  %6440 = vmatprep.mubr.msk.bf16.mxu0 %vm7738_vm0, %v9994_v0  ;;  %v299_v39 = vpack.c.bf16 %v249_v36, %v248_v35  ;;  %v307_v34 = vpack.c.bf16 %v265_v32, %v264_v31  ;;  %v363_v35 = vld [vmem:[#allocation2 + $0x141] sm:$0xff]  ;;  %v364_v36 = vld [vmem:[#allocation2 + $0x149] sm:$0xff]  ;;  %v365_v41 = vld [vmem:[#allocation2 + $0x151] sm:$0xff] }
  0x32   :  { %6568 = vmatprep.mubr.msk.bf16.mxu1 %vm7738_vm0, %v9994_v0  ;;  %v367_v47 = vld [vmem:[#allocation2 + $0x161] sm:$0xff]  ;;  %v369_v53 = vld [vmem:[#allocation2 + $0x171] sm:$0xff]  ;;  %v372_v61 = vld [vmem:[#allocation2 + $0x189] sm:$0xff] }
  0x33   :  { %v270_v49 = vld [vmem:[#allocation2 + $0x160] sm:$0xff]  ;;  %v271_v50 = vld [vmem:[#allocation2 + $0x168] sm:$0xff]  ;;  %v276_v5 = vld [vmem:[#allocation2 + $0x190] sm:$0xff] }
  0x34   :  { %v310_v52 = vpack.c.bf16 %v271_v50, %v270_v49  ;;  %v274_v62 = vld [vmem:[#allocation2 + $0x180] sm:$0xff]  ;;  %v277_v6 = vld [vmem:[#allocation2 + $0x198] sm:$0xff]  ;;  %v380_v32 = vld [vmem:[#allocation2 + $0x1c9] sm:$0xff] }
  0x35   :  { %v374_v4 = vld [vmem:[#allocation2 + $0x199] sm:$0xff]  ;;  %v379_v31 = vld [vmem:[#allocation2 + $0x1c1] sm:$0xff]  ;;  %v284_v49 = vld [vmem:[#allocation2 + $0x1d0] sm:$0xff] }
  0x36   :  { %v285_v50 = vld [vmem:[#allocation2 + $0x1d8] sm:$0xff] }
  0x38   :  { %6441 = vmatmul.mubr.msk.bf16.gmra.mrb[20].mxu0 %vm157_vm1, %v390_v46  ;;  %v397_v46 = vpack.c.bf16 %v348_v43, %v347_v42  ;;  %v366_v42 = vld [vmem:[#allocation2 + $0x159] sm:$0xff]  ;;  %v268_v43 = vld [vmem:[#allocation2 + $0x150] sm:$0xff] }
  0x39   :  { %6569 = vmatmul.mubr.msk.bf16.gmra.mrb[20].mxu1 %vm157_vm1, %v293_v48  ;;  %6444 = vmatprep.mubr.msk.bf16.mxu0 %vm7738_vm0, %v9994_v0  ;;  %v300_v48 = vpack.c.bf16 %v251_v45, %v250_v44  ;;  %v269_v44 = vld [vmem:[#allocation2 + $0x158] sm:$0xff]  ;;  %v406_v45 = vpack.c.bf16 %v366_v42, %v365_v41 }
  0x3a   :  { %6572 = vmatprep.mubr.msk.bf16.mxu1 %vm7738_vm0, %v9994_v0 }
  0x40   :  { %6445 = vmatmul.mubr.msk.bf16.gmra.mrb[24].mxu0 %vm157_vm1, %v391_v55  ;;  %v253_v55 = vld [vmem:[#allocation2 + $0xd8] sm:$0xff] }
  0x41   :  { %6573 = vmatmul.mubr.msk.bf16.gmra.mrb[24].mxu1 %vm157_vm1, %v294_v57  ;;  %6448 = vmatprep.mubr.msk.bf16.mxu0 %vm7738_vm0, %v9994_v0  ;;  %v8038_v57 = vld [vmem:[%s9989_s0 + $0xf8] sm:$0xff]   ;;  %v301_v58 = vpack.c.bf16 %v253_v55, %v252_v54  ;;  %v370_v54 = vld [vmem:[#allocation2 + $0x179] sm:$0xff]  ;;  %v272_v55 = vld [vmem:[#allocation2 + $0x170] sm:$0xff] }
  0x42   :  { %6576 = vmatprep.mubr.msk.bf16.mxu1 %vm7738_vm0, %v9994_v0  ;;  %v6037_v60 = vunpack.c.l.bf16 %v8038_v57 }
  0x44   :  { %220 = vst.msk [vmem:[#allocation2 + $0x1f0] sm:$0xff] %vm157_vm1, %v6037_v60  ;;  %v371_v60 = vld [vmem:[#allocation2 + $0x181] sm:$0xff] }
  0x48   :  { %6449 = vmatmul.mubr.msk.bf16.gmra.mrb[28].mxu0 %vm157_vm1, %v392_v1  ;;  %v255_v1 = vld [vmem:[#allocation2 + $0xe8] sm:$0xff] }
  0x49   :  { %6577 = vmatmul.mubr.msk.bf16.gmra.mrb[28].mxu1 %vm157_vm1, %v295_v3  ;;  %6452 = vmatprep.mubr.msk.bf16.mxu0 %vm7738_vm0, %v9994_v0  ;;  %v302_v3 = vpack.c.bf16 %v255_v1, %v254_v63  ;;  %v275_v63 = vld [vmem:[#allocation2 + $0x188] sm:$0xff]  ;;  %v409_v1 = vpack.c.bf16 %v372_v61, %v371_v60 }
  0x4a   :  { %6580 = vmatprep.mubr.msk.bf16.mxu1 %vm7738_vm0, %v9994_v0 }
  0x50   :  { %6453 = vmatmul.mubr.msk.bf16.gmra.mrb[32].mxu0 %vm157_vm1, %v393_v10  ;;  %v7717_v10 = vld [vmem:[%s9988_s1 + $0x38] sm:$0xff]  }
  0x51   :  { %6581 = vmatmul.mubr.msk.bf16.gmra.mrb[32].mxu1 %vm157_vm1, %v296_v12  ;;  %6456 = vmatprep.mubr.msk.bf16.mxu0 %vm7738_vm0, %v9994_v0  ;;  %v356_v12 = vld [vmem:[#allocation2 + $0x109] sm:$0xff] }
  0x52   :  { %6584 = vmatprep.mubr.msk.bf16.mxu1 %vm7738_vm0, %v9994_v0  ;;  %6803 = vmatpush3.bf16.msra.mxu1 %v7717_v10  ;;  %v401_v15 = vpack.c.bf16 %v356_v12, %v355_v11  ;;  %v376_v10 = vld [vmem:[#allocation2 + $0x1a9] sm:$0xff]  ;;  %v278_v11 = vld [vmem:[#allocation2 + $0x1a0] sm:$0xff] }
  0x53   :  { %7056 = vmatprep.subr.bf16.mxu1 %v9994_v0  ;;  %v279_v12 = vld [vmem:[#allocation2 + $0x1a8] sm:$0xff] }
  0x54   :  { %v314_v14 = vpack.c.bf16 %v279_v12, %v278_v11 }
  0x58   :  { %6457 = vmatmul.mubr.msk.bf16.gmra.mrb[36].mxu0 %vm157_vm1, %v394_v19  ;;  %v260_v19 = vld [vmem:[#allocation2 + $0x110] sm:$0xff] }
  0x59   :  { %6585 = vmatmul.mubr.msk.bf16.gmra.mrb[36].mxu1 %vm157_vm1, %v297_v21  ;;  %6460 = vmatprep.mubr.msk.bf16.mxu0 %vm7738_vm0, %v9994_v0  ;;  %v402_v21 = vpack.c.bf16 %v358_v18, %v357_v17  ;;  %v305_v22 = vpack.c.bf16 %v261_v20, %v260_v19  ;;  %v280_v17 = vld [vmem:[#allocation2 + $0x1b0] sm:$0xff]  ;;  %v281_v18 = vld [vmem:[#allocation2 + $0x1b8] sm:$0xff] }
  0x5a   :  { %6588 = vmatprep.mubr.msk.bf16.mxu1 %vm7738_vm0, %v9994_v0 }
  0x60   :  { %6461 = vmatmul.mubr.msk.bf16.gmra.mrb[40].mxu0 %vm157_vm1, %v395_v28  ;;  %v306_v28 = vpack.c.bf16 %v263_v26, %v262_v25  ;;  %v315_v26 = vpack.c.bf16 %v281_v18, %v280_v17  ;;  %v1192_v17 = vld [vmem:[#allocation2 + $0x2] sm:$0xff]  ;;  %v1193_v18 = vld [vmem:[#allocation2 + $0xa] sm:$0xff] }
  0x61   :  { %6589 = vmatmul.mubr.msk.bf16.gmra.mrb[40].mxu1 %vm157_vm1, %v298_v30  ;;  %6464 = vmatprep.mubr.msk.bf16.mxu0 %vm7738_vm0, %v9994_v0  ;;  %v362_v30 = vld [vmem:[#allocation2 + $0x139] sm:$0xff] }
  0x62   :  { %6592 = vmatprep.mubr.msk.bf16.mxu1 %vm7738_vm0, %v9994_v0  ;;  %v404_v33 = vpack.c.bf16 %v362_v30, %v361_v29 }
  0x68   :  { %6465 = vmatmul.mubr.msk.bf16.gmra.mrb[44].mxu0 %vm157_vm1, %v396_v37  ;;  %v266_v37 = vld [vmem:[#allocation2 + $0x140] sm:$0xff] }
  0x69   :  { %6593 = vmatmul.mubr.msk.bf16.gmra.mrb[44].mxu1 %vm157_vm1, %v299_v39  ;;  %6468 = vmatprep.mubr.msk.bf16.mxu0 %vm7738_vm0, %v9994_v0  ;;  %v405_v39 = vpack.c.bf16 %v364_v36, %v363_v35  ;;  %v308_v40 = vpack.c.bf16 %v267_v38, %v266_v37  ;;  %v413_v38 = vpack.c.bf16 %v380_v32, %v379_v31 }
  0x6a   :  { %6596 = vmatprep.mubr.msk.bf16.mxu1 %vm7738_vm0, %v9994_v0 }
  0x70   :  { %6469 = vmatmul.mubr.msk.bf16.gmra.mrb[48].mxu0 %vm157_vm1, %v397_v46  ;;  %v309_v46 = vpack.c.bf16 %v269_v44, %v268_v43 }
  0x71   :  { %6597 = vmatmul.mubr.msk.bf16.gmra.mrb[48].mxu1 %vm157_vm1, %v300_v48  ;;  %6472 = vmatprep.mubr.msk.bf16.mxu0 %vm7738_vm0, %v9994_v0  ;;  %v368_v48 = vld [vmem:[#allocation2 + $0x169] sm:$0xff] }
  0x72   :  { %6600 = vmatprep.mubr.msk.bf16.mxu1 %vm7738_vm0, %v9994_v0  ;;  %v407_v51 = vpack.c.bf16 %v368_v48, %v367_v47  ;;  %v381_v47 = vld [vmem:[#allocation2 + $0x1d1] sm:$0xff]  ;;  %v382_v48 = vld [vmem:[#allocation2 + $0x1d9] sm:$0xff] }
  0x78   :  { %6473 = vmatmul.mubr.msk.bf16.gmra.mrb[52].mxu0 %vm157_vm1, %v398_v56  ;;  %v273_v56 = vld [vmem:[#allocation2 + $0x178] sm:$0xff] }
  0x79   :  { %6601 = vmatmul.mubr.msk.bf16.gmra.mrb[52].mxu1 %vm157_vm1, %v301_v58  ;;  %6476 = vmatprep.mubr.msk.bf16.mxu0 %vm7738_vm0, %v9994_v0  ;;  %v408_v58 = vpack.c.bf16 %v370_v54, %v369_v53  ;;  %v311_v59 = vpack.c.bf16 %v273_v56, %v272_v55  ;;  %v414_v54 = vpack.c.bf16 %v382_v48, %v381_v47 }
  0x7a   :  { %6604 = vmatprep.mubr.msk.bf16.mxu1 %vm7738_vm0, %v9994_v0 }
  0x80   :  { %6477 = vmatmul.mubr.msk.bf16.gmra.mrb[56].mxu0 %vm157_vm1, %v399_v2  ;;  %v312_v2 = vpack.c.bf16 %v275_v63, %v274_v62 }
  0x81   :  { %6605 = vmatmul.mubr.msk.bf16.gmra.mrb[56].mxu1 %vm157_vm1, %v302_v3  ;;  %6480 = vmatprep.mubr.msk.bf16.mxu0 %vm7738_vm0, %v9994_v0  ;;  %v373_v3 = vld [vmem:[#allocation2 + $0x191] sm:$0xff] }
  0x82   :  { %6608 = vmatprep.mubr.msk.bf16.mxu1 %vm7738_vm0, %v9994_v0  ;;  %v410_v7 = vpack.c.bf16 %v374_v4, %v373_v3  ;;  %v286_v3 = vld [vmem:[#allocation2 + $0x1e0] sm:$0xff]  ;;  %v287_v4 = vld [vmem:[#allocation2 + $0x1e8] sm:$0xff] }
  0x83   :  { %v318_v12 = vpack.c.bf16 %v287_v4, %v286_v3 }
  0x88   :  { %6481 = vmatmul.mubr.msk.bf16.gmra.mrb[60].mxu0 %vm157_vm1, %v400_v8  ;;  %v313_v8 = vpack.c.bf16 %v277_v6, %v276_v5 }
  0x89   :  { %6609 = vmatmul.mubr.msk.bf16.gmra.mrb[60].mxu1 %vm157_vm1, %v303_v9  ;;  %6484 = vmatprep.mubr.msk.bf16.mxu0 %vm7738_vm0, %v9994_v0  ;;  %v375_v9 = vld [vmem:[#allocation2 + $0x1a1] sm:$0xff] }
  0x8a   :  { %6612 = vmatprep.mubr.msk.bf16.mxu1 %vm7738_vm0, %v9994_v0  ;;  %v411_v13 = vpack.c.bf16 %v376_v10, %v375_v9 }
  0x90   :  { %6485 = vmatmul.mubr.msk.bf16.gmra.mrb[64].mxu0 %vm157_vm1, %v401_v15  ;;  %v377_v15 = vld [vmem:[#allocation2 + $0x1b1] sm:$0xff] }
  0x91   :  { %6613 = vmatmul.mubr.msk.bf16.gmra.mrb[64].mxu1 %vm157_vm1, %v304_v16  ;;  %6488 = vmatprep.mubr.msk.bf16.mxu0 %vm7738_vm0, %v9994_v0  ;;  %v378_v16 = vld [vmem:[#allocation2 + $0x1b9] sm:$0xff] }
  0x92   :  { %6616 = vmatprep.mubr.msk.bf16.mxu1 %vm7738_vm0, %v9994_v0 }
  0x98   :  { %6489 = vmatmul.mubr.msk.bf16.gmra.mrb[68].mxu0 %vm157_vm1, %v402_v21 }
  0x99   :  { %6617 = vmatmul.mubr.msk.bf16.gmra.mrb[68].mxu1 %vm157_vm1, %v305_v22  ;;  %6492 = vmatprep.mubr.msk.bf16.mxu0 %vm7738_vm0, %v9994_v0  ;;  %v412_v22 = vpack.c.bf16 %v378_v16, %v377_v15 }
  0x9a   :  { %6620 = vmatprep.mubr.msk.bf16.mxu1 %vm7738_vm0, %v9994_v0 }
  0xa0   :  { %6493 = vmatmul.mubr.msk.bf16.gmra.mrb[72].mxu0 %vm157_vm1, %v403_v27 }
  0xa1   :  { %6621 = vmatmul.mubr.msk.bf16.gmra.mrb[72].mxu1 %vm157_vm1, %v306_v28  ;;  %6496 = vmatprep.mubr.msk.bf16.mxu0 %vm7738_vm0, %v9994_v0 }
  0xa2   :  { %6624 = vmatprep.mubr.msk.bf16.mxu1 %vm7738_vm0, %v9994_v0 }
  0xa8   :  { %6497 = vmatmul.mubr.msk.bf16.gmra.mrb[76].mxu0 %vm157_vm1, %v404_v33  ;;  %v282_v33 = vld [vmem:[#allocation2 + $0x1c0] sm:$0xff] }
  0xa9   :  { %6625 = vmatmul.mubr.msk.bf16.gmra.mrb[76].mxu1 %vm157_vm1, %v307_v34  ;;  %6500 = vmatprep.mubr.msk.bf16.mxu0 %vm7738_vm0, %v9994_v0  ;;  %v283_v34 = vld [vmem:[#allocation2 + $0x1c8] sm:$0xff] }
  0xaa   :  { %6628 = vmatprep.mubr.msk.bf16.mxu1 %vm7738_vm0, %v9994_v0  ;;  %v316_v42 = vpack.c.bf16 %v283_v34, %v282_v33 }
  0xb0   :  { %6501 = vmatmul.mubr.msk.bf16.gmra.mrb[80].mxu0 %vm157_vm1, %v405_v39 }
  0xb1   :  { %6629 = vmatmul.mubr.msk.bf16.gmra.mrb[80].mxu1 %vm157_vm1, %v308_v40  ;;  %6504 = vmatprep.mubr.msk.bf16.mxu0 %vm7738_vm0, %v9994_v0 }
  0xb2   :  { %6632 = vmatprep.mubr.msk.bf16.mxu1 %vm7738_vm0, %v9994_v0 }
  0xb8   :  { %6505 = vmatmul.mubr.msk.bf16.gmra.mrb[84].mxu0 %vm157_vm1, %v406_v45 }
  0xb9   :  { %6633 = vmatmul.mubr.msk.bf16.gmra.mrb[84].mxu1 %vm157_vm1, %v309_v46  ;;  %6508 = vmatprep.mubr.msk.bf16.mxu0 %vm7738_vm0, %v9994_v0 }
  0xba   :  { %6636 = vmatprep.mubr.msk.bf16.mxu1 %vm7738_vm0, %v9994_v0 }
  0xc0   :  { %6509 = vmatmul.mubr.msk.bf16.gmra.mrb[88].mxu0 %vm157_vm1, %v407_v51 }
  0xc1   :  { %6637 = vmatmul.mubr.msk.bf16.gmra.mrb[88].mxu1 %vm157_vm1, %v310_v52  ;;  %6512 = vmatprep.mubr.msk.bf16.mxu0 %vm7738_vm0, %v9994_v0 }
  0xc2   :  { %6640 = vmatprep.mubr.msk.bf16.mxu1 %vm7738_vm0, %v9994_v0 }
  0xc8   :  { %6513 = vmatmul.mubr.msk.bf16.gmra.mrb[92].mxu0 %vm157_vm1, %v408_v58 }
  0xc9   :  { %6641 = vmatmul.mubr.msk.bf16.gmra.mrb[92].mxu1 %vm157_vm1, %v311_v59  ;;  %6516 = vmatprep.mubr.msk.bf16.mxu0 %vm7738_vm0, %v9994_v0  ;;  %v317_v59 = vpack.c.bf16 %v285_v50, %v284_v49 }
  0xca   :  { %6644 = vmatprep.mubr.msk.bf16.mxu1 %vm7738_vm0, %v9994_v0 }
  0xd0   :  { %6517 = vmatmul.mubr.msk.bf16.gmra.mrb[96].mxu0 %vm157_vm1, %v409_v1  ;;  %v383_v1 = vld [vmem:[#allocation2 + $0x1e1] sm:$0xff] }
  0xd1   :  { %6645 = vmatmul.mubr.msk.bf16.gmra.mrb[96].mxu1 %vm157_vm1, %v312_v2  ;;  %6520 = vmatprep.mubr.msk.bf16.mxu0 %vm7738_vm0, %v9994_v0  ;;  %v384_v2 = vld [vmem:[#allocation2 + $0x1e9] sm:$0xff] }
  0xd2   :  { %6648 = vmatprep.mubr.msk.bf16.mxu1 %vm7738_vm0, %v9994_v0 }
  0xd8   :  { %6521 = vmatmul.mubr.msk.bf16.gmra.mrb[100].mxu0 %vm157_vm1, %v410_v7 }
  0xd9   :  { %6649 = vmatmul.mubr.msk.bf16.gmra.mrb[100].mxu1 %vm157_vm1, %v313_v8  ;;  %6524 = vmatprep.mubr.msk.bf16.mxu0 %vm7738_vm0, %v9994_v0  ;;  %v415_v8 = vpack.c.bf16 %v384_v2, %v383_v1 }
  0xda   :  { %6652 = vmatprep.mubr.msk.bf16.mxu1 %vm7738_vm0, %v9994_v0 }
  0xe0   :  { %6525 = vmatmul.mubr.msk.bf16.gmra.mrb[104].mxu0 %vm157_vm1, %v411_v13 }
  0xe1   :  { %6653 = vmatmul.mubr.msk.bf16.gmra.mrb[104].mxu1 %vm157_vm1, %v314_v14  ;;  %6528 = vmatprep.mubr.msk.bf16.mxu0 %vm7738_vm0, %v9994_v0 }
  0xe2   :  { %6656 = vmatprep.mubr.msk.bf16.mxu1 %vm7738_vm0, %v9994_v0 }
  0xe3   :  { %v559_v19 = vpop.f32.mrb[0].mxu0 }
  0xe4   :  { %v945_v20 = vpop.f32.mrb[0].mxu1  ;;  %v6422_v21 = vpop.f32.mrb[1].mxu0 }
  0xe5   :  { %v8131_v23 = vadd.f32 %v945_v20, %v559_v19  ;;  %v6550_v24 = vpop.f32.mrb[1].mxu1  ;;  %v562_v25 = vpop.f32.mrb[2].mxu0  ;;  %v1737_v19 = vld [vmem:[#allocation2 + $0x10] sm:$0xff]  ;;  %v1738_v20 = vld [vmem:[#allocation2 + $0x18] sm:$0xff] }
  0xe6   :  { %v948_v27 = vpop.f32.mrb[2].mxu1  ;;  %v6423_v28 = vpop.f32.mrb[3].mxu0  ;;  %v1799_v31 = vpack.c.bf16 %v1738_v20, %v1737_v19 }
  0xe7   :  { %v8133_v29 = vadd.f32 %v948_v27, %v562_v25  ;;  %v6551_v30 = vpop.f32.mrb[3].mxu1  ;;  %v1254_v25 = vpack.c.bf16 %v1193_v18, %v1192_v17 }
  0xe8   :  { %6529 = vmatmul.mubr.msk.bf16.gmra.mrb[108].mxu0 %vm157_vm1, %v412_v22  ;;  %v7718_v30 = vld [vmem:[%s9988_s1 + $0x40] sm:$0xff]  }
  0xe9   :  { %6657 = vmatmul.mubr.msk.bf16.gmra.mrb[108].mxu1 %vm157_vm1, %v315_v26  ;;  %6532 = vmatprep.mubr.msk.bf16.mxu0 %vm7738_vm0, %v9994_v0 }
  0xea   :  { %6660 = vmatprep.mubr.msk.bf16.mxu1 %vm7738_vm0, %v9994_v0 }
  0xeb   :  { %v567_v35 = vpop.f32.mrb[4].mxu0 }
  0xec   :  { %v953_v36 = vpop.f32.mrb[4].mxu1  ;;  %v6426_v37 = vpop.f32.mrb[5].mxu0 }
  0xed   :  { %v8141_v39 = vadd.f32 %v953_v36, %v567_v35  ;;  %v6554_v40 = vpop.f32.mrb[5].mxu1  ;;  %v570_v41 = vpop.f32.mrb[6].mxu0  ;;  %v1194_v36 = vld [vmem:[#allocation2 + $0x12] sm:$0xff]  ;;  %v1195_v37 = vld [vmem:[#allocation2 + $0x1a] sm:$0xff] }
  0xee   :  { %v956_v43 = vpop.f32.mrb[6].mxu1  ;;  %v6427_v44 = vpop.f32.mrb[7].mxu0  ;;  %v1739_v40 = vld [vmem:[#allocation2 + $0x20] sm:$0xff] }
  0xef   :  { %v8143_v45 = vadd.f32 %v956_v43, %v570_v41  ;;  %v6555_v46 = vpop.f32.mrb[7].mxu1  ;;  %v1740_v41 = vld [vmem:[#allocation2 + $0x28] sm:$0xff] }
  0xf0   :  { %6533 = vmatmul.mubr.msk.bf16.gmra.mrb[112].mxu0 %vm157_vm1, %v413_v38  ;;  %v7719_v38 = vld [vmem:[%s9988_s1 + $0x48] sm:$0xff]   ;;  %v1255_v46 = vpack.c.bf16 %v1195_v37, %v1194_v36  ;;  %v1800_v50 = vpack.c.bf16 %v1740_v41, %v1739_v40 }
  0xf1   :  { %6661 = vmatmul.mubr.msk.bf16.gmra.mrb[112].mxu1 %vm157_vm1, %v316_v42  ;;  %6536 = vmatprep.mubr.msk.bf16.mxu0 %vm7738_vm0, %v9994_v0  ;;  %v1746_v36 = vld [vmem:[#allocation2 + $0x58] sm:$0xff] }
  0xf2   :  { %6664 = vmatprep.mubr.msk.bf16.mxu1 %vm7738_vm0, %v9994_v0 }
  0xf3   :  { %v575_v51 = vpop.f32.mrb[8].mxu0 }
  0xf4   :  { %v961_v52 = vpop.f32.mrb[8].mxu1  ;;  %v6430_v53 = vpop.f32.mrb[9].mxu0 }
  0xf5   :  { %v8151_v55 = vadd.f32 %v961_v52, %v575_v51  ;;  %v6558_v56 = vpop.f32.mrb[9].mxu1  ;;  %v578_v58 = vpop.f32.mrb[10].mxu0 }
  0xf6   :  { %v964_v60 = vpop.f32.mrb[10].mxu1  ;;  %v6431_v61 = vpop.f32.mrb[11].mxu0  ;;  %v1196_v56 = vld [vmem:[#allocation2 + $0x22] sm:$0xff] }
  0xf7   :  { %v8153_v62 = vadd.f32 %v964_v60, %v578_v58  ;;  %v6559_v63 = vpop.f32.mrb[11].mxu1  ;;  %v1197_v58 = vld [vmem:[#allocation2 + $0x2a] sm:$0xff]  ;;  %v1742_v60 = vld [vmem:[#allocation2 + $0x38] sm:$0xff] }
  0xf8   :  { %6537 = vmatmul.mubr.msk.bf16.gmra.mrb[116].mxu0 %vm157_vm1, %v414_v54  ;;  %v1256_v2 = vpack.c.bf16 %v1197_v58, %v1196_v56  ;;  %v1747_v56 = vld [vmem:[#allocation2 + $0x60] sm:$0xff]  ;;  %v1748_v58 = vld [vmem:[#allocation2 + $0x68] sm:$0xff] }
  0xf9   :  { %6665 = vmatmul.mubr.msk.bf16.gmra.mrb[116].mxu1 %vm157_vm1, %v317_v59  ;;  %6540 = vmatprep.mubr.msk.bf16.mxu0 %vm7738_vm0, %v9994_v0  ;;  %v1741_v59 = vld [vmem:[#allocation2 + $0x30] sm:$0xff] }
  0xfa   :  { %6668 = vmatprep.mubr.msk.bf16.mxu1 %vm7738_vm0, %v9994_v0 }
  0xfb   :  { %v583_v5 = vpop.f32.mrb[12].mxu0 }
  0xfc   :  { %v969_v6 = vpop.f32.mrb[12].mxu1  ;;  %v6434_v7 = vpop.f32.mrb[13].mxu0 }
  0xfd   :  { %v8161_v9 = vadd.f32 %v969_v6, %v583_v5  ;;  %v6562_v10 = vpop.f32.mrb[13].mxu1  ;;  %v586_v11 = vpop.f32.mrb[14].mxu0  ;;  %v1801_v6 = vpack.c.bf16 %v1742_v60, %v1741_v59 }
  0xfe   :  { %v972_v13 = vpop.f32.mrb[14].mxu1  ;;  %v6435_v14 = vpop.f32.mrb[15].mxu0 }
  0xff   :  { %v8163_v15 = vadd.f32 %v972_v13, %v586_v11  ;;  %v6563_v16 = vpop.f32.mrb[15].mxu1  ;;  %v1199_v13 = vld [vmem:[#allocation2 + $0x3a] sm:$0xff] }
 0x100   :  { %6541 = vmatmul.mubr.msk.bf16.gmra.mrb[120].mxu0 %vm157_vm1, %v415_v8  ;;  %v1743_v14 = vld [vmem:[#allocation2 + $0x40] sm:$0xff]  ;;  %v1744_v16 = vld [vmem:[#allocation2 + $0x48] sm:$0xff] }
 0x101   :  { %6669 = vmatmul.mubr.msk.bf16.gmra.mrb[120].mxu1 %vm157_vm1, %v318_v12  ;;  %6676 = vmatprep.mubr.msk.bf16.mxu0 %vm7738_vm0, %v9994_v0  ;;  %v1198_v12 = vld [vmem:[#allocation2 + $0x32] sm:$0xff] }
 0x102   :  { %6804 = vmatprep.mubr.msk.bf16.mxu1 %vm7738_vm0, %v9994_v0  ;;  %v1257_v20 = vpack.c.bf16 %v1199_v13, %v1198_v12  ;;  %v1204_v12 = vld [vmem:[#allocation2 + $0x62] sm:$0xff]  ;;  %v1205_v13 = vld [vmem:[#allocation2 + $0x6a] sm:$0xff] }
 0x103   :  { %v591_v21 = vpop.f32.mrb[16].mxu0 }
 0x104   :  { %v977_v22 = vpop.f32.mrb[16].mxu1  ;;  %v6438_v24 = vpop.f32.mrb[17].mxu0 }
 0x105   :  { %v8171_v26 = vadd.f32 %v977_v22, %v591_v21  ;;  %v6566_v27 = vpop.f32.mrb[17].mxu1  ;;  %v594_v28 = vpop.f32.mrb[18].mxu0 }
 0x106   :  { %v980_v32 = vpop.f32.mrb[18].mxu1  ;;  %v6439_v33 = vpop.f32.mrb[19].mxu0 }
 0x107   :  { %v8176_v34 = vadd.f32 %v980_v32, %v594_v28  ;;  %v6567_v35 = vpop.f32.mrb[19].mxu1  ;;  %v1200_v32 = vld [vmem:[#allocation2 + $0x42] sm:$0xff]  ;;  %v1201_v33 = vld [vmem:[#allocation2 + $0x4a] sm:$0xff] }
 0x108   :  { %6677 = vmatmul.mubr.msk.bf16.vlgmr.msra.gmra.mrb[124].mxu0 %vm157_vm1, %v1254_v25  ;;  %v1802_v25 = vpack.c.bf16 %v1744_v16, %v1743_v14  ;;  %v1745_v35 = vld [vmem:[#allocation2 + $0x50] sm:$0xff]  ;;  %v1258_v41 = vpack.c.bf16 %v1201_v33, %v1200_v32  ;;  %v1750_v16 = vld [vmem:[#allocation2 + $0x78] sm:$0xff] }
 0x109   :  { %6929 = vmatpush3.bf16.msra.mxu0 %v7718_v30  ;;  %6805 = vmatmul.mubr.msk.bf16.vlgmr.msra.gmra.mrb[124].mxu1 %vm157_vm1, %v1799_v31  ;;  %v1749_v14 = vld [vmem:[#allocation2 + $0x70] sm:$0xff] }
 0x10a   :  { %6680 = vmatprep.mubr.msk.bf16.mxu0 %vm7738_vm0, %v9994_v0  ;;  %6808 = vmatprep.mubr.msk.bf16.mxu1 %vm7738_vm0, %v9994_v0 }
 0x10b   :  { %v599_v42 = vpop.f32.mrb[20].mxu0  ;;  %6930 = vmatprep.subr.bf16.mxu0 %v9994_v0 }
 0x10c   :  { %v985_v43 = vpop.f32.mrb[20].mxu1  ;;  %v6442_v44 = vpop.f32.mrb[21].mxu0 }
 0x10d   :  { %v8188_v47 = vadd.f32 %v985_v43, %v599_v42  ;;  %v6570_v48 = vpop.f32.mrb[21].mxu1  ;;  %v602_v49 = vpop.f32.mrb[22].mxu0  ;;  %6931 = vmatpush3.bf16.msra.mxu0 %v7719_v38 }
 0x10e   :  { %v988_v51 = vpop.f32.mrb[22].mxu1  ;;  %v6443_v52 = vpop.f32.mrb[23].mxu0  ;;  %7184 = vmatprep.subr.bf16.mxu0 %v9994_v0 }
 0x10f   :  { %v8191_v53 = vadd.f32 %v988_v51, %v602_v49  ;;  %v6571_v54 = vpop.f32.mrb[23].mxu1  ;;  %v1202_v52 = vld [vmem:[#allocation2 + $0x52] sm:$0xff] }
 0x110   :  { %6681 = vmatmul.mubr.msk.bf16.gmra.mrb[128].mxu0 %vm157_vm1, %v1255_v46  ;;  %v1803_v46 = vpack.c.bf16 %v1746_v36, %v1745_v35  ;;  %v1203_v54 = vld [vmem:[#allocation2 + $0x5a] sm:$0xff]  ;;  %v1206_v35 = vld [vmem:[#allocation2 + $0x72] sm:$0xff] }
 0x111   :  { %6809 = vmatmul.mubr.msk.bf16.gmra.mrb[128].mxu1 %vm157_vm1, %v1800_v50  ;;  %6684 = vmatprep.mubr.msk.bf16.mxu0 %vm7738_vm0, %v9994_v0  ;;  %v1207_v36 = vld [vmem:[#allocation2 + $0x7a] sm:$0xff] }
 0x112   :  { %6812 = vmatprep.mubr.msk.bf16.mxu1 %vm7738_vm0, %v9994_v0 }
 0x113   :  { %v607_v61 = vpop.f32.mrb[24].mxu0 }
 0x114   :  { %v993_v63 = vpop.f32.mrb[24].mxu1  ;;  %v6446_v1 = vpop.f32.mrb[25].mxu0 }
 0x115   :  { %v8199_v3 = vadd.f32 %v993_v63, %v607_v61  ;;  %v6574_v4 = vpop.f32.mrb[25].mxu1  ;;  %v610_v5 = vpop.f32.mrb[26].mxu0  ;;  %v1259_v63 = vpack.c.bf16 %v1203_v54, %v1202_v52 }
 0x116   :  { %v996_v7 = vpop.f32.mrb[26].mxu1  ;;  %v6447_v8 = vpop.f32.mrb[27].mxu0 }
 0x117   :  { %v8201_v10 = vadd.f32 %v996_v7, %v610_v5  ;;  %v6575_v11 = vpop.f32.mrb[27].mxu1  ;;  %v1804_v5 = vpack.c.bf16 %v1748_v58, %v1747_v56 }
 0x118   :  { %6685 = vmatmul.mubr.msk.bf16.gmra.mrb[132].mxu0 %vm157_vm1, %v1256_v2 }
 0x119   :  { %6813 = vmatmul.mubr.msk.bf16.gmra.mrb[132].mxu1 %vm157_vm1, %v1801_v6  ;;  %6688 = vmatprep.mubr.msk.bf16.mxu0 %vm7738_vm0, %v9994_v0 }
 0x11a   :  { %6816 = vmatprep.mubr.msk.bf16.mxu1 %vm7738_vm0, %v9994_v0 }
 0x11b   :  { %v615_v17 = vpop.f32.mrb[28].mxu0 }
 0x11c   :  { %v1001_v18 = vpop.f32.mrb[28].mxu1  ;;  %v6450_v19 = vpop.f32.mrb[29].mxu0 }
 0x11d   :  { %v8209_v21 = vadd.f32 %v1001_v18, %v615_v17  ;;  %v6578_v22 = vpop.f32.mrb[29].mxu1  ;;  %v618_v24 = vpop.f32.mrb[30].mxu0 }
 0x11e   :  { %v1004_v27 = vpop.f32.mrb[30].mxu1  ;;  %v6451_v28 = vpop.f32.mrb[31].mxu0 }
 0x11f   :  { %v8211_v30 = vadd.f32 %v1004_v27, %v618_v24  ;;  %v6579_v31 = vpop.f32.mrb[31].mxu1  ;;  %v1805_v27 = vpack.c.bf16 %v1750_v16, %v1749_v14 }
 0x120   :  { %6689 = vmatmul.mubr.msk.bf16.gmra.mrb[136].mxu0 %vm157_vm1, %v1257_v20  ;;  %v1260_v20 = vpack.c.bf16 %v1205_v13, %v1204_v12 }
 0x121   :  { %6817 = vmatmul.mubr.msk.bf16.gmra.mrb[136].mxu1 %vm157_vm1, %v1802_v25  ;;  %6692 = vmatprep.mubr.msk.bf16.mxu0 %vm7738_vm0, %v9994_v0 }
 0x122   :  { %6820 = vmatprep.mubr.msk.bf16.mxu1 %vm7738_vm0, %v9994_v0 }
 0x123   :  { %v623_v37 = vpop.f32.mrb[32].mxu0 }
 0x124   :  { %v1009_v38 = vpop.f32.mrb[32].mxu1  ;;  %v6454_v40 = vpop.f32.mrb[33].mxu0 }
 0x125   :  { %v8219_v42 = vadd.f32 %v1009_v38, %v623_v37  ;;  %v6582_v43 = vpop.f32.mrb[33].mxu1  ;;  %v626_v44 = vpop.f32.mrb[34].mxu0  ;;  %v1751_v37 = vld [vmem:[#allocation2 + $0x80] sm:$0xff]  ;;  %v1752_v38 = vld [vmem:[#allocation2 + $0x88] sm:$0xff] }
 0x126   :  { %v1012_v48 = vpop.f32.mrb[34].mxu1  ;;  %v6455_v49 = vpop.f32.mrb[35].mxu0 }
 0x127   :  { %v8221_v50 = vadd.f32 %v1012_v48, %v626_v44  ;;  %v6583_v51 = vpop.f32.mrb[35].mxu1  ;;  %v1261_v44 = vpack.c.bf16 %v1207_v36, %v1206_v35 }
 0x128   :  { %6693 = vmatmul.mubr.msk.bf16.gmra.mrb[140].mxu0 %vm157_vm1, %v1258_v41  ;;  %v1806_v51 = vpack.c.bf16 %v1752_v38, %v1751_v37 }
 0x129   :  { %6821 = vmatmul.mubr.msk.bf16.gmra.mrb[140].mxu1 %vm157_vm1, %v1803_v46  ;;  %6696 = vmatprep.mubr.msk.bf16.mxu0 %vm7738_vm0, %v9994_v0 }
 0x12a   :  { %6824 = vmatprep.mubr.msk.bf16.mxu1 %vm7738_vm0, %v9994_v0 }
 0x12b   :  { %v631_v59 = vpop.f32.mrb[36].mxu0 }
 0x12c   :  { %v1017_v60 = vpop.f32.mrb[36].mxu1  ;;  %v6458_v61 = vpop.f32.mrb[37].mxu0 }
 0x12d   :  { %v8229_v1 = vadd.f32 %v1017_v60, %v631_v59  ;;  %v6586_v2 = vpop.f32.mrb[37].mxu1  ;;  %v634_v4 = vpop.f32.mrb[38].mxu0  ;;  %v1208_v59 = vld [vmem:[#allocation2 + $0x82] sm:$0xff]  ;;  %v1209_v60 = vld [vmem:[#allocation2 + $0x8a] sm:$0xff] }
 0x12e   :  { %v1020_v6 = vpop.f32.mrb[38].mxu1  ;;  %v6459_v7 = vpop.f32.mrb[39].mxu0  ;;  %v1753_v61 = vld [vmem:[#allocation2 + $0x90] sm:$0xff] }
 0x12f   :  { %v8231_v8 = vadd.f32 %v1020_v6, %v634_v4  ;;  %v6587_v11 = vpop.f32.mrb[39].mxu1  ;;  %v1262_v6 = vpack.c.bf16 %v1209_v60, %v1208_v59 }
 0x130   :  { %6697 = vmatmul.mubr.msk.bf16.gmra.mrb[144].mxu0 %vm157_vm1, %v1259_v63  ;;  %v1754_v63 = vld [vmem:[#allocation2 + $0x98] sm:$0xff] }
 0x131   :  { %6825 = vmatmul.mubr.msk.bf16.gmra.mrb[144].mxu1 %vm157_vm1, %v1804_v5  ;;  %6700 = vmatprep.mubr.msk.bf16.mxu0 %vm7738_vm0, %v9994_v0  ;;  %v1807_v13 = vpack.c.bf16 %v1754_v63, %v1753_v61 }
 0x132   :  { %6828 = vmatprep.mubr.msk.bf16.mxu1 %vm7738_vm0, %v9994_v0 }
 0x133   :  { %v639_v17 = vpop.f32.mrb[40].mxu0 }
 0x134   :  { %v1025_v18 = vpop.f32.mrb[40].mxu1  ;;  %v6462_v19 = vpop.f32.mrb[41].mxu0 }
 0x135   :  { %v8239_v22 = vadd.f32 %v1025_v18, %v639_v17  ;;  %v6590_v24 = vpop.f32.mrb[41].mxu1  ;;  %v642_v25 = vpop.f32.mrb[42].mxu0  ;;  %v1210_v19 = vld [vmem:[#allocation2 + $0x92] sm:$0xff] }
 0x136   :  { %v1028_v28 = vpop.f32.mrb[42].mxu1  ;;  %v6463_v31 = vpop.f32.mrb[43].mxu0  ;;  %v1755_v24 = vld [vmem:[#allocation2 + $0xa0] sm:$0xff] }
 0x137   :  { %v8241_v32 = vadd.f32 %v1028_v28, %v642_v25  ;;  %v6591_v33 = vpop.f32.mrb[43].mxu1  ;;  %v1756_v25 = vld [vmem:[#allocation2 + $0xa8] sm:$0xff] }
 0x138   :  { %6701 = vmatmul.mubr.msk.bf16.gmra.mrb[148].mxu0 %vm157_vm1, %v1260_v20  ;;  %v1211_v20 = vld [vmem:[#allocation2 + $0x9a] sm:$0xff]  ;;  %v1808_v38 = vpack.c.bf16 %v1756_v25, %v1755_v24 }
 0x139   :  { %6829 = vmatmul.mubr.msk.bf16.gmra.mrb[148].mxu1 %vm157_vm1, %v1805_v27  ;;  %6704 = vmatprep.mubr.msk.bf16.mxu0 %vm7738_vm0, %v9994_v0  ;;  %v1263_v33 = vpack.c.bf16 %v1211_v20, %v1210_v19 }
 0x13a   :  { %6832 = vmatprep.mubr.msk.bf16.mxu1 %vm7738_vm0, %v9994_v0 }
 0x13b   :  { %v647_v40 = vpop.f32.mrb[44].mxu0 }
 0x13c   :  { %v1033_v41 = vpop.f32.mrb[44].mxu1  ;;  %v6466_v43 = vpop.f32.mrb[45].mxu0 }
 0x13d   :  { %v8249_v46 = vadd.f32 %v1033_v41, %v647_v40  ;;  %v6594_v48 = vpop.f32.mrb[45].mxu1  ;;  %v650_v49 = vpop.f32.mrb[46].mxu0 }
 0x13e   :  { %v1036_v52 = vpop.f32.mrb[46].mxu1  ;;  %v6467_v54 = vpop.f32.mrb[47].mxu0  ;;  %v1212_v48 = vld [vmem:[#allocation2 + $0xa2] sm:$0xff] }
 0x13f   :  { %v8251_v56 = vadd.f32 %v1036_v52, %v650_v49  ;;  %v6595_v58 = vpop.f32.mrb[47].mxu1  ;;  %v1213_v49 = vld [vmem:[#allocation2 + $0xaa] sm:$0xff]  ;;  %v1758_v52 = vld [vmem:[#allocation2 + $0xb8] sm:$0xff] }
 0x140   :  { %6705 = vmatmul.mubr.msk.bf16.gmra.mrb[152].mxu0 %vm157_vm1, %v1261_v44  ;;  %v1264_v60 = vpack.c.bf16 %v1213_v49, %v1212_v48  ;;  %v1761_v48 = vld [vmem:[#allocation2 + $0xd0] sm:$0xff]  ;;  %v1762_v49 = vld [vmem:[#allocation2 + $0xd8] sm:$0xff] }
 0x141   :  { %6833 = vmatmul.mubr.msk.bf16.gmra.mrb[152].mxu1 %vm157_vm1, %v1806_v51  ;;  %6708 = vmatprep.mubr.msk.bf16.mxu0 %vm7738_vm0, %v9994_v0  ;;  %v1757_v51 = vld [vmem:[#allocation2 + $0xb0] sm:$0xff] }
 0x142   :  { %6836 = vmatprep.mubr.msk.bf16.mxu1 %vm7738_vm0, %v9994_v0 }
 0x143   :  { %v655_v2 = vpop.f32.mrb[48].mxu0 }
 0x144   :  { %v1041_v4 = vpop.f32.mrb[48].mxu1  ;;  %v6470_v5 = vpop.f32.mrb[49].mxu0 }
 0x145   :  { %v8259_v7 = vadd.f32 %v1041_v4, %v655_v2  ;;  %v6598_v11 = vpop.f32.mrb[49].mxu1  ;;  %v658_v12 = vpop.f32.mrb[50].mxu0  ;;  %v1809_v4 = vpack.c.bf16 %v1758_v52, %v1757_v51 }
 0x146   :  { %v1044_v14 = vpop.f32.mrb[50].mxu1  ;;  %v6471_v16 = vpop.f32.mrb[51].mxu0 }
 0x147   :  { %v8261_v17 = vadd.f32 %v1044_v14, %v658_v12  ;;  %v6599_v18 = vpop.f32.mrb[51].mxu1  ;;  %v1215_v14 = vld [vmem:[#allocation2 + $0xba] sm:$0xff] }
 0x148   :  { %6709 = vmatmul.mubr.msk.bf16.gmra.mrb[156].mxu0 %vm157_vm1, %v1262_v6  ;;  %v1759_v16 = vld [vmem:[#allocation2 + $0xc0] sm:$0xff]  ;;  %v1760_v18 = vld [vmem:[#allocation2 + $0xc8] sm:$0xff] }
 0x149   :  { %6837 = vmatmul.mubr.msk.bf16.gmra.mrb[156].mxu1 %vm157_vm1, %v1807_v13  ;;  %6712 = vmatprep.mubr.msk.bf16.mxu0 %vm7738_vm0, %v9994_v0  ;;  %v1214_v13 = vld [vmem:[#allocation2 + $0xb2] sm:$0xff] }
 0x14a   :  { %6840 = vmatprep.mubr.msk.bf16.mxu1 %vm7738_vm0, %v9994_v0  ;;  %v1265_v25 = vpack.c.bf16 %v1215_v14, %v1214_v13  ;;  %v1218_v14 = vld [vmem:[#allocation2 + $0xd2] sm:$0xff] }
 0x14b   :  { %v663_v27 = vpop.f32.mrb[52].mxu0 }
 0x14c   :  { %v1049_v28 = vpop.f32.mrb[52].mxu1  ;;  %v6474_v31 = vpop.f32.mrb[53].mxu0 }
 0x14d   :  { %v8269_v35 = vadd.f32 %v1049_v28, %v663_v27  ;;  %v6602_v36 = vpop.f32.mrb[53].mxu1  ;;  %v666_v37 = vpop.f32.mrb[54].mxu0 }
 0x14e   :  { %v1052_v40 = vpop.f32.mrb[54].mxu1  ;;  %v6475_v41 = vpop.f32.mrb[55].mxu0 }
 0x14f   :  { %v8271_v43 = vadd.f32 %v1052_v40, %v666_v37  ;;  %v6603_v44 = vpop.f32.mrb[55].mxu1  ;;  %v1216_v41 = vld [vmem:[#allocation2 + $0xc2] sm:$0xff] }
 0x150   :  { %6713 = vmatmul.mubr.msk.bf16.gmra.mrb[160].mxu0 %vm157_vm1, %v1263_v33  ;;  %v1810_v33 = vpack.c.bf16 %v1760_v18, %v1759_v16  ;;  %v1217_v44 = vld [vmem:[#allocation2 + $0xca] sm:$0xff]  ;;  %v1219_v16 = vld [vmem:[#allocation2 + $0xda] sm:$0xff] }
 0x151   :  { %6841 = vmatmul.mubr.msk.bf16.gmra.mrb[160].mxu1 %vm157_vm1, %v1808_v38  ;;  %6716 = vmatprep.mubr.msk.bf16.mxu0 %vm7738_vm0, %v9994_v0  ;;  %v1763_v18 = vld [vmem:[#allocation2 + $0xe0] sm:$0xff] }
 0x152   :  { %6844 = vmatprep.mubr.msk.bf16.mxu1 %vm7738_vm0, %v9994_v0 }
 0x153   :  { %v671_v54 = vpop.f32.mrb[56].mxu0 }
 0x154   :  { %v1057_v58 = vpop.f32.mrb[56].mxu1  ;;  %v6478_v59 = vpop.f32.mrb[57].mxu0 }
 0x155   :  { %v8279_v61 = vadd.f32 %v1057_v58, %v671_v54  ;;  %v6606_v63 = vpop.f32.mrb[57].mxu1  ;;  %v674_v2 = vpop.f32.mrb[58].mxu0  ;;  %v1266_v58 = vpack.c.bf16 %v1217_v44, %v1216_v41 }
 0x156   :  { %v1060_v5 = vpop.f32.mrb[58].mxu1  ;;  %v6479_v6 = vpop.f32.mrb[59].mxu0 }
 0x157   :  { %v8281_v11 = vadd.f32 %v1060_v5, %v674_v2  ;;  %v6607_v12 = vpop.f32.mrb[59].mxu1  ;;  %v1811_v2 = vpack.c.bf16 %v1762_v49, %v1761_v48  ;;  %v7720_v6 = vld [vmem:[%s9988_s1 + $0x50] sm:$0xff]   ;;  %v6038_v49 = vunpack.c.h.bf16 %v8038_v57 }
 0x158   :  { %6717 = vmatmul.mubr.msk.bf16.gmra.mrb[164].mxu0 %vm157_vm1, %v1264_v60  ;;  %7057 = vmatpush3.bf16.msra.mxu1 %v7720_v6 }
 0x159   :  { %6845 = vmatmul.mubr.msk.bf16.gmra.mrb[164].mxu1 %vm157_vm1, %v1809_v4  ;;  %6720 = vmatprep.mubr.msk.bf16.mxu0 %vm7738_vm0, %v9994_v0  ;;  %221 = vst.msk [vmem:[#allocation2 + $0x1f8] sm:$0xff] %vm157_vm1, %v6038_v49 }
 0x15a   :  { %6848 = vmatprep.mubr.msk.bf16.mxu1 %vm7738_vm0, %v9994_v0  ;;  %7058 = vmatprep.subr.bf16.mxu1 %v9994_v0 }
 0x15b   :  { %v679_v19 = vpop.f32.mrb[60].mxu0 }
 0x15c   :  { %v1065_v20 = vpop.f32.mrb[60].mxu1  ;;  %v6482_v24 = vpop.f32.mrb[61].mxu0 }
 0x15d   :  { %v8289_v27 = vadd.f32 %v1065_v20, %v679_v19  ;;  %v6610_v28 = vpop.f32.mrb[61].mxu1  ;;  %v682_v31 = vpop.f32.mrb[62].mxu0  ;;  %v1764_v19 = vld [vmem:[#allocation2 + $0xe8] sm:$0xff] }
 0x15e   :  { %v1068_v36 = vpop.f32.mrb[62].mxu1  ;;  %v6483_v37 = vpop.f32.mrb[63].mxu0  ;;  %v1267_v28 = vpack.c.bf16 %v1219_v16, %v1218_v14 }
 0x15f   :  { %v8291_v38 = vadd.f32 %v1068_v36, %v682_v31  ;;  %v6611_v40 = vpop.f32.mrb[63].mxu1  ;;  %v1812_v37 = vpack.c.bf16 %v1764_v19, %v1763_v18 }
 0x160   :  { %6721 = vmatmul.mubr.msk.bf16.gmra.mrb[168].mxu0 %vm157_vm1, %v1265_v25 }
 0x161   :  { %6849 = vmatmul.mubr.msk.bf16.gmra.mrb[168].mxu1 %vm157_vm1, %v1810_v33  ;;  %6724 = vmatprep.mubr.msk.bf16.mxu0 %vm7738_vm0, %v9994_v0 }
 0x162   :  { %6852 = vmatprep.mubr.msk.bf16.mxu1 %vm7738_vm0, %v9994_v0 }
 0x163   :  { %v687_v51 = vpop.f32.mrb[64].mxu0 }
 0x164   :  { %v1073_v52 = vpop.f32.mrb[64].mxu1  ;;  %v6486_v54 = vpop.f32.mrb[65].mxu0 }
 0x165   :  { %v8299_v59 = vadd.f32 %v1073_v52, %v687_v51  ;;  %v6614_v60 = vpop.f32.mrb[65].mxu1  ;;  %v690_v63 = vpop.f32.mrb[66].mxu0  ;;  %v1220_v51 = vld [vmem:[#allocation2 + $0xe2] sm:$0xff]  ;;  %v1221_v52 = vld [vmem:[#allocation2 + $0xea] sm:$0xff] }
 0x166   :  { %v1076_v4 = vpop.f32.mrb[66].mxu1  ;;  %v6487_v5 = vpop.f32.mrb[67].mxu0  ;;  %v1765_v54 = vld [vmem:[#allocation2 + $0xf0] sm:$0xff]  ;;  %v1268_v57 = vpack.c.bf16 %v1221_v52, %v1220_v51 }
 0x167   :  { %v8304_v12 = vadd.f32 %v1076_v4, %v690_v63  ;;  %v6615_v13 = vpop.f32.mrb[67].mxu1 }
 0x168   :  { %6725 = vmatmul.mubr.msk.bf16.gmra.mrb[172].mxu0 %vm157_vm1, %v1266_v58  ;;  %v1766_v58 = vld [vmem:[#allocation2 + $0xf8] sm:$0xff] }
 0x169   :  { %6853 = vmatmul.mubr.msk.bf16.gmra.mrb[172].mxu1 %vm157_vm1, %v1811_v2  ;;  %6728 = vmatprep.mubr.msk.bf16.mxu0 %vm7738_vm0, %v9994_v0  ;;  %v1813_v13 = vpack.c.bf16 %v1766_v58, %v1765_v54  ;;  %v7721_v58 = vld [vmem:[%s9988_s1 + $0x58] sm:$0xff]  }
 0x16a   :  { %6856 = vmatprep.mubr.msk.bf16.mxu1 %vm7738_vm0, %v9994_v0  ;;  %7059 = vmatpush3.bf16.msra.mxu1 %v7721_v58 }
 0x16b   :  { %v695_v20 = vpop.f32.mrb[68].mxu0  ;;  %7312 = vmatprep.subr.bf16.mxu1 %v9994_v0 }
 0x16c   :  { %v1081_v24 = vpop.f32.mrb[68].mxu1  ;;  %v6490_v25 = vpop.f32.mrb[69].mxu0 }
 0x16d   :  { %v8313_v31 = vadd.f32 %v1081_v24, %v695_v20  ;;  %v6618_v33 = vpop.f32.mrb[69].mxu1  ;;  %v698_v36 = vpop.f32.mrb[70].mxu0  ;;  %v1222_v20 = vld [vmem:[#allocation2 + $0xf2] sm:$0xff]  ;;  %v1223_v24 = vld [vmem:[#allocation2 + $0xfa] sm:$0xff] }
 0x16e   :  { %v1084_v40 = vpop.f32.mrb[70].mxu1  ;;  %v6491_v41 = vpop.f32.mrb[71].mxu0  ;;  %v1767_v25 = vld [vmem:[#allocation2 + $0x100] sm:$0xff] }
 0x16f   :  { %v8315_v44 = vadd.f32 %v1084_v40, %v698_v36  ;;  %v6619_v48 = vpop.f32.mrb[71].mxu1  ;;  %v1269_v40 = vpack.c.bf16 %v1223_v24, %v1222_v20 }
 0x170   :  { %6729 = vmatmul.mubr.msk.bf16.gmra.mrb[176].mxu0 %vm157_vm1, %v1267_v28  ;;  %v1768_v28 = vld [vmem:[#allocation2 + $0x108] sm:$0xff] }
 0x171   :  { %6857 = vmatmul.mubr.msk.bf16.gmra.mrb[176].mxu1 %vm157_vm1, %v1812_v37  ;;  %6732 = vmatprep.mubr.msk.bf16.mxu0 %vm7738_vm0, %v9994_v0  ;;  %v1814_v51 = vpack.c.bf16 %v1768_v28, %v1767_v25 }
 0x172   :  { %6860 = vmatprep.mubr.msk.bf16.mxu1 %vm7738_vm0, %v9994_v0 }
 0x173   :  { %v703_v60 = vpop.f32.mrb[72].mxu0 }
 0x174   :  { %v1089_v63 = vpop.f32.mrb[72].mxu1  ;;  %v6494_v2 = vpop.f32.mrb[73].mxu0 }
 0x175   :  { %v8325_v4 = vadd.f32 %v1089_v63, %v703_v60  ;;  %v6622_v5 = vpop.f32.mrb[73].mxu1  ;;  %v706_v6 = vpop.f32.mrb[74].mxu0  ;;  %v1224_v2 = vld [vmem:[#allocation2 + $0x102] sm:$0xff] }
 0x176   :  { %v1092_v14 = vpop.f32.mrb[74].mxu1  ;;  %v6495_v16 = vpop.f32.mrb[75].mxu0  ;;  %v1769_v5 = vld [vmem:[#allocation2 + $0x110] sm:$0xff] }
 0x177   :  { %v8327_v18 = vadd.f32 %v1092_v14, %v706_v6  ;;  %v6623_v19 = vpop.f32.mrb[75].mxu1  ;;  %v1770_v6 = vld [vmem:[#allocation2 + $0x118] sm:$0xff] }
 0x178   :  { %6733 = vmatmul.mubr.msk.bf16.gmra.mrb[180].mxu0 %vm157_vm1, %v1268_v57  ;;  %v1225_v57 = vld [vmem:[#allocation2 + $0x10a] sm:$0xff]  ;;  %v1815_v28 = vpack.c.bf16 %v1770_v6, %v1769_v5 }
 0x179   :  { %6861 = vmatmul.mubr.msk.bf16.gmra.mrb[180].mxu1 %vm157_vm1, %v1813_v13  ;;  %6736 = vmatprep.mubr.msk.bf16.mxu0 %vm7738_vm0, %v9994_v0  ;;  %v1270_v19 = vpack.c.bf16 %v1225_v57, %v1224_v2 }
 0x17a   :  { %6864 = vmatprep.mubr.msk.bf16.mxu1 %vm7738_vm0, %v9994_v0 }
 0x17b   :  { %v711_v33 = vpop.f32.mrb[76].mxu0 }
 0x17c   :  { %v1097_v36 = vpop.f32.mrb[76].mxu1  ;;  %v6498_v37 = vpop.f32.mrb[77].mxu0 }
 0x17d   :  { %v8335_v41 = vadd.f32 %v1097_v36, %v711_v33  ;;  %v6626_v48 = vpop.f32.mrb[77].mxu1  ;;  %v714_v49 = vpop.f32.mrb[78].mxu0 }
 0x17e   :  { %v1100_v52 = vpop.f32.mrb[78].mxu1  ;;  %v6499_v54 = vpop.f32.mrb[79].mxu0  ;;  %v1226_v48 = vld [vmem:[#allocation2 + $0x112] sm:$0xff] }
 0x17f   :  { %v8340_v60 = vadd.f32 %v1100_v52, %v714_v49  ;;  %v6627_v63 = vpop.f32.mrb[79].mxu1  ;;  %v1227_v49 = vld [vmem:[#allocation2 + $0x11a] sm:$0xff]  ;;  %v1772_v52 = vld [vmem:[#allocation2 + $0x128] sm:$0xff] }
 0x180   :  { %6737 = vmatmul.mubr.msk.bf16.gmra.mrb[184].mxu0 %vm157_vm1, %v1269_v40  ;;  %v1271_v2 = vpack.c.bf16 %v1227_v49, %v1226_v48 }
 0x181   :  { %6865 = vmatmul.mubr.msk.bf16.gmra.mrb[184].mxu1 %vm157_vm1, %v1814_v51  ;;  %6740 = vmatprep.mubr.msk.bf16.mxu0 %vm7738_vm0, %v9994_v0  ;;  %v1771_v51 = vld [vmem:[#allocation2 + $0x120] sm:$0xff] }
 0x182   :  { %6868 = vmatprep.mubr.msk.bf16.mxu1 %vm7738_vm0, %v9994_v0 }
 0x183   :  { %v719_v13 = vpop.f32.mrb[80].mxu0 }
 0x184   :  { %v1105_v14 = vpop.f32.mrb[80].mxu1  ;;  %v6502_v16 = vpop.f32.mrb[81].mxu0 }
 0x185   :  { %v8349_v20 = vadd.f32 %v1105_v14, %v719_v13  ;;  %v6630_v24 = vpop.f32.mrb[81].mxu1  ;;  %v722_v25 = vpop.f32.mrb[82].mxu0  ;;  %v1816_v13 = vpack.c.bf16 %v1772_v52, %v1771_v51 }
 0x186   :  { %v1108_v33 = vpop.f32.mrb[82].mxu1  ;;  %v6503_v36 = vpop.f32.mrb[83].mxu0 }
 0x187   :  { %v8351_v37 = vadd.f32 %v1108_v33, %v722_v25  ;;  %v6631_v40 = vpop.f32.mrb[83].mxu1  ;;  %v1228_v25 = vld [vmem:[#allocation2 + $0x122] sm:$0xff]  ;;  %v1773_v33 = vld [vmem:[#allocation2 + $0x130] sm:$0xff]  ;;  %v1774_v36 = vld [vmem:[#allocation2 + $0x138] sm:$0xff] }
 0x188   :  { %6741 = vmatmul.mubr.msk.bf16.gmra.mrb[188].mxu0 %vm157_vm1, %v1270_v19 }
 0x189   :  { %6869 = vmatmul.mubr.msk.bf16.gmra.mrb[188].mxu1 %vm157_vm1, %v1815_v28  ;;  %6744 = vmatprep.mubr.msk.bf16.mxu0 %vm7738_vm0, %v9994_v0  ;;  %v1229_v28 = vld [vmem:[#allocation2 + $0x12a] sm:$0xff] }
 0x18a   :  { %6872 = vmatprep.mubr.msk.bf16.mxu1 %vm7738_vm0, %v9994_v0  ;;  %v1272_v51 = vpack.c.bf16 %v1229_v28, %v1228_v25  ;;  %v1776_v25 = vld [vmem:[#allocation2 + $0x148] sm:$0xff] }
 0x18b   :  { %v727_v54 = vpop.f32.mrb[84].mxu0 }
 0x18c   :  { %v1113_v58 = vpop.f32.mrb[84].mxu1  ;;  %v6506_v63 = vpop.f32.mrb[85].mxu0 }
 0x18d   :  { %v8359_v57 = vadd.f32 %v1113_v58, %v727_v54  ;;  %v6634_v5 = vpop.f32.mrb[85].mxu1  ;;  %v730_v6 = vpop.f32.mrb[86].mxu0  ;;  %v1817_v63 = vpack.c.bf16 %v1774_v36, %v1773_v33 }
 0x18e   :  { %v1116_v14 = vpop.f32.mrb[86].mxu1  ;;  %v6507_v16 = vpop.f32.mrb[87].mxu0 }
 0x18f   :  { %v8361_v19 = vadd.f32 %v1116_v14, %v730_v6  ;;  %v6635_v24 = vpop.f32.mrb[87].mxu1  ;;  %v1230_v14 = vld [vmem:[#allocation2 + $0x132] sm:$0xff]  ;;  %v1231_v16 = vld [vmem:[#allocation2 + $0x13a] sm:$0xff] }
 0x190   :  { %6745 = vmatmul.mubr.msk.bf16.gmra.mrb[192].mxu0 %vm157_vm1, %v1271_v2  ;;  %v1775_v24 = vld [vmem:[#allocation2 + $0x140] sm:$0xff] }
 0x191   :  { %6873 = vmatmul.mubr.msk.bf16.gmra.mrb[192].mxu1 %vm157_vm1, %v1816_v13  ;;  %6748 = vmatprep.mubr.msk.bf16.mxu0 %vm7738_vm0, %v9994_v0 }
 0x192   :  { %6876 = vmatprep.mubr.msk.bf16.mxu1 %vm7738_vm0, %v9994_v0 }
 0x193   :  { %v735_v40 = vpop.f32.mrb[88].mxu0 }
 0x194   :  { %v1121_v48 = vpop.f32.mrb[88].mxu1  ;;  %v6510_v49 = vpop.f32.mrb[89].mxu0 }
 0x195   :  { %v8369_v52 = vadd.f32 %v1121_v48, %v735_v40  ;;  %v6638_v54 = vpop.f32.mrb[89].mxu1  ;;  %v738_v58 = vpop.f32.mrb[90].mxu0  ;;  %v1273_v40 = vpack.c.bf16 %v1231_v16, %v1230_v14  ;;  %v1777_v14 = vld [vmem:[#allocation2 + $0x150] sm:$0xff]  ;;  %v1778_v16 = vld [vmem:[#allocation2 + $0x158] sm:$0xff] }
 0x196   :  { %v1124_v2 = vpop.f32.mrb[90].mxu1  ;;  %v6511_v5 = vpop.f32.mrb[91].mxu0  ;;  %v1818_v54 = vpack.c.bf16 %v1776_v25, %v1775_v24 }
 0x197   :  { %v8371_v6 = vadd.f32 %v1124_v2, %v738_v58  ;;  %v6639_v13 = vpop.f32.mrb[91].mxu1 }
 0x198   :  { %6749 = vmatmul.mubr.msk.bf16.gmra.mrb[196].mxu0 %vm157_vm1, %v1272_v51  ;;  %v1232_v13 = vld [vmem:[#allocation2 + $0x142] sm:$0xff] }
 0x199   :  { %9996 = vst [vmem:[#allocation3_spill] sm:$0xff] %v8371_v6  ;;  %6877 = vmatmul.mubr.msk.bf16.gmra.mrb[196].mxu1 %vm157_vm1, %v1817_v63  ;;  %6752 = vmatprep.mubr.msk.bf16.mxu0 %vm7738_vm0, %v9994_v0 }
 0x19a   :  { %6880 = vmatprep.mubr.msk.bf16.mxu1 %vm7738_vm0, %v9994_v0 }
 0x19b   :  { %v743_v28 = vpop.f32.mrb[92].mxu0 }
 0x19c   :  { %v1129_v33 = vpop.f32.mrb[92].mxu1  ;;  %v6514_v36 = vpop.f32.mrb[93].mxu0 }
 0x19d   :  { %v8379_v48 = vadd.f32 %v1129_v33, %v743_v28  ;;  %v6642_v49 = vpop.f32.mrb[93].mxu1  ;;  %v746_v51 = vpop.f32.mrb[94].mxu0  ;;  %v1233_v36 = vld [vmem:[#allocation2 + $0x14a] sm:$0xff] }
 0x19e   :  { %v1132_v58 = vpop.f32.mrb[94].mxu1  ;;  %v6515_v63 = vpop.f32.mrb[95].mxu0  ;;  %v1274_v33 = vpack.c.bf16 %v1233_v36, %v1232_v13  ;;  %v1779_v13 = vld [vmem:[#allocation2 + $0x160] sm:$0xff]  ;;  %v1780_v36 = vld [vmem:[#allocation2 + $0x168] sm:$0xff] }
 0x19f   :  { %9997 = vst [vmem:[#allocation4_spill] sm:$0xff] %v8379_v48  ;;  %v8381_v2 = vadd.f32 %v1132_v58, %v746_v51  ;;  %v6643_v5 = vpop.f32.mrb[95].mxu1  ;;  %v1819_v58 = vpack.c.bf16 %v1778_v16, %v1777_v14  ;;  %v1234_v48 = vld [vmem:[#allocation2 + $0x152] sm:$0xff] }
 0x1a0   :  { %6753 = vmatmul.mubr.msk.bf16.gmra.mrb[200].mxu0 %vm157_vm1, %v1273_v40 }
 0x1a1   :  { %9998 = vst [vmem:[#allocation5_spill] sm:$0xff] %v8381_v2  ;;  %6881 = vmatmul.mubr.msk.bf16.gmra.mrb[200].mxu1 %vm157_vm1, %v1818_v54  ;;  %6756 = vmatprep.mubr.msk.bf16.mxu0 %vm7738_vm0, %v9994_v0 }
 0x1a2   :  { %6884 = vmatprep.mubr.msk.bf16.mxu1 %vm7738_vm0, %v9994_v0 }
 0x1a3   :  { %v751_v24 = vpop.f32.mrb[96].mxu0 }
 0x1a4   :  { %v1137_v25 = vpop.f32.mrb[96].mxu1  ;;  %v6518_v28 = vpop.f32.mrb[97].mxu0 }
 0x1a5   :  { %v8389_v49 = vadd.f32 %v1137_v25, %v751_v24  ;;  %v6646_v51 = vpop.f32.mrb[97].mxu1  ;;  %v754_v40 = vpop.f32.mrb[98].mxu0  ;;  %v1235_v28 = vld [vmem:[#allocation2 + $0x15a] sm:$0xff] }
 0x1a6   :  { %v1140_v54 = vpop.f32.mrb[98].mxu1  ;;  %v6519_v63 = vpop.f32.mrb[99].mxu0  ;;  %v1275_v25 = vpack.c.bf16 %v1235_v28, %v1234_v48  ;;  %v1781_v48 = vld [vmem:[#allocation2 + $0x170] sm:$0xff]  ;;  %v1782_v28 = vld [vmem:[#allocation2 + $0x178] sm:$0xff] }
 0x1a7   :  { %9999 = vst [vmem:[#allocation6_spill] sm:$0xff] %v8389_v49  ;;  %v8391_v5 = vadd.f32 %v1140_v54, %v754_v40  ;;  %v6647_v2 = vpop.f32.mrb[99].mxu1  ;;  %v1820_v40 = vpack.c.bf16 %v1780_v36, %v1779_v13  ;;  %v1236_v49 = vld [vmem:[#allocation2 + $0x162] sm:$0xff] }
 0x1a8   :  { %6757 = vmatmul.mubr.msk.bf16.gmra.mrb[204].mxu0 %vm157_vm1, %v1274_v33 }
 0x1a9   :  { %10000 = vst [vmem:[#allocation7_spill] sm:$0xff] %v8391_v5  ;;  %6885 = vmatmul.mubr.msk.bf16.gmra.mrb[204].mxu1 %vm157_vm1, %v1819_v58  ;;  %6760 = vmatprep.mubr.msk.bf16.mxu0 %vm7738_vm0, %v9994_v0 }
 0x1aa   :  { %6888 = vmatprep.mubr.msk.bf16.mxu1 %vm7738_vm0, %v9994_v0 }
 0x1ab   :  { %v759_v14 = vpop.f32.mrb[100].mxu0 }
 0x1ac   :  { %v1145_v16 = vpop.f32.mrb[100].mxu1  ;;  %v6522_v24 = vpop.f32.mrb[101].mxu0 }
 0x1ad   :  { %v8399_v51 = vadd.f32 %v1145_v16, %v759_v14  ;;  %v6650_v2 = vpop.f32.mrb[101].mxu1  ;;  %v762_v33 = vpop.f32.mrb[102].mxu0  ;;  %v1237_v24 = vld [vmem:[#allocation2 + $0x16a] sm:$0xff] }
 0x1ae   :  { %v1148_v58 = vpop.f32.mrb[102].mxu1  ;;  %v6523_v54 = vpop.f32.mrb[103].mxu0  ;;  %v1276_v16 = vpack.c.bf16 %v1237_v24, %v1236_v49  ;;  %v1783_v49 = vld [vmem:[#allocation2 + $0x180] sm:$0xff]  ;;  %v1784_v24 = vld [vmem:[#allocation2 + $0x188] sm:$0xff] }
 0x1af   :  { %10001 = vst [vmem:[#allocation8_spill] sm:$0xff] %v8399_v51  ;;  %v8401_v63 = vadd.f32 %v1148_v58, %v762_v33  ;;  %v6651_v5 = vpop.f32.mrb[103].mxu1  ;;  %v1821_v33 = vpack.c.bf16 %v1782_v28, %v1781_v48  ;;  %v1238_v51 = vld [vmem:[#allocation2 + $0x172] sm:$0xff] }
 0x1b0   :  { %6761 = vmatmul.mubr.msk.bf16.gmra.mrb[208].mxu0 %vm157_vm1, %v1275_v25 }
 0x1b1   :  { %10002 = vst [vmem:[#allocation9_spill] sm:$0xff] %v8401_v63  ;;  %6889 = vmatmul.mubr.msk.bf16.gmra.mrb[208].mxu1 %vm157_vm1, %v1820_v40  ;;  %6764 = vmatprep.mubr.msk.bf16.mxu0 %vm7738_vm0, %v9994_v0 }
 0x1b2   :  { %6892 = vmatprep.mubr.msk.bf16.mxu1 %vm7738_vm0, %v9994_v0 }
 0x1b3   :  { %v767_v13 = vpop.f32.mrb[104].mxu0 }
 0x1b4   :  { %v1153_v36 = vpop.f32.mrb[104].mxu1  ;;  %v6526_v14 = vpop.f32.mrb[105].mxu0 }
 0x1b5   :  { %v8409_v2 = vadd.f32 %v1153_v36, %v767_v13  ;;  %v6654_v5 = vpop.f32.mrb[105].mxu1  ;;  %v770_v25 = vpop.f32.mrb[106].mxu0  ;;  %v1239_v14 = vld [vmem:[#allocation2 + $0x17a] sm:$0xff] }
 0x1b6   :  { %v1156_v40 = vpop.f32.mrb[106].mxu1  ;;  %v6527_v58 = vpop.f32.mrb[107].mxu0  ;;  %v1277_v36 = vpack.c.bf16 %v1239_v14, %v1238_v51  ;;  %v1785_v51 = vld [vmem:[#allocation2 + $0x190] sm:$0xff]  ;;  %v1786_v14 = vld [vmem:[#allocation2 + $0x198] sm:$0xff] }
 0x1b7   :  { %10003 = vst [vmem:[#allocation10_spill] sm:$0xff] %v8409_v2  ;;  %v8411_v54 = vadd.f32 %v1156_v40, %v770_v25  ;;  %v6655_v63 = vpop.f32.mrb[107].mxu1  ;;  %v1822_v25 = vpack.c.bf16 %v1784_v24, %v1783_v49  ;;  %v1240_v2 = vld [vmem:[#allocation2 + $0x182] sm:$0xff] }
 0x1b8   :  { %6765 = vmatmul.mubr.msk.bf16.gmra.mrb[212].mxu0 %vm157_vm1, %v1276_v16 }
 0x1b9   :  { %10004 = vst [vmem:[#allocation11_spill] sm:$0xff] %v8411_v54  ;;  %6893 = vmatmul.mubr.msk.bf16.gmra.mrb[212].mxu1 %vm157_vm1, %v1821_v33  ;;  %6768 = vmatprep.mubr.msk.bf16.mxu0 %vm7738_vm0, %v9994_v0 }
 0x1ba   :  { %6896 = vmatprep.mubr.msk.bf16.mxu1 %vm7738_vm0, %v9994_v0 }
 0x1bb   :  { %v775_v48 = vpop.f32.mrb[108].mxu0 }
 0x1bc   :  { %v1161_v28 = vpop.f32.mrb[108].mxu1  ;;  %v6530_v13 = vpop.f32.mrb[109].mxu0 }
 0x1bd   :  { %v8419_v5 = vadd.f32 %v1161_v28, %v775_v48  ;;  %v6658_v63 = vpop.f32.mrb[109].mxu1  ;;  %v778_v16 = vpop.f32.mrb[110].mxu0  ;;  %v1241_v13 = vld [vmem:[#allocation2 + $0x18a] sm:$0xff] }
 0x1be   :  { %v1164_v33 = vpop.f32.mrb[110].mxu1  ;;  %v6531_v40 = vpop.f32.mrb[111].mxu0  ;;  %v1278_v28 = vpack.c.bf16 %v1241_v13, %v1240_v2  ;;  %v1787_v2 = vld [vmem:[#allocation2 + $0x1a0] sm:$0xff]  ;;  %v1788_v13 = vld [vmem:[#allocation2 + $0x1a8] sm:$0xff] }
 0x1bf   :  { %10005 = vst [vmem:[#allocation12_spill] sm:$0xff] %v8419_v5  ;;  %v8421_v58 = vadd.f32 %v1164_v33, %v778_v16  ;;  %v6659_v54 = vpop.f32.mrb[111].mxu1  ;;  %v1823_v16 = vpack.c.bf16 %v1786_v14, %v1785_v51  ;;  %v1242_v5 = vld [vmem:[#allocation2 + $0x192] sm:$0xff] }
 0x1c0   :  { %6769 = vmatmul.mubr.msk.bf16.gmra.mrb[216].mxu0 %vm157_vm1, %v1277_v36 }
 0x1c1   :  { %10006 = vst [vmem:[#allocation13_spill] sm:$0xff] %v8421_v58  ;;  %6897 = vmatmul.mubr.msk.bf16.gmra.mrb[216].mxu1 %vm157_vm1, %v1822_v25  ;;  %6772 = vmatprep.mubr.msk.bf16.mxu0 %vm7738_vm0, %v9994_v0 }
 0x1c2   :  { %6900 = vmatprep.mubr.msk.bf16.mxu1 %vm7738_vm0, %v9994_v0 }
 0x1c3   :  { %v783_v49 = vpop.f32.mrb[112].mxu0 }
 0x1c4   :  { %v1169_v24 = vpop.f32.mrb[112].mxu1  ;;  %v6534_v48 = vpop.f32.mrb[113].mxu0 }
 0x1c5   :  { %v8429_v63 = vadd.f32 %v1169_v24, %v783_v49  ;;  %v6662_v54 = vpop.f32.mrb[113].mxu1  ;;  %v786_v36 = vpop.f32.mrb[114].mxu0  ;;  %v1243_v48 = vld [vmem:[#allocation2 + $0x19a] sm:$0xff] }
 0x1c6   :  { %v1172_v25 = vpop.f32.mrb[114].mxu1  ;;  %v6535_v33 = vpop.f32.mrb[115].mxu0  ;;  %v1279_v24 = vpack.c.bf16 %v1243_v48, %v1242_v5  ;;  %v1789_v5 = vld [vmem:[#allocation2 + $0x1b0] sm:$0xff]  ;;  %v1790_v48 = vld [vmem:[#allocation2 + $0x1b8] sm:$0xff] }
 0x1c7   :  { %10007 = vst [vmem:[#allocation14_spill] sm:$0xff] %v8429_v63  ;;  %v8431_v40 = vadd.f32 %v1172_v25, %v786_v36  ;;  %v6663_v58 = vpop.f32.mrb[115].mxu1  ;;  %v1824_v36 = vpack.c.bf16 %v1788_v13, %v1787_v2  ;;  %v1244_v63 = vld [vmem:[#allocation2 + $0x1a2] sm:$0xff] }
 0x1c8   :  { %6773 = vmatmul.mubr.msk.bf16.gmra.mrb[220].mxu0 %vm157_vm1, %v1278_v28 }
 0x1c9   :  { %10008 = vst [vmem:[#allocation15_spill] sm:$0xff] %v8431_v40  ;;  %6901 = vmatmul.mubr.msk.bf16.gmra.mrb[220].mxu1 %vm157_vm1, %v1823_v16  ;;  %6776 = vmatprep.mubr.msk.bf16.mxu0 %vm7738_vm0, %v9994_v0 }
 0x1ca   :  { %6904 = vmatprep.mubr.msk.bf16.mxu1 %vm7738_vm0, %v9994_v0 }
 0x1cb   :  { %v791_v51 = vpop.f32.mrb[116].mxu0 }
 0x1cc   :  { %v1177_v14 = vpop.f32.mrb[116].mxu1  ;;  %v6538_v49 = vpop.f32.mrb[117].mxu0 }
 0x1cd   :  { %v8439_v54 = vadd.f32 %v1177_v14, %v791_v51  ;;  %v6666_v58 = vpop.f32.mrb[117].mxu1  ;;  %v794_v28 = vpop.f32.mrb[118].mxu0  ;;  %v1245_v49 = vld [vmem:[#allocation2 + $0x1aa] sm:$0xff] }
 0x1ce   :  { %v1180_v16 = vpop.f32.mrb[118].mxu1  ;;  %v6539_v25 = vpop.f32.mrb[119].mxu0  ;;  %v1280_v14 = vpack.c.bf16 %v1245_v49, %v1244_v63  ;;  %v1791_v63 = vld [vmem:[#allocation2 + $0x1c0] sm:$0xff]  ;;  %v1792_v49 = vld [vmem:[#allocation2 + $0x1c8] sm:$0xff] }
 0x1cf   :  { %10009 = vst [vmem:[#allocation16_spill] sm:$0xff] %v8439_v54  ;;  %v8441_v33 = vadd.f32 %v1180_v16, %v794_v28  ;;  %v6667_v40 = vpop.f32.mrb[119].mxu1  ;;  %v1825_v28 = vpack.c.bf16 %v1790_v48, %v1789_v5  ;;  %v1246_v54 = vld [vmem:[#allocation2 + $0x1b2] sm:$0xff] }
 0x1d0   :  { %6777 = vmatmul.mubr.msk.bf16.gmra.mrb[224].mxu0 %vm157_vm1, %v1279_v24 }
 0x1d1   :  { %10010 = vst [vmem:[#allocation17_spill] sm:$0xff] %v8441_v33  ;;  %6905 = vmatmul.mubr.msk.bf16.gmra.mrb[224].mxu1 %vm157_vm1, %v1824_v36  ;;  %6780 = vmatprep.mubr.msk.bf16.mxu0 %vm7738_vm0, %v9994_v0 }
 0x1d2   :  { %6908 = vmatprep.mubr.msk.bf16.mxu1 %vm7738_vm0, %v9994_v0 }
 0x1d3   :  { %v799_v2 = vpop.f32.mrb[120].mxu0 }
 0x1d4   :  { %v1185_v13 = vpop.f32.mrb[120].mxu1  ;;  %v6542_v51 = vpop.f32.mrb[121].mxu0 }
 0x1d5   :  { %v8449_v58 = vadd.f32 %v1185_v13, %v799_v2  ;;  %v6670_v40 = vpop.f32.mrb[121].mxu1  ;;  %v802_v24 = vpop.f32.mrb[122].mxu0  ;;  %v1247_v51 = vld [vmem:[#allocation2 + $0x1ba] sm:$0xff] }
 0x1d6   :  { %v1188_v36 = vpop.f32.mrb[122].mxu1  ;;  %v6543_v16 = vpop.f32.mrb[123].mxu0 }
 0x1d7   :  { %10011 = vst [vmem:[#allocation18_spill] sm:$0xff] %v8449_v58  ;;  %v8451_v25 = vadd.f32 %v1188_v36, %v802_v24  ;;  %v6671_v33 = vpop.f32.mrb[123].mxu1  ;;  %v1826_v24 = vpack.c.bf16 %v1792_v49, %v1791_v63 }
 0x1d8   :  { %6781 = vmatmul.mubr.msk.bf16.gmra.mrb[228].mxu0 %vm157_vm1, %v1280_v14  ;;  %v1281_v33 = vpack.c.bf16 %v1247_v51, %v1246_v54  ;;  %v1249_v54 = vld [vmem:[#allocation2 + $0x1ca] sm:$0xff]  ;;  %v1794_v51 = vld [vmem:[#allocation2 + $0x1d8] sm:$0xff] }
 0x1d9   :  { %10012 = vst [vmem:[#allocation19_spill] sm:$0xff] %v8451_v25  ;;  %6909 = vmatmul.mubr.msk.bf16.gmra.mrb[228].mxu1 %vm157_vm1, %v1825_v28  ;;  %6784 = vmatprep.mubr.msk.bf16.mxu0 %vm7738_vm0, %v9994_v0 }
 0x1da   :  { %6912 = vmatprep.mubr.msk.bf16.mxu1 %vm7738_vm0, %v9994_v0 }
 0x1db   :  { %v1428_v5 = vpop.f32.mrb[124].mxu0 }
 0x1dc   :  { %v1675_v48 = vadd.f32 %v1428_v5, %v8131_v23  ;;  %v6678_v2 = vpop.f32.mrb[125].mxu0  ;;  %v1973_v13 = vpop.f32.mrb[124].mxu1  ;;  %v1248_v23 = vld [vmem:[#allocation2 + $0x1c2] sm:$0xff] }
 0x1dd   :  { %v1431_v40 = vpop.f32.mrb[126].mxu0  ;;  %v6806_v14 = vpop.f32.mrb[125].mxu1  ;;  %v1282_v5 = vpack.c.bf16 %v1249_v54, %v1248_v23  ;;  %v1251_v23 = vld [vmem:[#allocation2 + $0x1da] sm:$0xff]  ;;  %v1796_v54 = vld [vmem:[#allocation2 + $0x1e8] sm:$0xff] }
 0x1de   :  { %v1676_v28 = vadd.f32 %v1431_v40, %v8133_v29  ;;  %v8461_v36 = vadd.f32 %v1973_v13, %v1675_v48  ;;  %v6679_v16 = vpop.f32.mrb[127].mxu0  ;;  %v1976_v25 = vpop.f32.mrb[126].mxu1  ;;  %v1793_v29 = vld [vmem:[#allocation2 + $0x1d0] sm:$0xff] }
 0x1df   :  { %v6807_v58 = vpop.f32.mrb[127].mxu1  ;;  %v1827_v13 = vpack.c.bf16 %v1794_v51, %v1793_v29 }
 0x1e0   :  { %v8463_v6 = vadd.f32 %v1976_v25, %v1676_v28  ;;  %6785 = vmatmul.mubr.msk.bf16.gmra.mrb[232].mxu0 %vm157_vm1, %v1281_v33 }
 0x1e1   :  { %6913 = vmatmul.mubr.msk.bf16.gmra.mrb[232].mxu1 %vm157_vm1, %v1826_v24  ;;  %6788 = vmatprep.mubr.msk.bf16.mxu0 %vm7738_vm0, %v9994_v0 }
 0x1e2   :  { %6916 = vmatprep.mubr.msk.bf16.mxu1 %vm7738_vm0, %v9994_v0 }
 0x1e3   :  { %v1436_v63 = vpop.f32.mrb[128].mxu0 }
 0x1e4   :  { %v1677_v49 = vadd.f32 %v1436_v63, %v8141_v39  ;;  %v6682_v58 = vpop.f32.mrb[129].mxu0  ;;  %v1981_v25 = vpop.f32.mrb[128].mxu1  ;;  %v1250_v39 = vld [vmem:[#allocation2 + $0x1d2] sm:$0xff] }
 0x1e5   :  { %v1439_v48 = vpop.f32.mrb[130].mxu0  ;;  %v6810_v2 = vpop.f32.mrb[129].mxu1  ;;  %v1283_v58 = vpack.c.bf16 %v1251_v23, %v1250_v39  ;;  %v1253_v39 = vld [vmem:[#allocation2 + $0x1ea] sm:$0xff]  ;;  %v1798_v23 = vld [vmem:[#allocation2 + $0x1f8] sm:$0xff] }
 0x1e6   :  { %v1678_v33 = vadd.f32 %v1439_v48, %v8143_v45  ;;  %v8473_v40 = vadd.f32 %v1981_v25, %v1677_v49  ;;  %v6683_v14 = vpop.f32.mrb[131].mxu0  ;;  %v1984_v24 = vpop.f32.mrb[130].mxu1  ;;  %v1795_v45 = vld [vmem:[#allocation2 + $0x1e0] sm:$0xff] }
 0x1e7   :  { %v6811_v28 = vpop.f32.mrb[131].mxu1  ;;  %v1828_v48 = vpack.c.bf16 %v1796_v54, %v1795_v45 }
 0x1e8   :  { %v8475_v16 = vadd.f32 %v1984_v24, %v1678_v33  ;;  %6789 = vmatmul.mubr.msk.bf16.gmra.mrb[236].mxu0 %vm157_vm1, %v1282_v5 }
 0x1e9   :  { %6917 = vmatmul.mubr.msk.bf16.gmra.mrb[236].mxu1 %vm157_vm1, %v1827_v13  ;;  %6792 = vmatprep.mubr.msk.bf16.mxu0 %vm7738_vm0, %v9994_v0 }
 0x1ea   :  { %6920 = vmatprep.mubr.msk.bf16.mxu1 %vm7738_vm0, %v9994_v0 }
 0x1eb   :  { %v1444_v29 = vpop.f32.mrb[132].mxu0 }
 0x1ec   :  { %v1679_v51 = vadd.f32 %v1444_v29, %v8151_v55  ;;  %v6686_v63 = vpop.f32.mrb[133].mxu0  ;;  %v1989_v49 = vpop.f32.mrb[132].mxu1  ;;  %v1252_v55 = vld [vmem:[#allocation2 + $0x1e2] sm:$0xff] }
 0x1ed   :  { %v1447_v25 = vpop.f32.mrb[134].mxu0  ;;  %v6814_v5 = vpop.f32.mrb[133].mxu1  ;;  %v1284_v63 = vpack.c.bf16 %v1253_v39, %v1252_v55  ;;  %v2283_v55 = vld [vmem:[#allocation2 + $0x19] sm:$0xff] }
 0x1ee   :  { %v1680_v2 = vadd.f32 %v1447_v25, %v8153_v62  ;;  %v8485_v13 = vadd.f32 %v1989_v49, %v1679_v51  ;;  %v6687_v33 = vpop.f32.mrb[135].mxu0  ;;  %v1992_v14 = vpop.f32.mrb[134].mxu1  ;;  %v1797_v62 = vld [vmem:[#allocation2 + $0x1f0] sm:$0xff]  ;;  %v2828_v39 = vld [vmem:[#allocation2 + $0x1a] sm:$0xff] }
 0x1ef   :  { %v6815_v24 = vpop.f32.mrb[135].mxu1  ;;  %v1829_v25 = vpack.c.bf16 %v1798_v23, %v1797_v62 }
 0x1f0   :  { %v8487_v28 = vadd.f32 %v1992_v14, %v1680_v2  ;;  %6793 = vmatmul.mubr.msk.bf16.gmra.mrb[240].mxu0 %vm157_vm1, %v1283_v58 }
 0x1f1   :  { %6921 = vmatmul.mubr.msk.bf16.gmra.mrb[240].mxu1 %vm157_vm1, %v1828_v48  ;;  %6796 = vmatprep.mubr.msk.bf16.mxu0 %vm7738_vm0, %v9994_v0 }
 0x1f2   :  { %6924 = vmatprep.mubr.msk.bf16.mxu1 %vm7738_vm0, %v9994_v0 }
 0x1f3   :  { %v1452_v45 = vpop.f32.mrb[136].mxu0 }
 0x1f4   :  { %v1681_v54 = vadd.f32 %v1452_v45, %v8161_v9  ;;  %v6690_v29 = vpop.f32.mrb[137].mxu0  ;;  %v1997_v51 = vpop.f32.mrb[136].mxu1  ;;  %v2282_v9 = vld [vmem:[#allocation2 + $0x11] sm:$0xff] }
 0x1f5   :  { %v1455_v49 = vpop.f32.mrb[138].mxu0  ;;  %v6818_v58 = vpop.f32.mrb[137].mxu1  ;;  %v2344_v29 = vpack.c.bf16 %v2283_v55, %v2282_v9  ;;  %v2285_v9 = vld [vmem:[#allocation2 + $0x29] sm:$0xff]  ;;  %v7723_v55 = vld [vmem:[%s9988_s1 + $0x68] sm:$0xff]  }
 0x1f6   :  { %v1682_v5 = vadd.f32 %v1455_v49, %v8163_v15  ;;  %v8497_v48 = vadd.f32 %v1997_v51, %v1681_v54  ;;  %v6691_v2 = vpop.f32.mrb[139].mxu0  ;;  %v2000_v33 = vpop.f32.mrb[138].mxu1  ;;  %v2827_v15 = vld [vmem:[#allocation2 + $0x12] sm:$0xff] }
 0x1f7   :  { %v6819_v14 = vpop.f32.mrb[139].mxu1  ;;  %v7722_v49 = vld [vmem:[%s9988_s1 + $0x60] sm:$0xff]   ;;  %v2889_v58 = vpack.c.bf16 %v2828_v39, %v2827_v15  ;;  %v10014_v15 = vmov 0.0  }
 0x1f8   :  { %v8499_v24 = vadd.f32 %v2000_v33, %v1682_v5  ;;  %6797 = vmatmul.mubr.msk.bf16.gmra.mrb[244].mxu0 %vm157_vm1, %v1284_v63  ;;  %v2830_v39 = vld [vmem:[#allocation2 + $0x2a] sm:$0xff] }
 0x1f9   :  { %6925 = vmatmul.mubr.msk.bf16.gmra.mrb[244].mxu1 %vm157_vm1, %v1829_v25  ;;  %6932 = vmatprep.mubr.msk.bf16.mxu0 %vm7738_vm0, %v9994_v0 }
 0x1fa   :  { %7060 = vmatprep.mubr.msk.bf16.mxu1 %vm7738_vm0, %v9994_v0 }
 0x1fb   :  { %v1460_v62 = vpop.f32.mrb[140].mxu0 }
 0x1fc   :  { %v1683_v23 = vadd.f32 %v1460_v62, %v8171_v26  ;;  %v6694_v45 = vpop.f32.mrb[141].mxu0  ;;  %v2005_v54 = vpop.f32.mrb[140].mxu1  ;;  %v2284_v26 = vld [vmem:[#allocation2 + $0x21] sm:$0xff] }
 0x1fd   :  { %v1463_v51 = vpop.f32.mrb[142].mxu0  ;;  %v6822_v63 = vpop.f32.mrb[141].mxu1 }
 0x1fe   :  { %v1684_v25 = vadd.f32 %v1463_v51, %v8176_v34  ;;  %v8512_v5 = vadd.f32 %v2005_v54, %v1683_v23  ;;  %v6695_v2 = vpop.f32.mrb[143].mxu0  ;;  %v2008_v33 = vpop.f32.mrb[142].mxu1  ;;  %v2829_v34 = vld [vmem:[#allocation2 + $0x22] sm:$0xff] }
 0x1ff   :  { %v6823_v14 = vpop.f32.mrb[143].mxu1 }
 0x200   :  { %v8514_v0 = vadd.f32 %v2008_v33, %v1684_v25  ;;  %6933 = vmatmul.mubr.msk.bf16.vlgmr.msra.gmra.mrb[248].mxu0 %vm157_vm1, %v2344_v29  ;;  %v2345_v29 = vpack.c.bf16 %v2285_v9, %v2284_v26  ;;  %v2287_v26 = vld [vmem:[#allocation2 + $0x39] sm:$0xff] }
 0x201   :  { %7185 = vmatpush3.bf16.msra.mxu0 %v7722_v49  ;;  %7061 = vmatmul.mubr.msk.bf16.vlgmr.msra.gmra.mrb[248].mxu1 %vm157_vm1, %v2889_v58  ;;  %v2890_v49 = vpack.c.bf16 %v2830_v39, %v2829_v34  ;;  %v2832_v9 = vld [vmem:[#allocation2 + $0x3a] sm:$0xff] }
 0x202   :  { %10013 = vst [vmem:[#allocation20_spill] sm:$0xff] %v8514_v0  ;;  %6936 = vmatprep.mubr.msk.bf16.mxu0 %vm7738_vm0, %v10014_v15  ;;  %7064 = vmatprep.mubr.msk.bf16.mxu1 %vm7738_vm0, %v10014_v15 }
 0x203   :  { %v1468_v62 = vpop.f32.mrb[144].mxu0  ;;  %7186 = vmatprep.subr.bf16.mxu0 %v10014_v15 }
 0x204   :  { %v1685_v23 = vadd.f32 %v1468_v62, %v8188_v47  ;;  %v6698_v45 = vpop.f32.mrb[145].mxu0  ;;  %v2013_v54 = vpop.f32.mrb[144].mxu1  ;;  %v2286_v47 = vld [vmem:[#allocation2 + $0x31] sm:$0xff] }
 0x205   :  { %v1471_v51 = vpop.f32.mrb[146].mxu0  ;;  %v6826_v63 = vpop.f32.mrb[145].mxu1  ;;  %7187 = vmatpush3.bf16.msra.mxu0 %v7723_v55 }
 0x206   :  { %v1686_v58 = vadd.f32 %v1471_v51, %v8191_v53  ;;  %v8528_v25 = vadd.f32 %v2013_v54, %v1685_v23  ;;  %v6699_v2 = vpop.f32.mrb[147].mxu0  ;;  %v2016_v33 = vpop.f32.mrb[146].mxu1  ;;  %7440 = vmatprep.subr.bf16.mxu0 %v10014_v15  ;;  %v2831_v53 = vld [vmem:[#allocation2 + $0x32] sm:$0xff]  ;;  %v2346_v23 = vpack.c.bf16 %v2287_v26, %v2286_v47  ;;  %v2834_v47 = vld [vmem:[#allocation2 + $0x4a] sm:$0xff] }
 0x207   :  { %v6827_v14 = vpop.f32.mrb[147].mxu1 }
 0x208   :  { %v8531_v0 = vadd.f32 %v2016_v33, %v1686_v58  ;;  %6937 = vmatmul.mubr.msk.bf16.gmra.mrb[252].mxu0 %vm157_vm1, %v2345_v29  ;;  %v2891_v29 = vpack.c.bf16 %v2832_v9, %v2831_v53  ;;  %v2289_v14 = vld [vmem:[#allocation2 + $0x49] sm:$0xff] }
 0x209   :  { %7065 = vmatmul.mubr.msk.bf16.gmra.mrb[252].mxu1 %vm157_vm1, %v2890_v49  ;;  %6940 = vmatprep.mubr.msk.bf16.mxu0 %vm7738_vm0, %v10014_v15 }
 0x20a   :  { %7068 = vmatprep.mubr.msk.bf16.mxu1 %vm7738_vm0, %v10014_v15 }
 0x20b   :  { %v1476_v55 = vpop.f32.mrb[148].mxu0 }
 0x20c   :  { %v1687_v34 = vadd.f32 %v1476_v55, %v8199_v3  ;;  %v6702_v39 = vpop.f32.mrb[149].mxu0  ;;  %v2021_v62 = vpop.f32.mrb[148].mxu1  ;;  %v2288_v3 = vld [vmem:[#allocation2 + $0x41] sm:$0xff] }
 0x20d   :  { %v1479_v45 = vpop.f32.mrb[150].mxu0  ;;  %v6830_v54 = vpop.f32.mrb[149].mxu1 }
 0x20e   :  { %v1688_v51 = vadd.f32 %v1479_v45, %v8201_v10  ;;  %v8541_v63 = vadd.f32 %v2021_v62, %v1687_v34  ;;  %v6703_v49 = vpop.f32.mrb[151].mxu0  ;;  %v2024_v58 = vpop.f32.mrb[150].mxu1  ;;  %v2833_v10 = vld [vmem:[#allocation2 + $0x42] sm:$0xff]  ;;  %v2347_v34 = vpack.c.bf16 %v2289_v14, %v2288_v3  ;;  %v2836_v3 = vld [vmem:[#allocation2 + $0x5a] sm:$0xff] }
 0x20f   :  { %v6831_v2 = vpop.f32.mrb[151].mxu1 }
 0x210   :  { %v8543_v33 = vadd.f32 %v2024_v58, %v1688_v51  ;;  %6941 = vmatmul.mubr.msk.bf16.gmra.mrb[0].mxu0 %vm157_vm1, %v2346_v23  ;;  %v2892_v23 = vpack.c.bf16 %v2834_v47, %v2833_v10  ;;  %v2291_v2 = vld [vmem:[#allocation2 + $0x59] sm:$0xff] }
 0x211   :  { %7069 = vmatmul.mubr.msk.bf16.gmra.mrb[0].mxu1 %vm157_vm1, %v2891_v29  ;;  %6944 = vmatprep.mubr.msk.bf16.mxu0 %vm7738_vm0, %v10014_v15 }
 0x212   :  { %7072 = vmatprep.mubr.msk.bf16.mxu1 %vm7738_vm0, %v10014_v15 }
 0x213   :  { %v1484_v26 = vpop.f32.mrb[152].mxu0 }
 0x214   :  { %v1689_v53 = vadd.f32 %v1484_v26, %v8209_v21  ;;  %v6706_v9 = vpop.f32.mrb[153].mxu0  ;;  %v2029_v55 = vpop.f32.mrb[152].mxu1  ;;  %v2290_v21 = vld [vmem:[#allocation2 + $0x51] sm:$0xff] }
 0x215   :  { %v1487_v39 = vpop.f32.mrb[154].mxu0  ;;  %v6834_v62 = vpop.f32.mrb[153].mxu1 }
 0x216   :  { %v1690_v45 = vadd.f32 %v1487_v39, %v8211_v30  ;;  %v8553_v54 = vadd.f32 %v2029_v55, %v1689_v53  ;;  %v6707_v29 = vpop.f32.mrb[155].mxu0  ;;  %v2032_v51 = vpop.f32.mrb[154].mxu1  ;;  %v2835_v30 = vld [vmem:[#allocation2 + $0x52] sm:$0xff]  ;;  %v2348_v53 = vpack.c.bf16 %v2291_v2, %v2290_v21  ;;  %v2838_v21 = vld [vmem:[#allocation2 + $0x6a] sm:$0xff] }
 0x217   :  { %v6835_v49 = vpop.f32.mrb[155].mxu1 }
 0x218   :  { %v8555_v58 = vadd.f32 %v2032_v51, %v1690_v45  ;;  %6945 = vmatmul.mubr.msk.bf16.gmra.mrb[4].mxu0 %vm157_vm1, %v2347_v34  ;;  %v2893_v34 = vpack.c.bf16 %v2836_v3, %v2835_v30  ;;  %v2293_v49 = vld [vmem:[#allocation2 + $0x69] sm:$0xff] }
 0x219   :  { %7073 = vmatmul.mubr.msk.bf16.gmra.mrb[4].mxu1 %vm157_vm1, %v2892_v23  ;;  %6948 = vmatprep.mubr.msk.bf16.mxu0 %vm7738_vm0, %v10014_v15 }
 0x21a   :  { %7076 = vmatprep.mubr.msk.bf16.mxu1 %vm7738_vm0, %v10014_v15 }
 0x21b   :  { %v1492_v14 = vpop.f32.mrb[156].mxu0 }
 0x21c   :  { %v1691_v10 = vadd.f32 %v1492_v14, %v8219_v42  ;;  %v6710_v47 = vpop.f32.mrb[157].mxu0  ;;  %v2037_v26 = vpop.f32.mrb[156].mxu1  ;;  %v2292_v42 = vld [vmem:[#allocation2 + $0x61] sm:$0xff] }
 0x21d   :  { %v1495_v9 = vpop.f32.mrb[158].mxu0  ;;  %v6838_v55 = vpop.f32.mrb[157].mxu1 }
 0x21e   :  { %v1692_v39 = vadd.f32 %v1495_v9, %v8221_v50  ;;  %v8565_v62 = vadd.f32 %v2037_v26, %v1691_v10  ;;  %v6711_v23 = vpop.f32.mrb[159].mxu0  ;;  %v2040_v45 = vpop.f32.mrb[158].mxu1  ;;  %v2837_v50 = vld [vmem:[#allocation2 + $0x62] sm:$0xff]  ;;  %v2349_v10 = vpack.c.bf16 %v2293_v49, %v2292_v42  ;;  %v2840_v42 = vld [vmem:[#allocation2 + $0x7a] sm:$0xff] }
 0x21f   :  { %v6839_v29 = vpop.f32.mrb[159].mxu1 }
 0x220   :  { %v8567_v51 = vadd.f32 %v2040_v45, %v1692_v39  ;;  %6949 = vmatmul.mubr.msk.bf16.gmra.mrb[8].mxu0 %vm157_vm1, %v2348_v53  ;;  %v2894_v53 = vpack.c.bf16 %v2838_v21, %v2837_v50  ;;  %v2295_v29 = vld [vmem:[#allocation2 + $0x79] sm:$0xff] }
 0x221   :  { %7077 = vmatmul.mubr.msk.bf16.gmra.mrb[8].mxu1 %vm157_vm1, %v2893_v34  ;;  %6952 = vmatprep.mubr.msk.bf16.mxu0 %vm7738_vm0, %v10014_v15 }
 0x222   :  { %7080 = vmatprep.mubr.msk.bf16.mxu1 %vm7738_vm0, %v10014_v15 }
 0x223   :  { %v1500_v2 = vpop.f32.mrb[160].mxu0 }
 0x224   :  { %v1693_v30 = vadd.f32 %v1500_v2, %v8229_v1  ;;  %v6714_v3 = vpop.f32.mrb[161].mxu0  ;;  %v2045_v14 = vpop.f32.mrb[160].mxu1  ;;  %v2294_v1 = vld [vmem:[#allocation2 + $0x71] sm:$0xff] }
 0x225   :  { %v1503_v47 = vpop.f32.mrb[162].mxu0  ;;  %v6842_v26 = vpop.f32.mrb[161].mxu1 }
 0x226   :  { %v1694_v9 = vadd.f32 %v1503_v47, %v8231_v8  ;;  %v8577_v55 = vadd.f32 %v2045_v14, %v1693_v30  ;;  %v6715_v34 = vpop.f32.mrb[163].mxu0  ;;  %v2048_v39 = vpop.f32.mrb[162].mxu1  ;;  %v2839_v8 = vld [vmem:[#allocation2 + $0x72] sm:$0xff]  ;;  %v2350_v30 = vpack.c.bf16 %v2295_v29, %v2294_v1  ;;  %v2842_v1 = vld [vmem:[#allocation2 + $0x8a] sm:$0xff] }
 0x227   :  { %v6843_v23 = vpop.f32.mrb[163].mxu1 }
 0x228   :  { %v8579_v45 = vadd.f32 %v2048_v39, %v1694_v9  ;;  %6953 = vmatmul.mubr.msk.bf16.gmra.mrb[12].mxu0 %vm157_vm1, %v2349_v10  ;;  %v2895_v10 = vpack.c.bf16 %v2840_v42, %v2839_v8  ;;  %v2297_v23 = vld [vmem:[#allocation2 + $0x89] sm:$0xff] }
 0x229   :  { %7081 = vmatmul.mubr.msk.bf16.gmra.mrb[12].mxu1 %vm157_vm1, %v2894_v53  ;;  %6956 = vmatprep.mubr.msk.bf16.mxu0 %vm7738_vm0, %v10014_v15 }
 0x22a   :  { %7084 = vmatprep.mubr.msk.bf16.mxu1 %vm7738_vm0, %v10014_v15 }
 0x22b   :  { %v1508_v49 = vpop.f32.mrb[164].mxu0 }
 0x22c   :  { %v1695_v50 = vadd.f32 %v1508_v49, %v8239_v22  ;;  %v6718_v21 = vpop.f32.mrb[165].mxu0  ;;  %v2053_v2 = vpop.f32.mrb[164].mxu1  ;;  %v2296_v22 = vld [vmem:[#allocation2 + $0x81] sm:$0xff] }
 0x22d   :  { %v1511_v3 = vpop.f32.mrb[166].mxu0  ;;  %v6846_v14 = vpop.f32.mrb[165].mxu1 }
 0x22e   :  { %v1696_v47 = vadd.f32 %v1511_v3, %v8241_v32  ;;  %v8589_v26 = vadd.f32 %v2053_v2, %v1695_v50  ;;  %v6719_v53 = vpop.f32.mrb[167].mxu0  ;;  %v2056_v9 = vpop.f32.mrb[166].mxu1  ;;  %v2841_v32 = vld [vmem:[#allocation2 + $0x82] sm:$0xff]  ;;  %v2351_v50 = vpack.c.bf16 %v2297_v23, %v2296_v22  ;;  %v2844_v22 = vld [vmem:[#allocation2 + $0x9a] sm:$0xff] }
 0x22f   :  { %v6847_v34 = vpop.f32.mrb[167].mxu1 }
 0x230   :  { %v8591_v39 = vadd.f32 %v2056_v9, %v1696_v47  ;;  %6957 = vmatmul.mubr.msk.bf16.gmra.mrb[16].mxu0 %vm157_vm1, %v2350_v30  ;;  %v2896_v30 = vpack.c.bf16 %v2842_v1, %v2841_v32  ;;  %v2299_v34 = vld [vmem:[#allocation2 + $0x99] sm:$0xff] }
 0x231   :  { %7085 = vmatmul.mubr.msk.bf16.gmra.mrb[16].mxu1 %vm157_vm1, %v2895_v10  ;;  %6960 = vmatprep.mubr.msk.bf16.mxu0 %vm7738_vm0, %v10014_v15 }
 0x232   :  { %7088 = vmatprep.mubr.msk.bf16.mxu1 %vm7738_vm0, %v10014_v15 }
 0x233   :  { %v1516_v29 = vpop.f32.mrb[168].mxu0 }
 0x234   :  { %v1697_v8 = vadd.f32 %v1516_v29, %v8249_v46  ;;  %v6722_v42 = vpop.f32.mrb[169].mxu0  ;;  %v2061_v49 = vpop.f32.mrb[168].mxu1  ;;  %v2298_v46 = vld [vmem:[#allocation2 + $0x91] sm:$0xff] }
 0x235   :  { %v1519_v21 = vpop.f32.mrb[170].mxu0  ;;  %v6850_v2 = vpop.f32.mrb[169].mxu1 }
 0x236   :  { %v1698_v3 = vadd.f32 %v1519_v21, %v8251_v56  ;;  %v8601_v14 = vadd.f32 %v2061_v49, %v1697_v8  ;;  %v6723_v10 = vpop.f32.mrb[171].mxu0  ;;  %v2064_v47 = vpop.f32.mrb[170].mxu1  ;;  %v2843_v56 = vld [vmem:[#allocation2 + $0x92] sm:$0xff]  ;;  %v2352_v8 = vpack.c.bf16 %v2299_v34, %v2298_v46  ;;  %v2846_v46 = vld [vmem:[#allocation2 + $0xaa] sm:$0xff] }
 0x237   :  { %v6851_v53 = vpop.f32.mrb[171].mxu1 }
 0x238   :  { %v8603_v9 = vadd.f32 %v2064_v47, %v1698_v3  ;;  %6961 = vmatmul.mubr.msk.bf16.gmra.mrb[20].mxu0 %vm157_vm1, %v2351_v50  ;;  %v2897_v50 = vpack.c.bf16 %v2844_v22, %v2843_v56  ;;  %v2301_v53 = vld [vmem:[#allocation2 + $0xa9] sm:$0xff] }
 0x239   :  { %7089 = vmatmul.mubr.msk.bf16.gmra.mrb[20].mxu1 %vm157_vm1, %v2896_v30  ;;  %6964 = vmatprep.mubr.msk.bf16.mxu0 %vm7738_vm0, %v10014_v15 }
 0x23a   :  { %7092 = vmatprep.mubr.msk.bf16.mxu1 %vm7738_vm0, %v10014_v15 }
 0x23b   :  { %v1524_v23 = vpop.f32.mrb[172].mxu0 }
 0x23c   :  { %v1699_v32 = vadd.f32 %v1524_v23, %v8259_v7  ;;  %v6726_v1 = vpop.f32.mrb[173].mxu0  ;;  %v2069_v29 = vpop.f32.mrb[172].mxu1  ;;  %v2300_v7 = vld [vmem:[#allocation2 + $0xa1] sm:$0xff] }
 0x23d   :  { %v1527_v42 = vpop.f32.mrb[174].mxu0  ;;  %v6854_v49 = vpop.f32.mrb[173].mxu1 }
 0x23e   :  { %v1700_v21 = vadd.f32 %v1527_v42, %v8261_v17  ;;  %v8613_v2 = vadd.f32 %v2069_v29, %v1699_v32  ;;  %v6727_v30 = vpop.f32.mrb[175].mxu0  ;;  %v2072_v3 = vpop.f32.mrb[174].mxu1  ;;  %v2845_v17 = vld [vmem:[#allocation2 + $0xa2] sm:$0xff]  ;;  %v2353_v32 = vpack.c.bf16 %v2301_v53, %v2300_v7  ;;  %v2848_v7 = vld [vmem:[#allocation2 + $0xba] sm:$0xff] }
 0x23f   :  { %v6855_v10 = vpop.f32.mrb[175].mxu1 }
 0x240   :  { %v8615_v47 = vadd.f32 %v2072_v3, %v1700_v21  ;;  %6965 = vmatmul.mubr.msk.bf16.gmra.mrb[24].mxu0 %vm157_vm1, %v2352_v8  ;;  %v2898_v8 = vpack.c.bf16 %v2846_v46, %v2845_v17  ;;  %v2303_v10 = vld [vmem:[#allocation2 + $0xb9] sm:$0xff] }
 0x241   :  { %7093 = vmatmul.mubr.msk.bf16.gmra.mrb[24].mxu1 %vm157_vm1, %v2897_v50  ;;  %6968 = vmatprep.mubr.msk.bf16.mxu0 %vm7738_vm0, %v10014_v15 }
 0x242   :  { %7096 = vmatprep.mubr.msk.bf16.mxu1 %vm7738_vm0, %v10014_v15 }
 0x243   :  { %v1532_v34 = vpop.f32.mrb[176].mxu0 }
 0x244   :  { %v1701_v56 = vadd.f32 %v1532_v34, %v8269_v35  ;;  %v6730_v22 = vpop.f32.mrb[177].mxu0  ;;  %v2077_v23 = vpop.f32.mrb[176].mxu1  ;;  %v2302_v35 = vld [vmem:[#allocation2 + $0xb1] sm:$0xff] }
 0x245   :  { %v1535_v1 = vpop.f32.mrb[178].mxu0  ;;  %v6858_v29 = vpop.f32.mrb[177].mxu1 }
 0x246   :  { %v1702_v42 = vadd.f32 %v1535_v1, %v8271_v43  ;;  %v8625_v49 = vadd.f32 %v2077_v23, %v1701_v56  ;;  %v6731_v50 = vpop.f32.mrb[179].mxu0  ;;  %v2080_v21 = vpop.f32.mrb[178].mxu1  ;;  %v2847_v43 = vld [vmem:[#allocation2 + $0xb2] sm:$0xff]  ;;  %v2354_v56 = vpack.c.bf16 %v2303_v10, %v2302_v35  ;;  %v2850_v35 = vld [vmem:[#allocation2 + $0xca] sm:$0xff] }
 0x247   :  { %v6859_v30 = vpop.f32.mrb[179].mxu1 }
 0x248   :  { %v8627_v3 = vadd.f32 %v2080_v21, %v1702_v42  ;;  %6969 = vmatmul.mubr.msk.bf16.gmra.mrb[28].mxu0 %vm157_vm1, %v2353_v32  ;;  %v2899_v32 = vpack.c.bf16 %v2848_v7, %v2847_v43  ;;  %v2305_v30 = vld [vmem:[#allocation2 + $0xc9] sm:$0xff] }
 0x249   :  { %7097 = vmatmul.mubr.msk.bf16.gmra.mrb[28].mxu1 %vm157_vm1, %v2898_v8  ;;  %6972 = vmatprep.mubr.msk.bf16.mxu0 %vm7738_vm0, %v10014_v15 }
 0x24a   :  { %7100 = vmatprep.mubr.msk.bf16.mxu1 %vm7738_vm0, %v10014_v15 }
 0x24b   :  { %v1540_v53 = vpop.f32.mrb[180].mxu0 }
 0x24c   :  { %v1703_v17 = vadd.f32 %v1540_v53, %v8279_v61  ;;  %v6734_v46 = vpop.f32.mrb[181].mxu0  ;;  %v2085_v34 = vpop.f32.mrb[180].mxu1  ;;  %v2304_v61 = vld [vmem:[#allocation2 + $0xc1] sm:$0xff] }
 0x24d   :  { %v1543_v22 = vpop.f32.mrb[182].mxu0  ;;  %v6862_v23 = vpop.f32.mrb[181].mxu1 }
 0x24e   :  { %v1704_v1 = vadd.f32 %v1543_v22, %v8281_v11  ;;  %v8637_v29 = vadd.f32 %v2085_v34, %v1703_v17  ;;  %v6735_v8 = vpop.f32.mrb[183].mxu0  ;;  %v2088_v42 = vpop.f32.mrb[182].mxu1  ;;  %v2849_v11 = vld [vmem:[#allocation2 + $0xc2] sm:$0xff]  ;;  %v2355_v17 = vpack.c.bf16 %v2305_v30, %v2304_v61  ;;  %v2852_v61 = vld [vmem:[#allocation2 + $0xda] sm:$0xff] }
 0x24f   :  { %v6863_v50 = vpop.f32.mrb[183].mxu1 }
 0x250   :  { %v8639_v21 = vadd.f32 %v2088_v42, %v1704_v1  ;;  %6973 = vmatmul.mubr.msk.bf16.gmra.mrb[32].mxu0 %vm157_vm1, %v2354_v56  ;;  %v2900_v56 = vpack.c.bf16 %v2850_v35, %v2849_v11  ;;  %v2307_v50 = vld [vmem:[#allocation2 + $0xd9] sm:$0xff] }
 0x251   :  { %7101 = vmatmul.mubr.msk.bf16.gmra.mrb[32].mxu1 %vm157_vm1, %v2899_v32  ;;  %6976 = vmatprep.mubr.msk.bf16.mxu0 %vm7738_vm0, %v10014_v15 }
 0x252   :  { %7104 = vmatprep.mubr.msk.bf16.mxu1 %vm7738_vm0, %v10014_v15 }
 0x253   :  { %v1548_v10 = vpop.f32.mrb[184].mxu0 }
 0x254   :  { %v1705_v43 = vadd.f32 %v1548_v10, %v8289_v27  ;;  %v6738_v7 = vpop.f32.mrb[185].mxu0  ;;  %v2093_v53 = vpop.f32.mrb[184].mxu1  ;;  %v2306_v27 = vld [vmem:[#allocation2 + $0xd1] sm:$0xff] }
 0x255   :  { %v1551_v46 = vpop.f32.mrb[186].mxu0  ;;  %v6866_v34 = vpop.f32.mrb[185].mxu1 }
 0x256   :  { %v1706_v22 = vadd.f32 %v1551_v46, %v8291_v38  ;;  %v8649_v23 = vadd.f32 %v2093_v53, %v1705_v43  ;;  %v6739_v32 = vpop.f32.mrb[187].mxu0  ;;  %v2096_v1 = vpop.f32.mrb[186].mxu1  ;;  %v2851_v38 = vld [vmem:[#allocation2 + $0xd2] sm:$0xff]  ;;  %v2356_v43 = vpack.c.bf16 %v2307_v50, %v2306_v27  ;;  %v2853_v27 = vld [vmem:[#allocation2 + $0xe2] sm:$0xff]  ;;  %v2854_v50 = vld [vmem:[#allocation2 + $0xea] sm:$0xff] }
 0x257   :  { %v6867_v8 = vpop.f32.mrb[187].mxu1  ;;  %v7724_v32 = vld [vmem:[%s9988_s1 + $0x70] sm:$0xff]  }
 0x258   :  { %v8651_v42 = vadd.f32 %v2096_v1, %v1706_v22  ;;  %6977 = vmatmul.mubr.msk.bf16.gmra.mrb[36].mxu0 %vm157_vm1, %v2355_v17  ;;  %v2901_v17 = vpack.c.bf16 %v2852_v61, %v2851_v38  ;;  %7313 = vmatpush3.bf16.msra.mxu1 %v7724_v32 }
 0x259   :  { %7105 = vmatmul.mubr.msk.bf16.gmra.mrb[36].mxu1 %vm157_vm1, %v2900_v56  ;;  %6980 = vmatprep.mubr.msk.bf16.mxu0 %vm7738_vm0, %v10014_v15 }
 0x25a   :  { %7108 = vmatprep.mubr.msk.bf16.mxu1 %vm7738_vm0, %v10014_v15  ;;  %7314 = vmatprep.subr.bf16.mxu1 %v10014_v15 }
 0x25b   :  { %v1556_v30 = vpop.f32.mrb[188].mxu0 }
 0x25c   :  { %v1707_v11 = vadd.f32 %v1556_v30, %v8299_v59  ;;  %v6742_v35 = vpop.f32.mrb[189].mxu0  ;;  %v2101_v10 = vpop.f32.mrb[188].mxu1  ;;  %v2308_v59 = vld [vmem:[#allocation2 + $0xe1] sm:$0xff] }
 0x25d   :  { %v1559_v7 = vpop.f32.mrb[190].mxu0  ;;  %v6870_v53 = vpop.f32.mrb[189].mxu1 }
 0x25e   :  { %v1708_v46 = vadd.f32 %v1559_v7, %v8304_v12  ;;  %v8661_v34 = vadd.f32 %v2101_v10, %v1707_v11  ;;  %v6743_v56 = vpop.f32.mrb[191].mxu0  ;;  %v2104_v22 = vpop.f32.mrb[190].mxu1  ;;  %v2309_v12 = vld [vmem:[#allocation2 + $0xe9] sm:$0xff]  ;;  %v2902_v53 = vpack.c.bf16 %v2854_v50, %v2853_v27  ;;  %v2856_v27 = vld [vmem:[#allocation2 + $0xfa] sm:$0xff] }
 0x25f   :  { %v6871_v1 = vpop.f32.mrb[191].mxu1  ;;  %v2357_v35 = vpack.c.bf16 %v2309_v12, %v2308_v59  ;;  %v6078_v10 = vld [vmem:[%s9989_s0 + $0x100] sm:$0xff]   ;;  %v2311_v12 = vld [vmem:[#allocation2 + $0xf9] sm:$0xff] }
 0x260   :  { %v8666_v8 = vadd.f32 %v2104_v22, %v1708_v46  ;;  %6981 = vmatmul.mubr.msk.bf16.gmra.mrb[40].mxu0 %vm157_vm1, %v2356_v43  ;;  %v2310_v59 = vld [vmem:[#allocation2 + $0xf1] sm:$0xff] }
 0x261   :  { %7109 = vmatmul.mubr.msk.bf16.gmra.mrb[40].mxu1 %vm157_vm1, %v2901_v17  ;;  %6984 = vmatprep.mubr.msk.bf16.mxu0 %vm7738_vm0, %v10014_v15  ;;  %v6041_v17 = vunpack.c.l.bf16 %v6078_v10 }
 0x262   :  { %7112 = vmatprep.mubr.msk.bf16.mxu1 %vm7738_vm0, %v10014_v15 }
 0x263   :  { %v1564_v38 = vpop.f32.mrb[192].mxu0  ;;  %222 = vst.msk [vmem:[#allocation2 + $0x200] sm:$0xff] %vm157_vm1, %v6041_v17 }
 0x264   :  { %v1709_v61 = vadd.f32 %v1564_v38, %v8313_v31  ;;  %v6746_v30 = vpop.f32.mrb[193].mxu0  ;;  %v2109_v11 = vpop.f32.mrb[192].mxu1 }
 0x265   :  { %v1567_v43 = vpop.f32.mrb[194].mxu0  ;;  %v6874_v7 = vpop.f32.mrb[193].mxu1 }
 0x266   :  { %v1710_v46 = vadd.f32 %v1567_v43, %v8315_v44  ;;  %v8680_v56 = vadd.f32 %v2109_v11, %v1709_v61  ;;  %v6747_v22 = vpop.f32.mrb[195].mxu0  ;;  %v2112_v32 = vpop.f32.mrb[194].mxu1  ;;  %v2855_v44 = vld [vmem:[#allocation2 + $0xf2] sm:$0xff]  ;;  %v2358_v11 = vpack.c.bf16 %v2311_v12, %v2310_v59  ;;  %v2858_v59 = vld [vmem:[#allocation2 + $0x10a] sm:$0xff] }
 0x267   :  { %v6875_v1 = vpop.f32.mrb[195].mxu1  ;;  %v2903_v43 = vpack.c.bf16 %v2856_v27, %v2855_v44 }
 0x268   :  { %v8683_v31 = vadd.f32 %v2112_v32, %v1710_v46  ;;  %6985 = vmatmul.mubr.msk.bf16.gmra.mrb[44].mxu0 %vm157_vm1, %v2357_v35  ;;  %v2313_v1 = vld [vmem:[#allocation2 + $0x109] sm:$0xff] }
 0x269   :  { %7113 = vmatmul.mubr.msk.bf16.gmra.mrb[44].mxu1 %vm157_vm1, %v2902_v53  ;;  %6988 = vmatprep.mubr.msk.bf16.mxu0 %vm7738_vm0, %v10014_v15 }
 0x26a   :  { %7116 = vmatprep.mubr.msk.bf16.mxu1 %vm7738_vm0, %v10014_v15 }
 0x26b   :  { %v1572_v50 = vpop.f32.mrb[196].mxu0 }
 0x26c   :  { %v1711_v38 = vadd.f32 %v1572_v50, %v8325_v4  ;;  %v6750_v61 = vpop.f32.mrb[197].mxu0  ;;  %v2117_v30 = vpop.f32.mrb[196].mxu1  ;;  %v2312_v4 = vld [vmem:[#allocation2 + $0x101] sm:$0xff] }
 0x26d   :  { %v1575_v10 = vpop.f32.mrb[198].mxu0  ;;  %v6878_v35 = vpop.f32.mrb[197].mxu1 }
 0x26e   :  { %v1712_v7 = vadd.f32 %v1575_v10, %v8327_v18  ;;  %v8693_v53 = vadd.f32 %v2117_v30, %v1711_v38  ;;  %v6751_v17 = vpop.f32.mrb[199].mxu0  ;;  %v2120_v46 = vpop.f32.mrb[198].mxu1  ;;  %v2857_v18 = vld [vmem:[#allocation2 + $0x102] sm:$0xff]  ;;  %v2359_v38 = vpack.c.bf16 %v2313_v1, %v2312_v4  ;;  %v2859_v4 = vld [vmem:[#allocation2 + $0x112] sm:$0xff]  ;;  %v2860_v1 = vld [vmem:[#allocation2 + $0x11a] sm:$0xff] }
 0x26f   :  { %v6879_v22 = vpop.f32.mrb[199].mxu1  ;;  %v7725_v17 = vld [vmem:[%s9988_s1 + $0x78] sm:$0xff]  }
 0x270   :  { %v8695_v32 = vadd.f32 %v2120_v46, %v1712_v7  ;;  %6989 = vmatmul.mubr.msk.bf16.gmra.mrb[48].mxu0 %vm157_vm1, %v2358_v11  ;;  %v2904_v11 = vpack.c.bf16 %v2858_v59, %v2857_v18  ;;  %7315 = vmatpush3.bf16.msra.mxu1 %v7725_v17 }
 0x271   :  { %7117 = vmatmul.mubr.msk.bf16.gmra.mrb[48].mxu1 %vm157_vm1, %v2903_v43  ;;  %6992 = vmatprep.mubr.msk.bf16.mxu0 %vm7738_vm0, %v10014_v15 }
 0x272   :  { %7120 = vmatprep.mubr.msk.bf16.mxu1 %vm7738_vm0, %v10014_v15  ;;  %7568 = vmatprep.subr.bf16.mxu1 %v10014_v15 }
 0x273   :  { %v1580_v12 = vpop.f32.mrb[200].mxu0 }
 0x274   :  { %v1713_v44 = vadd.f32 %v1580_v12, %v8335_v41  ;;  %v6754_v27 = vpop.f32.mrb[201].mxu0  ;;  %v2125_v50 = vpop.f32.mrb[200].mxu1  ;;  %v2314_v41 = vld [vmem:[#allocation2 + $0x111] sm:$0xff] }
 0x275   :  { %v1583_v61 = vpop.f32.mrb[202].mxu0  ;;  %v6882_v30 = vpop.f32.mrb[201].mxu1 }
 0x276   :  { %v1714_v10 = vadd.f32 %v1583_v61, %v8340_v60  ;;  %v8705_v35 = vadd.f32 %v2125_v50, %v1713_v44  ;;  %v6755_v43 = vpop.f32.mrb[203].mxu0  ;;  %v2128_v7 = vpop.f32.mrb[202].mxu1  ;;  %v2315_v60 = vld [vmem:[#allocation2 + $0x119] sm:$0xff]  ;;  %v2905_v61 = vpack.c.bf16 %v2860_v1, %v2859_v4 }
 0x277   :  { %v6883_v46 = vpop.f32.mrb[203].mxu1  ;;  %v2360_v27 = vpack.c.bf16 %v2315_v60, %v2314_v41  ;;  %v2862_v41 = vld [vmem:[#allocation2 + $0x12a] sm:$0xff] }
 0x278   :  { %v8710_v22 = vadd.f32 %v2128_v7, %v1714_v10  ;;  %6993 = vmatmul.mubr.msk.bf16.gmra.mrb[52].mxu0 %vm157_vm1, %v2359_v38  ;;  %v2317_v46 = vld [vmem:[#allocation2 + $0x129] sm:$0xff] }
 0x279   :  { %7121 = vmatmul.mubr.msk.bf16.gmra.mrb[52].mxu1 %vm157_vm1, %v2904_v11  ;;  %6996 = vmatprep.mubr.msk.bf16.mxu0 %vm7738_vm0, %v10014_v15 }
 0x27a   :  { %7124 = vmatprep.mubr.msk.bf16.mxu1 %vm7738_vm0, %v10014_v15 }
 0x27b   :  { %v1588_v18 = vpop.f32.mrb[204].mxu0 }
 0x27c   :  { %v1715_v59 = vadd.f32 %v1588_v18, %v8349_v20  ;;  %v6758_v12 = vpop.f32.mrb[205].mxu0  ;;  %v2133_v44 = vpop.f32.mrb[204].mxu1  ;;  %v2316_v20 = vld [vmem:[#allocation2 + $0x121] sm:$0xff] }
 0x27d   :  { %v1591_v50 = vpop.f32.mrb[206].mxu0  ;;  %v6886_v38 = vpop.f32.mrb[205].mxu1 }
 0x27e   :  { %v1716_v30 = vadd.f32 %v1591_v50, %v8351_v37  ;;  %v8721_v11 = vadd.f32 %v2133_v44, %v1715_v59  ;;  %v6759_v10 = vpop.f32.mrb[207].mxu0  ;;  %v2136_v43 = vpop.f32.mrb[206].mxu1  ;;  %v2861_v37 = vld [vmem:[#allocation2 + $0x122] sm:$0xff]  ;;  %v2361_v59 = vpack.c.bf16 %v2317_v46, %v2316_v20  ;;  %v2864_v20 = vld [vmem:[#allocation2 + $0x13a] sm:$0xff] }
 0x27f   :  { %v6887_v7 = vpop.f32.mrb[207].mxu1 }
 0x280   :  { %v8723_v17 = vadd.f32 %v2136_v43, %v1716_v30  ;;  %6997 = vmatmul.mubr.msk.bf16.gmra.mrb[56].mxu0 %vm157_vm1, %v2360_v27  ;;  %v2906_v27 = vpack.c.bf16 %v2862_v41, %v2861_v37  ;;  %v2319_v7 = vld [vmem:[#allocation2 + $0x139] sm:$0xff] }
 0x281   :  { %7125 = vmatmul.mubr.msk.bf16.gmra.mrb[56].mxu1 %vm157_vm1, %v2905_v61  ;;  %7000 = vmatprep.mubr.msk.bf16.mxu0 %vm7738_vm0, %v10014_v15 }
 0x282   :  { %7128 = vmatprep.mubr.msk.bf16.mxu1 %vm7738_vm0, %v10014_v15 }
 0x283   :  { %v1596_v60 = vpop.f32.mrb[208].mxu0 }
 0x284   :  { %v1717_v4 = vadd.f32 %v1596_v60, %v8359_v57  ;;  %v6762_v1 = vpop.f32.mrb[209].mxu0  ;;  %v2141_v18 = vpop.f32.mrb[208].mxu1  ;;  %v2318_v57 = vld [vmem:[#allocation2 + $0x131] sm:$0xff] }
 0x285   :  { %v1599_v12 = vpop.f32.mrb[210].mxu0  ;;  %v6890_v44 = vpop.f32.mrb[209].mxu1 }
 0x286   :  { %v1718_v50 = vadd.f32 %v1599_v12, %v8361_v19  ;;  %v8733_v38 = vadd.f32 %v2141_v18, %v1717_v4  ;;  %v6763_v61 = vpop.f32.mrb[211].mxu0  ;;  %v2144_v30 = vpop.f32.mrb[210].mxu1  ;;  %v2863_v19 = vld [vmem:[#allocation2 + $0x132] sm:$0xff]  ;;  %v2362_v4 = vpack.c.bf16 %v2319_v7, %v2318_v57  ;;  %v10015_v12 = vld [vmem:[#allocation3_spill] sm:$0xff]  ;;  %v2321_v57 = vld [vmem:[#allocation2 + $0x149] sm:$0xff] }
 0x287   :  { %v6891_v10 = vpop.f32.mrb[211].mxu1  ;;  %v2865_v7 = vld [vmem:[#allocation2 + $0x142] sm:$0xff] }
 0x288   :  { %v8735_v43 = vadd.f32 %v2144_v30, %v1718_v50  ;;  %7001 = vmatmul.mubr.msk.bf16.gmra.mrb[60].mxu0 %vm157_vm1, %v2361_v59  ;;  %v2907_v59 = vpack.c.bf16 %v2864_v20, %v2863_v19  ;;  %v2866_v19 = vld [vmem:[#allocation2 + $0x14a] sm:$0xff] }
 0x289   :  { %7129 = vmatmul.mubr.msk.bf16.gmra.mrb[60].mxu1 %vm157_vm1, %v2906_v27  ;;  %7004 = vmatprep.mubr.msk.bf16.mxu0 %vm7738_vm0, %v10014_v15 }
 0x28a   :  { %7132 = vmatprep.mubr.msk.bf16.mxu1 %vm7738_vm0, %v10014_v15 }
 0x28b   :  { %v1604_v46 = vpop.f32.mrb[212].mxu0 }
 0x28c   :  { %v1719_v37 = vadd.f32 %v1604_v46, %v8369_v52  ;;  %v6766_v41 = vpop.f32.mrb[213].mxu0  ;;  %v2149_v60 = vpop.f32.mrb[212].mxu1  ;;  %v2320_v52 = vld [vmem:[#allocation2 + $0x141] sm:$0xff] }
 0x28d   :  { %v1607_v1 = vpop.f32.mrb[214].mxu0  ;;  %v6894_v18 = vpop.f32.mrb[213].mxu1  ;;  %v10018_v46 = vld [vmem:[#allocation4_spill] sm:$0xff] }
 0x28e   :  { %v1720_v44 = vadd.f32 %v1607_v1, %v10015_v12  ;;  %v8745_v27 = vadd.f32 %v2149_v60, %v1719_v37  ;;  %v6767_v50 = vpop.f32.mrb[215].mxu0  ;;  %v2152_v61 = vpop.f32.mrb[214].mxu1  ;;  %v2363_v1 = vpack.c.bf16 %v2321_v57, %v2320_v52  ;;  %v2908_v12 = vpack.c.bf16 %v2866_v19, %v2865_v7  ;;  %v2322_v52 = vld [vmem:[#allocation2 + $0x151] sm:$0xff]  ;;  %v2323_v57 = vld [vmem:[#allocation2 + $0x159] sm:$0xff] }
 0x28f   :  { %v6895_v30 = vpop.f32.mrb[215].mxu1  ;;  %v2867_v7 = vld [vmem:[#allocation2 + $0x152] sm:$0xff]  ;;  %v2868_v19 = vld [vmem:[#allocation2 + $0x15a] sm:$0xff] }
 0x290   :  { %10016 = vst [vmem:[#allocation3_spill] sm:$0xff] %v8745_v27  ;;  %v8747_v10 = vadd.f32 %v2152_v61, %v1720_v44  ;;  %7005 = vmatmul.mubr.msk.bf16.gmra.mrb[64].mxu0 %vm157_vm1, %v2362_v4 }
 0x291   :  { %7133 = vmatmul.mubr.msk.bf16.gmra.mrb[64].mxu1 %vm157_vm1, %v2907_v59  ;;  %7008 = vmatprep.mubr.msk.bf16.mxu0 %vm7738_vm0, %v10014_v15  ;;  %v10019_v59 = vld [vmem:[#allocation5_spill] sm:$0xff] }
 0x292   :  { %10017 = vst [vmem:[#allocation21_spill] sm:$0xff] %v8747_v10  ;;  %7136 = vmatprep.mubr.msk.bf16.mxu1 %vm7738_vm0, %v10014_v15 }
 0x293   :  { %v1612_v20 = vpop.f32.mrb[216].mxu0 }
 0x294   :  { %v1721_v37 = vadd.f32 %v1612_v20, %v10018_v46  ;;  %v6770_v41 = vpop.f32.mrb[217].mxu0  ;;  %v2157_v60 = vpop.f32.mrb[216].mxu1  ;;  %v10022_v46 = vld [vmem:[#allocation6_spill] sm:$0xff] }
 0x295   :  { %v1615_v18 = vpop.f32.mrb[218].mxu0  ;;  %v6898_v4 = vpop.f32.mrb[217].mxu1 }
 0x296   :  { %v1722_v44 = vadd.f32 %v1615_v18, %v10019_v59  ;;  %v8757_v50 = vadd.f32 %v2157_v60, %v1721_v37  ;;  %v6771_v61 = vpop.f32.mrb[219].mxu0  ;;  %v2160_v30 = vpop.f32.mrb[218].mxu1  ;;  %v2364_v60 = vpack.c.bf16 %v2323_v57, %v2322_v52  ;;  %v2909_v4 = vpack.c.bf16 %v2868_v19, %v2867_v7  ;;  %v2324_v52 = vld [vmem:[#allocation2 + $0x161] sm:$0xff]  ;;  %v2325_v57 = vld [vmem:[#allocation2 + $0x169] sm:$0xff] }
 0x297   :  { %v6899_v10 = vpop.f32.mrb[219].mxu1  ;;  %v2869_v7 = vld [vmem:[#allocation2 + $0x162] sm:$0xff]  ;;  %v2870_v19 = vld [vmem:[#allocation2 + $0x16a] sm:$0xff] }
 0x298   :  { %10020 = vst [vmem:[#allocation4_spill] sm:$0xff] %v8757_v50  ;;  %v8759_v27 = vadd.f32 %v2160_v30, %v1722_v44  ;;  %7009 = vmatmul.mubr.msk.bf16.gmra.mrb[68].mxu0 %vm157_vm1, %v2363_v1 }
 0x299   :  { %7137 = vmatmul.mubr.msk.bf16.gmra.mrb[68].mxu1 %vm157_vm1, %v2908_v12  ;;  %7012 = vmatprep.mubr.msk.bf16.mxu0 %vm7738_vm0, %v10014_v15  ;;  %v10023_v12 = vld [vmem:[#allocation7_spill] sm:$0xff] }
 0x29a   :  { %10021 = vst [vmem:[#allocation5_spill] sm:$0xff] %v8759_v27  ;;  %7140 = vmatprep.mubr.msk.bf16.mxu1 %vm7738_vm0, %v10014_v15 }
 0x29b   :  { %v1620_v20 = vpop.f32.mrb[220].mxu0 }
 0x29c   :  { %v1723_v37 = vadd.f32 %v1620_v20, %v10022_v46  ;;  %v6774_v10 = vpop.f32.mrb[221].mxu0  ;;  %v2165_v41 = vpop.f32.mrb[220].mxu1  ;;  %v10026_v46 = vld [vmem:[#allocation8_spill] sm:$0xff] }
 0x29d   :  { %v1623_v18 = vpop.f32.mrb[222].mxu0  ;;  %v6902_v1 = vpop.f32.mrb[221].mxu1 }
 0x29e   :  { %v1724_v59 = vadd.f32 %v1623_v18, %v10023_v12  ;;  %v8769_v44 = vadd.f32 %v2165_v41, %v1723_v37  ;;  %v6775_v61 = vpop.f32.mrb[223].mxu0  ;;  %v2168_v30 = vpop.f32.mrb[222].mxu1  ;;  %v2365_v41 = vpack.c.bf16 %v2325_v57, %v2324_v52  ;;  %v2910_v1 = vpack.c.bf16 %v2870_v19, %v2869_v7  ;;  %v2326_v52 = vld [vmem:[#allocation2 + $0x171] sm:$0xff]  ;;  %v2327_v57 = vld [vmem:[#allocation2 + $0x179] sm:$0xff] }
 0x29f   :  { %v6903_v27 = vpop.f32.mrb[223].mxu1  ;;  %v2871_v7 = vld [vmem:[#allocation2 + $0x172] sm:$0xff]  ;;  %v2872_v19 = vld [vmem:[#allocation2 + $0x17a] sm:$0xff] }
 0x2a0   :  { %10024 = vst [vmem:[#allocation6_spill] sm:$0xff] %v8769_v44  ;;  %v8771_v50 = vadd.f32 %v2168_v30, %v1724_v59  ;;  %7013 = vmatmul.mubr.msk.bf16.gmra.mrb[72].mxu0 %vm157_vm1, %v2364_v60 }
 0x2a1   :  { %7141 = vmatmul.mubr.msk.bf16.gmra.mrb[72].mxu1 %vm157_vm1, %v2909_v4  ;;  %7016 = vmatprep.mubr.msk.bf16.mxu0 %vm7738_vm0, %v10014_v15  ;;  %v10027_v4 = vld [vmem:[#allocation9_spill] sm:$0xff] }
 0x2a2   :  { %10025 = vst [vmem:[#allocation7_spill] sm:$0xff] %v8771_v50  ;;  %7144 = vmatprep.mubr.msk.bf16.mxu1 %vm7738_vm0, %v10014_v15 }
 0x2a3   :  { %v1628_v20 = vpop.f32.mrb[224].mxu0 }
 0x2a4   :  { %v1725_v37 = vadd.f32 %v1628_v20, %v10026_v46  ;;  %v6778_v27 = vpop.f32.mrb[225].mxu0  ;;  %v2173_v10 = vpop.f32.mrb[224].mxu1  ;;  %v10030_v46 = vld [vmem:[#allocation10_spill] sm:$0xff] }
 0x2a5   :  { %v1631_v18 = vpop.f32.mrb[226].mxu0  ;;  %v6906_v60 = vpop.f32.mrb[225].mxu1 }
 0x2a6   :  { %v1726_v12 = vadd.f32 %v1631_v18, %v10027_v4  ;;  %v8781_v59 = vadd.f32 %v2173_v10, %v1725_v37  ;;  %v6779_v61 = vpop.f32.mrb[227].mxu0  ;;  %v2176_v30 = vpop.f32.mrb[226].mxu1  ;;  %v2366_v10 = vpack.c.bf16 %v2327_v57, %v2326_v52  ;;  %v2911_v60 = vpack.c.bf16 %v2872_v19, %v2871_v7  ;;  %v2328_v52 = vld [vmem:[#allocation2 + $0x181] sm:$0xff]  ;;  %v2329_v57 = vld [vmem:[#allocation2 + $0x189] sm:$0xff] }
 0x2a7   :  { %v6907_v50 = vpop.f32.mrb[227].mxu1  ;;  %v2873_v7 = vld [vmem:[#allocation2 + $0x182] sm:$0xff]  ;;  %v2874_v19 = vld [vmem:[#allocation2 + $0x18a] sm:$0xff] }
 0x2a8   :  { %10028 = vst [vmem:[#allocation8_spill] sm:$0xff] %v8781_v59  ;;  %v8783_v44 = vadd.f32 %v2176_v30, %v1726_v12  ;;  %7017 = vmatmul.mubr.msk.bf16.gmra.mrb[76].mxu0 %vm157_vm1, %v2365_v41 }
 0x2a9   :  { %7145 = vmatmul.mubr.msk.bf16.gmra.mrb[76].mxu1 %vm157_vm1, %v2910_v1  ;;  %7020 = vmatprep.mubr.msk.bf16.mxu0 %vm7738_vm0, %v10014_v15  ;;  %v10031_v1 = vld [vmem:[#allocation11_spill] sm:$0xff] }
 0x2aa   :  { %10029 = vst [vmem:[#allocation9_spill] sm:$0xff] %v8783_v44  ;;  %7148 = vmatprep.mubr.msk.bf16.mxu1 %vm7738_vm0, %v10014_v15 }
 0x2ab   :  { %v1636_v20 = vpop.f32.mrb[228].mxu0 }
 0x2ac   :  { %v1727_v37 = vadd.f32 %v1636_v20, %v10030_v46  ;;  %v6782_v50 = vpop.f32.mrb[229].mxu0  ;;  %v2181_v27 = vpop.f32.mrb[228].mxu1  ;;  %v10034_v46 = vld [vmem:[#allocation12_spill] sm:$0xff] }
 0x2ad   :  { %v1639_v18 = vpop.f32.mrb[230].mxu0  ;;  %v6910_v41 = vpop.f32.mrb[229].mxu1 }
 0x2ae   :  { %v1728_v4 = vadd.f32 %v1639_v18, %v10031_v1  ;;  %v8793_v12 = vadd.f32 %v2181_v27, %v1727_v37  ;;  %v6783_v61 = vpop.f32.mrb[231].mxu0  ;;  %v2184_v30 = vpop.f32.mrb[230].mxu1  ;;  %v2367_v27 = vpack.c.bf16 %v2329_v57, %v2328_v52  ;;  %v2912_v41 = vpack.c.bf16 %v2874_v19, %v2873_v7  ;;  %v2330_v52 = vld [vmem:[#allocation2 + $0x191] sm:$0xff]  ;;  %v2331_v57 = vld [vmem:[#allocation2 + $0x199] sm:$0xff] }
 0x2af   :  { %v6911_v44 = vpop.f32.mrb[231].mxu1  ;;  %v2875_v7 = vld [vmem:[#allocation2 + $0x192] sm:$0xff]  ;;  %v2876_v19 = vld [vmem:[#allocation2 + $0x19a] sm:$0xff] }
 0x2b0   :  { %10032 = vst [vmem:[#allocation10_spill] sm:$0xff] %v8793_v12  ;;  %v8795_v59 = vadd.f32 %v2184_v30, %v1728_v4  ;;  %7021 = vmatmul.mubr.msk.bf16.gmra.mrb[80].mxu0 %vm157_vm1, %v2366_v10 }
 0x2b1   :  { %7149 = vmatmul.mubr.msk.bf16.gmra.mrb[80].mxu1 %vm157_vm1, %v2911_v60  ;;  %7024 = vmatprep.mubr.msk.bf16.mxu0 %vm7738_vm0, %v10014_v15  ;;  %v10035_v60 = vld [vmem:[#allocation13_spill] sm:$0xff] }
 0x2b2   :  { %10033 = vst [vmem:[#allocation11_spill] sm:$0xff] %v8795_v59  ;;  %7152 = vmatprep.mubr.msk.bf16.mxu1 %vm7738_vm0, %v10014_v15 }
 0x2b3   :  { %v1644_v20 = vpop.f32.mrb[232].mxu0 }
 0x2b4   :  { %v1729_v37 = vadd.f32 %v1644_v20, %v10034_v46  ;;  %v6786_v44 = vpop.f32.mrb[233].mxu0  ;;  %v2189_v50 = vpop.f32.mrb[232].mxu1  ;;  %v10038_v46 = vld [vmem:[#allocation14_spill] sm:$0xff] }
 0x2b5   :  { %v1647_v18 = vpop.f32.mrb[234].mxu0  ;;  %v6914_v10 = vpop.f32.mrb[233].mxu1 }
 0x2b6   :  { %v1730_v1 = vadd.f32 %v1647_v18, %v10035_v60  ;;  %v8805_v4 = vadd.f32 %v2189_v50, %v1729_v37  ;;  %v6787_v61 = vpop.f32.mrb[235].mxu0  ;;  %v2192_v30 = vpop.f32.mrb[234].mxu1  ;;  %v2368_v50 = vpack.c.bf16 %v2331_v57, %v2330_v52  ;;  %v2913_v10 = vpack.c.bf16 %v2876_v19, %v2875_v7  ;;  %v2332_v52 = vld [vmem:[#allocation2 + $0x1a1] sm:$0xff]  ;;  %v2333_v57 = vld [vmem:[#allocation2 + $0x1a9] sm:$0xff] }
 0x2b7   :  { %v6915_v59 = vpop.f32.mrb[235].mxu1  ;;  %v2877_v7 = vld [vmem:[#allocation2 + $0x1a2] sm:$0xff]  ;;  %v2878_v19 = vld [vmem:[#allocation2 + $0x1aa] sm:$0xff] }
 0x2b8   :  { %10036 = vst [vmem:[#allocation12_spill] sm:$0xff] %v8805_v4  ;;  %v8807_v12 = vadd.f32 %v2192_v30, %v1730_v1  ;;  %7025 = vmatmul.mubr.msk.bf16.gmra.mrb[84].mxu0 %vm157_vm1, %v2367_v27 }
 0x2b9   :  { %7153 = vmatmul.mubr.msk.bf16.gmra.mrb[84].mxu1 %vm157_vm1, %v2912_v41  ;;  %7028 = vmatprep.mubr.msk.bf16.mxu0 %vm7738_vm0, %v10014_v15  ;;  %v10039_v41 = vld [vmem:[#allocation15_spill] sm:$0xff] }
 0x2ba   :  { %10037 = vst [vmem:[#allocation13_spill] sm:$0xff] %v8807_v12  ;;  %7156 = vmatprep.mubr.msk.bf16.mxu1 %vm7738_vm0, %v10014_v15 }
 0x2bb   :  { %v1652_v20 = vpop.f32.mrb[236].mxu0 }
 0x2bc   :  { %v1731_v37 = vadd.f32 %v1652_v20, %v10038_v46  ;;  %v6790_v59 = vpop.f32.mrb[237].mxu0  ;;  %v2197_v44 = vpop.f32.mrb[236].mxu1  ;;  %v10042_v46 = vld [vmem:[#allocation16_spill] sm:$0xff] }
 0x2bd   :  { %v1655_v18 = vpop.f32.mrb[238].mxu0  ;;  %v6918_v27 = vpop.f32.mrb[237].mxu1 }
 0x2be   :  { %v1732_v60 = vadd.f32 %v1655_v18, %v10039_v41  ;;  %v8817_v1 = vadd.f32 %v2197_v44, %v1731_v37  ;;  %v6791_v61 = vpop.f32.mrb[239].mxu0  ;;  %v2200_v30 = vpop.f32.mrb[238].mxu1  ;;  %v2369_v44 = vpack.c.bf16 %v2333_v57, %v2332_v52  ;;  %v2914_v27 = vpack.c.bf16 %v2878_v19, %v2877_v7  ;;  %v2334_v52 = vld [vmem:[#allocation2 + $0x1b1] sm:$0xff]  ;;  %v2335_v57 = vld [vmem:[#allocation2 + $0x1b9] sm:$0xff] }
 0x2bf   :  { %v6919_v12 = vpop.f32.mrb[239].mxu1  ;;  %v2879_v7 = vld [vmem:[#allocation2 + $0x1b2] sm:$0xff]  ;;  %v2880_v19 = vld [vmem:[#allocation2 + $0x1ba] sm:$0xff] }
 0x2c0   :  { %10040 = vst [vmem:[#allocation14_spill] sm:$0xff] %v8817_v1  ;;  %v8819_v4 = vadd.f32 %v2200_v30, %v1732_v60  ;;  %7029 = vmatmul.mubr.msk.bf16.gmra.mrb[88].mxu0 %vm157_vm1, %v2368_v50 }
 0x2c1   :  { %7157 = vmatmul.mubr.msk.bf16.gmra.mrb[88].mxu1 %vm157_vm1, %v2913_v10  ;;  %7032 = vmatprep.mubr.msk.bf16.mxu0 %vm7738_vm0, %v10014_v15  ;;  %v10043_v10 = vld [vmem:[#allocation17_spill] sm:$0xff] }
 0x2c2   :  { %10041 = vst [vmem:[#allocation15_spill] sm:$0xff] %v8819_v4  ;;  %7160 = vmatprep.mubr.msk.bf16.mxu1 %vm7738_vm0, %v10014_v15 }
 0x2c3   :  { %v1660_v20 = vpop.f32.mrb[240].mxu0 }
 0x2c4   :  { %v1733_v37 = vadd.f32 %v1660_v20, %v10042_v46  ;;  %v6794_v12 = vpop.f32.mrb[241].mxu0  ;;  %v2205_v59 = vpop.f32.mrb[240].mxu1  ;;  %v10046_v46 = vld [vmem:[#allocation18_spill] sm:$0xff] }
 0x2c5   :  { %v1663_v18 = vpop.f32.mrb[242].mxu0  ;;  %v6922_v50 = vpop.f32.mrb[241].mxu1 }
 0x2c6   :  { %v1734_v41 = vadd.f32 %v1663_v18, %v10043_v10  ;;  %v6795_v60 = vpop.f32.mrb[243].mxu0  ;;  %v2208_v61 = vpop.f32.mrb[242].mxu1  ;;  %v8829_v30 = vadd.f32 %v2205_v59, %v1733_v37  ;;  %v2370_v59 = vpack.c.bf16 %v2335_v57, %v2334_v52  ;;  %v2915_v50 = vpack.c.bf16 %v2880_v19, %v2879_v7  ;;  %v2336_v52 = vld [vmem:[#allocation2 + $0x1c1] sm:$0xff]  ;;  %v2337_v57 = vld [vmem:[#allocation2 + $0x1c9] sm:$0xff] }
 0x2c7   :  { %v6923_v4 = vpop.f32.mrb[243].mxu1  ;;  %v2881_v7 = vld [vmem:[#allocation2 + $0x1c2] sm:$0xff]  ;;  %v2882_v19 = vld [vmem:[#allocation2 + $0x1ca] sm:$0xff] }
 0x2c8   :  { %10044 = vst [vmem:[#allocation16_spill] sm:$0xff] %v8829_v30  ;;  %7033 = vmatmul.mubr.msk.bf16.gmra.mrb[92].mxu0 %vm157_vm1, %v2369_v44  ;;  %v8832_v1 = vadd.f32 %v2208_v61, %v1734_v41 }
 0x2c9   :  { %7161 = vmatmul.mubr.msk.bf16.gmra.mrb[92].mxu1 %vm157_vm1, %v2914_v27  ;;  %7036 = vmatprep.mubr.msk.bf16.mxu0 %vm7738_vm0, %v10014_v15  ;;  %v10047_v27 = vld [vmem:[#allocation19_spill] sm:$0xff] }
 0x2ca   :  { %10045 = vst [vmem:[#allocation17_spill] sm:$0xff] %v8832_v1  ;;  %7164 = vmatprep.mubr.msk.bf16.mxu1 %vm7738_vm0, %v10014_v15 }
 0x2cb   :  { %v1668_v20 = vpop.f32.mrb[244].mxu0 }
 0x2cc   :  { %v1735_v37 = vadd.f32 %v1668_v20, %v10046_v46  ;;  %v6798_v4 = vpop.f32.mrb[245].mxu0  ;;  %v2213_v12 = vpop.f32.mrb[244].mxu1 }
 0x2cd   :  { %v1671_v44 = vpop.f32.mrb[246].mxu0  ;;  %v6926_v18 = vpop.f32.mrb[245].mxu1  ;;  %v2371_v4 = vpack.c.bf16 %v2337_v57, %v2336_v52  ;;  %v2339_v52 = vld [vmem:[#allocation2 + $0x1d9] sm:$0xff] }
 0x2ce   :  { %v1736_v10 = vadd.f32 %v1671_v44, %v10047_v27  ;;  %v6799_v41 = vpop.f32.mrb[247].mxu0  ;;  %v2216_v60 = vpop.f32.mrb[246].mxu1  ;;  %v8841_v61 = vadd.f32 %v2213_v12, %v1735_v37  ;;  %v2916_v44 = vpack.c.bf16 %v2882_v19, %v2881_v7  ;;  %v2884_v57 = vld [vmem:[#allocation2 + $0x1da] sm:$0xff] }
 0x2cf   :  { %v6927_v1 = vpop.f32.mrb[247].mxu1 }
 0x2d0   :  { %7037 = vmatmul.mubr.msk.bf16.gmra.mrb[96].mxu0 %vm157_vm1, %v2370_v59  ;;  %v8844_v30 = vadd.f32 %v2216_v60, %v1736_v10 }
 0x2d1   :  { %7165 = vmatmul.mubr.msk.bf16.gmra.mrb[96].mxu1 %vm157_vm1, %v2915_v50  ;;  %7040 = vmatprep.mubr.msk.bf16.mxu0 %vm7738_vm0, %v10014_v15 }
 0x2d2   :  { %7168 = vmatprep.mubr.msk.bf16.mxu1 %vm7738_vm0, %v10014_v15 }
 0x2d3   :  { %v2518_v20 = vpop.f32.mrb[248].mxu0 }
 0x2d4   :  { %v2765_v46 = vadd.f32 %v2518_v20, %v8461_v36  ;;  %v6934_v1 = vpop.f32.mrb[249].mxu0  ;;  %v3063_v37 = vpop.f32.mrb[248].mxu1  ;;  %v2338_v36 = vld [vmem:[#allocation2 + $0x1d1] sm:$0xff] }
 0x2d5   :  { %v2521_v12 = vpop.f32.mrb[250].mxu0  ;;  %v7062_v59 = vpop.f32.mrb[249].mxu1  ;;  %v2372_v1 = vpack.c.bf16 %v2339_v52, %v2338_v36  ;;  %v2341_v36 = vld [vmem:[#allocation2 + $0x1e9] sm:$0xff] }
 0x2d6   :  { %v2766_v18 = vadd.f32 %v2521_v12, %v8463_v6  ;;  %v6935_v50 = vpop.f32.mrb[251].mxu0  ;;  %v3066_v27 = vpop.f32.mrb[250].mxu1  ;;  %v8853_v10 = vadd.f32 %v3063_v37, %v2765_v46  ;;  %v2883_v6 = vld [vmem:[#allocation2 + $0x1d2] sm:$0xff]  ;;  %v2886_v52 = vld [vmem:[#allocation2 + $0x1ea] sm:$0xff] }
 0x2d7   :  { %v7063_v41 = vpop.f32.mrb[251].mxu1  ;;  %v2917_v12 = vpack.c.bf16 %v2884_v57, %v2883_v6 }
 0x2d8   :  { %7041 = vmatmul.mubr.msk.bf16.gmra.mrb[100].mxu0 %vm157_vm1, %v2371_v4  ;;  %v8856_v60 = vadd.f32 %v3066_v27, %v2766_v18 }
 0x2d9   :  { %7169 = vmatmul.mubr.msk.bf16.gmra.mrb[100].mxu1 %vm157_vm1, %v2916_v44  ;;  %7044 = vmatprep.mubr.msk.bf16.mxu0 %vm7738_vm0, %v10014_v15 }
 0x2da   :  { %7172 = vmatprep.mubr.msk.bf16.mxu1 %vm7738_vm0, %v10014_v15 }
 0x2db   :  { %v2526_v7 = vpop.f32.mrb[252].mxu0 }
 0x2dc   :  { %v2767_v19 = vadd.f32 %v2526_v7, %v8473_v40  ;;  %v6938_v20 = vpop.f32.mrb[253].mxu0  ;;  %v3071_v46 = vpop.f32.mrb[252].mxu1  ;;  %v2340_v40 = vld [vmem:[#allocation2 + $0x1e1] sm:$0xff] }
 0x2dd   :  { %v2529_v37 = vpop.f32.mrb[254].mxu0  ;;  %v7066_v4 = vpop.f32.mrb[253].mxu1  ;;  %v2373_v20 = vpack.c.bf16 %v2341_v36, %v2340_v40  ;;  %v2343_v40 = vld [vmem:[#allocation2 + $0x1f9] sm:$0xff] }
 0x2de   :  { %v2768_v59 = vadd.f32 %v2529_v37, %v8475_v16  ;;  %v6939_v44 = vpop.f32.mrb[255].mxu0  ;;  %v3074_v18 = vpop.f32.mrb[254].mxu1  ;;  %v8865_v50 = vadd.f32 %v3071_v46, %v2767_v19  ;;  %v2885_v16 = vld [vmem:[#allocation2 + $0x1e2] sm:$0xff]  ;;  %v2888_v36 = vld [vmem:[#allocation2 + $0x1fa] sm:$0xff] }
 0x2df   :  { %v7067_v27 = vpop.f32.mrb[255].mxu1  ;;  %v2918_v37 = vpack.c.bf16 %v2886_v52, %v2885_v16 }
 0x2e0   :  { %7045 = vmatmul.mubr.msk.bf16.gmra.mrb[104].mxu0 %vm157_vm1, %v2372_v1  ;;  %v8868_v41 = vadd.f32 %v3074_v18, %v2768_v59 }
 0x2e1   :  { %7173 = vmatmul.mubr.msk.bf16.gmra.mrb[104].mxu1 %vm157_vm1, %v2917_v12  ;;  %7048 = vmatprep.mubr.msk.bf16.mxu0 %vm7738_vm0, %v10014_v15 }
 0x2e2   :  { %7176 = vmatprep.mubr.msk.bf16.mxu1 %vm7738_vm0, %v10014_v15 }
 0x2e3   :  { %v2534_v6 = vpop.f32.mrb[0].mxu0 }
 0x2e4   :  { %v2769_v57 = vadd.f32 %v2534_v6, %v8485_v13  ;;  %v6942_v7 = vpop.f32.mrb[1].mxu0  ;;  %v3079_v19 = vpop.f32.mrb[0].mxu1  ;;  %v2342_v13 = vld [vmem:[#allocation2 + $0x1f1] sm:$0xff] }
 0x2e5   :  { %v2537_v46 = vpop.f32.mrb[2].mxu0  ;;  %v7070_v1 = vpop.f32.mrb[1].mxu1  ;;  %v2374_v7 = vpack.c.bf16 %v2343_v40, %v2342_v13  ;;  %v3373_v13 = vld [vmem:[#allocation2 + $0x28] sm:$0xff] }
 0x2e6   :  { %v2770_v4 = vadd.f32 %v2537_v46, %v8487_v28  ;;  %v6943_v12 = vpop.f32.mrb[3].mxu0  ;;  %v3082_v59 = vpop.f32.mrb[2].mxu1  ;;  %v8877_v44 = vadd.f32 %v3079_v19, %v2769_v57  ;;  %v2887_v28 = vld [vmem:[#allocation2 + $0x1f2] sm:$0xff]  ;;  %v3918_v40 = vld [vmem:[#allocation2 + $0x29] sm:$0xff] }
 0x2e7   :  { %v7071_v18 = vpop.f32.mrb[3].mxu1  ;;  %v2919_v46 = vpack.c.bf16 %v2888_v36, %v2887_v28 }
 0x2e8   :  { %7049 = vmatmul.mubr.msk.bf16.gmra.mrb[108].mxu0 %vm157_vm1, %v2373_v20  ;;  %v8880_v27 = vadd.f32 %v3082_v59, %v2770_v4 }
 0x2e9   :  { %7177 = vmatmul.mubr.msk.bf16.gmra.mrb[108].mxu1 %vm157_vm1, %v2918_v37  ;;  %7052 = vmatprep.mubr.msk.bf16.mxu0 %vm7738_vm0, %v10014_v15 }
 0x2ea   :  { %7180 = vmatprep.mubr.msk.bf16.mxu1 %vm7738_vm0, %v10014_v15 }
 0x2eb   :  { %v2542_v16 = vpop.f32.mrb[4].mxu0 }
 0x2ec   :  { %v2771_v52 = vadd.f32 %v2542_v16, %v8497_v48  ;;  %v6946_v6 = vpop.f32.mrb[5].mxu0  ;;  %v3087_v57 = vpop.f32.mrb[4].mxu1  ;;  %v3372_v48 = vld [vmem:[#allocation2 + $0x20] sm:$0xff] }
 0x2ed   :  { %v2545_v19 = vpop.f32.mrb[6].mxu0  ;;  %v7074_v20 = vpop.f32.mrb[5].mxu1  ;;  %v3434_v6 = vpack.c.bf16 %v3373_v13, %v3372_v48  ;;  %v3374_v48 = vld [vmem:[#allocation2 + $0x30] sm:$0xff]  ;;  %v3375_v13 = vld [vmem:[#allocation2 + $0x38] sm:$0xff] }
 0x2ee   :  { %v2772_v1 = vadd.f32 %v2545_v19, %v8499_v24  ;;  %v6947_v37 = vpop.f32.mrb[7].mxu0  ;;  %v3090_v4 = vpop.f32.mrb[6].mxu1  ;;  %v8889_v12 = vadd.f32 %v3087_v57, %v2771_v52  ;;  %v3917_v24 = vld [vmem:[#allocation2 + $0x21] sm:$0xff]  ;;  %v7726_v19 = vld [vmem:[%s9988_s1 + $0x80] sm:$0xff]  }
 0x2ef   :  { %v7075_v59 = vpop.f32.mrb[7].mxu1  ;;  %v3979_v20 = vpack.c.bf16 %v3918_v40, %v3917_v24  ;;  %v7727_v24 = vld [vmem:[%s9988_s1 + $0x88] sm:$0xff]  }
 0x2f0   :  { %7053 = vmatmul.mubr.msk.bf16.gmra.mrb[112].mxu0 %vm157_vm1, %v2374_v7  ;;  %v8892_v18 = vadd.f32 %v3090_v4, %v2772_v1  ;;  %v3920_v40 = vld [vmem:[#allocation2 + $0x39] sm:$0xff] }
 0x2f1   :  { %7181 = vmatmul.mubr.msk.bf16.gmra.mrb[112].mxu1 %vm157_vm1, %v2919_v46  ;;  %7188 = vmatprep.mubr.msk.bf16.mxu0 %vm7738_vm0, %v10014_v15  ;;  %v10049_v46 = vld [vmem:[#allocation20_spill] sm:$0xff] }
 0x2f2   :  { %10048 = vst [vmem:[#allocation18_spill] sm:$0xff] %v8892_v18  ;;  %7316 = vmatprep.mubr.msk.bf16.mxu1 %vm7738_vm0, %v10014_v15 }
 0x2f3   :  { %v2550_v28 = vpop.f32.mrb[8].mxu0 }
 0x2f4   :  { %v2773_v36 = vadd.f32 %v2550_v28, %v8512_v5  ;;  %v6950_v16 = vpop.f32.mrb[9].mxu0  ;;  %v3095_v52 = vpop.f32.mrb[8].mxu1 }
 0x2f5   :  { %v2553_v57 = vpop.f32.mrb[10].mxu0  ;;  %v7078_v7 = vpop.f32.mrb[9].mxu1 }
 0x2f6   :  { %v2774_v1 = vadd.f32 %v2553_v57, %v10049_v46  ;;  %v6951_v37 = vpop.f32.mrb[11].mxu0  ;;  %v3098_v4 = vpop.f32.mrb[10].mxu1  ;;  %v8904_v59 = vadd.f32 %v3095_v52, %v2773_v36 }
 0x2f7   :  { %v7079_v18 = vpop.f32.mrb[11].mxu1 }
 0x2f8   :  { %7189 = vmatmul.mubr.msk.bf16.vlgmr.msra.gmra.mrb[116].mxu0 %vm157_vm1, %v3434_v6  ;;  %v8907_v5 = vadd.f32 %v3098_v4, %v2774_v1  ;;  %v3919_v18 = vld [vmem:[#allocation2 + $0x31] sm:$0xff]  ;;  %v3435_v6 = vpack.c.bf16 %v3375_v13, %v3374_v48  ;;  %v3377_v48 = vld [vmem:[#allocation2 + $0x48] sm:$0xff] }
 0x2f9   :  { %7441 = vmatpush3.bf16.msra.mxu0 %v7726_v19  ;;  %7317 = vmatmul.mubr.msk.bf16.vlgmr.msra.gmra.mrb[116].mxu1 %vm157_vm1, %v3979_v20  ;;  %v3980_v19 = vpack.c.bf16 %v3920_v40, %v3919_v18  ;;  %v3922_v13 = vld [vmem:[#allocation2 + $0x49] sm:$0xff] }
 0x2fa   :  { %10050 = vst [vmem:[#allocation19_spill] sm:$0xff] %v8907_v5  ;;  %7192 = vmatprep.mubr.msk.bf16.mxu0 %vm7738_vm0, %v10014_v15  ;;  %7320 = vmatprep.mubr.msk.bf16.mxu1 %vm7738_vm0, %v10014_v15 }
 0x2fb   :  { %v2558_v28 = vpop.f32.mrb[12].mxu0  ;;  %7442 = vmatprep.subr.bf16.mxu0 %v10014_v15 }
 0x2fc   :  { %v2775_v36 = vadd.f32 %v2558_v28, %v8528_v25  ;;  %v6954_v16 = vpop.f32.mrb[13].mxu0  ;;  %v3103_v52 = vpop.f32.mrb[12].mxu1  ;;  %v3376_v25 = vld [vmem:[#allocation2 + $0x40] sm:$0xff] }
 0x2fd   :  { %v2561_v57 = vpop.f32.mrb[14].mxu0  ;;  %v7082_v7 = vpop.f32.mrb[13].mxu1  ;;  %7443 = vmatpush3.bf16.msra.mxu0 %v7727_v24 }
 0x2fe   :  { %v2776_v20 = vadd.f32 %v2561_v57, %v8531_v0  ;;  %v6955_v46 = vpop.f32.mrb[15].mxu0  ;;  %v3106_v1 = vpop.f32.mrb[14].mxu1  ;;  %v8920_v37 = vadd.f32 %v3103_v52, %v2775_v36  ;;  %v3921_v0 = vld [vmem:[#allocation2 + $0x41] sm:$0xff]  ;;  %v3436_v36 = vpack.c.bf16 %v3377_v48, %v3376_v25  ;;  %v3924_v25 = vld [vmem:[#allocation2 + $0x59] sm:$0xff] }
 0x2ff   :  { %v7083_v4 = vpop.f32.mrb[15].mxu1 }
 0x300   :  { %7193 = vmatmul.mubr.msk.bf16.gmra.mrb[120].mxu0 %vm157_vm1, %v3435_v6  ;;  %v8923_v5 = vadd.f32 %v3106_v1, %v2776_v20  ;;  %v3981_v6 = vpack.c.bf16 %v3922_v13, %v3921_v0  ;;  %v3379_v4 = vld [vmem:[#allocation2 + $0x58] sm:$0xff] }
 0x301   :  { %7321 = vmatmul.mubr.msk.bf16.gmra.mrb[120].mxu1 %vm157_vm1, %v3980_v19  ;;  %7196 = vmatprep.mubr.msk.bf16.mxu0 %vm7738_vm0, %v10014_v15 }
 0x302   :  { %7324 = vmatprep.mubr.msk.bf16.mxu1 %vm7738_vm0, %v10014_v15 }
 0x303   :  { %v2566_v24 = vpop.f32.mrb[16].mxu0 }
 0x304   :  { %v2777_v18 = vadd.f32 %v2566_v24, %v8541_v63  ;;  %v6958_v40 = vpop.f32.mrb[17].mxu0  ;;  %v3111_v28 = vpop.f32.mrb[16].mxu1  ;;  %v3378_v63 = vld [vmem:[#allocation2 + $0x50] sm:$0xff] }
 0x305   :  { %v2569_v16 = vpop.f32.mrb[18].mxu0  ;;  %v7086_v52 = vpop.f32.mrb[17].mxu1 }
 0x306   :  { %v2778_v57 = vadd.f32 %v2569_v16, %v8543_v33  ;;  %v6959_v7 = vpop.f32.mrb[19].mxu0  ;;  %v3114_v19 = vpop.f32.mrb[18].mxu1  ;;  %v8932_v20 = vadd.f32 %v3111_v28, %v2777_v18  ;;  %v3923_v33 = vld [vmem:[#allocation2 + $0x51] sm:$0xff]  ;;  %v3437_v18 = vpack.c.bf16 %v3379_v4, %v3378_v63  ;;  %v3926_v63 = vld [vmem:[#allocation2 + $0x69] sm:$0xff] }
 0x307   :  { %v7087_v46 = vpop.f32.mrb[19].mxu1 }
 0x308   :  { %7197 = vmatmul.mubr.msk.bf16.gmra.mrb[124].mxu0 %vm157_vm1, %v3436_v36  ;;  %v8935_v1 = vadd.f32 %v3114_v19, %v2778_v57  ;;  %v3982_v36 = vpack.c.bf16 %v3924_v25, %v3923_v33  ;;  %v3381_v46 = vld [vmem:[#allocation2 + $0x68] sm:$0xff] }
 0x309   :  { %7325 = vmatmul.mubr.msk.bf16.gmra.mrb[124].mxu1 %vm157_vm1, %v3981_v6  ;;  %7200 = vmatprep.mubr.msk.bf16.mxu0 %vm7738_vm0, %v10014_v15 }
 0x30a   :  { %7328 = vmatprep.mubr.msk.bf16.mxu1 %vm7738_vm0, %v10014_v15 }
 0x30b   :  { %v2574_v48 = vpop.f32.mrb[20].mxu0 }
 0x30c   :  { %v2779_v0 = vadd.f32 %v2574_v48, %v8553_v54  ;;  %v6962_v13 = vpop.f32.mrb[21].mxu0  ;;  %v3119_v24 = vpop.f32.mrb[20].mxu1  ;;  %v3380_v54 = vld [vmem:[#allocation2 + $0x60] sm:$0xff] }
 0x30d   :  { %v2577_v40 = vpop.f32.mrb[22].mxu0  ;;  %v7090_v28 = vpop.f32.mrb[21].mxu1 }
 0x30e   :  { %v2780_v16 = vadd.f32 %v2577_v40, %v8555_v58  ;;  %v6963_v52 = vpop.f32.mrb[23].mxu0  ;;  %v3122_v6 = vpop.f32.mrb[22].mxu1  ;;  %v8944_v57 = vadd.f32 %v3119_v24, %v2779_v0  ;;  %v3925_v58 = vld [vmem:[#allocation2 + $0x61] sm:$0xff]  ;;  %v3438_v0 = vpack.c.bf16 %v3381_v46, %v3380_v54  ;;  %v3928_v54 = vld [vmem:[#allocation2 + $0x79] sm:$0xff] }
 0x30f   :  { %v7091_v7 = vpop.f32.mrb[23].mxu1 }
 0x310   :  { %7201 = vmatmul.mubr.msk.bf16.gmra.mrb[128].mxu0 %vm157_vm1, %v3437_v18  ;;  %v8947_v19 = vadd.f32 %v3122_v6, %v2780_v16  ;;  %v3983_v18 = vpack.c.bf16 %v3926_v63, %v3925_v58  ;;  %v3383_v7 = vld [vmem:[#allocation2 + $0x78] sm:$0xff] }
 0x311   :  { %7329 = vmatmul.mubr.msk.bf16.gmra.mrb[128].mxu1 %vm157_vm1, %v3982_v36  ;;  %7204 = vmatprep.mubr.msk.bf16.mxu0 %vm7738_vm0, %v10014_v15 }
 0x312   :  { %7332 = vmatprep.mubr.msk.bf16.mxu1 %vm7738_vm0, %v10014_v15 }
 0x313   :  { %v2582_v4 = vpop.f32.mrb[24].mxu0 }
 0x314   :  { %v2781_v33 = vadd.f32 %v2582_v4, %v8565_v62  ;;  %v6966_v25 = vpop.f32.mrb[25].mxu0  ;;  %v3127_v48 = vpop.f32.mrb[24].mxu1  ;;  %v3382_v62 = vld [vmem:[#allocation2 + $0x70] sm:$0xff] }
 0x315   :  { %v2585_v13 = vpop.f32.mrb[26].mxu0  ;;  %v7094_v24 = vpop.f32.mrb[25].mxu1 }
 0x316   :  { %v2782_v40 = vadd.f32 %v2585_v13, %v8567_v51  ;;  %v6967_v28 = vpop.f32.mrb[27].mxu0  ;;  %v3130_v36 = vpop.f32.mrb[26].mxu1  ;;  %v8956_v16 = vadd.f32 %v3127_v48, %v2781_v33  ;;  %v3927_v51 = vld [vmem:[#allocation2 + $0x71] sm:$0xff]  ;;  %v3439_v33 = vpack.c.bf16 %v3383_v7, %v3382_v62  ;;  %v3930_v62 = vld [vmem:[#allocation2 + $0x89] sm:$0xff] }
 0x317   :  { %v7095_v52 = vpop.f32.mrb[27].mxu1 }
 0x318   :  { %7205 = vmatmul.mubr.msk.bf16.gmra.mrb[132].mxu0 %vm157_vm1, %v3438_v0  ;;  %v8959_v6 = vadd.f32 %v3130_v36, %v2782_v40  ;;  %v3984_v0 = vpack.c.bf16 %v3928_v54, %v3927_v51  ;;  %v3385_v52 = vld [vmem:[#allocation2 + $0x88] sm:$0xff] }
 0x319   :  { %7333 = vmatmul.mubr.msk.bf16.gmra.mrb[132].mxu1 %vm157_vm1, %v3983_v18  ;;  %7208 = vmatprep.mubr.msk.bf16.mxu0 %vm7738_vm0, %v10014_v15 }
 0x31a   :  { %7336 = vmatprep.mubr.msk.bf16.mxu1 %vm7738_vm0, %v10014_v15 }
 0x31b   :  { %v2590_v46 = vpop.f32.mrb[28].mxu0 }
 0x31c   :  { %v2783_v58 = vadd.f32 %v2590_v46, %v8577_v55  ;;  %v6970_v63 = vpop.f32.mrb[29].mxu0  ;;  %v3135_v4 = vpop.f32.mrb[28].mxu1  ;;  %v3384_v55 = vld [vmem:[#allocation2 + $0x80] sm:$0xff] }
 0x31d   :  { %v2593_v25 = vpop.f32.mrb[30].mxu0  ;;  %v7098_v48 = vpop.f32.mrb[29].mxu1 }
 0x31e   :  { %v2784_v13 = vadd.f32 %v2593_v25, %v8579_v45  ;;  %v6971_v24 = vpop.f32.mrb[31].mxu0  ;;  %v3138_v18 = vpop.f32.mrb[30].mxu1  ;;  %v8968_v40 = vadd.f32 %v3135_v4, %v2783_v58  ;;  %v3929_v45 = vld [vmem:[#allocation2 + $0x81] sm:$0xff]  ;;  %v3440_v58 = vpack.c.bf16 %v3385_v52, %v3384_v55  ;;  %v3932_v55 = vld [vmem:[#allocation2 + $0x99] sm:$0xff] }
 0x31f   :  { %v7099_v28 = vpop.f32.mrb[31].mxu1 }
 0x320   :  { %7209 = vmatmul.mubr.msk.bf16.gmra.mrb[136].mxu0 %vm157_vm1, %v3439_v33  ;;  %v8971_v36 = vadd.f32 %v3138_v18, %v2784_v13  ;;  %v3985_v33 = vpack.c.bf16 %v3930_v62, %v3929_v45  ;;  %v3387_v28 = vld [vmem:[#allocation2 + $0x98] sm:$0xff] }
 0x321   :  { %7337 = vmatmul.mubr.msk.bf16.gmra.mrb[136].mxu1 %vm157_vm1, %v3984_v0  ;;  %7212 = vmatprep.mubr.msk.bf16.mxu0 %vm7738_vm0, %v10014_v15 }
 0x322   :  { %7340 = vmatprep.mubr.msk.bf16.mxu1 %vm7738_vm0, %v10014_v15 }
 0x323   :  { %v2598_v7 = vpop.f32.mrb[32].mxu0 }
 0x324   :  { %v2785_v51 = vadd.f32 %v2598_v7, %v8589_v26  ;;  %v6974_v54 = vpop.f32.mrb[33].mxu0  ;;  %v3143_v46 = vpop.f32.mrb[32].mxu1  ;;  %v3386_v26 = vld [vmem:[#allocation2 + $0x90] sm:$0xff] }
 0x325   :  { %v2601_v63 = vpop.f32.mrb[34].mxu0  ;;  %v7102_v4 = vpop.f32.mrb[33].mxu1 }
 0x326   :  { %v2786_v25 = vadd.f32 %v2601_v63, %v8591_v39  ;;  %v6975_v48 = vpop.f32.mrb[35].mxu0  ;;  %v3146_v0 = vpop.f32.mrb[34].mxu1  ;;  %v8980_v13 = vadd.f32 %v3143_v46, %v2785_v51  ;;  %v3931_v39 = vld [vmem:[#allocation2 + $0x91] sm:$0xff]  ;;  %v3441_v51 = vpack.c.bf16 %v3387_v28, %v3386_v26  ;;  %v3934_v26 = vld [vmem:[#allocation2 + $0xa9] sm:$0xff] }
 0x327   :  { %v7103_v24 = vpop.f32.mrb[35].mxu1 }
 0x328   :  { %7213 = vmatmul.mubr.msk.bf16.gmra.mrb[140].mxu0 %vm157_vm1, %v3440_v58  ;;  %v8983_v18 = vadd.f32 %v3146_v0, %v2786_v25  ;;  %v3986_v58 = vpack.c.bf16 %v3932_v55, %v3931_v39  ;;  %v3389_v24 = vld [vmem:[#allocation2 + $0xa8] sm:$0xff] }
 0x329   :  { %7341 = vmatmul.mubr.msk.bf16.gmra.mrb[140].mxu1 %vm157_vm1, %v3985_v33  ;;  %7216 = vmatprep.mubr.msk.bf16.mxu0 %vm7738_vm0, %v10014_v15 }
 0x32a   :  { %7344 = vmatprep.mubr.msk.bf16.mxu1 %vm7738_vm0, %v10014_v15 }
 0x32b   :  { %v2606_v52 = vpop.f32.mrb[36].mxu0 }
 0x32c   :  { %v2787_v45 = vadd.f32 %v2606_v52, %v8601_v14  ;;  %v6978_v62 = vpop.f32.mrb[37].mxu0  ;;  %v3151_v7 = vpop.f32.mrb[36].mxu1  ;;  %v3388_v14 = vld [vmem:[#allocation2 + $0xa0] sm:$0xff] }
 0x32d   :  { %v2609_v54 = vpop.f32.mrb[38].mxu0  ;;  %v7106_v46 = vpop.f32.mrb[37].mxu1 }
 0x32e   :  { %v2788_v63 = vadd.f32 %v2609_v54, %v8603_v9  ;;  %v6979_v4 = vpop.f32.mrb[39].mxu0  ;;  %v3154_v33 = vpop.f32.mrb[38].mxu1  ;;  %v8992_v25 = vadd.f32 %v3151_v7, %v2787_v45  ;;  %v3933_v9 = vld [vmem:[#allocation2 + $0xa1] sm:$0xff]  ;;  %v3442_v45 = vpack.c.bf16 %v3389_v24, %v3388_v14  ;;  %v3936_v14 = vld [vmem:[#allocation2 + $0xb9] sm:$0xff] }
 0x32f   :  { %v7107_v48 = vpop.f32.mrb[39].mxu1 }
 0x330   :  { %7217 = vmatmul.mubr.msk.bf16.gmra.mrb[144].mxu0 %vm157_vm1, %v3441_v51  ;;  %v8995_v0 = vadd.f32 %v3154_v33, %v2788_v63  ;;  %v3987_v51 = vpack.c.bf16 %v3934_v26, %v3933_v9  ;;  %v3391_v48 = vld [vmem:[#allocation2 + $0xb8] sm:$0xff] }
 0x331   :  { %7345 = vmatmul.mubr.msk.bf16.gmra.mrb[144].mxu1 %vm157_vm1, %v3986_v58  ;;  %7220 = vmatprep.mubr.msk.bf16.mxu0 %vm7738_vm0, %v10014_v15 }
 0x332   :  { %7348 = vmatprep.mubr.msk.bf16.mxu1 %vm7738_vm0, %v10014_v15 }
 0x333   :  { %v2614_v28 = vpop.f32.mrb[40].mxu0 }
 0x334   :  { %v2789_v39 = vadd.f32 %v2614_v28, %v8613_v2  ;;  %v6982_v55 = vpop.f32.mrb[41].mxu0  ;;  %v3159_v52 = vpop.f32.mrb[40].mxu1  ;;  %v3390_v2 = vld [vmem:[#allocation2 + $0xb0] sm:$0xff] }
 0x335   :  { %v2617_v62 = vpop.f32.mrb[42].mxu0  ;;  %v7110_v7 = vpop.f32.mrb[41].mxu1 }
 0x336   :  { %v2790_v54 = vadd.f32 %v2617_v62, %v8615_v47  ;;  %v6983_v46 = vpop.f32.mrb[43].mxu0  ;;  %v3162_v58 = vpop.f32.mrb[42].mxu1  ;;  %v9004_v63 = vadd.f32 %v3159_v52, %v2789_v39  ;;  %v3935_v47 = vld [vmem:[#allocation2 + $0xb1] sm:$0xff]  ;;  %v3443_v39 = vpack.c.bf16 %v3391_v48, %v3390_v2  ;;  %v3938_v2 = vld [vmem:[#allocation2 + $0xc9] sm:$0xff] }
 0x337   :  { %v7111_v4 = vpop.f32.mrb[43].mxu1 }
 0x338   :  { %7221 = vmatmul.mubr.msk.bf16.gmra.mrb[148].mxu0 %vm157_vm1, %v3442_v45  ;;  %v9007_v33 = vadd.f32 %v3162_v58, %v2790_v54  ;;  %v3988_v45 = vpack.c.bf16 %v3936_v14, %v3935_v47  ;;  %v3393_v4 = vld [vmem:[#allocation2 + $0xc8] sm:$0xff] }
 0x339   :  { %7349 = vmatmul.mubr.msk.bf16.gmra.mrb[148].mxu1 %vm157_vm1, %v3987_v51  ;;  %7224 = vmatprep.mubr.msk.bf16.mxu0 %vm7738_vm0, %v10014_v15 }
 0x33a   :  { %7352 = vmatprep.mubr.msk.bf16.mxu1 %vm7738_vm0, %v10014_v15 }
 0x33b   :  { %v2622_v24 = vpop.f32.mrb[44].mxu0 }
 0x33c   :  { %v2791_v9 = vadd.f32 %v2622_v24, %v8625_v49  ;;  %v6986_v26 = vpop.f32.mrb[45].mxu0  ;;  %v3167_v28 = vpop.f32.mrb[44].mxu1  ;;  %v3392_v49 = vld [vmem:[#allocation2 + $0xc0] sm:$0xff] }
 0x33d   :  { %v2625_v55 = vpop.f32.mrb[46].mxu0  ;;  %v7114_v52 = vpop.f32.mrb[45].mxu1 }
 0x33e   :  { %v2792_v62 = vadd.f32 %v2625_v55, %v8627_v3  ;;  %v6987_v7 = vpop.f32.mrb[47].mxu0  ;;  %v3170_v51 = vpop.f32.mrb[46].mxu1  ;;  %v9016_v54 = vadd.f32 %v3167_v28, %v2791_v9  ;;  %v3937_v3 = vld [vmem:[#allocation2 + $0xc1] sm:$0xff]  ;;  %v3444_v9 = vpack.c.bf16 %v3393_v4, %v3392_v49  ;;  %v3940_v49 = vld [vmem:[#allocation2 + $0xd9] sm:$0xff] }
 0x33f   :  { %v7115_v46 = vpop.f32.mrb[47].mxu1 }
 0x340   :  { %7225 = vmatmul.mubr.msk.bf16.gmra.mrb[152].mxu0 %vm157_vm1, %v3443_v39  ;;  %v9019_v58 = vadd.f32 %v3170_v51, %v2792_v62  ;;  %v3989_v39 = vpack.c.bf16 %v3938_v2, %v3937_v3  ;;  %v3395_v46 = vld [vmem:[#allocation2 + $0xd8] sm:$0xff] }
 0x341   :  { %7353 = vmatmul.mubr.msk.bf16.gmra.mrb[152].mxu1 %vm157_vm1, %v3988_v45  ;;  %7228 = vmatprep.mubr.msk.bf16.mxu0 %vm7738_vm0, %v10014_v15 }
 0x342   :  { %7356 = vmatprep.mubr.msk.bf16.mxu1 %vm7738_vm0, %v10014_v15 }
 0x343   :  { %v2630_v48 = vpop.f32.mrb[48].mxu0 }
 0x344   :  { %v2793_v47 = vadd.f32 %v2630_v48, %v8637_v29  ;;  %v6990_v14 = vpop.f32.mrb[49].mxu0  ;;  %v3175_v24 = vpop.f32.mrb[48].mxu1  ;;  %v3394_v29 = vld [vmem:[#allocation2 + $0xd0] sm:$0xff] }
 0x345   :  { %v2633_v26 = vpop.f32.mrb[50].mxu0  ;;  %v7118_v28 = vpop.f32.mrb[49].mxu1 }
 0x346   :  { %v2794_v55 = vadd.f32 %v2633_v26, %v8639_v21  ;;  %v6991_v52 = vpop.f32.mrb[51].mxu0  ;;  %v3178_v45 = vpop.f32.mrb[50].mxu1  ;;  %v9028_v62 = vadd.f32 %v3175_v24, %v2793_v47  ;;  %v3939_v21 = vld [vmem:[#allocation2 + $0xd1] sm:$0xff]  ;;  %v3445_v47 = vpack.c.bf16 %v3395_v46, %v3394_v29  ;;  %v3942_v29 = vld [vmem:[#allocation2 + $0xe9] sm:$0xff] }
 0x347   :  { %v7119_v7 = vpop.f32.mrb[51].mxu1 }
 0x348   :  { %7229 = vmatmul.mubr.msk.bf16.gmra.mrb[156].mxu0 %vm157_vm1, %v3444_v9  ;;  %v9031_v51 = vadd.f32 %v3178_v45, %v2794_v55  ;;  %v3990_v9 = vpack.c.bf16 %v3940_v49, %v3939_v21  ;;  %v3397_v7 = vld [vmem:[#allocation2 + $0xe8] sm:$0xff] }
 0x349   :  { %7357 = vmatmul.mubr.msk.bf16.gmra.mrb[156].mxu1 %vm157_vm1, %v3989_v39  ;;  %7232 = vmatprep.mubr.msk.bf16.mxu0 %vm7738_vm0, %v10014_v15 }
 0x34a   :  { %7360 = vmatprep.mubr.msk.bf16.mxu1 %vm7738_vm0, %v10014_v15 }
 0x34b   :  { %v2638_v4 = vpop.f32.mrb[52].mxu0 }
 0x34c   :  { %v2795_v3 = vadd.f32 %v2638_v4, %v8649_v23  ;;  %v6994_v2 = vpop.f32.mrb[53].mxu0  ;;  %v3183_v48 = vpop.f32.mrb[52].mxu1  ;;  %v3396_v23 = vld [vmem:[#allocation2 + $0xe0] sm:$0xff] }
 0x34d   :  { %v2641_v14 = vpop.f32.mrb[54].mxu0  ;;  %v7122_v24 = vpop.f32.mrb[53].mxu1 }
 0x34e   :  { %v2796_v26 = vadd.f32 %v2641_v14, %v8651_v42  ;;  %v6995_v28 = vpop.f32.mrb[55].mxu0  ;;  %v3186_v39 = vpop.f32.mrb[54].mxu1  ;;  %v9040_v55 = vadd.f32 %v3183_v48, %v2795_v3  ;;  %v3941_v42 = vld [vmem:[#allocation2 + $0xe1] sm:$0xff]  ;;  %v3446_v3 = vpack.c.bf16 %v3397_v7, %v3396_v23  ;;  %v3944_v23 = vld [vmem:[#allocation2 + $0xf9] sm:$0xff] }
 0x34f   :  { %v7123_v52 = vpop.f32.mrb[55].mxu1 }
 0x350   :  { %7233 = vmatmul.mubr.msk.bf16.gmra.mrb[160].mxu0 %vm157_vm1, %v3445_v47  ;;  %v9043_v45 = vadd.f32 %v3186_v39, %v2796_v26  ;;  %v3991_v47 = vpack.c.bf16 %v3942_v29, %v3941_v42  ;;  %v3398_v39 = vld [vmem:[#allocation2 + $0xf0] sm:$0xff]  ;;  %v3399_v52 = vld [vmem:[#allocation2 + $0xf8] sm:$0xff] }
 0x351   :  { %7361 = vmatmul.mubr.msk.bf16.gmra.mrb[160].mxu1 %vm157_vm1, %v3990_v9  ;;  %7236 = vmatprep.mubr.msk.bf16.mxu0 %vm7738_vm0, %v10014_v15 }
 0x352   :  { %10051 = vst [vmem:[#allocation20_spill] sm:$0xff] %v9043_v45  ;;  %7364 = vmatprep.mubr.msk.bf16.mxu1 %vm7738_vm0, %v10014_v15  ;;  %v7728_v45 = vld [vmem:[%s9990_s3] sm:$0xff]  }
 0x353   :  { %v2646_v46 = vpop.f32.mrb[56].mxu0  ;;  %7569 = vmatpush3.bf16.msra.mxu1 %v7728_v45 }
 0x354   :  { %v2797_v21 = vadd.f32 %v2646_v46, %v8661_v34  ;;  %v6998_v49 = vpop.f32.mrb[57].mxu0  ;;  %v3191_v4 = vpop.f32.mrb[56].mxu1  ;;  %v3943_v34 = vld [vmem:[#allocation2 + $0xf1] sm:$0xff]  ;;  %7570 = vmatprep.subr.bf16.mxu1 %v10014_v15 }
 0x355   :  { %v2649_v2 = vpop.f32.mrb[58].mxu0  ;;  %v7126_v48 = vpop.f32.mrb[57].mxu1 }
 0x356   :  { %v2798_v14 = vadd.f32 %v2649_v2, %v8666_v8  ;;  %v6999_v24 = vpop.f32.mrb[59].mxu0  ;;  %v3194_v9 = vpop.f32.mrb[58].mxu1  ;;  %v9052_v26 = vadd.f32 %v3191_v4, %v2797_v21  ;;  %v3447_v21 = vpack.c.bf16 %v3399_v52, %v3398_v39  ;;  %v7736_v2 = vld [vmem:[%s9989_s0 + $0x100] sm:$0xff]   ;;  %v3401_v52 = vld [vmem:[#allocation2 + $0x108] sm:$0xff] }
 0x357   :  { %v7127_v28 = vpop.f32.mrb[59].mxu1  ;;  %v6042_v48 = vunpack.c.h.bf16 %v7736_v2  ;;  %v6079_v24 = vld [vmem:[%s9989_s0 + $0x108] sm:$0xff]  }
 0x358   :  { %7237 = vmatmul.mubr.msk.bf16.gmra.mrb[164].mxu0 %vm157_vm1, %v3446_v3  ;;  %v9058_v7 = vadd.f32 %v3194_v9, %v2798_v14  ;;  %v3992_v3 = vpack.c.bf16 %v3944_v23, %v3943_v34  ;;  %v6045_v28 = vunpack.c.l.bf16 %v6079_v24  ;;  %v3945_v34 = vld [vmem:[#allocation2 + $0x101] sm:$0xff]  ;;  %v3946_v23 = vld [vmem:[#allocation2 + $0x109] sm:$0xff] }
 0x359   :  { %7365 = vmatmul.mubr.msk.bf16.gmra.mrb[164].mxu1 %vm157_vm1, %v3991_v47  ;;  %7240 = vmatprep.mubr.msk.bf16.mxu0 %vm7738_vm0, %v10014_v15  ;;  %223 = vst.msk [vmem:[#allocation2 + $0x208] sm:$0xff] %vm157_vm1, %v6042_v48 }
 0x35a   :  { %7368 = vmatprep.mubr.msk.bf16.mxu1 %vm7738_vm0, %v10014_v15  ;;  %224 = vst.msk [vmem:[#allocation2 + $0x210] sm:$0xff] %vm157_vm1, %v6045_v28  ;;  %v3948_v28 = vld [vmem:[#allocation2 + $0x119] sm:$0xff] }
 0x35b   :  { %v2654_v8 = vpop.f32.mrb[60].mxu0 }
 0x35c   :  { %v2799_v42 = vadd.f32 %v2654_v8, %v8680_v56  ;;  %v7002_v29 = vpop.f32.mrb[61].mxu0  ;;  %v3199_v46 = vpop.f32.mrb[60].mxu1 }
 0x35d   :  { %v2657_v49 = vpop.f32.mrb[62].mxu0  ;;  %v7130_v4 = vpop.f32.mrb[61].mxu1 }
 0x35e   :  { %v2800_v47 = vadd.f32 %v2657_v49, %v8683_v31  ;;  %v7003_v14 = vpop.f32.mrb[63].mxu0  ;;  %v3202_v45 = vpop.f32.mrb[62].mxu1  ;;  %v9074_v56 = vadd.f32 %v3199_v46, %v2799_v42  ;;  %v3400_v31 = vld [vmem:[#allocation2 + $0x100] sm:$0xff] }
 0x35f   :  { %v7131_v9 = vpop.f32.mrb[63].mxu1 }
 0x360   :  { %7241 = vmatmul.mubr.msk.bf16.gmra.mrb[168].mxu0 %vm157_vm1, %v3447_v21  ;;  %v9078_v39 = vadd.f32 %v3202_v45, %v2800_v47  ;;  %v3448_v21 = vpack.c.bf16 %v3401_v52, %v3400_v31  ;;  %v3403_v9 = vld [vmem:[#allocation2 + $0x118] sm:$0xff] }
 0x361   :  { %7369 = vmatmul.mubr.msk.bf16.gmra.mrb[168].mxu1 %vm157_vm1, %v3992_v3  ;;  %7244 = vmatprep.mubr.msk.bf16.mxu0 %vm7738_vm0, %v10014_v15  ;;  %v3993_v3 = vpack.c.bf16 %v3946_v23, %v3945_v34 }
 0x362   :  { %7372 = vmatprep.mubr.msk.bf16.mxu1 %vm7738_vm0, %v10014_v15 }
 0x363   :  { %v2662_v8 = vpop.f32.mrb[64].mxu0 }
 0x364   :  { %v2801_v42 = vadd.f32 %v2662_v8, %v8693_v53  ;;  %v7006_v29 = vpop.f32.mrb[65].mxu0  ;;  %v3207_v46 = vpop.f32.mrb[64].mxu1  ;;  %v3402_v53 = vld [vmem:[#allocation2 + $0x110] sm:$0xff] }
 0x365   :  { %v2665_v49 = vpop.f32.mrb[66].mxu0  ;;  %v7134_v4 = vpop.f32.mrb[65].mxu1  ;;  %v3449_v8 = vpack.c.bf16 %v3403_v9, %v3402_v53 }
 0x366   :  { %v2802_v2 = vadd.f32 %v2665_v49, %v8695_v32  ;;  %v7007_v48 = vpop.f32.mrb[67].mxu0  ;;  %v3210_v47 = vpop.f32.mrb[66].mxu1  ;;  %v9088_v14 = vadd.f32 %v3207_v46, %v2801_v42  ;;  %v3947_v32 = vld [vmem:[#allocation2 + $0x111] sm:$0xff] }
 0x367   :  { %v7135_v45 = vpop.f32.mrb[67].mxu1  ;;  %v3994_v46 = vpack.c.bf16 %v3948_v28, %v3947_v32 }
 0x368   :  { %7245 = vmatmul.mubr.msk.bf16.gmra.mrb[172].mxu0 %vm157_vm1, %v3448_v21  ;;  %v9091_v24 = vadd.f32 %v3210_v47, %v2802_v2  ;;  %v3405_v47 = vld [vmem:[#allocation2 + $0x128] sm:$0xff] }
 0x369   :  { %7373 = vmatmul.mubr.msk.bf16.gmra.mrb[172].mxu1 %vm157_vm1, %v3993_v3  ;;  %7248 = vmatprep.mubr.msk.bf16.mxu0 %vm7738_vm0, %v10014_v15  ;;  %v3950_v45 = vld [vmem:[#allocation2 + $0x129] sm:$0xff] }
 0x36a   :  { %7376 = vmatprep.mubr.msk.bf16.mxu1 %vm7738_vm0, %v10014_v15 }
 0x36b   :  { %v2670_v31 = vpop.f32.mrb[68].mxu0 }
 0x36c   :  { %v2803_v52 = vadd.f32 %v2670_v31, %v8705_v35  ;;  %v7010_v34 = vpop.f32.mrb[69].mxu0  ;;  %v3215_v23 = vpop.f32.mrb[68].mxu1  ;;  %v3404_v35 = vld [vmem:[#allocation2 + $0x120] sm:$0xff] }
 0x36d   :  { %v2673_v42 = vpop.f32.mrb[70].mxu0  ;;  %v7138_v29 = vpop.f32.mrb[69].mxu1  ;;  %v3450_v31 = vpack.c.bf16 %v3405_v47, %v3404_v35  ;;  %v3952_v35 = vld [vmem:[#allocation2 + $0x139] sm:$0xff] }
 0x36e   :  { %v2804_v21 = vadd.f32 %v2673_v42, %v8710_v22  ;;  %v7011_v49 = vpop.f32.mrb[71].mxu0  ;;  %v3218_v4 = vpop.f32.mrb[70].mxu1  ;;  %v9100_v3 = vadd.f32 %v3215_v23, %v2803_v52  ;;  %v3949_v22 = vld [vmem:[#allocation2 + $0x121] sm:$0xff] }
 0x36f   :  { %v7139_v2 = vpop.f32.mrb[71].mxu1  ;;  %v3995_v23 = vpack.c.bf16 %v3950_v45, %v3949_v22 }
 0x370   :  { %7249 = vmatmul.mubr.msk.bf16.gmra.mrb[176].mxu0 %vm157_vm1, %v3449_v8  ;;  %v9103_v48 = vadd.f32 %v3218_v4, %v2804_v21  ;;  %v3407_v4 = vld [vmem:[#allocation2 + $0x138] sm:$0xff] }
 0x371   :  { %7377 = vmatmul.mubr.msk.bf16.gmra.mrb[176].mxu1 %vm157_vm1, %v3994_v46  ;;  %7252 = vmatprep.mubr.msk.bf16.mxu0 %vm7738_vm0, %v10014_v15  ;;  %v7729_v46 = vld [vmem:[%s9990_s3 + $0x8] sm:$0xff]  }
 0x372   :  { %7380 = vmatprep.mubr.msk.bf16.mxu1 %vm7738_vm0, %v10014_v15  ;;  %7571 = vmatpush3.bf16.msra.mxu1 %v7729_v46  ;;  %v3951_v2 = vld [vmem:[#allocation2 + $0x131] sm:$0xff]  ;;  %v3409_v46 = vld [vmem:[#allocation2 + $0x148] sm:$0xff] }
 0x373   :  { %v2678_v53 = vpop.f32.mrb[72].mxu0  ;;  %7572 = vmatprep.subr.bf16.mxu1 %v10014_v15 }
 0x374   :  { %v2805_v9 = vadd.f32 %v2678_v53, %v8721_v11  ;;  %v7014_v32 = vpop.f32.mrb[73].mxu0  ;;  %v3223_v28 = vpop.f32.mrb[72].mxu1 }
 0x375   :  { %v2681_v52 = vpop.f32.mrb[74].mxu0  ;;  %v7142_v34 = vpop.f32.mrb[73].mxu1 }
 0x376   :  { %v2806_v8 = vadd.f32 %v2681_v52, %v8723_v17  ;;  %v7015_v42 = vpop.f32.mrb[75].mxu0  ;;  %v3226_v29 = vpop.f32.mrb[74].mxu1  ;;  %v9115_v21 = vadd.f32 %v3223_v28, %v2805_v9  ;;  %v3406_v17 = vld [vmem:[#allocation2 + $0x130] sm:$0xff] }
 0x377   :  { %v7143_v49 = vpop.f32.mrb[75].mxu1  ;;  %v3451_v9 = vpack.c.bf16 %v3407_v4, %v3406_v17  ;;  %v10052_v4 = vld [vmem:[#allocation3_spill] sm:$0xff] }
 0x378   :  { %7253 = vmatmul.mubr.msk.bf16.gmra.mrb[180].mxu0 %vm157_vm1, %v3450_v31  ;;  %v9118_v11 = vadd.f32 %v3226_v29, %v2806_v8  ;;  %v3996_v31 = vpack.c.bf16 %v3952_v35, %v3951_v2  ;;  %v3954_v49 = vld [vmem:[#allocation2 + $0x149] sm:$0xff] }
 0x379   :  { %7381 = vmatmul.mubr.msk.bf16.gmra.mrb[180].mxu1 %vm157_vm1, %v3995_v23  ;;  %7256 = vmatprep.mubr.msk.bf16.mxu0 %vm7738_vm0, %v10014_v15 }
 0x37a   :  { %7384 = vmatprep.mubr.msk.bf16.mxu1 %vm7738_vm0, %v10014_v15 }
 0x37b   :  { %v2686_v47 = vpop.f32.mrb[76].mxu0 }
 0x37c   :  { %v2807_v22 = vadd.f32 %v2686_v47, %v8733_v38  ;;  %v7018_v45 = vpop.f32.mrb[77].mxu0  ;;  %v3231_v53 = vpop.f32.mrb[76].mxu1  ;;  %v3408_v38 = vld [vmem:[#allocation2 + $0x140] sm:$0xff] }
 0x37d   :  { %v2689_v32 = vpop.f32.mrb[78].mxu0  ;;  %v7146_v28 = vpop.f32.mrb[77].mxu1 }
 0x37e   :  { %v2808_v52 = vadd.f32 %v2689_v32, %v8735_v43  ;;  %v7019_v34 = vpop.f32.mrb[79].mxu0  ;;  %v3234_v23 = vpop.f32.mrb[78].mxu1  ;;  %v9128_v8 = vadd.f32 %v3231_v53, %v2807_v22  ;;  %v3953_v43 = vld [vmem:[#allocation2 + $0x141] sm:$0xff]  ;;  %v3452_v22 = vpack.c.bf16 %v3409_v46, %v3408_v38  ;;  %v10053_v32 = vld [vmem:[#allocation21_spill] sm:$0xff]  ;;  %v3411_v46 = vld [vmem:[#allocation2 + $0x158] sm:$0xff] }
 0x37f   :  { %v7147_v42 = vpop.f32.mrb[79].mxu1  ;;  %v3410_v38 = vld [vmem:[#allocation2 + $0x150] sm:$0xff] }
 0x380   :  { %7257 = vmatmul.mubr.msk.bf16.gmra.mrb[184].mxu0 %vm157_vm1, %v3451_v9  ;;  %v9131_v29 = vadd.f32 %v3234_v23, %v2808_v52  ;;  %v3997_v9 = vpack.c.bf16 %v3954_v49, %v3953_v43  ;;  %v3955_v43 = vld [vmem:[#allocation2 + $0x151] sm:$0xff]  ;;  %v3956_v49 = vld [vmem:[#allocation2 + $0x159] sm:$0xff] }
 0x381   :  { %7385 = vmatmul.mubr.msk.bf16.gmra.mrb[184].mxu1 %vm157_vm1, %v3996_v31  ;;  %7260 = vmatprep.mubr.msk.bf16.mxu0 %vm7738_vm0, %v10014_v15 }
 0x382   :  { %7388 = vmatprep.mubr.msk.bf16.mxu1 %vm7738_vm0, %v10014_v15 }
 0x383   :  { %v2694_v17 = vpop.f32.mrb[80].mxu0 }
 0x384   :  { %v2809_v2 = vadd.f32 %v2694_v17, %v10052_v4  ;;  %v7022_v35 = vpop.f32.mrb[81].mxu0  ;;  %v3239_v47 = vpop.f32.mrb[80].mxu1  ;;  %v10056_v4 = vld [vmem:[#allocation4_spill] sm:$0xff] }
 0x385   :  { %v2697_v45 = vpop.f32.mrb[82].mxu0  ;;  %v7150_v53 = vpop.f32.mrb[81].mxu1 }
 0x386   :  { %v2810_v28 = vadd.f32 %v2697_v45, %v10053_v32  ;;  %v7023_v31 = vpop.f32.mrb[83].mxu0  ;;  %v3242_v52 = vpop.f32.mrb[82].mxu1  ;;  %v9140_v34 = vadd.f32 %v3239_v47, %v2809_v2  ;;  %v3998_v32 = vpack.c.bf16 %v3956_v49, %v3955_v43  ;;  %v3957_v43 = vld [vmem:[#allocation2 + $0x161] sm:$0xff]  ;;  %v3958_v49 = vld [vmem:[#allocation2 + $0x169] sm:$0xff] }
 0x387   :  { %v7151_v23 = vpop.f32.mrb[83].mxu1 }
 0x388   :  { %10054 = vst [vmem:[#allocation3_spill] sm:$0xff] %v9140_v34  ;;  %7261 = vmatmul.mubr.msk.bf16.gmra.mrb[188].mxu0 %vm157_vm1, %v3452_v22  ;;  %v9143_v42 = vadd.f32 %v3242_v52, %v2810_v28  ;;  %v3453_v22 = vpack.c.bf16 %v3411_v46, %v3410_v38  ;;  %v3412_v38 = vld [vmem:[#allocation2 + $0x160] sm:$0xff]  ;;  %v3413_v46 = vld [vmem:[#allocation2 + $0x168] sm:$0xff] }
 0x389   :  { %7389 = vmatmul.mubr.msk.bf16.gmra.mrb[188].mxu1 %vm157_vm1, %v3997_v9  ;;  %7264 = vmatprep.mubr.msk.bf16.mxu0 %vm7738_vm0, %v10014_v15  ;;  %v10057_v9 = vld [vmem:[#allocation5_spill] sm:$0xff] }
 0x38a   :  { %10055 = vst [vmem:[#allocation21_spill] sm:$0xff] %v9143_v42  ;;  %7392 = vmatprep.mubr.msk.bf16.mxu1 %vm7738_vm0, %v10014_v15 }
 0x38b   :  { %v2702_v17 = vpop.f32.mrb[84].mxu0 }
 0x38c   :  { %v2811_v2 = vadd.f32 %v2702_v17, %v10056_v4  ;;  %v7026_v35 = vpop.f32.mrb[85].mxu0  ;;  %v3247_v47 = vpop.f32.mrb[84].mxu1  ;;  %v10060_v4 = vld [vmem:[#allocation6_spill] sm:$0xff] }
 0x38d   :  { %v2705_v45 = vpop.f32.mrb[86].mxu0  ;;  %v7154_v53 = vpop.f32.mrb[85].mxu1 }
 0x38e   :  { %v2812_v28 = vadd.f32 %v2705_v45, %v10057_v9  ;;  %v7027_v31 = vpop.f32.mrb[87].mxu0  ;;  %v3250_v52 = vpop.f32.mrb[86].mxu1  ;;  %v9152_v23 = vadd.f32 %v3247_v47, %v2811_v2  ;;  %v3454_v47 = vpack.c.bf16 %v3413_v46, %v3412_v38  ;;  %v10061_v9 = vld [vmem:[#allocation7_spill] sm:$0xff]  ;;  %v3414_v46 = vld [vmem:[#allocation2 + $0x170] sm:$0xff] }
 0x38f   :  { %v7155_v42 = vpop.f32.mrb[87].mxu1 }
 0x390   :  { %10058 = vst [vmem:[#allocation4_spill] sm:$0xff] %v9152_v23  ;;  %7265 = vmatmul.mubr.msk.bf16.gmra.mrb[192].mxu0 %vm157_vm1, %v3453_v22  ;;  %v9155_v34 = vadd.f32 %v3250_v52, %v2812_v28  ;;  %v7730_v22 = vld [vmem:[%s9990_s3 + $0x10] sm:$0xff]  }
 0x391   :  { %7393 = vmatmul.mubr.msk.bf16.gmra.mrb[192].mxu1 %vm157_vm1, %v3998_v32  ;;  %7268 = vmatprep.mubr.msk.bf16.mxu0 %vm7738_vm0, %v10014_v15  ;;  %v3999_v32 = vpack.c.bf16 %v3958_v49, %v3957_v43  ;;  %v3415_v43 = vld [vmem:[#allocation2 + $0x178] sm:$0xff] }
 0x392   :  { %10059 = vst [vmem:[#allocation5_spill] sm:$0xff] %v9155_v34  ;;  %7396 = vmatprep.mubr.msk.bf16.mxu1 %vm7738_vm0, %v10014_v15  ;;  %7573 = vmatpush3.bf16.msra.mxu1 %v7730_v22  ;;  %v3959_v49 = vld [vmem:[#allocation2 + $0x171] sm:$0xff] }
 0x393   :  { %v2710_v17 = vpop.f32.mrb[88].mxu0  ;;  %7574 = vmatprep.subr.bf16.mxu1 %v10014_v15 }
 0x394   :  { %v2813_v2 = vadd.f32 %v2710_v17, %v10060_v4  ;;  %v7030_v42 = vpop.f32.mrb[89].mxu0  ;;  %v3255_v35 = vpop.f32.mrb[88].mxu1  ;;  %v3960_v17 = vld [vmem:[#allocation2 + $0x179] sm:$0xff] }
 0x395   :  { %v2713_v45 = vpop.f32.mrb[90].mxu0  ;;  %v7158_v53 = vpop.f32.mrb[89].mxu1 }
 0x396   :  { %v2814_v28 = vadd.f32 %v2713_v45, %v10061_v9  ;;  %v7031_v31 = vpop.f32.mrb[91].mxu0  ;;  %v3258_v52 = vpop.f32.mrb[90].mxu1  ;;  %v9167_v34 = vadd.f32 %v3255_v35, %v2813_v2  ;;  %v4000_v53 = vpack.c.bf16 %v3960_v17, %v3959_v49  ;;  %v3961_v49 = vld [vmem:[#allocation2 + $0x181] sm:$0xff]  ;;  %v3962_v17 = vld [vmem:[#allocation2 + $0x189] sm:$0xff] }
 0x397   :  { %v7159_v23 = vpop.f32.mrb[91].mxu1 }
 0x398   :  { %10062 = vst [vmem:[#allocation6_spill] sm:$0xff] %v9167_v34  ;;  %7269 = vmatmul.mubr.msk.bf16.gmra.mrb[196].mxu0 %vm157_vm1, %v3454_v47  ;;  %v9171_v38 = vadd.f32 %v3258_v52, %v2814_v28  ;;  %v10064_v23 = vld [vmem:[#allocation8_spill] sm:$0xff]  ;;  %v3455_v47 = vpack.c.bf16 %v3415_v43, %v3414_v46  ;;  %v3416_v46 = vld [vmem:[#allocation2 + $0x180] sm:$0xff] }
 0x399   :  { %7397 = vmatmul.mubr.msk.bf16.gmra.mrb[196].mxu1 %vm157_vm1, %v3999_v32  ;;  %7272 = vmatprep.mubr.msk.bf16.mxu0 %vm7738_vm0, %v10014_v15  ;;  %v10065_v32 = vld [vmem:[#allocation9_spill] sm:$0xff]  ;;  %v3417_v43 = vld [vmem:[#allocation2 + $0x188] sm:$0xff] }
 0x39a   :  { %10063 = vst [vmem:[#allocation7_spill] sm:$0xff] %v9171_v38  ;;  %7400 = vmatprep.mubr.msk.bf16.mxu1 %vm7738_vm0, %v10014_v15 }
 0x39b   :  { %v2718_v4 = vpop.f32.mrb[92].mxu0 }
 0x39c   :  { %v2815_v2 = vadd.f32 %v2718_v4, %v10064_v23  ;;  %v7034_v42 = vpop.f32.mrb[93].mxu0  ;;  %v3263_v35 = vpop.f32.mrb[92].mxu1  ;;  %v10068_v23 = vld [vmem:[#allocation10_spill] sm:$0xff] }
 0x39d   :  { %v2721_v22 = vpop.f32.mrb[94].mxu0  ;;  %v7162_v45 = vpop.f32.mrb[93].mxu1 }
 0x39e   :  { %v2816_v9 = vadd.f32 %v2721_v22, %v10065_v32  ;;  %v7035_v28 = vpop.f32.mrb[95].mxu0  ;;  %v3266_v31 = vpop.f32.mrb[94].mxu1  ;;  %v9180_v52 = vadd.f32 %v3263_v35, %v2815_v2  ;;  %v3456_v35 = vpack.c.bf16 %v3417_v43, %v3416_v46  ;;  %v4001_v45 = vpack.c.bf16 %v3962_v17, %v3961_v49  ;;  %v3418_v46 = vld [vmem:[#allocation2 + $0x190] sm:$0xff]  ;;  %v3419_v43 = vld [vmem:[#allocation2 + $0x198] sm:$0xff] }
 0x39f   :  { %v7163_v38 = vpop.f32.mrb[95].mxu1  ;;  %v3963_v49 = vld [vmem:[#allocation2 + $0x191] sm:$0xff]  ;;  %v3964_v17 = vld [vmem:[#allocation2 + $0x199] sm:$0xff] }
 0x3a0   :  { %10066 = vst [vmem:[#allocation8_spill] sm:$0xff] %v9180_v52  ;;  %7273 = vmatmul.mubr.msk.bf16.gmra.mrb[200].mxu0 %vm157_vm1, %v3455_v47  ;;  %v9183_v34 = vadd.f32 %v3266_v31, %v2816_v9 }
 0x3a1   :  { %7401 = vmatmul.mubr.msk.bf16.gmra.mrb[200].mxu1 %vm157_vm1, %v4000_v53  ;;  %7276 = vmatprep.mubr.msk.bf16.mxu0 %vm7738_vm0, %v10014_v15  ;;  %v10069_v53 = vld [vmem:[#allocation11_spill] sm:$0xff] }
 0x3a2   :  { %10067 = vst [vmem:[#allocation9_spill] sm:$0xff] %v9183_v34  ;;  %7404 = vmatprep.mubr.msk.bf16.mxu1 %vm7738_vm0, %v10014_v15 }
 0x3a3   :  { %v2726_v4 = vpop.f32.mrb[96].mxu0 }
 0x3a4   :  { %v2817_v2 = vadd.f32 %v2726_v4, %v10068_v23  ;;  %v7038_v38 = vpop.f32.mrb[97].mxu0  ;;  %v3271_v42 = vpop.f32.mrb[96].mxu1  ;;  %v10072_v23 = vld [vmem:[#allocation12_spill] sm:$0xff] }
 0x3a5   :  { %v2729_v47 = vpop.f32.mrb[98].mxu0  ;;  %v7166_v22 = vpop.f32.mrb[97].mxu1 }
 0x3a6   :  { %v2818_v32 = vadd.f32 %v2729_v47, %v10069_v53  ;;  %v7039_v9 = vpop.f32.mrb[99].mxu0  ;;  %v3274_v28 = vpop.f32.mrb[98].mxu1  ;;  %v9192_v31 = vadd.f32 %v3271_v42, %v2817_v2  ;;  %v3457_v42 = vpack.c.bf16 %v3419_v43, %v3418_v46  ;;  %v4002_v22 = vpack.c.bf16 %v3964_v17, %v3963_v49  ;;  %v3420_v46 = vld [vmem:[#allocation2 + $0x1a0] sm:$0xff]  ;;  %v3421_v43 = vld [vmem:[#allocation2 + $0x1a8] sm:$0xff] }
 0x3a7   :  { %v7167_v34 = vpop.f32.mrb[99].mxu1  ;;  %v3965_v49 = vld [vmem:[#allocation2 + $0x1a1] sm:$0xff]  ;;  %v3966_v17 = vld [vmem:[#allocation2 + $0x1a9] sm:$0xff] }
 0x3a8   :  { %10070 = vst [vmem:[#allocation10_spill] sm:$0xff] %v9192_v31  ;;  %7277 = vmatmul.mubr.msk.bf16.gmra.mrb[204].mxu0 %vm157_vm1, %v3456_v35  ;;  %v9195_v52 = vadd.f32 %v3274_v28, %v2818_v32 }
 0x3a9   :  { %7405 = vmatmul.mubr.msk.bf16.gmra.mrb[204].mxu1 %vm157_vm1, %v4001_v45  ;;  %7280 = vmatprep.mubr.msk.bf16.mxu0 %vm7738_vm0, %v10014_v15  ;;  %v10073_v45 = vld [vmem:[#allocation13_spill] sm:$0xff] }
 0x3aa   :  { %10071 = vst [vmem:[#allocation11_spill] sm:$0xff] %v9195_v52  ;;  %7408 = vmatprep.mubr.msk.bf16.mxu1 %vm7738_vm0, %v10014_v15 }
 0x3ab   :  { %v2734_v4 = vpop.f32.mrb[100].mxu0 }
 0x3ac   :  { %v2819_v2 = vadd.f32 %v2734_v4, %v10072_v23  ;;  %v7042_v34 = vpop.f32.mrb[101].mxu0  ;;  %v3279_v38 = vpop.f32.mrb[100].mxu1  ;;  %v10076_v23 = vld [vmem:[#allocation14_spill] sm:$0xff] }
 0x3ad   :  { %v2737_v35 = vpop.f32.mrb[102].mxu0  ;;  %v7170_v47 = vpop.f32.mrb[101].mxu1 }
 0x3ae   :  { %v2820_v53 = vadd.f32 %v2737_v35, %v10073_v45  ;;  %v7043_v32 = vpop.f32.mrb[103].mxu0  ;;  %v3282_v9 = vpop.f32.mrb[102].mxu1  ;;  %v9204_v28 = vadd.f32 %v3279_v38, %v2819_v2  ;;  %v3458_v38 = vpack.c.bf16 %v3421_v43, %v3420_v46  ;;  %v10077_v45 = vld [vmem:[#allocation15_spill] sm:$0xff]  ;;  %v3422_v43 = vld [vmem:[#allocation2 + $0x1b0] sm:$0xff] }
 0x3af   :  { %v7171_v52 = vpop.f32.mrb[103].mxu1 }
 0x3b0   :  { %10074 = vst [vmem:[#allocation12_spill] sm:$0xff] %v9204_v28  ;;  %7281 = vmatmul.mubr.msk.bf16.gmra.mrb[208].mxu0 %vm157_vm1, %v3457_v42  ;;  %v9207_v31 = vadd.f32 %v3282_v9, %v2820_v53  ;;  %v7731_v42 = vld [vmem:[%s9990_s3 + $0x18] sm:$0xff]  }
 0x3b1   :  { %7409 = vmatmul.mubr.msk.bf16.gmra.mrb[208].mxu1 %vm157_vm1, %v4002_v22  ;;  %7284 = vmatprep.mubr.msk.bf16.mxu0 %vm7738_vm0, %v10014_v15  ;;  %v4003_v22 = vpack.c.bf16 %v3966_v17, %v3965_v49  ;;  %v3423_v49 = vld [vmem:[#allocation2 + $0x1b8] sm:$0xff] }
 0x3b2   :  { %10075 = vst [vmem:[#allocation13_spill] sm:$0xff] %v9207_v31  ;;  %7412 = vmatprep.mubr.msk.bf16.mxu1 %vm7738_vm0, %v10014_v15  ;;  %7575 = vmatpush3.bf16.msra.mxu1 %v7731_v42  ;;  %v3967_v17 = vld [vmem:[#allocation2 + $0x1b1] sm:$0xff] }
 0x3b3   :  { %v2742_v4 = vpop.f32.mrb[104].mxu0  ;;  %7576 = vmatprep.subr.bf16.mxu1 %v10014_v15 }
 0x3b4   :  { %v2821_v2 = vadd.f32 %v2742_v4, %v10076_v23  ;;  %v7046_v52 = vpop.f32.mrb[105].mxu0  ;;  %v3287_v34 = vpop.f32.mrb[104].mxu1  ;;  %v3968_v4 = vld [vmem:[#allocation2 + $0x1b9] sm:$0xff] }
 0x3b5   :  { %v2745_v35 = vpop.f32.mrb[106].mxu0  ;;  %v7174_v47 = vpop.f32.mrb[105].mxu1 }
 0x3b6   :  { %v2822_v53 = vadd.f32 %v2745_v35, %v10077_v45  ;;  %v7047_v32 = vpop.f32.mrb[107].mxu0  ;;  %v3290_v9 = vpop.f32.mrb[106].mxu1  ;;  %v9219_v31 = vadd.f32 %v3287_v34, %v2821_v2  ;;  %v4004_v47 = vpack.c.bf16 %v3968_v4, %v3967_v17  ;;  %v3969_v17 = vld [vmem:[#allocation2 + $0x1c1] sm:$0xff]  ;;  %v3970_v4 = vld [vmem:[#allocation2 + $0x1c9] sm:$0xff] }
 0x3b7   :  { %v7175_v28 = vpop.f32.mrb[107].mxu1 }
 0x3b8   :  { %10078 = vst [vmem:[#allocation14_spill] sm:$0xff] %v9219_v31  ;;  %7285 = vmatmul.mubr.msk.bf16.gmra.mrb[212].mxu0 %vm157_vm1, %v3458_v38  ;;  %v9223_v46 = vadd.f32 %v3290_v9, %v2822_v53  ;;  %v10080_v28 = vld [vmem:[#allocation16_spill] sm:$0xff]  ;;  %v3459_v38 = vpack.c.bf16 %v3423_v49, %v3422_v43  ;;  %v3424_v43 = vld [vmem:[#allocation2 + $0x1c0] sm:$0xff] }
 0x3b9   :  { %7413 = vmatmul.mubr.msk.bf16.gmra.mrb[212].mxu1 %vm157_vm1, %v4003_v22  ;;  %7288 = vmatprep.mubr.msk.bf16.mxu0 %vm7738_vm0, %v10014_v15  ;;  %v10081_v22 = vld [vmem:[#allocation17_spill] sm:$0xff]  ;;  %v3425_v49 = vld [vmem:[#allocation2 + $0x1c8] sm:$0xff] }
 0x3ba   :  { %10079 = vst [vmem:[#allocation15_spill] sm:$0xff] %v9223_v46  ;;  %7416 = vmatprep.mubr.msk.bf16.mxu1 %vm7738_vm0, %v10014_v15 }
 0x3bb   :  { %v2750_v23 = vpop.f32.mrb[108].mxu0 }
 0x3bc   :  { %v2823_v2 = vadd.f32 %v2750_v23, %v10080_v28  ;;  %v7050_v52 = vpop.f32.mrb[109].mxu0  ;;  %v3295_v34 = vpop.f32.mrb[108].mxu1 }
 0x3bd   :  { %v2753_v42 = vpop.f32.mrb[110].mxu0  ;;  %v7178_v35 = vpop.f32.mrb[109].mxu1  ;;  %v3460_v52 = vpack.c.bf16 %v3425_v49, %v3424_v43  ;;  %v3427_v43 = vld [vmem:[#allocation2 + $0x1d8] sm:$0xff] }
 0x3be   :  { %v2824_v45 = vadd.f32 %v2753_v42, %v10081_v22  ;;  %v9232_v53 = vadd.f32 %v3295_v34, %v2823_v2  ;;  %v7051_v32 = vpop.f32.mrb[111].mxu0  ;;  %v3298_v9 = vpop.f32.mrb[110].mxu1  ;;  %v4005_v42 = vpack.c.bf16 %v3970_v4, %v3969_v17  ;;  %v3972_v49 = vld [vmem:[#allocation2 + $0x1d9] sm:$0xff] }
 0x3bf   :  { %v7179_v46 = vpop.f32.mrb[111].mxu1 }
 0x3c0   :  { %v9234_v31 = vadd.f32 %v3298_v9, %v2824_v45  ;;  %7289 = vmatmul.mubr.msk.bf16.gmra.mrb[216].mxu0 %vm157_vm1, %v3459_v38 }
 0x3c1   :  { %7417 = vmatmul.mubr.msk.bf16.gmra.mrb[216].mxu1 %vm157_vm1, %v4004_v47  ;;  %7292 = vmatprep.mubr.msk.bf16.mxu0 %vm7738_vm0, %v10014_v15 }
 0x3c2   :  { %7420 = vmatprep.mubr.msk.bf16.mxu1 %vm7738_vm0, %v10014_v15 }
 0x3c3   :  { %v2758_v23 = vpop.f32.mrb[112].mxu0 }
 0x3c4   :  { %v2825_v28 = vadd.f32 %v2758_v23, %v8841_v61  ;;  %v7054_v46 = vpop.f32.mrb[113].mxu0  ;;  %v3303_v2 = vpop.f32.mrb[112].mxu1  ;;  %v3426_v61 = vld [vmem:[#allocation2 + $0x1d0] sm:$0xff] }
 0x3c5   :  { %v2761_v34 = vpop.f32.mrb[114].mxu0  ;;  %v7182_v38 = vpop.f32.mrb[113].mxu1  ;;  %v3461_v46 = vpack.c.bf16 %v3427_v43, %v3426_v61  ;;  %v3428_v61 = vld [vmem:[#allocation2 + $0x1e0] sm:$0xff] }
 0x3c6   :  { %v2826_v35 = vadd.f32 %v2761_v34, %v8844_v30  ;;  %v9244_v47 = vadd.f32 %v3303_v2, %v2825_v28  ;;  %v7055_v22 = vpop.f32.mrb[115].mxu0  ;;  %v3306_v45 = vpop.f32.mrb[114].mxu1  ;;  %v3971_v30 = vld [vmem:[#allocation2 + $0x1d1] sm:$0xff]  ;;  %v3973_v43 = vld [vmem:[#allocation2 + $0x1e1] sm:$0xff] }
 0x3c7   :  { %v7183_v32 = vpop.f32.mrb[115].mxu1  ;;  %v4006_v34 = vpack.c.bf16 %v3972_v49, %v3971_v30  ;;  %v3974_v30 = vld [vmem:[#allocation2 + $0x1e9] sm:$0xff] }
 0x3c8   :  { %v9246_v9 = vadd.f32 %v3306_v45, %v2826_v35  ;;  %7293 = vmatmul.mubr.msk.bf16.gmra.mrb[220].mxu0 %vm157_vm1, %v3460_v52 }
 0x3c9   :  { %7421 = vmatmul.mubr.msk.bf16.gmra.mrb[220].mxu1 %vm157_vm1, %v4005_v42  ;;  %7296 = vmatprep.mubr.msk.bf16.mxu0 %vm7738_vm0, %v10014_v15 }
 0x3ca   :  { %7424 = vmatprep.mubr.msk.bf16.mxu1 %vm7738_vm0, %v10014_v15 }
 0x3cb   :  { %v3608_v17 = vpop.f32.mrb[116].mxu0 }
 0x3cc   :  { %v3855_v4 = vadd.f32 %v3608_v17, %v8853_v10  ;;  %v7190_v23 = vpop.f32.mrb[117].mxu0  ;;  %v4153_v28 = vpop.f32.mrb[116].mxu1  ;;  %v7732_v10 = vld [vmem:[%s9990_s3 + $0x20] sm:$0xff]  }
 0x3cd   :  { %v3611_v2 = vpop.f32.mrb[118].mxu0  ;;  %v7318_v52 = vpop.f32.mrb[117].mxu1  ;;  %7577 = vmatpush3.bf16.msra.mxu1 %v7732_v10  ;;  %v3431_v10 = vld [vmem:[#allocation2 + $0x1f8] sm:$0xff] }
 0x3ce   :  { %v3856_v38 = vadd.f32 %v3611_v2, %v8856_v60  ;;  %v9256_v42 = vadd.f32 %v4153_v28, %v3855_v4  ;;  %v7191_v35 = vpop.f32.mrb[119].mxu0  ;;  %v4156_v22 = vpop.f32.mrb[118].mxu1  ;;  %v3429_v60 = vld [vmem:[#allocation2 + $0x1e8] sm:$0xff]  ;;  %7578 = vmatprep.subr.bf16.mxu1 %v10014_v15  ;;  %v4007_v52 = vpack.c.bf16 %v3974_v30, %v3973_v43 }
 0x3cf   :  { %v7319_v45 = vpop.f32.mrb[119].mxu1  ;;  %v3462_v28 = vpack.c.bf16 %v3429_v60, %v3428_v61  ;;  %v3976_v61 = vld [vmem:[#allocation2 + $0x1f9] sm:$0xff] }
 0x3d0   :  { %v9258_v32 = vadd.f32 %v4156_v22, %v3856_v38  ;;  %7297 = vmatmul.mubr.msk.bf16.gmra.mrb[224].mxu0 %vm157_vm1, %v3461_v46 }
 0x3d1   :  { %7425 = vmatmul.mubr.msk.bf16.gmra.mrb[224].mxu1 %vm157_vm1, %v4006_v34  ;;  %7300 = vmatprep.mubr.msk.bf16.mxu0 %vm7738_vm0, %v10014_v15 }
 0x3d2   :  { %10082 = vst [vmem:[#allocation16_spill] sm:$0xff] %v9258_v32  ;;  %7428 = vmatprep.mubr.msk.bf16.mxu1 %vm7738_vm0, %v10014_v15 }
 0x3d3   :  { %v3616_v49 = vpop.f32.mrb[120].mxu0 }
 0x3d4   :  { %v3857_v17 = vadd.f32 %v3616_v49, %v8865_v50  ;;  %v7194_v4 = vpop.f32.mrb[121].mxu0  ;;  %v4161_v23 = vpop.f32.mrb[120].mxu1  ;;  %v3430_v50 = vld [vmem:[#allocation2 + $0x1f0] sm:$0xff] }
 0x3d5   :  { %v3619_v46 = vpop.f32.mrb[122].mxu0  ;;  %v7322_v2 = vpop.f32.mrb[121].mxu1 }
 0x3d6   :  { %v3858_v34 = vadd.f32 %v3619_v46, %v8868_v41  ;;  %v9272_v38 = vadd.f32 %v4161_v23, %v3857_v17  ;;  %v7195_v35 = vpop.f32.mrb[123].mxu0  ;;  %v4164_v22 = vpop.f32.mrb[122].mxu1  ;;  %v3975_v41 = vld [vmem:[#allocation2 + $0x1f1] sm:$0xff]  ;;  %v3463_v17 = vpack.c.bf16 %v3431_v10, %v3430_v50  ;;  %v3978_v50 = vld [vmem:[#allocation2 + $0x209] sm:$0xff] }
 0x3d7   :  { %v7323_v45 = vpop.f32.mrb[123].mxu1 }
 0x3d8   :  { %v9274_v32 = vadd.f32 %v4164_v22, %v3858_v34  ;;  %7301 = vmatmul.mubr.msk.bf16.gmra.mrb[228].mxu0 %vm157_vm1, %v3462_v28  ;;  %v4008_v28 = vpack.c.bf16 %v3976_v61, %v3975_v41  ;;  %v3433_v45 = vld [vmem:[#allocation2 + $0x208] sm:$0xff] }
 0x3d9   :  { %7429 = vmatmul.mubr.msk.bf16.gmra.mrb[228].mxu1 %vm157_vm1, %v4007_v52  ;;  %7304 = vmatprep.mubr.msk.bf16.mxu0 %vm7738_vm0, %v10014_v15 }
 0x3da   :  { %7432 = vmatprep.mubr.msk.bf16.mxu1 %vm7738_vm0, %v10014_v15 }
 0x3db   :  { %v3624_v60 = vpop.f32.mrb[124].mxu0 }
 0x3dc   :  { %v3859_v43 = vadd.f32 %v3624_v60, %v8877_v44  ;;  %v7198_v30 = vpop.f32.mrb[125].mxu0  ;;  %v4169_v49 = vpop.f32.mrb[124].mxu1  ;;  %v3432_v44 = vld [vmem:[#allocation2 + $0x200] sm:$0xff] }
 0x3dd   :  { %v3627_v4 = vpop.f32.mrb[126].mxu0  ;;  %v7326_v23 = vpop.f32.mrb[125].mxu1 }
 0x3de   :  { %v3860_v46 = vadd.f32 %v3627_v4, %v8880_v27  ;;  %v9284_v2 = vadd.f32 %v4169_v49, %v3859_v43  ;;  %v7199_v52 = vpop.f32.mrb[127].mxu0  ;;  %v4172_v34 = vpop.f32.mrb[126].mxu1  ;;  %v3977_v27 = vld [vmem:[#allocation2 + $0x201] sm:$0xff]  ;;  %v3464_v43 = vpack.c.bf16 %v3433_v45, %v3432_v44  ;;  %v10083_v4 = vld [vmem:[#allocation18_spill] sm:$0xff]  ;;  %v4463_v44 = vld [vmem:[#allocation2 + $0x2a] sm:$0xff] }
 0x3df   :  { %v7327_v35 = vpop.f32.mrb[127].mxu1 }
 0x3e0   :  { %v9286_v22 = vadd.f32 %v4172_v34, %v3860_v46  ;;  %7305 = vmatmul.mubr.msk.bf16.gmra.mrb[232].mxu0 %vm157_vm1, %v3463_v17  ;;  %v4009_v17 = vpack.c.bf16 %v3978_v50, %v3977_v27 }
 0x3e1   :  { %7433 = vmatmul.mubr.msk.bf16.gmra.mrb[232].mxu1 %vm157_vm1, %v4008_v28  ;;  %7308 = vmatprep.mubr.msk.bf16.mxu0 %vm7738_vm0, %v10014_v15 }
 0x3e2   :  { %7436 = vmatprep.mubr.msk.bf16.mxu1 %vm7738_vm0, %v10014_v15 }
 0x3e3   :  { %v3632_v10 = vpop.f32.mrb[128].mxu0 }
 0x3e4   :  { %v3861_v41 = vadd.f32 %v3632_v10, %v8889_v12  ;;  %v7202_v61 = vpop.f32.mrb[129].mxu0  ;;  %v4177_v60 = vpop.f32.mrb[128].mxu1  ;;  %v4462_v12 = vld [vmem:[#allocation2 + $0x22] sm:$0xff] }
 0x3e5   :  { %v3635_v30 = vpop.f32.mrb[130].mxu0  ;;  %v7330_v49 = vpop.f32.mrb[129].mxu1 }
 0x3e6   :  { %v3862_v23 = vadd.f32 %v3635_v30, %v10083_v4  ;;  %v9296_v28 = vadd.f32 %v4177_v60, %v3861_v41  ;;  %v7203_v46 = vpop.f32.mrb[131].mxu0  ;;  %v4180_v52 = vpop.f32.mrb[130].mxu1  ;;  %v4524_v41 = vpack.c.bf16 %v4463_v44, %v4462_v12  ;;  %v10084_v30 = vld [vmem:[#allocation19_spill] sm:$0xff] }
 0x3e7   :  { %v7331_v34 = vpop.f32.mrb[131].mxu1 }
 0x3e8   :  { %v9298_v35 = vadd.f32 %v4180_v52, %v3862_v23  ;;  %7309 = vmatmul.mubr.msk.bf16.gmra.mrb[236].mxu0 %vm157_vm1, %v3464_v43  ;;  %v4464_v52 = vld [vmem:[#allocation2 + $0x32] sm:$0xff]  ;;  %v4465_v34 = vld [vmem:[#allocation2 + $0x3a] sm:$0xff] }
 0x3e9   :  { %7437 = vmatmul.mubr.msk.bf16.gmra.mrb[236].mxu1 %vm157_vm1, %v4009_v17  ;;  %7444 = vmatprep.mubr.msk.bf16.mxu0 %vm7738_vm0, %v10014_v15 }
 0x3ea   :  { %7584 = vmatprep.mubr.msk.bf16.mxu1 %vm7738_vm0, %v10014_v15 }
 0x3eb   :  { %v3640_v45 = vpop.f32.mrb[132].mxu0 }
 0x3ec   :  { %v3863_v27 = vadd.f32 %v3640_v45, %v8904_v59  ;;  %v7206_v50 = vpop.f32.mrb[133].mxu0  ;;  %v4185_v10 = vpop.f32.mrb[132].mxu1  ;;  %v7733_v59 = vld [vmem:[%s9990_s3 + $0x28] sm:$0xff]  }
 0x3ed   :  { %v3643_v61 = vpop.f32.mrb[134].mxu0  ;;  %v7334_v60 = vpop.f32.mrb[133].mxu1  ;;  %7579 = vmatpush3.bf16.msra.mxu1 %v7733_v59  ;;  %v4525_v50 = vpack.c.bf16 %v4465_v34, %v4464_v52 }
 0x3ee   :  { %v3864_v43 = vadd.f32 %v3643_v61, %v10084_v30  ;;  %v9308_v49 = vadd.f32 %v4185_v10, %v3863_v27  ;;  %v7207_v17 = vpop.f32.mrb[135].mxu0  ;;  %v4188_v4 = vpop.f32.mrb[134].mxu1  ;;  %7580 = vmatprep.subr.bf16.mxu1 %v10014_v15 }
 0x3ef   :  { %v7335_v23 = vpop.f32.mrb[135].mxu1 }
 0x3f0   :  { %v9310_v46 = vadd.f32 %v4188_v4, %v3864_v43  ;;  %7445 = vmatmul.mubr.msk.bf16.vlgmr.msra.gmra.mrb[240].mxu0 %vm157_vm1, %v4524_v41  ;;  %v4467_v23 = vld [vmem:[#allocation2 + $0x4a] sm:$0xff] }
 0x3f1   :  { %7448 = vmatprep.mubr.msk.bf16.mxu0 %vm7738_vm0, %v10014_v15 }
 0x3f3   :  { %v3648_v12 = vpop.f32.mrb[136].mxu0 }
 0x3f4   :  { %v3865_v44 = vadd.f32 %v3648_v12, %v8920_v37  ;;  %v7210_v45 = vpop.f32.mrb[137].mxu0  ;;  %v4193_v27 = vpop.f32.mrb[136].mxu1  ;;  %v4466_v37 = vld [vmem:[#allocation2 + $0x42] sm:$0xff] }
 0x3f5   :  { %v3651_v10 = vpop.f32.mrb[138].mxu0  ;;  %v7338_v41 = vpop.f32.mrb[137].mxu1 }
 0x3f6   :  { %v3866_v61 = vadd.f32 %v3651_v10, %v8923_v5  ;;  %v9321_v60 = vadd.f32 %v4193_v27, %v3865_v44  ;;  %v7211_v30 = vpop.f32.mrb[139].mxu0  ;;  %v4196_v43 = vpop.f32.mrb[138].mxu1  ;;  %v4526_v5 = vpack.c.bf16 %v4467_v23, %v4466_v37 }
 0x3f7   :  { %v7339_v17 = vpop.f32.mrb[139].mxu1 }
 0x3f8   :  { %v9323_v4 = vadd.f32 %v4196_v43, %v3866_v61  ;;  %7449 = vmatmul.mubr.msk.bf16.gmra.mrb[244].mxu0 %vm157_vm1, %v4525_v50  ;;  %v4469_v43 = vld [vmem:[#allocation2 + $0x5a] sm:$0xff] }
 0x3f9   :  { %7452 = vmatprep.mubr.msk.bf16.mxu0 %vm7738_vm0, %v10014_v15 }
 0x3fb   :  { %v3656_v59 = vpop.f32.mrb[140].mxu0 }
 0x3fc   :  { %v3867_v52 = vadd.f32 %v3656_v59, %v8932_v20  ;;  %v7214_v34 = vpop.f32.mrb[141].mxu0  ;;  %v4201_v12 = vpop.f32.mrb[140].mxu1  ;;  %v4468_v20 = vld [vmem:[#allocation2 + $0x52] sm:$0xff] }
 0x3fd   :  { %v3659_v44 = vpop.f32.mrb[142].mxu0  ;;  %v7342_v45 = vpop.f32.mrb[141].mxu1 }
 0x3fe   :  { %v3868_v27 = vadd.f32 %v3659_v44, %v8935_v1  ;;  %v9330_v10 = vadd.f32 %v4201_v12, %v3867_v52  ;;  %v7215_v41 = vpop.f32.mrb[143].mxu0  ;;  %v4204_v61 = vpop.f32.mrb[142].mxu1  ;;  %v4527_v1 = vpack.c.bf16 %v4469_v43, %v4468_v20 }
 0x3ff   :  { %v7343_v50 = vpop.f32.mrb[143].mxu1 }
 0x400   :  { %v9332_v30 = vadd.f32 %v4204_v61, %v3868_v27  ;;  %7453 = vmatmul.mubr.msk.bf16.gmra.mrb[248].mxu0 %vm157_vm1, %v4526_v5  ;;  %v4471_v61 = vld [vmem:[#allocation2 + $0x6a] sm:$0xff] }
 0x401   :  { %7456 = vmatprep.mubr.msk.bf16.mxu0 %vm7738_vm0, %v10014_v15 }
 0x403   :  { %v3664_v17 = vpop.f32.mrb[144].mxu0 }
 0x404   :  { %v3869_v37 = vadd.f32 %v3664_v17, %v8944_v57  ;;  %v7218_v23 = vpop.f32.mrb[145].mxu0  ;;  %v4209_v59 = vpop.f32.mrb[144].mxu1  ;;  %v4470_v57 = vld [vmem:[#allocation2 + $0x62] sm:$0xff] }
 0x405   :  { %v3667_v52 = vpop.f32.mrb[146].mxu0  ;;  %v7346_v34 = vpop.f32.mrb[145].mxu1 }
 0x406   :  { %v3870_v12 = vadd.f32 %v3667_v52, %v8947_v19  ;;  %v9339_v44 = vadd.f32 %v4209_v59, %v3869_v37  ;;  %v7219_v45 = vpop.f32.mrb[147].mxu0  ;;  %v4212_v27 = vpop.f32.mrb[146].mxu1  ;;  %v4528_v19 = vpack.c.bf16 %v4471_v61, %v4470_v57 }
 0x407   :  { %v7347_v5 = vpop.f32.mrb[147].mxu1 }
 0x408   :  { %v9341_v41 = vadd.f32 %v4212_v27, %v3870_v12  ;;  %7457 = vmatmul.mubr.msk.bf16.gmra.mrb[252].mxu0 %vm157_vm1, %v4527_v1  ;;  %v4472_v27 = vld [vmem:[#allocation2 + $0x72] sm:$0xff]  ;;  %v4473_v5 = vld [vmem:[#allocation2 + $0x7a] sm:$0xff] }
 0x409   :  { %7460 = vmatprep.mubr.msk.bf16.mxu0 %vm7738_vm0, %v10014_v15 }
 0x40b   :  { %v3672_v50 = vpop.f32.mrb[148].mxu0 }
 0x40c   :  { %v3871_v20 = vadd.f32 %v3672_v50, %v8956_v16  ;;  %v7222_v43 = vpop.f32.mrb[149].mxu0  ;;  %v4217_v17 = vpop.f32.mrb[148].mxu1  ;;  %v7734_v16 = vld [vmem:[%s9990_s3 + $0x30] sm:$0xff]  }
 0x40d   :  { %v3675_v37 = vpop.f32.mrb[150].mxu0  ;;  %v7350_v23 = vpop.f32.mrb[149].mxu1  ;;  %7581 = vmatpush3.bf16.msra.mxu1 %v7734_v16 }
 0x40e   :  { %v3872_v59 = vadd.f32 %v3675_v37, %v8959_v6  ;;  %v9348_v52 = vadd.f32 %v4217_v17, %v3871_v20  ;;  %v7223_v34 = vpop.f32.mrb[151].mxu0  ;;  %v4220_v12 = vpop.f32.mrb[150].mxu1  ;;  %7582 = vmatprep.subr.bf16.mxu1 %v10014_v15  ;;  %v4529_v20 = vpack.c.bf16 %v4473_v5, %v4472_v27 }
 0x40f   :  { %v7351_v1 = vpop.f32.mrb[151].mxu1 }
 0x410   :  { %v9350_v45 = vadd.f32 %v4220_v12, %v3872_v59  ;;  %7461 = vmatmul.mubr.msk.bf16.gmra.mrb[0].mxu0 %vm157_vm1, %v4528_v19  ;;  %v4475_v1 = vld [vmem:[#allocation2 + $0x8a] sm:$0xff] }
 0x411   :  { %7464 = vmatprep.mubr.msk.bf16.mxu0 %vm7738_vm0, %v10014_v15 }
 0x413   :  { %v3680_v6 = vpop.f32.mrb[152].mxu0 }
 0x414   :  { %v3873_v57 = vadd.f32 %v3680_v6, %v8968_v40  ;;  %v7226_v61 = vpop.f32.mrb[153].mxu0  ;;  %v4225_v50 = vpop.f32.mrb[152].mxu1  ;;  %v4474_v40 = vld [vmem:[#allocation2 + $0x82] sm:$0xff] }
 0x415   :  { %v3683_v43 = vpop.f32.mrb[154].mxu0  ;;  %v7354_v17 = vpop.f32.mrb[153].mxu1 }
 0x416   :  { %v3874_v19 = vadd.f32 %v3683_v43, %v8971_v36  ;;  %v9361_v37 = vadd.f32 %v4225_v50, %v3873_v57  ;;  %v7227_v23 = vpop.f32.mrb[155].mxu0  ;;  %v4228_v59 = vpop.f32.mrb[154].mxu1  ;;  %v4530_v36 = vpack.c.bf16 %v4475_v1, %v4474_v40 }
 0x417   :  { %v7355_v34 = vpop.f32.mrb[155].mxu1 }
 0x418   :  { %v9363_v12 = vadd.f32 %v4228_v59, %v3874_v19  ;;  %7465 = vmatmul.mubr.msk.bf16.gmra.mrb[4].mxu0 %vm157_vm1, %v4529_v20  ;;  %v4477_v59 = vld [vmem:[#allocation2 + $0x9a] sm:$0xff] }
 0x419   :  { %7468 = vmatprep.mubr.msk.bf16.mxu0 %vm7738_vm0, %v10014_v15 }
 0x41b   :  { %v3688_v16 = vpop.f32.mrb[156].mxu0 }
 0x41c   :  { %v3875_v27 = vadd.f32 %v3688_v16, %v8980_v13  ;;  %v7230_v5 = vpop.f32.mrb[157].mxu0  ;;  %v4233_v6 = vpop.f32.mrb[156].mxu1  ;;  %v4476_v13 = vld [vmem:[#allocation2 + $0x92] sm:$0xff] }
 0x41d   :  { %v3691_v57 = vpop.f32.mrb[158].mxu0  ;;  %v7358_v61 = vpop.f32.mrb[157].mxu1 }
 0x41e   :  { %v3876_v50 = vadd.f32 %v3691_v57, %v8983_v18  ;;  %v9370_v43 = vadd.f32 %v4233_v6, %v3875_v27  ;;  %v7231_v17 = vpop.f32.mrb[159].mxu0  ;;  %v4236_v19 = vpop.f32.mrb[158].mxu1  ;;  %v4531_v18 = vpack.c.bf16 %v4477_v59, %v4476_v13 }
 0x41f   :  { %v7359_v20 = vpop.f32.mrb[159].mxu1 }
 0x420   :  { %v9372_v23 = vadd.f32 %v4236_v19, %v3876_v50  ;;  %7469 = vmatmul.mubr.msk.bf16.gmra.mrb[8].mxu0 %vm157_vm1, %v4530_v36  ;;  %v4479_v19 = vld [vmem:[#allocation2 + $0xaa] sm:$0xff] }
 0x421   :  { %7472 = vmatprep.mubr.msk.bf16.mxu0 %vm7738_vm0, %v10014_v15 }
 0x423   :  { %v3696_v34 = vpop.f32.mrb[160].mxu0 }
 0x424   :  { %v3877_v40 = vadd.f32 %v3696_v34, %v8992_v25  ;;  %v7234_v1 = vpop.f32.mrb[161].mxu0  ;;  %v4241_v16 = vpop.f32.mrb[160].mxu1  ;;  %v4478_v25 = vld [vmem:[#allocation2 + $0xa2] sm:$0xff] }
 0x425   :  { %v3699_v27 = vpop.f32.mrb[162].mxu0  ;;  %v7362_v5 = vpop.f32.mrb[161].mxu1 }
 0x426   :  { %v3878_v6 = vadd.f32 %v3699_v27, %v8995_v0  ;;  %v9379_v57 = vadd.f32 %v4241_v16, %v3877_v40  ;;  %v7235_v61 = vpop.f32.mrb[163].mxu0  ;;  %v4244_v50 = vpop.f32.mrb[162].mxu1  ;;  %v4532_v0 = vpack.c.bf16 %v4479_v19, %v4478_v25 }
 0x427   :  { %v7363_v36 = vpop.f32.mrb[163].mxu1 }
 0x428   :  { %v9381_v17 = vadd.f32 %v4244_v50, %v3878_v6  ;;  %7473 = vmatmul.mubr.msk.bf16.gmra.mrb[12].mxu0 %vm157_vm1, %v4531_v18  ;;  %v4480_v50 = vld [vmem:[#allocation2 + $0xb2] sm:$0xff]  ;;  %v4481_v36 = vld [vmem:[#allocation2 + $0xba] sm:$0xff] }
 0x429   :  { %7476 = vmatprep.mubr.msk.bf16.mxu0 %vm7738_vm0, %v10014_v15 }
 0x42b   :  { %v3704_v20 = vpop.f32.mrb[164].mxu0 }
 0x42c   :  { %v3879_v13 = vadd.f32 %v3704_v20, %v9004_v63  ;;  %v7238_v59 = vpop.f32.mrb[165].mxu0  ;;  %v4249_v34 = vpop.f32.mrb[164].mxu1  ;;  %v7735_v63 = vld [vmem:[%s9990_s3 + $0x38] sm:$0xff]  }
 0x42d   :  { %v3707_v40 = vpop.f32.mrb[166].mxu0  ;;  %v7366_v1 = vpop.f32.mrb[165].mxu1  ;;  %7583 = vmatpush3.bf16.msra.mxu1 %v7735_v63 }
 0x42e   :  { %v3880_v16 = vadd.f32 %v3707_v40, %v9007_v33  ;;  %v9388_v27 = vadd.f32 %v4249_v34, %v3879_v13  ;;  %v7239_v5 = vpop.f32.mrb[167].mxu0  ;;  %v4252_v6 = vpop.f32.mrb[166].mxu1  ;;  %v4533_v13 = vpack.c.bf16 %v4481_v36, %v4480_v50 }
 0x42f   :  { %v7367_v18 = vpop.f32.mrb[167].mxu1 }
 0x430   :  { %v9390_v61 = vadd.f32 %v4252_v6, %v3880_v16  ;;  %7477 = vmatmul.mubr.msk.bf16.gmra.mrb[16].mxu0 %vm157_vm1, %v4532_v0  ;;  %v4483_v18 = vld [vmem:[#allocation2 + $0xca] sm:$0xff] }
 0x431   :  { %7480 = vmatprep.mubr.msk.bf16.mxu0 %vm7738_vm0, %v10014_v15 }
 0x433   :  { %v3712_v33 = vpop.f32.mrb[168].mxu0 }
 0x434   :  { %v3881_v25 = vadd.f32 %v3712_v33, %v9016_v54  ;;  %v7242_v19 = vpop.f32.mrb[169].mxu0  ;;  %v4257_v20 = vpop.f32.mrb[168].mxu1  ;;  %v4482_v54 = vld [vmem:[#allocation2 + $0xc2] sm:$0xff] }
 0x435   :  { %v3715_v59 = vpop.f32.mrb[170].mxu0  ;;  %v7370_v34 = vpop.f32.mrb[169].mxu1 }
 0x436   :  { %v3882_v0 = vadd.f32 %v3715_v59, %v9019_v58  ;;  %v9400_v40 = vadd.f32 %v4257_v20, %v3881_v25  ;;  %v7243_v1 = vpop.f32.mrb[171].mxu0  ;;  %v4260_v16 = vpop.f32.mrb[170].mxu1  ;;  %v4534_v58 = vpack.c.bf16 %v4483_v18, %v4482_v54 }
 0x437   :  { %v7371_v5 = vpop.f32.mrb[171].mxu1 }
 0x438   :  { %v9402_v6 = vadd.f32 %v4260_v16, %v3882_v0  ;;  %7481 = vmatmul.mubr.msk.bf16.gmra.mrb[20].mxu0 %vm157_vm1, %v4533_v13  ;;  %v4485_v16 = vld [vmem:[#allocation2 + $0xda] sm:$0xff] }
 0x439   :  { %7484 = vmatprep.mubr.msk.bf16.mxu0 %vm7738_vm0, %v10014_v15 }
 0x43b   :  { %v3720_v63 = vpop.f32.mrb[172].mxu0 }
 0x43c   :  { %v3883_v50 = vadd.f32 %v3720_v63, %v9028_v62  ;;  %v7246_v36 = vpop.f32.mrb[173].mxu0  ;;  %v4265_v33 = vpop.f32.mrb[172].mxu1  ;;  %v4484_v62 = vld [vmem:[#allocation2 + $0xd2] sm:$0xff] }
 0x43d   :  { %v3723_v25 = vpop.f32.mrb[174].mxu0  ;;  %v7374_v19 = vpop.f32.mrb[173].mxu1 }
 0x43e   :  { %v3884_v20 = vadd.f32 %v3723_v25, %v9031_v51  ;;  %v9409_v59 = vadd.f32 %v4265_v33, %v3883_v50  ;;  %v7247_v34 = vpop.f32.mrb[175].mxu0  ;;  %v4268_v0 = vpop.f32.mrb[174].mxu1  ;;  %v4535_v51 = vpack.c.bf16 %v4485_v16, %v4484_v62  ;;  %v10085_v33 = vld [vmem:[#allocation20_spill] sm:$0xff] }
 0x43f   :  { %v7375_v13 = vpop.f32.mrb[175].mxu1 }
 0x440   :  { %v9411_v1 = vadd.f32 %v4268_v0, %v3884_v20  ;;  %7485 = vmatmul.mubr.msk.bf16.gmra.mrb[24].mxu0 %vm157_vm1, %v4534_v58  ;;  %v4487_v13 = vld [vmem:[#allocation2 + $0xea] sm:$0xff] }
 0x441   :  { %7488 = vmatprep.mubr.msk.bf16.mxu0 %vm7738_vm0, %v10014_v15 }
 0x443   :  { %v3728_v5 = vpop.f32.mrb[176].mxu0 }
 0x444   :  { %v3885_v54 = vadd.f32 %v3728_v5, %v9040_v55  ;;  %v7250_v18 = vpop.f32.mrb[177].mxu0  ;;  %v4273_v63 = vpop.f32.mrb[176].mxu1  ;;  %v4486_v55 = vld [vmem:[#allocation2 + $0xe2] sm:$0xff] }
 0x445   :  { %v3731_v50 = vpop.f32.mrb[178].mxu0  ;;  %v7378_v36 = vpop.f32.mrb[177].mxu1 }
 0x446   :  { %v3886_v25 = vadd.f32 %v3731_v50, %v10085_v33  ;;  %v9418_v19 = vadd.f32 %v4273_v63, %v3885_v54  ;;  %v7251_v20 = vpop.f32.mrb[179].mxu0  ;;  %v4276_v34 = vpop.f32.mrb[178].mxu1  ;;  %v4536_v50 = vpack.c.bf16 %v4487_v13, %v4486_v55 }
 0x447   :  { %v7379_v58 = vpop.f32.mrb[179].mxu1 }
 0x448   :  { %v9420_v0 = vadd.f32 %v4276_v34, %v3886_v25  ;;  %7489 = vmatmul.mubr.msk.bf16.gmra.mrb[28].mxu0 %vm157_vm1, %v4535_v51  ;;  %v4489_v58 = vld [vmem:[#allocation2 + $0xfa] sm:$0xff] }
 0x449   :  { %7492 = vmatprep.mubr.msk.bf16.mxu0 %vm7738_vm0, %v10014_v15 }
 0x44b   :  { %v3736_v5 = vpop.f32.mrb[180].mxu0 }
 0x44c   :  { %v3887_v62 = vadd.f32 %v3736_v5, %v9052_v26  ;;  %v7254_v16 = vpop.f32.mrb[181].mxu0  ;;  %v4281_v18 = vpop.f32.mrb[180].mxu1  ;;  %v4488_v26 = vld [vmem:[#allocation2 + $0xf2] sm:$0xff] }
 0x44d   :  { %v3739_v54 = vpop.f32.mrb[182].mxu0  ;;  %v7382_v63 = vpop.f32.mrb[181].mxu1 }
 0x44e   :  { %v3888_v36 = vadd.f32 %v3739_v54, %v9058_v7  ;;  %v9427_v33 = vadd.f32 %v4281_v18, %v3887_v62  ;;  %v7255_v25 = vpop.f32.mrb[183].mxu0  ;;  %v4284_v20 = vpop.f32.mrb[182].mxu1  ;;  %v4537_v7 = vpack.c.bf16 %v4489_v58, %v4488_v26 }
 0x44f   :  { %v7383_v51 = vpop.f32.mrb[183].mxu1 }
 0x450   :  { %v9429_v34 = vadd.f32 %v4284_v20, %v3888_v36  ;;  %7493 = vmatmul.mubr.msk.bf16.gmra.mrb[32].mxu0 %vm157_vm1, %v4536_v50  ;;  %v4491_v51 = vld [vmem:[#allocation2 + $0x10a] sm:$0xff] }
 0x451   :  { %7496 = vmatprep.mubr.msk.bf16.mxu0 %vm7738_vm0, %v10014_v15 }
 0x453   :  { %v3744_v5 = vpop.f32.mrb[184].mxu0 }
 0x454   :  { %v3889_v55 = vadd.f32 %v3744_v5, %v9074_v56  ;;  %v7258_v13 = vpop.f32.mrb[185].mxu0  ;;  %v4289_v16 = vpop.f32.mrb[184].mxu1  ;;  %v4490_v56 = vld [vmem:[#allocation2 + $0x102] sm:$0xff] }
 0x455   :  { %v3747_v62 = vpop.f32.mrb[186].mxu0  ;;  %v7386_v18 = vpop.f32.mrb[185].mxu1 }
 0x456   :  { %v3890_v54 = vadd.f32 %v3747_v62, %v9078_v39  ;;  %v9436_v63 = vadd.f32 %v4289_v16, %v3889_v55  ;;  %v7259_v36 = vpop.f32.mrb[187].mxu0  ;;  %v4292_v25 = vpop.f32.mrb[186].mxu1  ;;  %v4538_v39 = vpack.c.bf16 %v4491_v51, %v4490_v56 }
 0x457   :  { %v7387_v50 = vpop.f32.mrb[187].mxu1 }
 0x458   :  { %v9438_v20 = vadd.f32 %v4292_v25, %v3890_v54  ;;  %7497 = vmatmul.mubr.msk.bf16.gmra.mrb[36].mxu0 %vm157_vm1, %v4537_v7  ;;  %v4493_v50 = vld [vmem:[#allocation2 + $0x11a] sm:$0xff] }
 0x459   :  { %7500 = vmatprep.mubr.msk.bf16.mxu0 %vm7738_vm0, %v10014_v15 }
 0x45b   :  { %v3752_v5 = vpop.f32.mrb[188].mxu0 }
 0x45c   :  { %v3891_v26 = vadd.f32 %v3752_v5, %v9088_v14  ;;  %v7262_v58 = vpop.f32.mrb[189].mxu0  ;;  %v4297_v13 = vpop.f32.mrb[188].mxu1  ;;  %v4492_v14 = vld [vmem:[#allocation2 + $0x112] sm:$0xff] }
 0x45d   :  { %v3755_v55 = vpop.f32.mrb[190].mxu0  ;;  %v7390_v16 = vpop.f32.mrb[189].mxu1 }
 0x45e   :  { %v3892_v62 = vadd.f32 %v3755_v55, %v9091_v24  ;;  %v9445_v18 = vadd.f32 %v4297_v13, %v3891_v26  ;;  %v7263_v54 = vpop.f32.mrb[191].mxu0  ;;  %v4300_v36 = vpop.f32.mrb[190].mxu1  ;;  %v4539_v24 = vpack.c.bf16 %v4493_v50, %v4492_v14 }
 0x45f   :  { %v7391_v7 = vpop.f32.mrb[191].mxu1 }
 0x460   :  { %v9447_v25 = vadd.f32 %v4300_v36, %v3892_v62  ;;  %7501 = vmatmul.mubr.msk.bf16.gmra.mrb[40].mxu0 %vm157_vm1, %v4538_v39  ;;  %v4495_v7 = vld [vmem:[#allocation2 + $0x12a] sm:$0xff] }
 0x461   :  { %7504 = vmatprep.mubr.msk.bf16.mxu0 %vm7738_vm0, %v10014_v15 }
 0x463   :  { %v3760_v5 = vpop.f32.mrb[192].mxu0 }
 0x464   :  { %v3893_v56 = vadd.f32 %v3760_v5, %v9100_v3  ;;  %v7266_v51 = vpop.f32.mrb[193].mxu0  ;;  %v4305_v58 = vpop.f32.mrb[192].mxu1  ;;  %v4494_v3 = vld [vmem:[#allocation2 + $0x122] sm:$0xff] }
 0x465   :  { %v3763_v26 = vpop.f32.mrb[194].mxu0  ;;  %v7394_v13 = vpop.f32.mrb[193].mxu1 }
 0x466   :  { %v3894_v55 = vadd.f32 %v3763_v26, %v9103_v48  ;;  %v9454_v16 = vadd.f32 %v4305_v58, %v3893_v56  ;;  %v7267_v62 = vpop.f32.mrb[195].mxu0  ;;  %v4308_v54 = vpop.f32.mrb[194].mxu1  ;;  %v4540_v48 = vpack.c.bf16 %v4495_v7, %v4494_v3 }
 0x467   :  { %v7395_v39 = vpop.f32.mrb[195].mxu1 }
 0x468   :  { %v9456_v36 = vadd.f32 %v4308_v54, %v3894_v55  ;;  %7505 = vmatmul.mubr.msk.bf16.gmra.mrb[44].mxu0 %vm157_vm1, %v4539_v24  ;;  %v4497_v39 = vld [vmem:[#allocation2 + $0x13a] sm:$0xff] }
 0x469   :  { %7508 = vmatprep.mubr.msk.bf16.mxu0 %vm7738_vm0, %v10014_v15 }
 0x46b   :  { %v3768_v5 = vpop.f32.mrb[196].mxu0 }
 0x46c   :  { %v3895_v14 = vadd.f32 %v3768_v5, %v9115_v21  ;;  %v7270_v50 = vpop.f32.mrb[197].mxu0  ;;  %v4313_v51 = vpop.f32.mrb[196].mxu1  ;;  %v4496_v21 = vld [vmem:[#allocation2 + $0x132] sm:$0xff] }
 0x46d   :  { %v3771_v56 = vpop.f32.mrb[198].mxu0  ;;  %v7398_v58 = vpop.f32.mrb[197].mxu1 }
 0x46e   :  { %v3896_v26 = vadd.f32 %v3771_v56, %v9118_v11  ;;  %v9463_v13 = vadd.f32 %v4313_v51, %v3895_v14  ;;  %v7271_v55 = vpop.f32.mrb[199].mxu0  ;;  %v4316_v62 = vpop.f32.mrb[198].mxu1  ;;  %v4541_v11 = vpack.c.bf16 %v4497_v39, %v4496_v21  ;;  %v10088_v21 = vld [vmem:[#allocation3_spill] sm:$0xff] }
 0x46f   :  { %v7399_v24 = vpop.f32.mrb[199].mxu1 }
 0x470   :  { %v9465_v54 = vadd.f32 %v4316_v62, %v3896_v26  ;;  %7509 = vmatmul.mubr.msk.bf16.gmra.mrb[48].mxu0 %vm157_vm1, %v4540_v48  ;;  %v4499_v24 = vld [vmem:[#allocation2 + $0x14a] sm:$0xff] }
 0x471   :  { %7512 = vmatprep.mubr.msk.bf16.mxu0 %vm7738_vm0, %v10014_v15 }
 0x473   :  { %v3776_v5 = vpop.f32.mrb[200].mxu0 }
 0x474   :  { %v3897_v3 = vadd.f32 %v3776_v5, %v9128_v8  ;;  %v7274_v7 = vpop.f32.mrb[201].mxu0  ;;  %v4321_v50 = vpop.f32.mrb[200].mxu1  ;;  %v4498_v8 = vld [vmem:[#allocation2 + $0x142] sm:$0xff] }
 0x475   :  { %v3779_v14 = vpop.f32.mrb[202].mxu0  ;;  %v7402_v51 = vpop.f32.mrb[201].mxu1 }
 0x476   :  { %v3898_v56 = vadd.f32 %v3779_v14, %v9131_v29  ;;  %v9472_v58 = vadd.f32 %v4321_v50, %v3897_v3  ;;  %v7275_v26 = vpop.f32.mrb[203].mxu0  ;;  %v4324_v55 = vpop.f32.mrb[202].mxu1  ;;  %v4542_v29 = vpack.c.bf16 %v4499_v24, %v4498_v8  ;;  %v10089_v14 = vld [vmem:[#allocation21_spill] sm:$0xff]  ;;  %v10092_v8 = vld [vmem:[#allocation4_spill] sm:$0xff] }
 0x477   :  { %v7403_v48 = vpop.f32.mrb[203].mxu1 }
 0x478   :  { %10086 = vst [vmem:[#allocation17_spill] sm:$0xff] %v9472_v58  ;;  %v9474_v62 = vadd.f32 %v4324_v55, %v3898_v56  ;;  %7513 = vmatmul.mubr.msk.bf16.gmra.mrb[52].mxu0 %vm157_vm1, %v4541_v11 }
 0x479   :  { %7516 = vmatprep.mubr.msk.bf16.mxu0 %vm7738_vm0, %v10014_v15 }
 0x47a   :  { %10087 = vst [vmem:[#allocation18_spill] sm:$0xff] %v9474_v62 }
 0x47b   :  { %v3784_v5 = vpop.f32.mrb[204].mxu0 }
 0x47c   :  { %v3899_v39 = vadd.f32 %v3784_v5, %v10088_v21  ;;  %v7278_v7 = vpop.f32.mrb[205].mxu0  ;;  %v4329_v51 = vpop.f32.mrb[204].mxu1  ;;  %v4500_v5 = vld [vmem:[#allocation2 + $0x152] sm:$0xff]  ;;  %v4501_v21 = vld [vmem:[#allocation2 + $0x15a] sm:$0xff] }
 0x47d   :  { %v3787_v3 = vpop.f32.mrb[206].mxu0  ;;  %v7406_v50 = vpop.f32.mrb[205].mxu1 }
 0x47e   :  { %v3900_v26 = vadd.f32 %v3787_v3, %v10089_v14  ;;  %v9481_v48 = vadd.f32 %v4329_v51, %v3899_v39  ;;  %v7279_v56 = vpop.f32.mrb[207].mxu0  ;;  %v4332_v55 = vpop.f32.mrb[206].mxu1  ;;  %v4543_v3 = vpack.c.bf16 %v4501_v21, %v4500_v5  ;;  %v10093_v14 = vld [vmem:[#allocation5_spill] sm:$0xff]  ;;  %v10096_v5 = vld [vmem:[#allocation6_spill] sm:$0xff] }
 0x47f   :  { %v7407_v11 = vpop.f32.mrb[207].mxu1 }
 0x480   :  { %10090 = vst [vmem:[#allocation19_spill] sm:$0xff] %v9481_v48  ;;  %v9483_v62 = vadd.f32 %v4332_v55, %v3900_v26  ;;  %7517 = vmatmul.mubr.msk.bf16.gmra.mrb[56].mxu0 %vm157_vm1, %v4542_v29 }
 0x481   :  { %7520 = vmatprep.mubr.msk.bf16.mxu0 %vm7738_vm0, %v10014_v15 }
 0x482   :  { %10091 = vst [vmem:[#allocation20_spill] sm:$0xff] %v9483_v62 }
 0x483   :  { %v3792_v7 = vpop.f32.mrb[208].mxu0 }
 0x484   :  { %v3901_v24 = vadd.f32 %v3792_v7, %v10092_v8  ;;  %v7282_v50 = vpop.f32.mrb[209].mxu0  ;;  %v4337_v58 = vpop.f32.mrb[208].mxu1  ;;  %v4502_v7 = vld [vmem:[#allocation2 + $0x162] sm:$0xff]  ;;  %v4503_v8 = vld [vmem:[#allocation2 + $0x16a] sm:$0xff] }
 0x485   :  { %v3795_v39 = vpop.f32.mrb[210].mxu0  ;;  %v7410_v51 = vpop.f32.mrb[209].mxu1 }
 0x486   :  { %v3902_v56 = vadd.f32 %v3795_v39, %v10093_v14  ;;  %v9490_v11 = vadd.f32 %v4337_v58, %v3901_v24  ;;  %v7283_v26 = vpop.f32.mrb[211].mxu0  ;;  %v4340_v55 = vpop.f32.mrb[210].mxu1  ;;  %v4544_v39 = vpack.c.bf16 %v4503_v8, %v4502_v7  ;;  %v10097_v14 = vld [vmem:[#allocation7_spill] sm:$0xff]  ;;  %v10100_v7 = vld [vmem:[#allocation8_spill] sm:$0xff] }
 0x487   :  { %v7411_v29 = vpop.f32.mrb[211].mxu1 }
 0x488   :  { %10094 = vst [vmem:[#allocation3_spill] sm:$0xff] %v9490_v11  ;;  %v9492_v62 = vadd.f32 %v4340_v55, %v3902_v56  ;;  %7521 = vmatmul.mubr.msk.bf16.gmra.mrb[60].mxu0 %vm157_vm1, %v4543_v3 }
 0x489   :  { %7524 = vmatprep.mubr.msk.bf16.mxu0 %vm7738_vm0, %v10014_v15 }
 0x48a   :  { %10095 = vst [vmem:[#allocation21_spill] sm:$0xff] %v9492_v62 }
 0x48b   :  { %v3800_v50 = vpop.f32.mrb[212].mxu0 }
 0x48c   :  { %v3903_v21 = vadd.f32 %v3800_v50, %v10096_v5  ;;  %v7286_v51 = vpop.f32.mrb[213].mxu0  ;;  %v4345_v48 = vpop.f32.mrb[212].mxu1  ;;  %v4504_v50 = vld [vmem:[#allocation2 + $0x172] sm:$0xff]  ;;  %v4505_v5 = vld [vmem:[#allocation2 + $0x17a] sm:$0xff] }
 0x48d   :  { %v3803_v58 = vpop.f32.mrb[214].mxu0  ;;  %v7414_v24 = vpop.f32.mrb[213].mxu1 }
 0x48e   :  { %v3904_v26 = vadd.f32 %v3803_v58, %v10097_v14  ;;  %v9499_v29 = vadd.f32 %v4345_v48, %v3903_v21  ;;  %v7287_v56 = vpop.f32.mrb[215].mxu0  ;;  %v4348_v55 = vpop.f32.mrb[214].mxu1  ;;  %v4545_v58 = vpack.c.bf16 %v4505_v5, %v4504_v50  ;;  %v10101_v14 = vld [vmem:[#allocation9_spill] sm:$0xff]  ;;  %v10104_v50 = vld [vmem:[#allocation10_spill] sm:$0xff] }
 0x48f   :  { %v7415_v3 = vpop.f32.mrb[215].mxu1 }
 0x490   :  { %10098 = vst [vmem:[#allocation4_spill] sm:$0xff] %v9499_v29  ;;  %v9501_v62 = vadd.f32 %v4348_v55, %v3904_v26  ;;  %7525 = vmatmul.mubr.msk.bf16.gmra.mrb[64].mxu0 %vm157_vm1, %v4544_v39 }
 0x491   :  { %7528 = vmatprep.mubr.msk.bf16.mxu0 %vm7738_vm0, %v10014_v15 }
 0x492   :  { %10099 = vst [vmem:[#allocation5_spill] sm:$0xff] %v9501_v62 }
 0x493   :  { %v3808_v51 = vpop.f32.mrb[216].mxu0 }
 0x494   :  { %v3905_v8 = vadd.f32 %v3808_v51, %v10100_v7  ;;  %v7290_v24 = vpop.f32.mrb[217].mxu0  ;;  %v4353_v11 = vpop.f32.mrb[216].mxu1  ;;  %v4506_v51 = vld [vmem:[#allocation2 + $0x182] sm:$0xff]  ;;  %v4507_v7 = vld [vmem:[#allocation2 + $0x18a] sm:$0xff] }
 0x495   :  { %v3811_v48 = vpop.f32.mrb[218].mxu0  ;;  %v7418_v21 = vpop.f32.mrb[217].mxu1 }
 0x496   :  { %v3906_v56 = vadd.f32 %v3811_v48, %v10101_v14  ;;  %v9508_v3 = vadd.f32 %v4353_v11, %v3905_v8  ;;  %v7291_v26 = vpop.f32.mrb[219].mxu0  ;;  %v4356_v55 = vpop.f32.mrb[218].mxu1  ;;  %v4546_v48 = vpack.c.bf16 %v4507_v7, %v4506_v51  ;;  %v10105_v14 = vld [vmem:[#allocation11_spill] sm:$0xff]  ;;  %v10108_v51 = vld [vmem:[#allocation12_spill] sm:$0xff] }
 0x497   :  { %v7419_v39 = vpop.f32.mrb[219].mxu1 }
 0x498   :  { %10102 = vst [vmem:[#allocation6_spill] sm:$0xff] %v9508_v3  ;;  %v9510_v62 = vadd.f32 %v4356_v55, %v3906_v56  ;;  %7529 = vmatmul.mubr.msk.bf16.gmra.mrb[68].mxu0 %vm157_vm1, %v4545_v58 }
 0x499   :  { %7532 = vmatprep.mubr.msk.bf16.mxu0 %vm7738_vm0, %v10014_v15 }
 0x49a   :  { %10103 = vst [vmem:[#allocation7_spill] sm:$0xff] %v9510_v62 }
 0x49b   :  { %v3816_v24 = vpop.f32.mrb[220].mxu0 }
 0x49c   :  { %v3907_v5 = vadd.f32 %v3816_v24, %v10104_v50  ;;  %v7294_v21 = vpop.f32.mrb[221].mxu0  ;;  %v4361_v29 = vpop.f32.mrb[220].mxu1  ;;  %v4508_v24 = vld [vmem:[#allocation2 + $0x192] sm:$0xff]  ;;  %v4509_v50 = vld [vmem:[#allocation2 + $0x19a] sm:$0xff] }
 0x49d   :  { %v3819_v11 = vpop.f32.mrb[222].mxu0  ;;  %v7422_v8 = vpop.f32.mrb[221].mxu1 }
 0x49e   :  { %v3908_v26 = vadd.f32 %v3819_v11, %v10105_v14  ;;  %v9517_v39 = vadd.f32 %v4361_v29, %v3907_v5  ;;  %v7295_v56 = vpop.f32.mrb[223].mxu0  ;;  %v4364_v55 = vpop.f32.mrb[222].mxu1  ;;  %v4547_v11 = vpack.c.bf16 %v4509_v50, %v4508_v24  ;;  %v10109_v14 = vld [vmem:[#allocation13_spill] sm:$0xff]  ;;  %v10111_v24 = vld [vmem:[#allocation14_spill] sm:$0xff] }
 0x49f   :  { %v7423_v58 = vpop.f32.mrb[223].mxu1 }
 0x4a0   :  { %10106 = vst [vmem:[#allocation8_spill] sm:$0xff] %v9517_v39  ;;  %v9519_v62 = vadd.f32 %v4364_v55, %v3908_v26  ;;  %7533 = vmatmul.mubr.msk.bf16.gmra.mrb[72].mxu0 %vm157_vm1, %v4546_v48 }
 0x4a1   :  { %7536 = vmatprep.mubr.msk.bf16.mxu0 %vm7738_vm0, %v10014_v15 }
 0x4a2   :  { %10107 = vst [vmem:[#allocation9_spill] sm:$0xff] %v9519_v62 }
 0x4a3   :  { %v3824_v21 = vpop.f32.mrb[224].mxu0 }
 0x4a4   :  { %v3909_v7 = vadd.f32 %v3824_v21, %v10108_v51  ;;  %v7298_v8 = vpop.f32.mrb[225].mxu0  ;;  %v4369_v3 = vpop.f32.mrb[224].mxu1  ;;  %v4510_v21 = vld [vmem:[#allocation2 + $0x1a2] sm:$0xff]  ;;  %v4511_v51 = vld [vmem:[#allocation2 + $0x1aa] sm:$0xff] }
 0x4a5   :  { %v3827_v29 = vpop.f32.mrb[226].mxu0  ;;  %v7426_v5 = vpop.f32.mrb[225].mxu1 }
 0x4a6   :  { %v3910_v56 = vadd.f32 %v3827_v29, %v10109_v14  ;;  %v9526_v58 = vadd.f32 %v4369_v3, %v3909_v7  ;;  %v7299_v26 = vpop.f32.mrb[227].mxu0  ;;  %v4372_v55 = vpop.f32.mrb[226].mxu1  ;;  %v4548_v29 = vpack.c.bf16 %v4511_v51, %v4510_v21  ;;  %v10112_v14 = vld [vmem:[#allocation15_spill] sm:$0xff] }
 0x4a7   :  { %v7427_v48 = vpop.f32.mrb[227].mxu1 }
 0x4a8   :  { %v9528_v62 = vadd.f32 %v4372_v55, %v3910_v56  ;;  %7537 = vmatmul.mubr.msk.bf16.gmra.mrb[76].mxu0 %vm157_vm1, %v4547_v11 }
 0x4a9   :  { %7540 = vmatprep.mubr.msk.bf16.mxu0 %vm7738_vm0, %v10014_v15 }
 0x4aa   :  { %10110 = vst [vmem:[#allocation10_spill] sm:$0xff] %v9528_v62 }
 0x4ab   :  { %v3832_v8 = vpop.f32.mrb[228].mxu0 }
 0x4ac   :  { %v3911_v50 = vadd.f32 %v3832_v8, %v10111_v24  ;;  %v7302_v5 = vpop.f32.mrb[229].mxu0  ;;  %v4377_v39 = vpop.f32.mrb[228].mxu1  ;;  %v4512_v8 = vld [vmem:[#allocation2 + $0x1b2] sm:$0xff]  ;;  %v4513_v24 = vld [vmem:[#allocation2 + $0x1ba] sm:$0xff] }
 0x4ad   :  { %v3835_v3 = vpop.f32.mrb[230].mxu0  ;;  %v7430_v7 = vpop.f32.mrb[229].mxu1 }
 0x4ae   :  { %v3912_v26 = vadd.f32 %v3835_v3, %v10112_v14  ;;  %v9535_v48 = vadd.f32 %v4377_v39, %v3911_v50  ;;  %v7303_v56 = vpop.f32.mrb[231].mxu0  ;;  %v4380_v55 = vpop.f32.mrb[230].mxu1  ;;  %v4549_v3 = vpack.c.bf16 %v4513_v24, %v4512_v8 }
 0x4af   :  { %v7431_v11 = vpop.f32.mrb[231].mxu1 }
 0x4b0   :  { %v9537_v62 = vadd.f32 %v4380_v55, %v3912_v26  ;;  %7541 = vmatmul.mubr.msk.bf16.gmra.mrb[80].mxu0 %vm157_vm1, %v4548_v29 }
 0x4b1   :  { %7544 = vmatprep.mubr.msk.bf16.mxu0 %vm7738_vm0, %v10014_v15 }
 0x4b3   :  { %v3840_v5 = vpop.f32.mrb[232].mxu0 }
 0x4b4   :  { %v3913_v21 = vadd.f32 %v3840_v5, %v9232_v53  ;;  %v7306_v51 = vpop.f32.mrb[233].mxu0  ;;  %v4385_v7 = vpop.f32.mrb[232].mxu1  ;;  %v4514_v53 = vld [vmem:[#allocation2 + $0x1c2] sm:$0xff]  ;;  %v4515_v5 = vld [vmem:[#allocation2 + $0x1ca] sm:$0xff] }
 0x4b5   :  { %v3843_v39 = vpop.f32.mrb[234].mxu0  ;;  %v7434_v50 = vpop.f32.mrb[233].mxu1 }
 0x4b6   :  { %v3914_v14 = vadd.f32 %v3843_v39, %v9234_v31  ;;  %v9544_v56 = vadd.f32 %v4385_v7, %v3913_v21  ;;  %v7307_v26 = vpop.f32.mrb[235].mxu0  ;;  %v4388_v55 = vpop.f32.mrb[234].mxu1  ;;  %v4550_v31 = vpack.c.bf16 %v4515_v5, %v4514_v53  ;;  %v9563_v53 = vld [vmem:[%s9991_s2] ss:$0 sm:$0xff] }
 0x4b7   :  { %v7435_v29 = vpop.f32.mrb[235].mxu1 }
 0x4b8   :  { %v9546_v11 = vadd.f32 %v4388_v55, %v3914_v14  ;;  %7545 = vmatmul.mubr.msk.bf16.gmra.mrb[84].mxu0 %vm157_vm1, %v4549_v3 }
 0x4b9   :  { %7548 = vmatprep.mubr.msk.bf16.mxu0 %vm7738_vm0, %v10014_v15 }
 0x4bb   :  { %v3848_v51 = vpop.f32.mrb[236].mxu0 }
 0x4bc   :  { %v3915_v8 = vadd.f32 %v3848_v51, %v9244_v47  ;;  %v7310_v24 = vpop.f32.mrb[237].mxu0  ;;  %v4393_v50 = vpop.f32.mrb[236].mxu1  ;;  %v4516_v47 = vld [vmem:[#allocation2 + $0x1d2] sm:$0xff]  ;;  %v4517_v51 = vld [vmem:[#allocation2 + $0x1da] sm:$0xff] }
 0x4bd   :  { %v3851_v21 = vpop.f32.mrb[238].mxu0  ;;  %v7438_v7 = vpop.f32.mrb[237].mxu1 }
 0x4be   :  { %v3916_v39 = vadd.f32 %v3851_v21, %v9246_v9  ;;  %v9553_v26 = vadd.f32 %v4393_v50, %v3915_v8  ;;  %v7311_v14 = vpop.f32.mrb[239].mxu0  ;;  %v4396_v55 = vpop.f32.mrb[238].mxu1  ;;  %v4551_v8 = vpack.c.bf16 %v4517_v51, %v4516_v47  ;;  %v10115_v7 = vld [vmem:[#allocation16_spill] sm:$0xff] }
 0x4bf   :  { %v7439_v3 = vpop.f32.mrb[239].mxu1 }
 0x4c0   :  { %10113 = vst [vmem:[#allocation11_spill] sm:$0xff] %v9553_v26  ;;  %v9555_v29 = vadd.f32 %v4396_v55, %v3916_v39  ;;  %7549 = vmatmul.mubr.msk.bf16.gmra.mrb[88].mxu0 %vm157_vm1, %v4550_v31  ;;  %v4518_v55 = vld [vmem:[#allocation2 + $0x1e2] sm:$0xff]  ;;  %v4519_v3 = vld [vmem:[#allocation2 + $0x1ea] sm:$0xff] }
 0x4c1   :  { %7552 = vmatprep.mubr.msk.bf16.mxu0 %vm7738_vm0, %v10014_v15 }
 0x4c2   :  { %10114 = vst [vmem:[#allocation12_spill] sm:$0xff] %v9555_v29 }
 0x4c3   :  { %v4698_v24 = vpop.f32.mrb[240].mxu0 }
 0x4c4   :  { %v4945_v9 = vadd.f32 %v4698_v24, %v9256_v42  ;;  %v7446_v5 = vpop.f32.mrb[241].mxu0 }
 0x4c5   :  { %v4701_v50 = vpop.f32.mrb[242].mxu0 }
 0x4c6   :  { %v5014_v21 = vadd.f32 %v9563_v53, %v4945_v9  ;;  %v4946_v31 = vadd.f32 %v4701_v50, %v10115_v7  ;;  %v7447_v39 = vpop.f32.mrb[243].mxu0  ;;  %v4552_v9 = vpack.c.bf16 %v4519_v3, %v4518_v55 }
 0x4c8   :  { %v5015_v14 = vadd.f32 %v9563_v53, %v4946_v31  ;;  %7553 = vmatmul.mubr.msk.bf16.gmra.mrb[92].mxu0 %vm157_vm1, %v4551_v8  ;;  %v5076_v29 = vmax.f32 %v5014_v21, 0.0 }
 0x4c9   :  { %7556 = vmatprep.mubr.msk.bf16.mxu0 %vm7738_vm0, %v10014_v15 }
 0x4ca   :  { %v5077_v26 = vmax.f32 %v5015_v14, 0.0 }
 0x4cb   :  { %v4706_v42 = vpop.f32.mrb[244].mxu0 }
 0x4cc   :  { %v5138_v24 = vpack.c.bf16 %v5077_v26, %v5076_v29  ;;  %v4947_v47 = vadd.f32 %v4706_v42, %v9272_v38  ;;  %v7450_v51 = vpop.f32.mrb[245].mxu0  ;;  %v4520_v38 = vld [vmem:[#allocation2 + $0x1f2] sm:$0xff]  ;;  %v4521_v26 = vld [vmem:[#allocation2 + $0x1fa] sm:$0xff] }
 0x4cd   :  { %v4709_v5 = vpop.f32.mrb[246].mxu0  ;;  %v4553_v3 = vpack.c.bf16 %v4521_v26, %v4520_v38 }
 0x4ce   :  { %v5016_v50 = vadd.f32 %v9563_v53, %v4947_v47  ;;  %v4948_v7 = vadd.f32 %v4709_v5, %v9274_v32  ;;  %v7451_v31 = vpop.f32.mrb[247].mxu0  ;;  %7585 = vmatmul.mubr.bf16.vlgmr.msra.gmra.mrb[240].mxu1 %v5138_v24  ;;  %v4523_v5 = vld [vmem:[#allocation2 + $0x20a] sm:$0xff] }
 0x4cf   :  { %7588 = vmatprep.mubr.msk.bf16.mxu1 %vm7738_vm0, %v10014_v15 }
 0x4d0   :  { %v5017_v8 = vadd.f32 %v9563_v53, %v4948_v7  ;;  %7557 = vmatmul.mubr.msk.bf16.gmra.mrb[96].mxu0 %vm157_vm1, %v4552_v9  ;;  %v5078_v29 = vmax.f32 %v5016_v50, 0.0 }
 0x4d1   :  { %7560 = vmatprep.mubr.msk.bf16.mxu0 %vm7738_vm0, %v10014_v15 }
 0x4d2   :  { %v5079_v21 = vmax.f32 %v5017_v8, 0.0 }
 0x4d3   :  { %v4714_v39 = vpop.f32.mrb[248].mxu0 }
 0x4d4   :  { %v5139_v14 = vpack.c.bf16 %v5079_v21, %v5078_v29  ;;  %v4949_v32 = vadd.f32 %v4714_v39, %v9284_v2  ;;  %v7454_v55 = vpop.f32.mrb[249].mxu0  ;;  %v4522_v2 = vld [vmem:[#allocation2 + $0x202] sm:$0xff] }
 0x4d5   :  { %v4717_v42 = vpop.f32.mrb[250].mxu0  ;;  %v4554_v26 = vpack.c.bf16 %v4523_v5, %v4522_v2 }
 0x4d6   :  { %v5018_v24 = vadd.f32 %v9563_v53, %v4949_v32  ;;  %v4950_v47 = vadd.f32 %v4717_v42, %v9286_v22  ;;  %v7455_v51 = vpop.f32.mrb[251].mxu0  ;;  %7589 = vmatmul.mubr.bf16.gmra.mrb[244].mxu1 %v5139_v14 }
 0x4d7   :  { %7592 = vmatprep.mubr.msk.bf16.mxu1 %vm7738_vm0, %v10014_v15 }
 0x4d8   :  { %v5019_v9 = vadd.f32 %v9563_v53, %v4950_v47  ;;  %7561 = vmatmul.mubr.msk.bf16.gmra.mrb[100].mxu0 %vm157_vm1, %v4553_v3  ;;  %v5080_v50 = vmax.f32 %v5018_v24, 0.0 }
 0x4d9   :  { %7564 = vmatprep.mubr.msk.bf16.mxu0 %vm7738_vm0, %v10014_v15 }
 0x4da   :  { %v5081_v7 = vmax.f32 %v5019_v9, 0.0 }
 0x4db   :  { %v4722_v31 = vpop.f32.mrb[252].mxu0 }
 0x4dc   :  { %v5140_v8 = vpack.c.bf16 %v5081_v7, %v5080_v50  ;;  %v4951_v22 = vadd.f32 %v4722_v31, %v9296_v28  ;;  %v7458_v38 = vpop.f32.mrb[253].mxu0 }
 0x4dd   :  { %v4725_v29 = vpop.f32.mrb[254].mxu0 }
 0x4de   :  { %v5020_v21 = vadd.f32 %v9563_v53, %v4951_v22  ;;  %v4952_v39 = vadd.f32 %v4725_v29, %v9298_v35  ;;  %v7459_v14 = vpop.f32.mrb[255].mxu0  ;;  %7593 = vmatmul.mubr.bf16.gmra.mrb[248].mxu1 %v5140_v8 }
 0x4df   :  { %7596 = vmatprep.mubr.msk.bf16.mxu1 %vm7738_vm0, %v10014_v15 }
 0x4e0   :  { %v5021_v32 = vadd.f32 %v9563_v53, %v4952_v39  ;;  %7565 = vmatmul.mubr.msk.bf16.gmra.mrb[104].mxu0 %vm157_vm1, %v4554_v26  ;;  %v5082_v55 = vmax.f32 %v5020_v21, 0.0 }
 0x4e2   :  { %v5083_v3 = vmax.f32 %v5021_v32, 0.0 }
 0x4e3   :  { %v4730_v42 = vpop.f32.mrb[0].mxu0 }
 0x4e4   :  { %v5141_v28 = vpack.c.bf16 %v5083_v3, %v5082_v55  ;;  %v4953_v24 = vadd.f32 %v4730_v42, %v9308_v49  ;;  %v7462_v47 = vpop.f32.mrb[1].mxu0 }
 0x4e5   :  { %v4733_v51 = vpop.f32.mrb[2].mxu0 }
 0x4e6   :  { %v5022_v9 = vadd.f32 %v9563_v53, %v4953_v24  ;;  %v4954_v35 = vadd.f32 %v4733_v51, %v9310_v46  ;;  %v7463_v2 = vpop.f32.mrb[3].mxu0  ;;  %7597 = vmatmul.mubr.bf16.gmra.mrb[252].mxu1 %v5141_v28 }
 0x4e7   :  { %7600 = vmatprep.mubr.msk.bf16.mxu1 %vm7738_vm0, %v10014_v15 }
 0x4e8   :  { %v5023_v5 = vadd.f32 %v9563_v53, %v4954_v35  ;;  %v5084_v50 = vmax.f32 %v5022_v9, 0.0 }
 0x4ea   :  { %v5085_v7 = vmax.f32 %v5023_v5, 0.0 }
 0x4eb   :  { %v4738_v31 = vpop.f32.mrb[4].mxu0 }
 0x4ec   :  { %v5142_v8 = vpack.c.bf16 %v5085_v7, %v5084_v50  ;;  %v4955_v22 = vadd.f32 %v4738_v31, %v9321_v60  ;;  %v7466_v49 = vpop.f32.mrb[5].mxu0 }
 0x4ed   :  { %v4741_v38 = vpop.f32.mrb[6].mxu0 }
 0x4ee   :  { %v5024_v26 = vadd.f32 %v9563_v53, %v4955_v22  ;;  %v4956_v29 = vadd.f32 %v4741_v38, %v9323_v4  ;;  %v7467_v46 = vpop.f32.mrb[7].mxu0  ;;  %7601 = vmatmul.mubr.bf16.gmra.mrb[0].mxu1 %v5142_v8 }
 0x4ef   :  { %7604 = vmatprep.mubr.msk.bf16.mxu1 %vm7738_vm0, %v10014_v15 }
 0x4f0   :  { %v5025_v21 = vadd.f32 %v9563_v53, %v4956_v29  ;;  %v5086_v39 = vmax.f32 %v5024_v26, 0.0 }
 0x4f2   :  { %v5087_v14 = vmax.f32 %v5025_v21, 0.0 }
 0x4f3   :  { %v4746_v32 = vpop.f32.mrb[8].mxu0 }
 0x4f4   :  { %v5143_v55 = vpack.c.bf16 %v5087_v14, %v5086_v39  ;;  %v4957_v3 = vadd.f32 %v4746_v32, %v9330_v10  ;;  %v7470_v60 = vpop.f32.mrb[9].mxu0 }
 0x4f5   :  { %v4749_v42 = vpop.f32.mrb[10].mxu0 }
 0x4f6   :  { %v5026_v28 = vadd.f32 %v9563_v53, %v4957_v3  ;;  %v4958_v24 = vadd.f32 %v4749_v42, %v9332_v30  ;;  %v7471_v4 = vpop.f32.mrb[11].mxu0  ;;  %7605 = vmatmul.mubr.bf16.gmra.mrb[4].mxu1 %v5143_v55 }
 0x4f7   :  { %7608 = vmatprep.mubr.msk.bf16.mxu1 %vm7738_vm0, %v10014_v15 }
 0x4f8   :  { %v5027_v47 = vadd.f32 %v9563_v53, %v4958_v24  ;;  %v5088_v51 = vmax.f32 %v5026_v28, 0.0 }
 0x4fa   :  { %v5089_v9 = vmax.f32 %v5027_v47, 0.0 }
 0x4fb   :  { %v4754_v35 = vpop.f32.mrb[12].mxu0 }
 0x4fc   :  { %v5144_v2 = vpack.c.bf16 %v5089_v9, %v5088_v51  ;;  %v4959_v5 = vadd.f32 %v4754_v35, %v9339_v44  ;;  %v7474_v10 = vpop.f32.mrb[13].mxu0 }
 0x4fd   :  { %v4757_v50 = vpop.f32.mrb[14].mxu0 }
 0x4fe   :  { %v5028_v7 = vadd.f32 %v9563_v53, %v4959_v5  ;;  %v4960_v31 = vadd.f32 %v4757_v50, %v9341_v41  ;;  %v7475_v30 = vpop.f32.mrb[15].mxu0  ;;  %7609 = vmatmul.mubr.bf16.gmra.mrb[8].mxu1 %v5144_v2 }
 0x4ff   :  { %7612 = vmatprep.mubr.msk.bf16.mxu1 %vm7738_vm0, %v10014_v15 }
 0x500   :  { %v5029_v8 = vadd.f32 %v9563_v53, %v4960_v31  ;;  %v5090_v22 = vmax.f32 %v5028_v7, 0.0 }
 0x502   :  { %v5091_v49 = vmax.f32 %v5029_v8, 0.0 }
 0x503   :  { %v4762_v38 = vpop.f32.mrb[16].mxu0 }
 0x504   :  { %v5145_v26 = vpack.c.bf16 %v5091_v49, %v5090_v22  ;;  %v4961_v29 = vadd.f32 %v4762_v38, %v9348_v52  ;;  %v7478_v44 = vpop.f32.mrb[17].mxu0 }
 0x505   :  { %v4765_v46 = vpop.f32.mrb[18].mxu0 }
 0x506   :  { %v5030_v21 = vadd.f32 %v9563_v53, %v4961_v29  ;;  %v4962_v39 = vadd.f32 %v4765_v46, %v9350_v45  ;;  %v7479_v41 = vpop.f32.mrb[19].mxu0  ;;  %7613 = vmatmul.mubr.bf16.gmra.mrb[12].mxu1 %v5145_v26 }
 0x507   :  { %7616 = vmatprep.mubr.msk.bf16.mxu1 %vm7738_vm0, %v10014_v15 }
 0x508   :  { %v5031_v14 = vadd.f32 %v9563_v53, %v4962_v39  ;;  %v5092_v32 = vmax.f32 %v5030_v21, 0.0 }
 0x50a   :  { %v5093_v55 = vmax.f32 %v5031_v14, 0.0 }
 0x50b   :  { %v4770_v3 = vpop.f32.mrb[20].mxu0 }
 0x50c   :  { %v5146_v60 = vpack.c.bf16 %v5093_v55, %v5092_v32  ;;  %v4963_v42 = vadd.f32 %v4770_v3, %v9361_v37  ;;  %v7482_v52 = vpop.f32.mrb[21].mxu0 }
 0x50d   :  { %v4773_v28 = vpop.f32.mrb[22].mxu0 }
 0x50e   :  { %v5032_v24 = vadd.f32 %v9563_v53, %v4963_v42  ;;  %v4964_v4 = vadd.f32 %v4773_v28, %v9363_v12  ;;  %v7483_v45 = vpop.f32.mrb[23].mxu0  ;;  %7617 = vmatmul.mubr.bf16.gmra.mrb[16].mxu1 %v5146_v60 }
 0x50f   :  { %7620 = vmatprep.mubr.msk.bf16.mxu1 %vm7738_vm0, %v10014_v15 }
 0x510   :  { %v5033_v47 = vadd.f32 %v9563_v53, %v4964_v4  ;;  %v5094_v51 = vmax.f32 %v5032_v24, 0.0 }
 0x512   :  { %v5095_v9 = vmax.f32 %v5033_v47, 0.0 }
 0x513   :  { %v4778_v35 = vpop.f32.mrb[24].mxu0 }
 0x514   :  { %v5147_v2 = vpack.c.bf16 %v5095_v9, %v5094_v51  ;;  %v4965_v5 = vadd.f32 %v4778_v35, %v9370_v43  ;;  %v7486_v37 = vpop.f32.mrb[25].mxu0 }
 0x515   :  { %v4781_v10 = vpop.f32.mrb[26].mxu0 }
 0x516   :  { %v5034_v50 = vadd.f32 %v9563_v53, %v4965_v5  ;;  %v4966_v7 = vadd.f32 %v4781_v10, %v9372_v23  ;;  %v7487_v12 = vpop.f32.mrb[27].mxu0  ;;  %7621 = vmatmul.mubr.bf16.gmra.mrb[20].mxu1 %v5147_v2 }
 0x517   :  { %7624 = vmatprep.mubr.msk.bf16.mxu1 %vm7738_vm0, %v10014_v15 }
 0x518   :  { %v5035_v31 = vadd.f32 %v9563_v53, %v4966_v7  ;;  %v5096_v30 = vmax.f32 %v5034_v50, 0.0 }
 0x51a   :  { %v5097_v8 = vmax.f32 %v5035_v31, 0.0 }
 0x51b   :  { %v4786_v22 = vpop.f32.mrb[28].mxu0 }
 0x51c   :  { %v5148_v49 = vpack.c.bf16 %v5097_v8, %v5096_v30  ;;  %v4967_v38 = vadd.f32 %v4786_v22, %v9379_v57  ;;  %v7490_v43 = vpop.f32.mrb[29].mxu0 }
 0x51d   :  { %v4789_v26 = vpop.f32.mrb[30].mxu0 }
 0x51e   :  { %v5036_v29 = vadd.f32 %v9563_v53, %v4967_v38  ;;  %v4968_v44 = vadd.f32 %v4789_v26, %v9381_v17  ;;  %v7491_v23 = vpop.f32.mrb[31].mxu0  ;;  %7625 = vmatmul.mubr.bf16.gmra.mrb[24].mxu1 %v5148_v49 }
 0x51f   :  { %7628 = vmatprep.mubr.msk.bf16.mxu1 %vm7738_vm0, %v10014_v15 }
 0x520   :  { %v5037_v46 = vadd.f32 %v9563_v53, %v4968_v44  ;;  %v5098_v21 = vmax.f32 %v5036_v29, 0.0 }
 0x522   :  { %v5099_v39 = vmax.f32 %v5037_v46, 0.0 }
 0x523   :  { %v4794_v41 = vpop.f32.mrb[32].mxu0 }
 0x524   :  { %v5149_v14 = vpack.c.bf16 %v5099_v39, %v5098_v21  ;;  %v4969_v32 = vadd.f32 %v4794_v41, %v9388_v27  ;;  %v7494_v57 = vpop.f32.mrb[33].mxu0 }
 0x525   :  { %v4797_v55 = vpop.f32.mrb[34].mxu0 }
 0x526   :  { %v5038_v3 = vadd.f32 %v9563_v53, %v4969_v32  ;;  %v4970_v60 = vadd.f32 %v4797_v55, %v9390_v61  ;;  %v7495_v17 = vpop.f32.mrb[35].mxu0  ;;  %7629 = vmatmul.mubr.bf16.gmra.mrb[28].mxu1 %v5149_v14 }
 0x527   :  { %7632 = vmatprep.mubr.msk.bf16.mxu1 %vm7738_vm0, %v10014_v15 }
 0x528   :  { %v5039_v42 = vadd.f32 %v9563_v53, %v4970_v60  ;;  %v5100_v52 = vmax.f32 %v5038_v3, 0.0 }
 0x52a   :  { %v5101_v28 = vmax.f32 %v5039_v42, 0.0 }
 0x52b   :  { %v4802_v24 = vpop.f32.mrb[36].mxu0 }
 0x52c   :  { %v5150_v4 = vpack.c.bf16 %v5101_v28, %v5100_v52  ;;  %v4971_v45 = vadd.f32 %v4802_v24, %v9400_v40  ;;  %v7498_v27 = vpop.f32.mrb[37].mxu0 }
 0x52d   :  { %v4805_v47 = vpop.f32.mrb[38].mxu0 }
 0x52e   :  { %v5040_v51 = vadd.f32 %v9563_v53, %v4971_v45  ;;  %v4972_v9 = vadd.f32 %v4805_v47, %v9402_v6  ;;  %v7499_v61 = vpop.f32.mrb[39].mxu0  ;;  %7633 = vmatmul.mubr.bf16.gmra.mrb[32].mxu1 %v5150_v4 }
 0x52f   :  { %7636 = vmatprep.mubr.msk.bf16.mxu1 %vm7738_vm0, %v10014_v15 }
 0x530   :  { %v5041_v35 = vadd.f32 %v9563_v53, %v4972_v9  ;;  %v5102_v2 = vmax.f32 %v5040_v51, 0.0 }
 0x532   :  { %v5103_v5 = vmax.f32 %v5041_v35, 0.0 }
 0x533   :  { %v4810_v37 = vpop.f32.mrb[40].mxu0 }
 0x534   :  { %v5151_v10 = vpack.c.bf16 %v5103_v5, %v5102_v2  ;;  %v4973_v50 = vadd.f32 %v4810_v37, %v9409_v59  ;;  %v7502_v40 = vpop.f32.mrb[41].mxu0 }
 0x535   :  { %v4813_v7 = vpop.f32.mrb[42].mxu0 }
 0x536   :  { %v5042_v12 = vadd.f32 %v9563_v53, %v4973_v50  ;;  %v4974_v31 = vadd.f32 %v4813_v7, %v9411_v1  ;;  %v7503_v6 = vpop.f32.mrb[43].mxu0  ;;  %7637 = vmatmul.mubr.bf16.gmra.mrb[36].mxu1 %v5151_v10 }
 0x537   :  { %7640 = vmatprep.mubr.msk.bf16.mxu1 %vm7738_vm0, %v10014_v15 }
 0x538   :  { %v5043_v30 = vadd.f32 %v9563_v53, %v4974_v31  ;;  %v5104_v8 = vmax.f32 %v5042_v12, 0.0 }
 0x53a   :  { %v5105_v22 = vmax.f32 %v5043_v30, 0.0 }
 0x53b   :  { %v4818_v49 = vpop.f32.mrb[44].mxu0 }
 0x53c   :  { %v5152_v38 = vpack.c.bf16 %v5105_v22, %v5104_v8  ;;  %v4975_v43 = vadd.f32 %v4818_v49, %v9418_v19  ;;  %v7506_v59 = vpop.f32.mrb[45].mxu0 }
 0x53d   :  { %v4821_v26 = vpop.f32.mrb[46].mxu0 }
 0x53e   :  { %v5044_v29 = vadd.f32 %v9563_v53, %v4975_v43  ;;  %v4976_v44 = vadd.f32 %v4821_v26, %v9420_v0  ;;  %v7507_v1 = vpop.f32.mrb[47].mxu0  ;;  %7641 = vmatmul.mubr.bf16.gmra.mrb[40].mxu1 %v5152_v38 }
 0x53f   :  { %7644 = vmatprep.mubr.msk.bf16.mxu1 %vm7738_vm0, %v10014_v15 }
 0x540   :  { %v5045_v23 = vadd.f32 %v9563_v53, %v4976_v44  ;;  %v5106_v46 = vmax.f32 %v5044_v29, 0.0 }
 0x542   :  { %v5107_v21 = vmax.f32 %v5045_v23, 0.0 }
 0x543   :  { %v4826_v39 = vpop.f32.mrb[48].mxu0 }
 0x544   :  { %v5153_v41 = vpack.c.bf16 %v5107_v21, %v5106_v46  ;;  %v4977_v14 = vadd.f32 %v4826_v39, %v9427_v33  ;;  %v7510_v19 = vpop.f32.mrb[49].mxu0 }
 0x545   :  { %v4829_v32 = vpop.f32.mrb[50].mxu0 }
 0x546   :  { %v5046_v57 = vadd.f32 %v9563_v53, %v4977_v14  ;;  %v4978_v55 = vadd.f32 %v4829_v32, %v9429_v34  ;;  %v7511_v0 = vpop.f32.mrb[51].mxu0  ;;  %7645 = vmatmul.mubr.bf16.gmra.mrb[44].mxu1 %v5153_v41  ;;  %v10116_v14 = vld [vmem:[#allocation17_spill] sm:$0xff] }
 0x547   :  { %7648 = vmatprep.mubr.msk.bf16.mxu1 %vm7738_vm0, %v10014_v15 }
 0x548   :  { %v5047_v3 = vadd.f32 %v9563_v53, %v4978_v55  ;;  %v5108_v60 = vmax.f32 %v5046_v57, 0.0  ;;  %v10117_v55 = vld [vmem:[#allocation18_spill] sm:$0xff] }
 0x54a   :  { %v5109_v17 = vmax.f32 %v5047_v3, 0.0 }
 0x54b   :  { %v4834_v42 = vpop.f32.mrb[52].mxu0 }
 0x54c   :  { %v5154_v52 = vpack.c.bf16 %v5109_v17, %v5108_v60  ;;  %v4979_v28 = vadd.f32 %v4834_v42, %v9436_v63  ;;  %v7514_v33 = vpop.f32.mrb[53].mxu0 }
 0x54d   :  { %v4837_v24 = vpop.f32.mrb[54].mxu0 }
 0x54e   :  { %v5048_v4 = vadd.f32 %v9563_v53, %v4979_v28  ;;  %v4980_v45 = vadd.f32 %v4837_v24, %v9438_v20  ;;  %v7515_v34 = vpop.f32.mrb[55].mxu0  ;;  %7649 = vmatmul.mubr.bf16.gmra.mrb[48].mxu1 %v5154_v52  ;;  %v10118_v28 = vld [vmem:[#allocation19_spill] sm:$0xff] }
 0x54f   :  { %7652 = vmatprep.mubr.msk.bf16.mxu1 %vm7738_vm0, %v10014_v15  ;;  %v10119_v34 = vld [vmem:[#allocation20_spill] sm:$0xff] }
 0x550   :  { %v5049_v27 = vadd.f32 %v9563_v53, %v4980_v45  ;;  %v5110_v47 = vmax.f32 %v5048_v4, 0.0 }
 0x552   :  { %v5111_v51 = vmax.f32 %v5049_v27, 0.0 }
 0x553   :  { %v4842_v9 = vpop.f32.mrb[56].mxu0 }
 0x554   :  { %v5155_v61 = vpack.c.bf16 %v5111_v51, %v5110_v47  ;;  %v4981_v35 = vadd.f32 %v4842_v9, %v9445_v18  ;;  %v7518_v63 = vpop.f32.mrb[57].mxu0 }
 0x555   :  { %v4845_v2 = vpop.f32.mrb[58].mxu0 }
 0x556   :  { %v5050_v5 = vadd.f32 %v9563_v53, %v4981_v35  ;;  %v4982_v37 = vadd.f32 %v4845_v2, %v9447_v25  ;;  %v7519_v20 = vpop.f32.mrb[59].mxu0  ;;  %7653 = vmatmul.mubr.bf16.gmra.mrb[52].mxu1 %v5155_v61  ;;  %v10120_v2 = vld [vmem:[#allocation3_spill] sm:$0xff] }
 0x557   :  { %7656 = vmatprep.mubr.msk.bf16.mxu1 %vm7738_vm0, %v10014_v15 }
 0x558   :  { %v5051_v10 = vadd.f32 %v9563_v53, %v4982_v37  ;;  %v5112_v50 = vmax.f32 %v5050_v5, 0.0 }
 0x55a   :  { %v5113_v40 = vmax.f32 %v5051_v10, 0.0 }
 0x55b   :  { %v4850_v7 = vpop.f32.mrb[60].mxu0 }
 0x55c   :  { %v5156_v12 = vpack.c.bf16 %v5113_v40, %v5112_v50  ;;  %v4983_v31 = vadd.f32 %v4850_v7, %v9454_v16  ;;  %v7522_v18 = vpop.f32.mrb[61].mxu0  ;;  %v10121_v50 = vld [vmem:[#allocation21_spill] sm:$0xff] }
 0x55d   :  { %v4853_v6 = vpop.f32.mrb[62].mxu0 }
 0x55e   :  { %v5052_v30 = vadd.f32 %v9563_v53, %v4983_v31  ;;  %v4984_v8 = vadd.f32 %v4853_v6, %v9456_v36  ;;  %v7523_v25 = vpop.f32.mrb[63].mxu0  ;;  %7657 = vmatmul.mubr.bf16.gmra.mrb[56].mxu1 %v5156_v12 }
 0x55f   :  { %7660 = vmatprep.mubr.msk.bf16.mxu1 %vm7738_vm0, %v10014_v15 }
 0x560   :  { %v5053_v22 = vadd.f32 %v9563_v53, %v4984_v8  ;;  %v5114_v49 = vmax.f32 %v5052_v30, 0.0  ;;  %v10122_v8 = vld [vmem:[#allocation4_spill] sm:$0xff] }
 0x562   :  { %v5115_v38 = vmax.f32 %v5053_v22, 0.0 }
 0x563   :  { %v4858_v43 = vpop.f32.mrb[64].mxu0 }
 0x564   :  { %v5157_v59 = vpack.c.bf16 %v5115_v38, %v5114_v49  ;;  %v4985_v26 = vadd.f32 %v4858_v43, %v9463_v13  ;;  %v7526_v16 = vpop.f32.mrb[65].mxu0  ;;  %v10123_v43 = vld [vmem:[#allocation5_spill] sm:$0xff] }
 0x565   :  { %v4861_v29 = vpop.f32.mrb[66].mxu0 }
 0x566   :  { %v5054_v44 = vadd.f32 %v9563_v53, %v4985_v26  ;;  %v4986_v1 = vadd.f32 %v4861_v29, %v9465_v54  ;;  %v7527_v36 = vpop.f32.mrb[67].mxu0  ;;  %7661 = vmatmul.mubr.bf16.gmra.mrb[60].mxu1 %v5157_v59 }
 0x567   :  { %7664 = vmatprep.mubr.msk.bf16.mxu1 %vm7738_vm0, %v10014_v15 }
 0x568   :  { %v5055_v23 = vadd.f32 %v9563_v53, %v4986_v1  ;;  %v5116_v46 = vmax.f32 %v5054_v44, 0.0 }
 0x56a   :  { %v5117_v21 = vmax.f32 %v5055_v23, 0.0  ;;  %v10124_v23 = vld [vmem:[#allocation6_spill] sm:$0xff] }
 0x56b   :  { %v4866_v39 = vpop.f32.mrb[68].mxu0 }
 0x56c   :  { %v5158_v41 = vpack.c.bf16 %v5117_v21, %v5116_v46  ;;  %v4987_v19 = vadd.f32 %v4866_v39, %v10116_v14  ;;  %v7530_v13 = vpop.f32.mrb[69].mxu0  ;;  %v10125_v14 = vld [vmem:[#allocation7_spill] sm:$0xff] }
 0x56d   :  { %v4869_v32 = vpop.f32.mrb[70].mxu0 }
 0x56e   :  { %v5056_v57 = vadd.f32 %v9563_v53, %v4987_v19  ;;  %v4988_v0 = vadd.f32 %v4869_v32, %v10117_v55  ;;  %v7531_v54 = vpop.f32.mrb[71].mxu0  ;;  %7665 = vmatmul.mubr.bf16.gmra.mrb[64].mxu1 %v5158_v41 }
 0x56f   :  { %7668 = vmatprep.mubr.msk.bf16.mxu1 %vm7738_vm0, %v10014_v15 }
 0x570   :  { %v5057_v3 = vadd.f32 %v9563_v53, %v4988_v0  ;;  %v5118_v60 = vmax.f32 %v5056_v57, 0.0 }
 0x572   :  { %v5119_v17 = vmax.f32 %v5057_v3, 0.0  ;;  %v10126_v3 = vld [vmem:[#allocation8_spill] sm:$0xff] }
 0x573   :  { %v4874_v42 = vpop.f32.mrb[72].mxu0 }
 0x574   :  { %v5159_v52 = vpack.c.bf16 %v5119_v17, %v5118_v60  ;;  %v4989_v33 = vadd.f32 %v4874_v42, %v10118_v28  ;;  %v7534_v24 = vpop.f32.mrb[73].mxu0  ;;  %v10127_v28 = vld [vmem:[#allocation9_spill] sm:$0xff] }
 0x575   :  { %v4877_v4 = vpop.f32.mrb[74].mxu0 }
 0x576   :  { %v5058_v45 = vadd.f32 %v9563_v53, %v4989_v33  ;;  %v4990_v27 = vadd.f32 %v4877_v4, %v10119_v34  ;;  %v7535_v47 = vpop.f32.mrb[75].mxu0  ;;  %7669 = vmatmul.mubr.bf16.gmra.mrb[68].mxu1 %v5159_v52 }
 0x577   :  { %7672 = vmatprep.mubr.msk.bf16.mxu1 %vm7738_vm0, %v10014_v15 }
 0x578   :  { %v5059_v51 = vadd.f32 %v9563_v53, %v4990_v27  ;;  %v5120_v9 = vmax.f32 %v5058_v45, 0.0 }
 0x57a   :  { %v5121_v61 = vmax.f32 %v5059_v51, 0.0 }
 0x57b   :  { %v4882_v35 = vpop.f32.mrb[76].mxu0 }
 0x57c   :  { %v5160_v63 = vpack.c.bf16 %v5121_v61, %v5120_v9  ;;  %v4991_v5 = vadd.f32 %v4882_v35, %v10120_v2  ;;  %v7538_v37 = vpop.f32.mrb[77].mxu0 }
 0x57d   :  { %v4885_v20 = vpop.f32.mrb[78].mxu0  ;;  %v9741_v37 = vld [vmem:[%s9992_s4] ss:$0 sm:$0xff] }
 0x57e   :  { %v5060_v10 = vadd.f32 %v9563_v53, %v4991_v5  ;;  %v4992_v40 = vadd.f32 %v4885_v20, %v10121_v50  ;;  %v7539_v7 = vpop.f32.mrb[79].mxu0  ;;  %7673 = vmatmul.mubr.bf16.gmra.mrb[72].mxu1 %v5160_v63  ;;  %v10128_v63 = vld [vmem:[#allocation10_spill] sm:$0xff] }
 0x57f   :  { %7676 = vmatprep.mubr.msk.bf16.mxu1 %vm7738_vm0, %v10014_v15 }
 0x580   :  { %v5061_v12 = vadd.f32 %v9563_v53, %v4992_v40  ;;  %v5122_v31 = vmax.f32 %v5060_v10, 0.0 }
 0x582   :  { %v5123_v18 = vmax.f32 %v5061_v12, 0.0 }
 0x583   :  { %v4890_v6 = vpop.f32.mrb[80].mxu0 }
 0x584   :  { %v5161_v30 = vpack.c.bf16 %v5123_v18, %v5122_v31  ;;  %v4993_v25 = vadd.f32 %v4890_v6, %v10122_v8  ;;  %v7542_v22 = vpop.f32.mrb[81].mxu0 }
 0x585   :  { %v4893_v49 = vpop.f32.mrb[82].mxu0 }
 0x586   :  { %v5062_v38 = vadd.f32 %v9563_v53, %v4993_v25  ;;  %v4994_v59 = vadd.f32 %v4893_v49, %v10123_v43  ;;  %v7543_v26 = vpop.f32.mrb[83].mxu0  ;;  %7677 = vmatmul.mubr.bf16.gmra.mrb[76].mxu1 %v5161_v30 }
 0x587   :  { %7680 = vmatprep.mubr.msk.bf16.mxu1 %vm7738_vm0, %v10014_v15 }
 0x588   :  { %v5063_v16 = vadd.f32 %v9563_v53, %v4994_v59  ;;  %v5124_v29 = vmax.f32 %v5062_v38, 0.0 }
 0x58a   :  { %v5125_v44 = vmax.f32 %v5063_v16, 0.0 }
 0x58b   :  { %v4898_v1 = vpop.f32.mrb[84].mxu0 }
 0x58c   :  { %v5162_v36 = vpack.c.bf16 %v5125_v44, %v5124_v29  ;;  %v4995_v46 = vadd.f32 %v4898_v1, %v10124_v23  ;;  %v7546_v21 = vpop.f32.mrb[85].mxu0 }
 0x58d   :  { %v4901_v39 = vpop.f32.mrb[86].mxu0 }
 0x58e   :  { %v5064_v41 = vadd.f32 %v9563_v53, %v4995_v46  ;;  %v4996_v19 = vadd.f32 %v4901_v39, %v10125_v14  ;;  %v7547_v13 = vpop.f32.mrb[87].mxu0  ;;  %7681 = vmatmul.mubr.bf16.gmra.mrb[80].mxu1 %v5162_v36 }
 0x58f   :  { %7684 = vmatprep.mubr.msk.bf16.mxu1 %vm7738_vm0, %v10014_v15 }
 0x590   :  { %v5065_v32 = vadd.f32 %v9563_v53, %v4996_v19  ;;  %v5126_v57 = vmax.f32 %v5064_v41, 0.0 }
 0x592   :  { %v5127_v55 = vmax.f32 %v5065_v32, 0.0 }
 0x593   :  { %v4906_v0 = vpop.f32.mrb[88].mxu0 }
 0x594   :  { %v5163_v54 = vpack.c.bf16 %v5127_v55, %v5126_v57  ;;  %v4997_v60 = vadd.f32 %v4906_v0, %v10126_v3  ;;  %v7550_v17 = vpop.f32.mrb[89].mxu0 }
 0x595   :  { %v4909_v42 = vpop.f32.mrb[90].mxu0 }
 0x596   :  { %v5066_v52 = vadd.f32 %v9563_v53, %v4997_v60  ;;  %v4998_v33 = vadd.f32 %v4909_v42, %v10127_v28  ;;  %v7551_v24 = vpop.f32.mrb[91].mxu0  ;;  %7685 = vmatmul.mubr.bf16.gmra.mrb[84].mxu1 %v5163_v54 }
 0x597   :  { %7688 = vmatprep.mubr.msk.bf16.mxu1 %vm7738_vm0, %v10014_v15 }
 0x598   :  { %v5067_v4 = vadd.f32 %v9563_v53, %v4998_v33  ;;  %v5128_v45 = vmax.f32 %v5066_v52, 0.0 }
 0x59a   :  { %v5129_v34 = vmax.f32 %v5067_v4, 0.0 }
 0x59b   :  { %v4914_v27 = vpop.f32.mrb[92].mxu0 }
 0x59c   :  { %v5164_v47 = vpack.c.bf16 %v5129_v34, %v5128_v45  ;;  %v4999_v51 = vadd.f32 %v4914_v27, %v9526_v58  ;;  %v7554_v9 = vpop.f32.mrb[93].mxu0  ;;  %v10130_v45 = vld [vmem:[#allocation12_spill] sm:$0xff] }
 0x59d   :  { %v4917_v61 = vpop.f32.mrb[94].mxu0 }
 0x59e   :  { %v5068_v35 = vadd.f32 %v9563_v53, %v4999_v51  ;;  %v5000_v2 = vadd.f32 %v4917_v61, %v10128_v63  ;;  %v7555_v5 = vpop.f32.mrb[95].mxu0  ;;  %7689 = vmatmul.mubr.bf16.gmra.mrb[88].mxu1 %v5164_v47 }
 0x59f   :  { %7692 = vmatprep.mubr.msk.bf16.mxu1 %vm7738_vm0, %v10014_v15 }
 0x5a0   :  { %v5069_v20 = vadd.f32 %v9563_v53, %v5000_v2  ;;  %v5130_v58 = vmax.f32 %v5068_v35, 0.0 }
 0x5a1   :  { %v5274_v10 = vpop.f32.mrb[240].mxu1 }
 0x5a2   :  { %v5131_v50 = vmax.f32 %v5069_v20, 0.0  ;;  %v5275_v40 = vadd.f32 %v9741_v37, %v5274_v10  ;;  %v7586_v7 = vpop.f32.mrb[241].mxu1 }
 0x5a3   :  { %v4922_v12 = vpop.f32.mrb[96].mxu0  ;;  %v5277_v31 = vpop.f32.mrb[242].mxu1 }
 0x5a4   :  { %v5165_v18 = vpack.c.bf16 %v5131_v50, %v5130_v58  ;;  %5515 = vst [vmem:[%s9993_s5] sm:$0xff] %v5275_v40  ;;  %v5001_v6 = vadd.f32 %v4922_v12, %v9535_v48  ;;  %v5278_v30 = vadd.f32 %v9741_v37, %v5277_v31  ;;  %v7558_v8 = vpop.f32.mrb[97].mxu0  ;;  %v7587_v25 = vpop.f32.mrb[243].mxu1 }
 0x5a5   :  { %v4925_v22 = vpop.f32.mrb[98].mxu0 }
 0x5a6   :  { %v5070_v49 = vadd.f32 %v9563_v53, %v5001_v6  ;;  %5516 = vst [vmem:[%s9993_s5 + $0x8] sm:$0xff] %v5278_v30  ;;  %v5002_v38 = vadd.f32 %v4925_v22, %v9537_v62  ;;  %v7559_v43 = vpop.f32.mrb[99].mxu0  ;;  %7693 = vmatmul.mubr.bf16.gmra.mrb[92].mxu1 %v5165_v18 }
 0x5a7   :  { %7696 = vmatprep.mubr.msk.bf16.mxu1 %vm7738_vm0, %v10014_v15 }
 0x5a8   :  { %v5071_v48 = vadd.f32 %v9563_v53, %v5002_v38  ;;  %v5132_v26 = vmax.f32 %v5070_v49, 0.0 }
 0x5a9   :  { %v5282_v59 = vpop.f32.mrb[244].mxu1 }
 0x5aa   :  { %v5133_v16 = vmax.f32 %v5071_v48, 0.0  ;;  %v5283_v29 = vadd.f32 %v9741_v37, %v5282_v59  ;;  %v7590_v44 = vpop.f32.mrb[245].mxu1 }
 0x5ab   :  { %v4930_v1 = vpop.f32.mrb[100].mxu0  ;;  %v5285_v36 = vpop.f32.mrb[246].mxu1 }
 0x5ac   :  { %v5166_v23 = vpack.c.bf16 %v5133_v16, %v5132_v26  ;;  %5517 = vst [vmem:[%s9993_s5 + $0x10] sm:$0xff] %v5283_v29  ;;  %v5003_v62 = vadd.f32 %v4930_v1, %v9544_v56  ;;  %v5286_v46 = vadd.f32 %v9741_v37, %v5285_v36  ;;  %v7562_v21 = vpop.f32.mrb[101].mxu0  ;;  %v7591_v39 = vpop.f32.mrb[247].mxu1 }
 0x5ad   :  { %v4933_v41 = vpop.f32.mrb[102].mxu0 }
 0x5ae   :  { %v5072_v14 = vadd.f32 %v9563_v53, %v5003_v62  ;;  %5518 = vst [vmem:[%s9993_s5 + $0x18] sm:$0xff] %v5286_v46  ;;  %v5004_v19 = vadd.f32 %v4933_v41, %v9546_v11  ;;  %v7563_v13 = vpop.f32.mrb[103].mxu0  ;;  %7697 = vmatmul.mubr.bf16.gmra.mrb[96].mxu1 %v5166_v23  ;;  %v10129_v11 = vld [vmem:[#allocation11_spill] sm:$0xff] }
 0x5af   :  { %7700 = vmatprep.mubr.msk.bf16.mxu1 %vm7738_vm0, %v10014_v15 }
 0x5b0   :  { %v5073_v56 = vadd.f32 %v9563_v53, %v5004_v19  ;;  %v5134_v57 = vmax.f32 %v5072_v14, 0.0 }
 0x5b1   :  { %v5290_v32 = vpop.f32.mrb[248].mxu1 }
 0x5b2   :  { %v5135_v55 = vmax.f32 %v5073_v56, 0.0  ;;  %v5291_v0 = vadd.f32 %v9741_v37, %v5290_v32  ;;  %v7594_v54 = vpop.f32.mrb[249].mxu1 }
 0x5b3   :  { %v4938_v3 = vpop.f32.mrb[104].mxu0  ;;  %v5293_v60 = vpop.f32.mrb[250].mxu1 }
 0x5b4   :  { %v5167_v17 = vpack.c.bf16 %v5135_v55, %v5134_v57  ;;  %5519 = vst [vmem:[%s9993_s5 + $0x20] sm:$0xff] %v5291_v0  ;;  %v5005_v42 = vadd.f32 %v4938_v3, %v10129_v11  ;;  %v5294_v52 = vadd.f32 %v9741_v37, %v5293_v60  ;;  %v7566_v28 = vpop.f32.mrb[105].mxu0  ;;  %v7595_v33 = vpop.f32.mrb[251].mxu1 }
 0x5b5   :  { %v4941_v24 = vpop.f32.mrb[106].mxu0 }
 0x5b6   :  { %v5074_v4 = vadd.f32 %v9563_v53, %v5005_v42  ;;  %5520 = vst [vmem:[%s9993_s5 + $0x28] sm:$0xff] %v5294_v52  ;;  %v5006_v34 = vadd.f32 %v4941_v24, %v10130_v45  ;;  %v7567_v27 = vpop.f32.mrb[107].mxu0  ;;  %7701 = vmatmul.mubr.bf16.gmra.mrb[100].mxu1 %v5167_v17 }
 0x5b7   :  { %7704 = vmatprep.mubr.msk.bf16.mxu1 %vm7738_vm0, %v10014_v15 }
 0x5b8   :  { %v5075_v47 = vadd.f32 %v9563_v53, %v5006_v34  ;;  %v5136_v9 = vmax.f32 %v5074_v4, 0.0 }
 0x5b9   :  { %v5298_v51 = vpop.f32.mrb[252].mxu1 }
 0x5ba   :  { %v5137_v61 = vmax.f32 %v5075_v47, 0.0  ;;  %v5299_v35 = vadd.f32 %v9741_v37, %v5298_v51  ;;  %v7598_v63 = vpop.f32.mrb[253].mxu1 }
 0x5bb   :  { %v5301_v2 = vpop.f32.mrb[254].mxu1 }
 0x5bc   :  { %v5168_v5 = vpack.c.bf16 %v5137_v61, %v5136_v9  ;;  %5521 = vst [vmem:[%s9993_s5 + $0x30] sm:$0xff] %v5299_v35  ;;  %v5302_v20 = vadd.f32 %v9741_v37, %v5301_v2  ;;  %v7599_v10 = vpop.f32.mrb[255].mxu1 }
 0x5be   :  { %5522 = vst [vmem:[%s9993_s5 + $0x38] sm:$0xff] %v5302_v20  ;;  %7705 = vmatmul.mubr.bf16.gmra.mrb[104].mxu1 %v5168_v5 }
 0x5c1   :  { %v5306_v15 = vpop.f32.mrb[0].mxu1 }
 0x5c2   :  { %v5307_v53 = vadd.f32 %v9741_v37, %v5306_v15  ;;  %v7602_v58 = vpop.f32.mrb[1].mxu1 }
 0x5c3   :  { %v5309_v50 = vpop.f32.mrb[2].mxu1 }
 0x5c4   :  { %5523 = vst [vmem:[%s9993_s5 + $0x40] sm:$0xff] %v5307_v53  ;;  %v5310_v40 = vadd.f32 %v9741_v37, %v5309_v50  ;;  %v7603_v7 = vpop.f32.mrb[3].mxu1 }
 0x5c6   :  { %5524 = vst [vmem:[%s9993_s5 + $0x48] sm:$0xff] %v5310_v40 }
 0x5c9   :  { %v5314_v12 = vpop.f32.mrb[4].mxu1 }
 0x5ca   :  { %v5315_v31 = vadd.f32 %v9741_v37, %v5314_v12  ;;  %v7606_v18 = vpop.f32.mrb[5].mxu1 }
 0x5cb   :  { %v5317_v6 = vpop.f32.mrb[6].mxu1 }
 0x5cc   :  { %5525 = vst [vmem:[%s9993_s5 + $0x50] sm:$0xff] %v5315_v31  ;;  %v5318_v30 = vadd.f32 %v9741_v37, %v5317_v6  ;;  %v7607_v8 = vpop.f32.mrb[7].mxu1 }
 0x5ce   :  { %5526 = vst [vmem:[%s9993_s5 + $0x58] sm:$0xff] %v5318_v30 }
 0x5d1   :  { %v5322_v25 = vpop.f32.mrb[8].mxu1 }
 0x5d2   :  { %v5323_v22 = vadd.f32 %v9741_v37, %v5322_v25  ;;  %v7610_v49 = vpop.f32.mrb[9].mxu1 }
 0x5d3   :  { %v5325_v38 = vpop.f32.mrb[10].mxu1 }
 0x5d4   :  { %5527 = vst [vmem:[%s9993_s5 + $0x60] sm:$0xff] %v5323_v22  ;;  %v5326_v43 = vadd.f32 %v9741_v37, %v5325_v38  ;;  %v7611_v48 = vpop.f32.mrb[11].mxu1 }
 0x5d6   :  { %5528 = vst [vmem:[%s9993_s5 + $0x68] sm:$0xff] %v5326_v43 }
 0x5d9   :  { %v5330_v59 = vpop.f32.mrb[12].mxu1 }
 0x5da   :  { %v5331_v26 = vadd.f32 %v9741_v37, %v5330_v59  ;;  %v7614_v16 = vpop.f32.mrb[13].mxu1 }
 0x5db   :  { %v5333_v29 = vpop.f32.mrb[14].mxu1 }
 0x5dc   :  { %5529 = vst [vmem:[%s9993_s5 + $0x70] sm:$0xff] %v5331_v26  ;;  %v5334_v44 = vadd.f32 %v9741_v37, %v5333_v29  ;;  %v7615_v1 = vpop.f32.mrb[15].mxu1 }
 0x5de   :  { %5530 = vst [vmem:[%s9993_s5 + $0x78] sm:$0xff] %v5334_v44 }
 0x5e1   :  { %v5338_v36 = vpop.f32.mrb[16].mxu1 }
 0x5e2   :  { %v5339_v23 = vadd.f32 %v9741_v37, %v5338_v36  ;;  %v7618_v62 = vpop.f32.mrb[17].mxu1 }
 0x5e3   :  { %v5341_v46 = vpop.f32.mrb[18].mxu1 }
 0x5e4   :  { %5531 = vst [vmem:[%s9993_s5 + $0x80] sm:$0xff] %v5339_v23  ;;  %v5342_v21 = vadd.f32 %v9741_v37, %v5341_v46  ;;  %v7619_v39 = vpop.f32.mrb[19].mxu1 }
 0x5e6   :  { %5532 = vst [vmem:[%s9993_s5 + $0x88] sm:$0xff] %v5342_v21 }
 0x5e9   :  { %v5346_v41 = vpop.f32.mrb[20].mxu1 }
 0x5ea   :  { %v5347_v14 = vadd.f32 %v9741_v37, %v5346_v41  ;;  %v7622_v19 = vpop.f32.mrb[21].mxu1 }
 0x5eb   :  { %v5349_v13 = vpop.f32.mrb[22].mxu1 }
 0x5ec   :  { %5533 = vst [vmem:[%s9993_s5 + $0x90] sm:$0xff] %v5347_v14  ;;  %v5350_v56 = vadd.f32 %v9741_v37, %v5349_v13  ;;  %v7623_v32 = vpop.f32.mrb[23].mxu1 }
 0x5ee   :  { %5534 = vst [vmem:[%s9993_s5 + $0x98] sm:$0xff] %v5350_v56 }
 0x5f1   :  { %v5354_v57 = vpop.f32.mrb[24].mxu1 }
 0x5f2   :  { %v5355_v55 = vadd.f32 %v9741_v37, %v5354_v57  ;;  %v7626_v0 = vpop.f32.mrb[25].mxu1 }
 0x5f3   :  { %v5357_v54 = vpop.f32.mrb[26].mxu1 }
 0x5f4   :  { %5535 = vst [vmem:[%s9993_s5 + $0xa0] sm:$0xff] %v5355_v55  ;;  %v5358_v3 = vadd.f32 %v9741_v37, %v5357_v54  ;;  %v7627_v60 = vpop.f32.mrb[27].mxu1 }
 0x5f6   :  { %5536 = vst [vmem:[%s9993_s5 + $0xa8] sm:$0xff] %v5358_v3 }
 0x5f9   :  { %v5362_v17 = vpop.f32.mrb[28].mxu1 }
 0x5fa   :  { %v5363_v11 = vadd.f32 %v9741_v37, %v5362_v17  ;;  %v7630_v42 = vpop.f32.mrb[29].mxu1 }
 0x5fb   :  { %v5365_v52 = vpop.f32.mrb[30].mxu1 }
 0x5fc   :  { %5537 = vst [vmem:[%s9993_s5 + $0xb0] sm:$0xff] %v5363_v11  ;;  %v5366_v28 = vadd.f32 %v9741_v37, %v5365_v52  ;;  %v7631_v33 = vpop.f32.mrb[31].mxu1 }
 0x5fe   :  { %5538 = vst [vmem:[%s9993_s5 + $0xb8] sm:$0xff] %v5366_v28 }
 0x601   :  { %v5370_v24 = vpop.f32.mrb[32].mxu1 }
 0x602   :  { %v5371_v4 = vadd.f32 %v9741_v37, %v5370_v24  ;;  %v7634_v45 = vpop.f32.mrb[33].mxu1 }
 0x603   :  { %v5373_v34 = vpop.f32.mrb[34].mxu1 }
 0x604   :  { %5539 = vst [vmem:[%s9993_s5 + $0xc0] sm:$0xff] %v5371_v4  ;;  %v5374_v27 = vadd.f32 %v9741_v37, %v5373_v34  ;;  %v7635_v47 = vpop.f32.mrb[35].mxu1 }
 0x606   :  { %5540 = vst [vmem:[%s9993_s5 + $0xc8] sm:$0xff] %v5374_v27 }
 0x609   :  { %v5378_v51 = vpop.f32.mrb[36].mxu1 }
 0x60a   :  { %v5379_v9 = vadd.f32 %v9741_v37, %v5378_v51  ;;  %v7638_v61 = vpop.f32.mrb[37].mxu1 }
 0x60b   :  { %v5381_v35 = vpop.f32.mrb[38].mxu1 }
 0x60c   :  { %5541 = vst [vmem:[%s9993_s5 + $0xd0] sm:$0xff] %v5379_v9  ;;  %v5382_v63 = vadd.f32 %v9741_v37, %v5381_v35  ;;  %v7639_v2 = vpop.f32.mrb[39].mxu1 }
 0x60e   :  { %5542 = vst [vmem:[%s9993_s5 + $0xd8] sm:$0xff] %v5382_v63 }
 0x611   :  { %v5386_v5 = vpop.f32.mrb[40].mxu1 }
 0x612   :  { %v7642_v20 = vpop.f32.mrb[41].mxu1 }
 0x613   :  { %v5388_v10 = vpop.f32.mrb[42].mxu1 }
 0x614   :  { %v7643_v15 = vpop.f32.mrb[43].mxu1 }
 0x619   :  { %v5392_v53 = vpop.f32.mrb[44].mxu1 }
 0x61a   :  { %v7646_v58 = vpop.f32.mrb[45].mxu1 }
 0x61b   :  { %v5394_v50 = vpop.f32.mrb[46].mxu1 }
 0x61c   :  { %v7647_v40 = vpop.f32.mrb[47].mxu1 }
 0x621   :  { %v5398_v7 = vpop.f32.mrb[48].mxu1 }
 0x622   :  { %v7650_v12 = vpop.f32.mrb[49].mxu1 }
 0x623   :  { %v5400_v31 = vpop.f32.mrb[50].mxu1 }
 0x624   :  { %v7651_v18 = vpop.f32.mrb[51].mxu1 }
 0x629   :  { %v5404_v6 = vpop.f32.mrb[52].mxu1 }
 0x62a   :  { %v5405_v30 = vadd.f32 %v9741_v37, %v5404_v6  ;;  %v7654_v8 = vpop.f32.mrb[53].mxu1 }
 0x62b   :  { %v5407_v25 = vpop.f32.mrb[54].mxu1 }
 0x62c   :  { %5883 = vst [vmem:[%s9993_s5 + $0xe0] sm:$0xff] %v5405_v30  ;;  %v5408_v22 = vadd.f32 %v9741_v37, %v5407_v25  ;;  %v7655_v49 = vpop.f32.mrb[55].mxu1 }
 0x62e   :  { %5884 = vst [vmem:[%s9993_s5 + $0xe8] sm:$0xff] %v5408_v22 }
 0x631   :  { %v5412_v38 = vpop.f32.mrb[56].mxu1 }
 0x632   :  { %v5413_v43 = vadd.f32 %v9741_v37, %v5412_v38  ;;  %v7658_v48 = vpop.f32.mrb[57].mxu1 }
 0x633   :  { %v5415_v59 = vpop.f32.mrb[58].mxu1 }
 0x634   :  { %5885 = vst [vmem:[%s9993_s5 + $0xf0] sm:$0xff] %v5413_v43  ;;  %v5416_v26 = vadd.f32 %v9741_v37, %v5415_v59  ;;  %v7659_v16 = vpop.f32.mrb[59].mxu1 }
 0x636   :  { %5886 = vst [vmem:[%s9993_s5 + $0xf8] sm:$0xff] %v5416_v26 }
 0x639   :  { %v5420_v29 = vpop.f32.mrb[60].mxu1 }
 0x63a   :  { %v5421_v44 = vadd.f32 %v9741_v37, %v5420_v29  ;;  %v7662_v1 = vpop.f32.mrb[61].mxu1 }
 0x63b   :  { %v5423_v36 = vpop.f32.mrb[62].mxu1 }
 0x63c   :  { %5887 = vst [vmem:[%s9993_s5 + $0x100] sm:$0xff] %v5421_v44  ;;  %v5424_v23 = vadd.f32 %v9741_v37, %v5423_v36  ;;  %v7663_v62 = vpop.f32.mrb[63].mxu1 }
 0x63e   :  { %5888 = vst [vmem:[%s9993_s5 + $0x108] sm:$0xff] %v5424_v23 }
 0x641   :  { %v5428_v46 = vpop.f32.mrb[64].mxu1 }
 0x642   :  { %v5429_v21 = vadd.f32 %v9741_v37, %v5428_v46  ;;  %v7666_v39 = vpop.f32.mrb[65].mxu1 }
 0x643   :  { %v5431_v41 = vpop.f32.mrb[66].mxu1 }
 0x644   :  { %5889 = vst [vmem:[%s9993_s5 + $0x110] sm:$0xff] %v5429_v21  ;;  %v5432_v14 = vadd.f32 %v9741_v37, %v5431_v41  ;;  %v7667_v19 = vpop.f32.mrb[67].mxu1 }
 0x646   :  { %5890 = vst [vmem:[%s9993_s5 + $0x118] sm:$0xff] %v5432_v14 }
 0x649   :  { %v5436_v13 = vpop.f32.mrb[68].mxu1 }
 0x64a   :  { %v5437_v56 = vadd.f32 %v9741_v37, %v5436_v13  ;;  %v7670_v32 = vpop.f32.mrb[69].mxu1 }
 0x64b   :  { %v5439_v57 = vpop.f32.mrb[70].mxu1 }
 0x64c   :  { %5891 = vst [vmem:[%s9993_s5 + $0x120] sm:$0xff] %v5437_v56  ;;  %v5440_v55 = vadd.f32 %v9741_v37, %v5439_v57  ;;  %v7671_v0 = vpop.f32.mrb[71].mxu1 }
 0x64e   :  { %5892 = vst [vmem:[%s9993_s5 + $0x128] sm:$0xff] %v5440_v55 }
 0x651   :  { %v5444_v54 = vpop.f32.mrb[72].mxu1 }
 0x652   :  { %v5445_v3 = vadd.f32 %v9741_v37, %v5444_v54  ;;  %v7674_v60 = vpop.f32.mrb[73].mxu1 }
 0x653   :  { %v5447_v17 = vpop.f32.mrb[74].mxu1 }
 0x654   :  { %5893 = vst [vmem:[%s9993_s5 + $0x130] sm:$0xff] %v5445_v3  ;;  %v5448_v11 = vadd.f32 %v9741_v37, %v5447_v17  ;;  %v7675_v42 = vpop.f32.mrb[75].mxu1 }
 0x656   :  { %5894 = vst [vmem:[%s9993_s5 + $0x138] sm:$0xff] %v5448_v11 }
 0x659   :  { %v5452_v52 = vpop.f32.mrb[76].mxu1 }
 0x65a   :  { %v5453_v28 = vadd.f32 %v9741_v37, %v5452_v52  ;;  %v7678_v33 = vpop.f32.mrb[77].mxu1 }
 0x65b   :  { %v5455_v24 = vpop.f32.mrb[78].mxu1 }
 0x65c   :  { %5895 = vst [vmem:[%s9993_s5 + $0x140] sm:$0xff] %v5453_v28  ;;  %v5456_v4 = vadd.f32 %v9741_v37, %v5455_v24  ;;  %v7679_v45 = vpop.f32.mrb[79].mxu1 }
 0x65e   :  { %5896 = vst [vmem:[%s9993_s5 + $0x148] sm:$0xff] %v5456_v4 }
 0x661   :  { %v5460_v34 = vpop.f32.mrb[80].mxu1 }
 0x662   :  { %v5461_v27 = vadd.f32 %v9741_v37, %v5460_v34  ;;  %v7682_v47 = vpop.f32.mrb[81].mxu1 }
 0x663   :  { %v5463_v51 = vpop.f32.mrb[82].mxu1 }
 0x664   :  { %5897 = vst [vmem:[%s9993_s5 + $0x150] sm:$0xff] %v5461_v27  ;;  %v5464_v9 = vadd.f32 %v9741_v37, %v5463_v51  ;;  %v7683_v61 = vpop.f32.mrb[83].mxu1 }
 0x666   :  { %5898 = vst [vmem:[%s9993_s5 + $0x158] sm:$0xff] %v5464_v9 }
 0x669   :  { %v5468_v35 = vpop.f32.mrb[84].mxu1 }
 0x66a   :  { %v5469_v63 = vadd.f32 %v9741_v37, %v5468_v35  ;;  %v7686_v2 = vpop.f32.mrb[85].mxu1 }
 0x66b   :  { %v5471_v5 = vpop.f32.mrb[86].mxu1 }
 0x66c   :  { %5899 = vst [vmem:[%s9993_s5 + $0x160] sm:$0xff] %v5469_v63  ;;  %v5472_v20 = vadd.f32 %v9741_v37, %v5471_v5  ;;  %v7687_v10 = vpop.f32.mrb[87].mxu1 }
 0x66e   :  { %5900 = vst [vmem:[%s9993_s5 + $0x168] sm:$0xff] %v5472_v20 }
 0x671   :  { %v5476_v15 = vpop.f32.mrb[88].mxu1 }
 0x672   :  { %v5477_v53 = vadd.f32 %v9741_v37, %v5476_v15  ;;  %v7690_v58 = vpop.f32.mrb[89].mxu1 }
 0x673   :  { %v5479_v50 = vpop.f32.mrb[90].mxu1 }
 0x674   :  { %5901 = vst [vmem:[%s9993_s5 + $0x170] sm:$0xff] %v5477_v53  ;;  %v5480_v40 = vadd.f32 %v9741_v37, %v5479_v50  ;;  %v7691_v7 = vpop.f32.mrb[91].mxu1 }
 0x676   :  { %5902 = vst [vmem:[%s9993_s5 + $0x178] sm:$0xff] %v5480_v40 }
 0x679   :  { %v5484_v12 = vpop.f32.mrb[92].mxu1 }
 0x67a   :  { %v5485_v31 = vadd.f32 %v9741_v37, %v5484_v12  ;;  %v7694_v18 = vpop.f32.mrb[93].mxu1 }
 0x67b   :  { %v5487_v6 = vpop.f32.mrb[94].mxu1 }
 0x67c   :  { %5903 = vst [vmem:[%s9993_s5 + $0x180] sm:$0xff] %v5485_v31  ;;  %v5488_v30 = vadd.f32 %v9741_v37, %v5487_v6  ;;  %v7695_v8 = vpop.f32.mrb[95].mxu1 }
 0x67e   :  { %5904 = vst [vmem:[%s9993_s5 + $0x188] sm:$0xff] %v5488_v30 }
 0x681   :  { %v5492_v25 = vpop.f32.mrb[96].mxu1 }
 0x682   :  { %v5493_v22 = vadd.f32 %v9741_v37, %v5492_v25  ;;  %v7698_v49 = vpop.f32.mrb[97].mxu1 }
 0x683   :  { %v5495_v38 = vpop.f32.mrb[98].mxu1 }
 0x684   :  { %5905 = vst [vmem:[%s9993_s5 + $0x190] sm:$0xff] %v5493_v22  ;;  %v5496_v43 = vadd.f32 %v9741_v37, %v5495_v38  ;;  %v7699_v48 = vpop.f32.mrb[99].mxu1 }
 0x686   :  { %5906 = vst [vmem:[%s9993_s5 + $0x198] sm:$0xff] %v5496_v43 }
 0x689   :  { %v5500_v59 = vpop.f32.mrb[100].mxu1 }
 0x68a   :  { %v5501_v26 = vadd.f32 %v9741_v37, %v5500_v59  ;;  %v7702_v16 = vpop.f32.mrb[101].mxu1 }
 0x68b   :  { %v5503_v29 = vpop.f32.mrb[102].mxu1 }
 0x68c   :  { %5907 = vst [vmem:[%s9993_s5 + $0x1a0] sm:$0xff] %v5501_v26  ;;  %v5504_v44 = vadd.f32 %v9741_v37, %v5503_v29  ;;  %v7703_v1 = vpop.f32.mrb[103].mxu1 }
 0x68e   :  { %5908 = vst [vmem:[%s9993_s5 + $0x1a8] sm:$0xff] %v5504_v44 }
 0x691   :  { %v5508_v36 = vpop.f32.mrb[104].mxu1 }
 0x692   :  { %v5509_v23 = vadd.f32 %v9741_v37, %v5508_v36  ;;  %v7706_v62 = vpop.f32.mrb[105].mxu1 }
 0x693   :  { %v5511_v46 = vpop.f32.mrb[106].mxu1 }
 0x694   :  { %5909 = vst [vmem:[%s9993_s5 + $0x1b0] sm:$0xff] %v5509_v23  ;;  %v5512_v21 = vadd.f32 %v9741_v37, %v5511_v46  ;;  %v7707_v39 = vpop.f32.mrb[107].mxu1 }
 0x696   :  { %5910 = vst [vmem:[%s9993_s5 + $0x1b8] sm:$0xff] %v5512_v21 }

</bundles_post_ra>
